<compile_context>
chip_gen: v7x
topology: tpu7x:2x2x1
jax: 0.10.0
libtpu: 0.0.40
codegen_flags: <defaults>
</compile_context>

<pallas_src>
import functools

import jax
import jax.numpy as jnp
from jax.experimental import pallas as pl
from jax.experimental.pallas import tpu as pltpu

LANE = 128      # TPU lane width: channel dims are padded to a multiple of this
SUBLANE = 8     # sublane tile: the padded conv width is padded to a multiple of this


def _round_up(n, m):
    return ((n + m - 1) // m) * m


def _pad_channels(a, c_pad):
    c = a.shape[-1]
    if c == c_pad:
        return a
    return jnp.pad(a, [(0, 0)] * (a.ndim - 1) + [(0, c_pad - c)])


def _vmem_budget_bytes():
    """Per-generation VMEM budget: ~3/4 of physical (64 MiB on v7x, 128 MiB on v5e/v6e)."""
    cap = 64 * 1024 * 1024                      # conservative default (v7x)
    try:
        cap = int(getattr(pltpu.get_tpu_info(), "vmem_capacity_bytes", cap))
    except Exception:
        pass
    return min((cap * 3) // 4, 100 * 1024 * 1024)


def _tile_vmem_bytes(th, w, wp_pad, halo, k, cin_pad, cout_pad, has_res, out_bytes):
    """Rough per-grid-step VMEM footprint for a tile of th output rows."""
    rows = th * wp_pad
    rows_h = (th + 2 * halo) * wp_pad
    b = 2 * th * wp_pad * cin_pad * 2           # main input block, double-buffered bf16
    b += 2 * 2 * halo * wp_pad * cin_pad * 2    # halo-tail block, double-buffered bf16
    b += 2 * k * k * cin_pad * cout_pad * 2     # weights (2 bufs; constant index -> copied once)
    b += rows * cout_pad * 4                    # f32 accumulator scratch
    b += rows_h * cin_pad * 2                   # in-kernel halo concat copy (bf16)
    b += 2 * rows * cout_pad * 4                # matmul product + rolled copy (f32)
    if has_res:
        b += 2 * th * w * cout_pad * 2          # residual, double-buffered bf16
    b += 2 * th * w * cout_pad * out_bytes      # output, double-buffered
    b += 2 * th * w * cout_pad * 4              # epilogue f32 temporaries
    return b + (2 << 20)


def _pick_row_tile(h, w, batch, fits, target_rows=2048):
    """Largest divisor of h whose matmul M (= th*W) hits the target and fits the VMEM budget;
    prefers an even grid length >= 2 so v7x megacore can shard the parallel axis."""
    divisors = sorted((d for d in range(1, h + 1) if h % d == 0), reverse=True)
    candidates = [d for d in divisors if d * w <= target_rows] or [divisors[-1]]
    th = next((d for d in candidates if fits(d)), candidates[-1])
    grid_len = batch * (h // th)
    if grid_len < 2 or grid_len % 2:
        for d in candidates:                    # never shrink below a quarter of the chosen tile
            if d < th and 4 * d >= th and fits(d) and (batch * (h // d)) % 2 == 0:
                th = d
                break
    return th


# ----------------------------------------------------------------------------
# Spherical boundary padding (port of the PyTorch boundary_padding) -- JAX glue
# ----------------------------------------------------------------------------
def boundary_padding_nchw(q, halo_x, halo_y):
    """Direct port of the torch function (operates on the last two dims)."""
    M, N = q.shape[-2], q.shape[-1]
    if M > N:
        q = jnp.concatenate([q[..., -halo_x:, :], q, q[..., :halo_x, :]], axis=-2)
        left = jnp.flip(q[..., :, :halo_y], axis=(-2, -1))
        right = jnp.flip(q[..., :, -halo_y:], axis=(-2, -1))
        q = jnp.concatenate([left, q, right], axis=-1)
    elif M < N:
        q = jnp.concatenate([q[..., :, -halo_y:], q, q[..., :, :halo_y]], axis=-1)
        top = jnp.flip(q[..., :halo_x, :], axis=(-2, -1))
        bot = jnp.flip(q[..., -halo_x:, :], axis=(-2, -1))
        q = jnp.concatenate([top, q, bot], axis=-2)
    else:
        raise AssertionError("boundary_padding requires M != N")
    return q


def _boundary_padding_nhwc(q, halo_x, halo_y):
    """Same spherical padding on NHWC (B, H, W, C): pads axes (1, 2)."""
    assert q.ndim == 4
    M, N = q.shape[1], q.shape[2]
    if M > N:
        q = jnp.concatenate([q[:, -halo_x:], q, q[:, :halo_x]], axis=1)
        left = jnp.flip(q[:, :, :halo_y, :], axis=(1, 2))
        right = jnp.flip(q[:, :, -halo_y:, :], axis=(1, 2))
        q = jnp.concatenate([left, q, right], axis=2)
    elif M < N:
        q = jnp.concatenate([q[:, :, -halo_y:, :], q, q[:, :, :halo_y, :]], axis=2)
        top = jnp.flip(q[:, :halo_x], axis=(1, 2))
        bot = jnp.flip(q[:, -halo_x:], axis=(1, 2))
        q = jnp.concatenate([top, q, bot], axis=1)
    else:
        raise AssertionError("boundary_padding requires H != W")
    return q


# ----------------------------------------------------------------------------
# Pallas kernel: one row tile of sin(conv(omega*x) + b) [+ fused 0.5*(x + inputs)]
# ----------------------------------------------------------------------------
def _siren_conv_kernel(x_ref, tail_ref, w_ref, b_ref, *rest, ksize, tile_h, out_w,
                       wp_pad, has_skip):
    """
    x_ref    : (1, TH, Wp_pad, cin_pad)       bf16 main rows of the halo-padded input
    tail_ref : (1, 2*halo, Wp_pad, cin_pad)   bf16 bottom halo rows of this tile
    w_ref    : (K, K, cin_pad, cout_pad)      bf16 omega-folded conv weights
    b_ref    : (1, cout_pad)                  f32 bias
    res_ref? : (1, TH, W, cout_pad)           bf16 residual (original inputs), skip only
    o_ref    : (1, TH, W, cout_pad)
    acc_ref  : (TH*Wp_pad, cout_pad)          f32 VMEM scratch accumulator
    """
    if has_skip:
        res_ref, o_ref, acc_ref = rest
    else:
        o_ref, acc_ref = rest
    cin_pad = x_ref.shape[-1]
    cout_pad = o_ref.shape[-1]
    rows = tile_h * wp_pad

    # Stitch the overlapping (TH + 2*halo)-row window in VMEM and flatten (H, W) -> rows.
    # Wp_pad % 8 == 0 and cin_pad % 128 == 0 make the reshape / row slices layout no-ops.
    x_full = jnp.concatenate([x_ref[0], tail_ref[0]], axis=0)        # (TH+2h, Wp_pad, cin)
    x2 = x_full.reshape((tile_h + tail_ref.shape[1]) * wp_pad, cin_pad)

    # K*K-tap conv as accumulated MXU matmuls over the full padded width.  The per-kh LHS
    # slice is sublane-aligned (kh*Wp_pad % 8 == 0, no copy); the kw offset is applied to
    # the f32 product with an XLU roll instead of an unaligned VMEM slice.
    for kh in range(ksize):
        lhs = x2[kh * wp_pad:kh * wp_pad + rows, :]                  # aligned, copy-free
        for kw in range(ksize):
            prod = jnp.dot(lhs, w_ref[kh, kw], preferred_element_type=jnp.float32)
            if kw:
                prod = pltpu.roll(prod, shift=rows - kw, axis=0)     # acc[j] += prod[j + kw]
            if kh == 0 and kw == 0:
                acc_ref[...] = prod
            else:
                acc_ref[...] += prod

    # Drop the width padding BEFORE the (VPU-expensive) sine.
    acc = acc_ref[...].reshape(tile_h, wp_pad, cout_pad)[:, :out_w, :]
    y = jnp.sin(acc + b_ref[...])                                    # sin(conv(omega*x) + b)
    if has_skip:
        y = 0.5 * (y + res_ref[0].astype(jnp.float32))               # 0.5 * (x + inputs)
    o_ref[0] = y.astype(o_ref.dtype)


def _siren_conv_layer(x_nhwc, weight, bias, omega, *, residual=None,
                      compute_dtype=jnp.bfloat16, out_dtype=jnp.float32,
                      target_rows=2048):
    """One SIRENLayer (spherical pad -> valid conv -> sin); optionally fuses the block's
    0.5*(x + inputs) residual.  x_nhwc: (B, H, W, C) with C possibly lane-padded."""
    B, H, W, Cx = x_nhwc.shape
    Co, Ci, K, K2 = weight.shape
    assert K == K2 and K % 2 == 1 and K >= 3 and Ci <= Cx
    halo = (K - 1) // 2

    cin_pad = _round_up(Cx, LANE)
    cout_pad = _round_up(Co, LANE)
    Wp = W + 2 * halo
    Wp_pad = _round_up(Wp, SUBLANE)

    # ---- plain-JAX glue: spherical halo + channel/width alignment padding -------------
    x = _pad_channels(x_nhwc, cin_pad).astype(compute_dtype)
    xp = _boundary_padding_nhwc(x, halo, halo)                       # (B, H+2h, W+2h, cin_pad)
    xp = jnp.pad(xp, ((0, 0), (0, 0), (0, Wp_pad - Wp), (0, 0)))     # width -> sublane multiple

    budget = _vmem_budget_bytes()
    out_bytes = jnp.dtype(out_dtype).itemsize

    def fits(th):
        return _tile_vmem_bytes(th, W, Wp_pad, halo, K, cin_pad, cout_pad,
                                residual is not None, out_bytes) <= budget

    TH = _pick_row_tile(H, W, B, fits, target_rows=target_rows)
    nH = H // TH

    # Bottom halo rows of every tile (only 2*halo rows per tile): lets the kernel assemble the
    # overlapping window in VMEM without materializing overlapping activation copies in HBM.
    tail = jnp.concatenate(
        [xp[:, (t + 1) * TH:(t + 1) * TH + 2 * halo] for t in range(nH)], axis=1)

    # conv weight (Co, Ci, K, K) -> (K, K, Ci, Co); fold omega (conv(omega*x) == (omega*w)*x);
    # zero-pad channels to lane multiples; cast for the MXU.
    wk = jnp.transpose(weight, (2, 3, 1, 0)).astype(jnp.float32) * omega
    wk = jnp.pad(wk, ((0, 0), (0, 0), (0, cin_pad - Ci), (0, cout_pad - Co)))
    wk = wk.astype(compute_dtype)
    bk = jnp.pad(bias.astype(jnp.float32), (0, cout_pad - Co)).reshape(1, cout_pad)

    args = [xp, tail, wk, bk]
    in_specs = [
        pl.BlockSpec((1, TH, Wp_pad, cin_pad), lambda b, t: (b, t, 0, 0)),
        pl.BlockSpec((1, 2 * halo, Wp_pad, cin_pad), lambda b, t: (b, t, 0, 0)),
        pl.BlockSpec((K, K, cin_pad, cout_pad), lambda b, t: (0, 0, 0, 0)),
        pl.BlockSpec((1, cout_pad), lambda b, t: (0, 0)),
    ]
    if residual is not None:
        # bf16 residual: halves the largest per-step DMA of layer 2; epilogue stays f32.
        args.append(_pad_channels(residual, cout_pad).astype(compute_dtype))
        in_specs.append(pl.BlockSpec((1, TH, W, cout_pad), lambda b, t: (b, t, 0, 0)))

    kernel = functools.partial(
        _siren_conv_kernel, ksize=K, tile_h=TH, out_w=W, wp_pad=Wp_pad,
        has_skip=residual is not None)

    return pl.pallas_call(
        kernel,
        grid=(B, nH),
        in_specs=in_specs,
        out_specs=pl.BlockSpec((1, TH, W, cout_pad), lambda b, t: (b, t, 0, 0)),
        out_shape=jax.ShapeDtypeStruct((B, H, W, cout_pad), out_dtype),
        scratch_shapes=[pltpu.VMEM((TH * Wp_pad, cout_pad), jnp.float32)],
        compiler_params=pltpu.CompilerParams(
            dimension_semantics=("parallel", "parallel"),   # batch x row tiles; v7x megacore
            vmem_limit_bytes=budget),
    )(*args)


# ----------------------------------------------------------------------------
# SIRENResBlock forward
# ----------------------------------------------------------------------------
def siren_res_block_forward(x_nchw, params, *, omega, kernel_size,
                            skip_connection=True, compute_dtype=jnp.bfloat16):
    """x_nchw: (B, C, H, W) float32 with H != W (required by boundary_padding)."""
    w1, b1, w2, b2 = params
    assert w1.shape[-1] == kernel_size and w2.shape[-1] == kernel_size
    B, Cin, H, W = x_nchw.shape
    Cout = w2.shape[0]
    if skip_connection and Cout != Cin:
        raise ValueError("skip_connection requires outfeature == infeature")

    x_nhwc = jnp.transpose(x_nchw, (0, 2, 3, 1)).astype(jnp.float32)  # NCHW -> NHWC once

    # layer 1: sin(conv1(omega * pad(x))).  Output stays lane-padded bf16 so layer 2
    # consumes it with no repacking and half the HBM traffic.
    y1 = _siren_conv_layer(x_nhwc, w1, b1, omega, residual=None,
                           compute_dtype=compute_dtype, out_dtype=compute_dtype)
    # layer 2: sin(conv2(omega * pad(y1))) with the 0.5*(x + inputs) skip fused in.
    y2 = _siren_conv_layer(y1, w2, b2, omega,
                           residual=x_nhwc if skip_connection else None,
                           compute_dtype=compute_dtype, out_dtype=jnp.float32)

    out = y2[..., :Cout]                                     # drop lane padding
    return jnp.transpose(out, (0, 3, 1, 2))                  # NHWC -> NCHW once


# ----------------------------------------------------------------------------
# Pure-JAX/XLA reference (direct port of the PyTorch forward, NCHW)
# ----------------------------------------------------------------------------
def reference_forward(x_nchw, params, *, omega, kernel_size, skip_connection,
                      compute_dtype=jnp.float32):
    """With compute_dtype=bfloat16 this matches the Pallas path's rounding points
    (bf16 activations/weights, f32 accumulation)."""
    w1, b1, w2, b2 = params
    halo = (kernel_size - 1) // 2

    def siren_layer(z, w, b):
        zp = boundary_padding_nchw(z, halo, halo).astype(compute_dtype)
        weff = (w.astype(jnp.float32) * omega).astype(compute_dtype)
        y = jax.lax.conv_general_dilated(
            zp, weff, window_strides=(1, 1), padding="VALID",
            dimension_numbers=("NCHW", "OIHW", "NCHW"),
            preferred_element_type=jnp.float32,
            precision=jax.lax.Precision.HIGHEST)
        return jnp.sin(y + b.astype(jnp.float32).reshape(1, -1, 1, 1))

    y = siren_layer(x_nchw, w1, b1)
    y = siren_layer(y, w2, b2)
    return 0.5 * (y + x_nchw) if skip_connection else y


if __name__ == "__main__":
    key = jax.random.PRNGKey(0)
    B, C, H, W, K = 2, 4, 16, 8, 3      # H != W is required by boundary_padding
    OMEGA = 30.0
    k1, k2, k3, k4, k5 = jax.random.split(key, 5)

    x = jax.random.normal(k1, (B, C, H, W), jnp.float32)

    # SIREN hidden-layer init (as in the PyTorch module)
    wb = (6.0 / C) ** 0.5 / OMEGA
    bb = 1.0 / C ** 0.5
    w1 = jax.random.uniform(k2, (C, C, K, K), jnp.float32, -wb, wb)
    b1 = jax.random.uniform(k3, (C,), jnp.float32, -bb, bb)
    w2 = jax.random.uniform(k4, (C, C, K, K), jnp.float32, -wb, wb)
    b2 = jax.random.uniform(k5, (C,), jnp.float32, -bb, bb)
    params = (w1, b1, w2, b2)

    fwd = jax.jit(functools.partial(siren_res_block_forward, omega=OMEGA,
                                    kernel_size=K, skip_connection=True))
    out = jax.block_until_ready(fwd(x, params))
    assert out.shape == (B, C, H, W) and out.dtype == jnp.float32

    # tight check vs an XLA reference with matched bf16 rounding points,
    # loose check vs the exact f32 reference (documents bf16-MXU deviation).
    ref_bf16 = reference_forward(x, params, omega=OMEGA, kernel_size=K,
                                 skip_connection=True, compute_dtype=jnp.bfloat16)
    ref_f32 = reference_forward(x, params, omega=OMEGA, kernel_size=K,
                                skip_connection=True, compute_dtype=jnp.float32)
    assert float(jnp.max(jnp.abs(out - ref_bf16))) < 5e-2
    assert float(jnp.max(jnp.abs(out - ref_f32))) < 3e-1

    print("KERNEL_OK")
</pallas_src>

<mosaic_0001>
module attributes {stable_mosaic.version = 11 : i64} {
  func.func @_siren_conv_kernel(%arg0: i32, %arg1: i32, %arg2: memref<1x16x16x128xbf16, #tpu.memory_space<vmem>>, %arg3: memref<1x2x16x128xbf16, #tpu.memory_space<vmem>>, %arg4: memref<3x3x128x128xbf16, #tpu.memory_space<vmem>>, %arg5: memref<1x128xf32, #tpu.memory_space<vmem>>, %arg6: memref<1x16x8x128xbf16, #tpu.memory_space<vmem>>, %arg7: memref<256x128xf32, #tpu.memory_space<vmem>>) attributes {dimension_semantics = [#tpu.dimension_semantics<parallel>, #tpu.dimension_semantics<parallel>], iteration_bounds = array<i64: 2, 1>, scalar_prefetch = 0 : i64, scratch_operands = 1 : i64, tpu.core_type = #tpu.core_type<tc>, window_params = [{transform_indices = @transform_0, window_bounds = array<i64: 1, 16, 16, 128>}, {transform_indices = @transform_1, window_bounds = array<i64: 1, 2, 16, 128>}, {pipeline_mode = #tpu.pipeline_mode<synchronous>, transform_indices = @transform_2, window_bounds = array<i64: 3, 3, 128, 128>}, {pipeline_mode = #tpu.pipeline_mode<synchronous>, transform_indices = @transform_3, window_bounds = array<i64: 1, 128>}, {transform_indices = @transform_4, window_bounds = array<i64: 1, 16, 8, 128>}]} {
    %c0 = arith.constant 0 : index
    %c0_0 = arith.constant 0 : index
    %c0_1 = arith.constant 0 : index
    %c0_2 = arith.constant 0 : index
    %0 = vector.load %arg2[%c0, %c0_0, %c0_1, %c0_2] : memref<1x16x16x128xbf16, #tpu.memory_space<vmem>>, vector<1x16x16x128xbf16>
    %1 = vector.shape_cast %0 : vector<1x16x16x128xbf16> to vector<16x16x128xbf16>
    %c0_3 = arith.constant 0 : index
    %c0_4 = arith.constant 0 : index
    %c0_5 = arith.constant 0 : index
    %c0_6 = arith.constant 0 : index
    %2 = vector.load %arg3[%c0_3, %c0_4, %c0_5, %c0_6] : memref<1x2x16x128xbf16, #tpu.memory_space<vmem>>, vector<1x2x16x128xbf16>
    %3 = vector.shape_cast %2 : vector<1x2x16x128xbf16> to vector<2x16x128xbf16>
    %4 = tpu.concatenate %1, %3 in 0 : vector<16x16x128xbf16>, vector<2x16x128xbf16> -> vector<18x16x128xbf16>
    %5 = vector.shape_cast %4 : vector<18x16x128xbf16> to vector<288x128xbf16>
    %6 = vector.extract_strided_slice %5 {offsets = [0, 0], sizes = [256, 128], strides = [1, 1]} : vector<288x128xbf16> to vector<256x128xbf16>
    %c0_7 = arith.constant 0 : index
    %c0_8 = arith.constant 0 : index
    %c0_9 = arith.constant 0 : index
    %c0_10 = arith.constant 0 : index
    %7 = vector.load %arg4[%c0_7, %c0_8, %c0_9, %c0_10] : memref<3x3x128x128xbf16, #tpu.memory_space<vmem>>, vector<1x1x128x128xbf16>
    %8 = vector.shape_cast %7 : vector<1x1x128x128xbf16> to vector<128x128xbf16>
    %cst = arith.constant dense<0.000000e+00> : vector<256x128xf32>
    %9 = tpu.matmul %6, %8, %cst {dimension_numbers = #tpu.dot_dimension_numbers<[1], [0], [0], [1], [0, 0, 1, 1], [], []>} : vector<256x128xbf16>, vector<128x128xbf16>, vector<256x128xf32> -> vector<256x128xf32>
    %c0_11 = arith.constant 0 : index
    %c0_12 = arith.constant 0 : index
    %10 = vector.load %arg7[%c0_11, %c0_12] : memref<256x128xf32, #tpu.memory_space<vmem>>, vector<256x128xf32>
    tpu.vector_store %arg7[%c0_11, %c0_12], %9 {strides = array<i32>} : memref<256x128xf32, #tpu.memory_space<vmem>>, vector<256x128xf32>,
    %c0_13 = arith.constant 0 : index
    %c1 = arith.constant 1 : index
    %c0_14 = arith.constant 0 : index
    %c0_15 = arith.constant 0 : index
    %11 = vector.load %arg4[%c0_13, %c1, %c0_14, %c0_15] : memref<3x3x128x128xbf16, #tpu.memory_space<vmem>>, vector<1x1x128x128xbf16>
    %12 = vector.shape_cast %11 : vector<1x1x128x128xbf16> to vector<128x128xbf16>
    %cst_16 = arith.constant dense<0.000000e+00> : vector<256x128xf32>
    %13 = tpu.matmul %6, %12, %cst_16 {dimension_numbers = #tpu.dot_dimension_numbers<[1], [0], [0], [1], [0, 0, 1, 1], [], []>} : vector<256x128xbf16>, vector<128x128xbf16>, vector<256x128xf32> -> vector<256x128xf32>
    %c255_i32 = arith.constant 255 : i32
    %14 = tpu.dynamic_rotate %13 by %c255_i32 dim 0 : vector<256x128xf32>, i32 -> vector<256x128xf32>
    %c0_17 = arith.constant 0 : index
    %c0_18 = arith.constant 0 : index
    %15 = vector.load %arg7[%c0_17, %c0_18] : memref<256x128xf32, #tpu.memory_space<vmem>>, vector<256x128xf32>
    %16 = arith.addf %15, %14 : vector<256x128xf32>
    %c0_19 = arith.constant 0 : index
    %c0_20 = arith.constant 0 : index
    %17 = vector.load %arg7[%c0_19, %c0_20] : memref<256x128xf32, #tpu.memory_space<vmem>>, vector<256x128xf32>
    tpu.vector_store %arg7[%c0_19, %c0_20], %16 {strides = array<i32>} : memref<256x128xf32, #tpu.memory_space<vmem>>, vector<256x128xf32>,
    %c0_21 = arith.constant 0 : index
    %c2 = arith.constant 2 : index
    %c0_22 = arith.constant 0 : index
    %c0_23 = arith.constant 0 : index
    %18 = vector.load %arg4[%c0_21, %c2, %c0_22, %c0_23] : memref<3x3x128x128xbf16, #tpu.memory_space<vmem>>, vector<1x1x128x128xbf16>
    %19 = vector.shape_cast %18 : vector<1x1x128x128xbf16> to vector<128x128xbf16>
    %cst_24 = arith.constant dense<0.000000e+00> : vector<256x128xf32>
    %20 = tpu.matmul %6, %19, %cst_24 {dimension_numbers = #tpu.dot_dimension_numbers<[1], [0], [0], [1], [0, 0, 1, 1], [], []>} : vector<256x128xbf16>, vector<128x128xbf16>, vector<256x128xf32> -> vector<256x128xf32>
    %c254_i32 = arith.constant 254 : i32
    %21 = tpu.dynamic_rotate %20 by %c254_i32 dim 0 : vector<256x128xf32>, i32 -> vector<256x128xf32>
    %c0_25 = arith.constant 0 : index
    %c0_26 = arith.constant 0 : index
    %22 = vector.load %arg7[%c0_25, %c0_26] : memref<256x128xf32, #tpu.memory_space<vmem>>, vector<256x128xf32>
    %23 = arith.addf %22, %21 : vector<256x128xf32>
    %c0_27 = arith.constant 0 : index
    %c0_28 = arith.constant 0 : index
    %24 = vector.load %arg7[%c0_27, %c0_28] : memref<256x128xf32, #tpu.memory_space<vmem>>, vector<256x128xf32>
    tpu.vector_store %arg7[%c0_27, %c0_28], %23 {strides = array<i32>} : memref<256x128xf32, #tpu.memory_space<vmem>>, vector<256x128xf32>,
    %25 = vector.extract_strided_slice %5 {offsets = [16, 0], sizes = [256, 128], strides = [1, 1]} : vector<288x128xbf16> to vector<256x128xbf16>
    %c1_29 = arith.constant 1 : index
    %c0_30 = arith.constant 0 : index
    %c0_31 = arith.constant 0 : index
    %c0_32 = arith.constant 0 : index
    %26 = vector.load %arg4[%c1_29, %c0_30, %c0_31, %c0_32] : memref<3x3x128x128xbf16, #tpu.memory_space<vmem>>, vector<1x1x128x128xbf16>
    %27 = vector.shape_cast %26 : vector<1x1x128x128xbf16> to vector<128x128xbf16>
    %cst_33 = arith.constant dense<0.000000e+00> : vector<256x128xf32>
    %28 = tpu.matmul %25, %27, %cst_33 {dimension_numbers = #tpu.dot_dimension_numbers<[1], [0], [0], [1], [0, 0, 1, 1], [], []>} : vector<256x128xbf16>, vector<128x128xbf16>, vector<256x128xf32> -> vector<256x128xf32>
    %c0_34 = arith.constant 0 : index
    %c0_35 = arith.constant 0 : index
    %29 = vector.load %arg7[%c0_34, %c0_35] : memref<256x128xf32, #tpu.memory_space<vmem>>, vector<256x128xf32>
    %30 = arith.addf %29, %28 : vector<256x128xf32>
    %c0_36 = arith.constant 0 : index
    %c0_37 = arith.constant 0 : index
    %31 = vector.load %arg7[%c0_36, %c0_37] : memref<256x128xf32, #tpu.memory_space<vmem>>, vector<256x128xf32>
    tpu.vector_store %arg7[%c0_36, %c0_37], %30 {strides = array<i32>} : memref<256x128xf32, #tpu.memory_space<vmem>>, vector<256x128xf32>,
    %c1_38 = arith.constant 1 : index
    %c1_39 = arith.constant 1 : index
    %c0_40 = arith.constant 0 : index
    %c0_41 = arith.constant 0 : index
    %32 = vector.load %arg4[%c1_38, %c1_39, %c0_40, %c0_41] : memref<3x3x128x128xbf16, #tpu.memory_space<vmem>>, vector<1x1x128x128xbf16>
    %33 = vector.shape_cast %32 : vector<1x1x128x128xbf16> to vector<128x128xbf16>
    %cst_42 = arith.constant dense<0.000000e+00> : vector<256x128xf32>
    %34 = tpu.matmul %25, %33, %cst_42 {dimension_numbers = #tpu.dot_dimension_numbers<[1], [0], [0], [1], [0, 0, 1, 1], [], []>} : vector<256x128xbf16>, vector<128x128xbf16>, vector<256x128xf32> -> vector<256x128xf32>
    %c255_i32_43 = arith.constant 255 : i32
    %35 = tpu.dynamic_rotate %34 by %c255_i32_43 dim 0 : vector<256x128xf32>, i32 -> vector<256x128xf32>
    %c0_44 = arith.constant 0 : index
    %c0_45 = arith.constant 0 : index
    %36 = vector.load %arg7[%c0_44, %c0_45] : memref<256x128xf32, #tpu.memory_space<vmem>>, vector<256x128xf32>
    %37 = arith.addf %36, %35 : vector<256x128xf32>
    %c0_46 = arith.constant 0 : index
    %c0_47 = arith.constant 0 : index
    %38 = vector.load %arg7[%c0_46, %c0_47] : memref<256x128xf32, #tpu.memory_space<vmem>>, vector<256x128xf32>
    tpu.vector_store %arg7[%c0_46, %c0_47], %37 {strides = array<i32>} : memref<256x128xf32, #tpu.memory_space<vmem>>, vector<256x128xf32>,
    %c1_48 = arith.constant 1 : index
    %c2_49 = arith.constant 2 : index
    %c0_50 = arith.constant 0 : index
    %c0_51 = arith.constant 0 : index
    %39 = vector.load %arg4[%c1_48, %c2_49, %c0_50, %c0_51] : memref<3x3x128x128xbf16, #tpu.memory_space<vmem>>, vector<1x1x128x128xbf16>
    %40 = vector.shape_cast %39 : vector<1x1x128x128xbf16> to vector<128x128xbf16>
    %cst_52 = arith.constant dense<0.000000e+00> : vector<256x128xf32>
    %41 = tpu.matmul %25, %40, %cst_52 {dimension_numbers = #tpu.dot_dimension_numbers<[1], [0], [0], [1], [0, 0, 1, 1], [], []>} : vector<256x128xbf16>, vector<128x128xbf16>, vector<256x128xf32> -> vector<256x128xf32>
    %c254_i32_53 = arith.constant 254 : i32
    %42 = tpu.dynamic_rotate %41 by %c254_i32_53 dim 0 : vector<256x128xf32>, i32 -> vector<256x128xf32>
    %c0_54 = arith.constant 0 : index
    %c0_55 = arith.constant 0 : index
    %43 = vector.load %arg7[%c0_54, %c0_55] : memref<256x128xf32, #tpu.memory_space<vmem>>, vector<256x128xf32>
    %44 = arith.addf %43, %42 : vector<256x128xf32>
    %c0_56 = arith.constant 0 : index
    %c0_57 = arith.constant 0 : index
    %45 = vector.load %arg7[%c0_56, %c0_57] : memref<256x128xf32, #tpu.memory_space<vmem>>, vector<256x128xf32>
    tpu.vector_store %arg7[%c0_56, %c0_57], %44 {strides = array<i32>} : memref<256x128xf32, #tpu.memory_space<vmem>>, vector<256x128xf32>,
    %46 = vector.extract_strided_slice %5 {offsets = [32, 0], sizes = [256, 128], strides = [1, 1]} : vector<288x128xbf16> to vector<256x128xbf16>
    %c2_58 = arith.constant 2 : index
    %c0_59 = arith.constant 0 : index
    %c0_60 = arith.constant 0 : index
    %c0_61 = arith.constant 0 : index
    %47 = vector.load %arg4[%c2_58, %c0_59, %c0_60, %c0_61] : memref<3x3x128x128xbf16, #tpu.memory_space<vmem>>, vector<1x1x128x128xbf16>
    %48 = vector.shape_cast %47 : vector<1x1x128x128xbf16> to vector<128x128xbf16>
    %cst_62 = arith.constant dense<0.000000e+00> : vector<256x128xf32>
    %49 = tpu.matmul %46, %48, %cst_62 {dimension_numbers = #tpu.dot_dimension_numbers<[1], [0], [0], [1], [0, 0, 1, 1], [], []>} : vector<256x128xbf16>, vector<128x128xbf16>, vector<256x128xf32> -> vector<256x128xf32>
    %c0_63 = arith.constant 0 : index
    %c0_64 = arith.constant 0 : index
    %50 = vector.load %arg7[%c0_63, %c0_64] : memref<256x128xf32, #tpu.memory_space<vmem>>, vector<256x128xf32>
    %51 = arith.addf %50, %49 : vector<256x128xf32>
    %c0_65 = arith.constant 0 : index
    %c0_66 = arith.constant 0 : index
    %52 = vector.load %arg7[%c0_65, %c0_66] : memref<256x128xf32, #tpu.memory_space<vmem>>, vector<256x128xf32>
    tpu.vector_store %arg7[%c0_65, %c0_66], %51 {strides = array<i32>} : memref<256x128xf32, #tpu.memory_space<vmem>>, vector<256x128xf32>,
    %c2_67 = arith.constant 2 : index
    %c1_68 = arith.constant 1 : index
    %c0_69 = arith.constant 0 : index
    %c0_70 = arith.constant 0 : index
    %53 = vector.load %arg4[%c2_67, %c1_68, %c0_69, %c0_70] : memref<3x3x128x128xbf16, #tpu.memory_space<vmem>>, vector<1x1x128x128xbf16>
    %54 = vector.shape_cast %53 : vector<1x1x128x128xbf16> to vector<128x128xbf16>
    %cst_71 = arith.constant dense<0.000000e+00> : vector<256x128xf32>
    %55 = tpu.matmul %46, %54, %cst_71 {dimension_numbers = #tpu.dot_dimension_numbers<[1], [0], [0], [1], [0, 0, 1, 1], [], []>} : vector<256x128xbf16>, vector<128x128xbf16>, vector<256x128xf32> -> vector<256x128xf32>
    %c255_i32_72 = arith.constant 255 : i32
    %56 = tpu.dynamic_rotate %55 by %c255_i32_72 dim 0 : vector<256x128xf32>, i32 -> vector<256x128xf32>
    %c0_73 = arith.constant 0 : index
    %c0_74 = arith.constant 0 : index
    %57 = vector.load %arg7[%c0_73, %c0_74] : memref<256x128xf32, #tpu.memory_space<vmem>>, vector<256x128xf32>
    %58 = arith.addf %57, %56 : vector<256x128xf32>
    %c0_75 = arith.constant 0 : index
    %c0_76 = arith.constant 0 : index
    %59 = vector.load %arg7[%c0_75, %c0_76] : memref<256x128xf32, #tpu.memory_space<vmem>>, vector<256x128xf32>
    tpu.vector_store %arg7[%c0_75, %c0_76], %58 {strides = array<i32>} : memref<256x128xf32, #tpu.memory_space<vmem>>, vector<256x128xf32>,
    %c2_77 = arith.constant 2 : index
    %c2_78 = arith.constant 2 : index
    %c0_79 = arith.constant 0 : index
    %c0_80 = arith.constant 0 : index
    %60 = vector.load %arg4[%c2_77, %c2_78, %c0_79, %c0_80] : memref<3x3x128x128xbf16, #tpu.memory_space<vmem>>, vector<1x1x128x128xbf16>
    %61 = vector.shape_cast %60 : vector<1x1x128x128xbf16> to vector<128x128xbf16>
    %cst_81 = arith.constant dense<0.000000e+00> : vector<256x128xf32>
    %62 = tpu.matmul %46, %61, %cst_81 {dimension_numbers = #tpu.dot_dimension_numbers<[1], [0], [0], [1], [0, 0, 1, 1], [], []>} : vector<256x128xbf16>, vector<128x128xbf16>, vector<256x128xf32> -> vector<256x128xf32>
    %c254_i32_82 = arith.constant 254 : i32
    %63 = tpu.dynamic_rotate %62 by %c254_i32_82 dim 0 : vector<256x128xf32>, i32 -> vector<256x128xf32>
    %c0_83 = arith.constant 0 : index
    %c0_84 = arith.constant 0 : index
    %64 = vector.load %arg7[%c0_83, %c0_84] : memref<256x128xf32, #tpu.memory_space<vmem>>, vector<256x128xf32>
    %65 = arith.addf %64, %63 : vector<256x128xf32>
    %c0_85 = arith.constant 0 : index
    %c0_86 = arith.constant 0 : index
    %66 = vector.load %arg7[%c0_85, %c0_86] : memref<256x128xf32, #tpu.memory_space<vmem>>, vector<256x128xf32>
    tpu.vector_store %arg7[%c0_85, %c0_86], %65 {strides = array<i32>} : memref<256x128xf32, #tpu.memory_space<vmem>>, vector<256x128xf32>,
    %c0_87 = arith.constant 0 : index
    %c0_88 = arith.constant 0 : index
    %67 = vector.load %arg7[%c0_87, %c0_88] : memref<256x128xf32, #tpu.memory_space<vmem>>, vector<256x128xf32>
    %68 = vector.shape_cast %67 : vector<256x128xf32> to vector<16x16x128xf32>
    %69 = vector.extract_strided_slice %68 {offsets = [0, 0, 0], sizes = [16, 8, 128], strides = [1, 1, 1]} : vector<16x16x128xf32> to vector<16x8x128xf32>
    %c0_89 = arith.constant 0 : index
    %c0_90 = arith.constant 0 : index
    %70 = vector.load %arg5[%c0_89, %c0_90] : memref<1x128xf32, #tpu.memory_space<vmem>>, vector<1x128xf32>
    %71 = vector.shape_cast %70 : vector<1x128xf32> to vector<1x1x128xf32>
    %72 = vector.broadcast %71 : vector<1x1x128xf32> to vector<16x8x128xf32>
    %73 = arith.addf %69, %72 : vector<16x8x128xf32>
    %74 = math.sin %73 : vector<16x8x128xf32>
    %75 = arith.truncf %74 : vector<16x8x128xf32> to vector<16x8x128xbf16>
    %c0_91 = arith.constant 0 : index
    %c0_92 = arith.constant 0 : index
    %c0_93 = arith.constant 0 : index
    %c0_94 = arith.constant 0 : index
    %76 = vector.load %arg6[%c0_91, %c0_92, %c0_93, %c0_94] : memref<1x16x8x128xbf16, #tpu.memory_space<vmem>>, vector<1x16x8x128xbf16>
    %77 = vector.shape_cast %76 : vector<1x16x8x128xbf16> to vector<16x8x128xbf16>
    %78 = vector.shape_cast %75 : vector<16x8x128xbf16> to vector<1x16x8x128xbf16>
    tpu.vector_store %arg6[%c0_91, %c0_92, %c0_93, %c0_94], %78 {strides = array<i32>} : memref<1x16x8x128xbf16, #tpu.memory_space<vmem>>, vector<1x16x8x128xbf16>,
    return
  }
  func.func @transform_0(%arg0: i32, %arg1: i32) -> (i32, i32, i32, i32) {
    %c0_i32 = arith.constant 0 : i32
    %c0_i32_0 = arith.constant 0 : i32
    %c0_i32_1 = arith.constant 0 : i32
    return %arg0, %arg1, %c0_i32, %c0_i32_0 : i32, i32, i32, i32
  }
  func.func @transform_1(%arg0: i32, %arg1: i32) -> (i32, i32, i32, i32) {
    %c0_i32 = arith.constant 0 : i32
    %c0_i32_0 = arith.constant 0 : i32
    %c0_i32_1 = arith.constant 0 : i32
    return %arg0, %arg1, %c0_i32, %c0_i32_0 : i32, i32, i32, i32
  }
  func.func @transform_2(%arg0: i32, %arg1: i32) -> (i32, i32, i32, i32) {
    %c0_i32 = arith.constant 0 : i32
    %c0_i32_0 = arith.constant 0 : i32
    %c0_i32_1 = arith.constant 0 : i32
    %c0_i32_2 = arith.constant 0 : i32
    %c0_i32_3 = arith.constant 0 : i32
    return %c0_i32, %c0_i32_0, %c0_i32_1, %c0_i32_2 : i32, i32, i32, i32
  }
  func.func @transform_3(%arg0: i32, %arg1: i32) -> (i32, i32) {
    %c0_i32 = arith.constant 0 : i32
    %c0_i32_0 = arith.constant 0 : i32
    %c0_i32_1 = arith.constant 0 : i32
    return %c0_i32, %c0_i32_0 : i32, i32
  }
  func.func @transform_4(%arg0: i32, %arg1: i32) -> (i32, i32, i32, i32) {
    %c0_i32 = arith.constant 0 : i32
    %c0_i32_0 = arith.constant 0 : i32
    %c0_i32_1 = arith.constant 0 : i32
    return %arg0, %arg1, %c0_i32, %c0_i32_0 : i32, i32, i32, i32
  }
}

module attributes {stable_mosaic.version = 11 : i64} {
  func.func @_siren_conv_kernel(%arg0: i32, %arg1: i32, %arg2: memref<1x16x16x128xbf16, #tpu.memory_space<vmem>>, %arg3: memref<1x2x16x128xbf16, #tpu.memory_space<vmem>>, %arg4: memref<3x3x128x128xbf16, #tpu.memory_space<vmem>>, %arg5: memref<1x128xf32, #tpu.memory_space<vmem>>, %arg6: memref<1x16x8x128xbf16, #tpu.memory_space<vmem>>, %arg7: memref<1x16x8x128xf32, #tpu.memory_space<vmem>>, %arg8: memref<256x128xf32, #tpu.memory_space<vmem>>) attributes {dimension_semantics = [#tpu.dimension_semantics<parallel>, #tpu.dimension_semantics<parallel>], iteration_bounds = array<i64: 2, 1>, scalar_prefetch = 0 : i64, scratch_operands = 1 : i64, tpu.core_type = #tpu.core_type<tc>, window_params = [{transform_indices = @transform_0, window_bounds = array<i64: 1, 16, 16, 128>}, {transform_indices = @transform_1, window_bounds = array<i64: 1, 2, 16, 128>}, {pipeline_mode = #tpu.pipeline_mode<synchronous>, transform_indices = @transform_2, window_bounds = array<i64: 3, 3, 128, 128>}, {pipeline_mode = #tpu.pipeline_mode<synchronous>, transform_indices = @transform_3, window_bounds = array<i64: 1, 128>}, {transform_indices = @transform_4, window_bounds = array<i64: 1, 16, 8, 128>}, {transform_indices = @transform_5, window_bounds = array<i64: 1, 16, 8, 128>}]} {
    %c0 = arith.constant 0 : index
    %c0_0 = arith.constant 0 : index
    %c0_1 = arith.constant 0 : index
    %c0_2 = arith.constant 0 : index
    %0 = vector.load %arg2[%c0, %c0_0, %c0_1, %c0_2] : memref<1x16x16x128xbf16, #tpu.memory_space<vmem>>, vector<1x16x16x128xbf16>
    %1 = vector.shape_cast %0 : vector<1x16x16x128xbf16> to vector<16x16x128xbf16>
    %c0_3 = arith.constant 0 : index
    %c0_4 = arith.constant 0 : index
    %c0_5 = arith.constant 0 : index
    %c0_6 = arith.constant 0 : index
    %2 = vector.load %arg3[%c0_3, %c0_4, %c0_5, %c0_6] : memref<1x2x16x128xbf16, #tpu.memory_space<vmem>>, vector<1x2x16x128xbf16>
    %3 = vector.shape_cast %2 : vector<1x2x16x128xbf16> to vector<2x16x128xbf16>
    %4 = tpu.concatenate %1, %3 in 0 : vector<16x16x128xbf16>, vector<2x16x128xbf16> -> vector<18x16x128xbf16>
    %5 = vector.shape_cast %4 : vector<18x16x128xbf16> to vector<288x128xbf16>
    %6 = vector.extract_strided_slice %5 {offsets = [0, 0], sizes = [256, 128], strides = [1, 1]} : vector<288x128xbf16> to vector<256x128xbf16>
    %c0_7 = arith.constant 0 : index
    %c0_8 = arith.constant 0 : index
    %c0_9 = arith.constant 0 : index
    %c0_10 = arith.constant 0 : index
    %7 = vector.load %arg4[%c0_7, %c0_8, %c0_9, %c0_10] : memref<3x3x128x128xbf16, #tpu.memory_space<vmem>>, vector<1x1x128x128xbf16>
    %8 = vector.shape_cast %7 : vector<1x1x128x128xbf16> to vector<128x128xbf16>
    %cst = arith.constant dense<0.000000e+00> : vector<256x128xf32>
    %9 = tpu.matmul %6, %8, %cst {dimension_numbers = #tpu.dot_dimension_numbers<[1], [0], [0], [1], [0, 0, 1, 1], [], []>} : vector<256x128xbf16>, vector<128x128xbf16>, vector<256x128xf32> -> vector<256x128xf32>
    %c0_11 = arith.constant 0 : index
    %c0_12 = arith.constant 0 : index
    %10 = vector.load %arg8[%c0_11, %c0_12] : memref<256x128xf32, #tpu.memory_space<vmem>>, vector<256x128xf32>
    tpu.vector_store %arg8[%c0_11, %c0_12], %9 {strides = array<i32>} : memref<256x128xf32, #tpu.memory_space<vmem>>, vector<256x128xf32>,
    %c0_13 = arith.constant 0 : index
    %c1 = arith.constant 1 : index
    %c0_14 = arith.constant 0 : index
    %c0_15 = arith.constant 0 : index
    %11 = vector.load %arg4[%c0_13, %c1, %c0_14, %c0_15] : memref<3x3x128x128xbf16, #tpu.memory_space<vmem>>, vector<1x1x128x128xbf16>
    %12 = vector.shape_cast %11 : vector<1x1x128x128xbf16> to vector<128x128xbf16>
    %cst_16 = arith.constant dense<0.000000e+00> : vector<256x128xf32>
    %13 = tpu.matmul %6, %12, %cst_16 {dimension_numbers = #tpu.dot_dimension_numbers<[1], [0], [0], [1], [0, 0, 1, 1], [], []>} : vector<256x128xbf16>, vector<128x128xbf16>, vector<256x128xf32> -> vector<256x128xf32>
    %c255_i32 = arith.constant 255 : i32
    %14 = tpu.dynamic_rotate %13 by %c255_i32 dim 0 : vector<256x128xf32>, i32 -> vector<256x128xf32>
    %c0_17 = arith.constant 0 : index
    %c0_18 = arith.constant 0 : index
    %15 = vector.load %arg8[%c0_17, %c0_18] : memref<256x128xf32, #tpu.memory_space<vmem>>, vector<256x128xf32>
    %16 = arith.addf %15, %14 : vector<256x128xf32>
    %c0_19 = arith.constant 0 : index
    %c0_20 = arith.constant 0 : index
    %17 = vector.load %arg8[%c0_19, %c0_20] : memref<256x128xf32, #tpu.memory_space<vmem>>, vector<256x128xf32>
    tpu.vector_store %arg8[%c0_19, %c0_20], %16 {strides = array<i32>} : memref<256x128xf32, #tpu.memory_space<vmem>>, vector<256x128xf32>,
    %c0_21 = arith.constant 0 : index
    %c2 = arith.constant 2 : index
    %c0_22 = arith.constant 0 : index
    %c0_23 = arith.constant 0 : index
    %18 = vector.load %arg4[%c0_21, %c2, %c0_22, %c0_23] : memref<3x3x128x128xbf16, #tpu.memory_space<vmem>>, vector<1x1x128x128xbf16>
    %19 = vector.shape_cast %18 : vector<1x1x128x128xbf16> to vector<128x128xbf16>
    %cst_24 = arith.constant dense<0.000000e+00> : vector<256x128xf32>
    %20 = tpu.matmul %6, %19, %cst_24 {dimension_numbers = #tpu.dot_dimension_numbers<[1], [0], [0], [1], [0, 0, 1, 1], [], []>} : vector<256x128xbf16>, vector<128x128xbf16>, vector<256x128xf32> -> vector<256x128xf32>
    %c254_i32 = arith.constant 254 : i32
    %21 = tpu.dynamic_rotate %20 by %c254_i32 dim 0 : vector<256x128xf32>, i32 -> vector<256x128xf32>
    %c0_25 = arith.constant 0 : index
    %c0_26 = arith.constant 0 : index
    %22 = vector.load %arg8[%c0_25, %c0_26] : memref<256x128xf32, #tpu.memory_space<vmem>>, vector<256x128xf32>
    %23 = arith.addf %22, %21 : vector<256x128xf32>
    %c0_27 = arith.constant 0 : index
    %c0_28 = arith.constant 0 : index
    %24 = vector.load %arg8[%c0_27, %c0_28] : memref<256x128xf32, #tpu.memory_space<vmem>>, vector<256x128xf32>
    tpu.vector_store %arg8[%c0_27, %c0_28], %23 {strides = array<i32>} : memref<256x128xf32, #tpu.memory_space<vmem>>, vector<256x128xf32>,
    %25 = vector.extract_strided_slice %5 {offsets = [16, 0], sizes = [256, 128], strides = [1, 1]} : vector<288x128xbf16> to vector<256x128xbf16>
    %c1_29 = arith.constant 1 : index
    %c0_30 = arith.constant 0 : index
    %c0_31 = arith.constant 0 : index
    %c0_32 = arith.constant 0 : index
    %26 = vector.load %arg4[%c1_29, %c0_30, %c0_31, %c0_32] : memref<3x3x128x128xbf16, #tpu.memory_space<vmem>>, vector<1x1x128x128xbf16>
    %27 = vector.shape_cast %26 : vector<1x1x128x128xbf16> to vector<128x128xbf16>
    %cst_33 = arith.constant dense<0.000000e+00> : vector<256x128xf32>
    %28 = tpu.matmul %25, %27, %cst_33 {dimension_numbers = #tpu.dot_dimension_numbers<[1], [0], [0], [1], [0, 0, 1, 1], [], []>} : vector<256x128xbf16>, vector<128x128xbf16>, vector<256x128xf32> -> vector<256x128xf32>
    %c0_34 = arith.constant 0 : index
    %c0_35 = arith.constant 0 : index
    %29 = vector.load %arg8[%c0_34, %c0_35] : memref<256x128xf32, #tpu.memory_space<vmem>>, vector<256x128xf32>
    %30 = arith.addf %29, %28 : vector<256x128xf32>
    %c0_36 = arith.constant 0 : index
    %c0_37 = arith.constant 0 : index
    %31 = vector.load %arg8[%c0_36, %c0_37] : memref<256x128xf32, #tpu.memory_space<vmem>>, vector<256x128xf32>
    tpu.vector_store %arg8[%c0_36, %c0_37], %30 {strides = array<i32>} : memref<256x128xf32, #tpu.memory_space<vmem>>, vector<256x128xf32>,
    %c1_38 = arith.constant 1 : index
    %c1_39 = arith.constant 1 : index
    %c0_40 = arith.constant 0 : index
    %c0_41 = arith.constant 0 : index
    %32 = vector.load %arg4[%c1_38, %c1_39, %c0_40, %c0_41] : memref<3x3x128x128xbf16, #tpu.memory_space<vmem>>, vector<1x1x128x128xbf16>
    %33 = vector.shape_cast %32 : vector<1x1x128x128xbf16> to vector<128x128xbf16>
    %cst_42 = arith.constant dense<0.000000e+00> : vector<256x128xf32>
    %34 = tpu.matmul %25, %33, %cst_42 {dimension_numbers = #tpu.dot_dimension_numbers<[1], [0], [0], [1], [0, 0, 1, 1], [], []>} : vector<256x128xbf16>, vector<128x128xbf16>, vector<256x128xf32> -> vector<256x128xf32>
    %c255_i32_43 = arith.constant 255 : i32
    %35 = tpu.dynamic_rotate %34 by %c255_i32_43 dim 0 : vector<256x128xf32>, i32 -> vector<256x128xf32>
    %c0_44 = arith.constant 0 : index
    %c0_45 = arith.constant 0 : index
    %36 = vector.load %arg8[%c0_44, %c0_45] : memref<256x128xf32, #tpu.memory_space<vmem>>, vector<256x128xf32>
    %37 = arith.addf %36, %35 : vector<256x128xf32>
    %c0_46 = arith.constant 0 : index
    %c0_47 = arith.constant 0 : index
    %38 = vector.load %arg8[%c0_46, %c0_47] : memref<256x128xf32, #tpu.memory_space<vmem>>, vector<256x128xf32>
    tpu.vector_store %arg8[%c0_46, %c0_47], %37 {strides = array<i32>} : memref<256x128xf32, #tpu.memory_space<vmem>>, vector<256x128xf32>,
    %c1_48 = arith.constant 1 : index
    %c2_49 = arith.constant 2 : index
    %c0_50 = arith.constant 0 : index
    %c0_51 = arith.constant 0 : index
    %39 = vector.load %arg4[%c1_48, %c2_49, %c0_50, %c0_51] : memref<3x3x128x128xbf16, #tpu.memory_space<vmem>>, vector<1x1x128x128xbf16>
    %40 = vector.shape_cast %39 : vector<1x1x128x128xbf16> to vector<128x128xbf16>
    %cst_52 = arith.constant dense<0.000000e+00> : vector<256x128xf32>
    %41 = tpu.matmul %25, %40, %cst_52 {dimension_numbers = #tpu.dot_dimension_numbers<[1], [0], [0], [1], [0, 0, 1, 1], [], []>} : vector<256x128xbf16>, vector<128x128xbf16>, vector<256x128xf32> -> vector<256x128xf32>
    %c254_i32_53 = arith.constant 254 : i32
    %42 = tpu.dynamic_rotate %41 by %c254_i32_53 dim 0 : vector<256x128xf32>, i32 -> vector<256x128xf32>
    %c0_54 = arith.constant 0 : index
    %c0_55 = arith.constant 0 : index
    %43 = vector.load %arg8[%c0_54, %c0_55] : memref<256x128xf32, #tpu.memory_space<vmem>>, vector<256x128xf32>
    %44 = arith.addf %43, %42 : vector<256x128xf32>
    %c0_56 = arith.constant 0 : index
    %c0_57 = arith.constant 0 : index
    %45 = vector.load %arg8[%c0_56, %c0_57] : memref<256x128xf32, #tpu.memory_space<vmem>>, vector<256x128xf32>
    tpu.vector_store %arg8[%c0_56, %c0_57], %44 {strides = array<i32>} : memref<256x128xf32, #tpu.memory_space<vmem>>, vector<256x128xf32>,
    %46 = vector.extract_strided_slice %5 {offsets = [32, 0], sizes = [256, 128], strides = [1, 1]} : vector<288x128xbf16> to vector<256x128xbf16>
    %c2_58 = arith.constant 2 : index
    %c0_59 = arith.constant 0 : index
    %c0_60 = arith.constant 0 : index
    %c0_61 = arith.constant 0 : index
    %47 = vector.load %arg4[%c2_58, %c0_59, %c0_60, %c0_61] : memref<3x3x128x128xbf16, #tpu.memory_space<vmem>>, vector<1x1x128x128xbf16>
    %48 = vector.shape_cast %47 : vector<1x1x128x128xbf16> to vector<128x128xbf16>
    %cst_62 = arith.constant dense<0.000000e+00> : vector<256x128xf32>
    %49 = tpu.matmul %46, %48, %cst_62 {dimension_numbers = #tpu.dot_dimension_numbers<[1], [0], [0], [1], [0, 0, 1, 1], [], []>} : vector<256x128xbf16>, vector<128x128xbf16>, vector<256x128xf32> -> vector<256x128xf32>
    %c0_63 = arith.constant 0 : index
    %c0_64 = arith.constant 0 : index
    %50 = vector.load %arg8[%c0_63, %c0_64] : memref<256x128xf32, #tpu.memory_space<vmem>>, vector<256x128xf32>
    %51 = arith.addf %50, %49 : vector<256x128xf32>
    %c0_65 = arith.constant 0 : index
    %c0_66 = arith.constant 0 : index
    %52 = vector.load %arg8[%c0_65, %c0_66] : memref<256x128xf32, #tpu.memory_space<vmem>>, vector<256x128xf32>
    tpu.vector_store %arg8[%c0_65, %c0_66], %51 {strides = array<i32>} : memref<256x128xf32, #tpu.memory_space<vmem>>, vector<256x128xf32>,
    %c2_67 = arith.constant 2 : index
    %c1_68 = arith.constant 1 : index
    %c0_69 = arith.constant 0 : index
    %c0_70 = arith.constant 0 : index
    %53 = vector.load %arg4[%c2_67, %c1_68, %c0_69, %c0_70] : memref<3x3x128x128xbf16, #tpu.memory_space<vmem>>, vector<1x1x128x128xbf16>
    %54 = vector.shape_cast %53 : vector<1x1x128x128xbf16> to vector<128x128xbf16>
    %cst_71 = arith.constant dense<0.000000e+00> : vector<256x128xf32>
    %55 = tpu.matmul %46, %54, %cst_71 {dimension_numbers = #tpu.dot_dimension_numbers<[1], [0], [0], [1], [0, 0, 1, 1], [], []>} : vector<256x128xbf16>, vector<128x128xbf16>, vector<256x128xf32> -> vector<256x128xf32>
    %c255_i32_72 = arith.constant 255 : i32
    %56 = tpu.dynamic_rotate %55 by %c255_i32_72 dim 0 : vector<256x128xf32>, i32 -> vector<256x128xf32>
    %c0_73 = arith.constant 0 : index
    %c0_74 = arith.constant 0 : index
    %57 = vector.load %arg8[%c0_73, %c0_74] : memref<256x128xf32, #tpu.memory_space<vmem>>, vector<256x128xf32>
    %58 = arith.addf %57, %56 : vector<256x128xf32>
    %c0_75 = arith.constant 0 : index
    %c0_76 = arith.constant 0 : index
    %59 = vector.load %arg8[%c0_75, %c0_76] : memref<256x128xf32, #tpu.memory_space<vmem>>, vector<256x128xf32>
    tpu.vector_store %arg8[%c0_75, %c0_76], %58 {strides = array<i32>} : memref<256x128xf32, #tpu.memory_space<vmem>>, vector<256x128xf32>,
    %c2_77 = arith.constant 2 : index
    %c2_78 = arith.constant 2 : index
    %c0_79 = arith.constant 0 : index
    %c0_80 = arith.constant 0 : index
    %60 = vector.load %arg4[%c2_77, %c2_78, %c0_79, %c0_80] : memref<3x3x128x128xbf16, #tpu.memory_space<vmem>>, vector<1x1x128x128xbf16>
    %61 = vector.shape_cast %60 : vector<1x1x128x128xbf16> to vector<128x128xbf16>
    %cst_81 = arith.constant dense<0.000000e+00> : vector<256x128xf32>
    %62 = tpu.matmul %46, %61, %cst_81 {dimension_numbers = #tpu.dot_dimension_numbers<[1], [0], [0], [1], [0, 0, 1, 1], [], []>} : vector<256x128xbf16>, vector<128x128xbf16>, vector<256x128xf32> -> vector<256x128xf32>
    %c254_i32_82 = arith.constant 254 : i32
    %63 = tpu.dynamic_rotate %62 by %c254_i32_82 dim 0 : vector<256x128xf32>, i32 -> vector<256x128xf32>
    %c0_83 = arith.constant 0 : index
    %c0_84 = arith.constant 0 : index
    %64 = vector.load %arg8[%c0_83, %c0_84] : memref<256x128xf32, #tpu.memory_space<vmem>>, vector<256x128xf32>
    %65 = arith.addf %64, %63 : vector<256x128xf32>
    %c0_85 = arith.constant 0 : index
    %c0_86 = arith.constant 0 : index
    %66 = vector.load %arg8[%c0_85, %c0_86] : memref<256x128xf32, #tpu.memory_space<vmem>>, vector<256x128xf32>
    tpu.vector_store %arg8[%c0_85, %c0_86], %65 {strides = array<i32>} : memref<256x128xf32, #tpu.memory_space<vmem>>, vector<256x128xf32>,
    %c0_87 = arith.constant 0 : index
    %c0_88 = arith.constant 0 : index
    %67 = vector.load %arg8[%c0_87, %c0_88] : memref<256x128xf32, #tpu.memory_space<vmem>>, vector<256x128xf32>
    %68 = vector.shape_cast %67 : vector<256x128xf32> to vector<16x16x128xf32>
    %69 = vector.extract_strided_slice %68 {offsets = [0, 0, 0], sizes = [16, 8, 128], strides = [1, 1, 1]} : vector<16x16x128xf32> to vector<16x8x128xf32>
    %c0_89 = arith.constant 0 : index
    %c0_90 = arith.constant 0 : index
    %70 = vector.load %arg5[%c0_89, %c0_90] : memref<1x128xf32, #tpu.memory_space<vmem>>, vector<1x128xf32>
    %71 = vector.shape_cast %70 : vector<1x128xf32> to vector<1x1x128xf32>
    %72 = vector.broadcast %71 : vector<1x1x128xf32> to vector<16x8x128xf32>
    %73 = arith.addf %69, %72 : vector<16x8x128xf32>
    %74 = math.sin %73 : vector<16x8x128xf32>
    %c0_91 = arith.constant 0 : index
    %c0_92 = arith.constant 0 : index
    %c0_93 = arith.constant 0 : index
    %c0_94 = arith.constant 0 : index
    %75 = vector.load %arg6[%c0_91, %c0_92, %c0_93, %c0_94] : memref<1x16x8x128xbf16, #tpu.memory_space<vmem>>, vector<1x16x8x128xbf16>
    %76 = vector.shape_cast %75 : vector<1x16x8x128xbf16> to vector<16x8x128xbf16>
    %77 = arith.extf %76 : vector<16x8x128xbf16> to vector<16x8x128xf32>
    %78 = arith.addf %74, %77 : vector<16x8x128xf32>
    %cst_95 = arith.constant 5.000000e-01 : f32
    %79 = vector.broadcast %cst_95 : f32 to vector<16x8x128xf32>
    %80 = arith.mulf %79, %78 : vector<16x8x128xf32>
    %c0_96 = arith.constant 0 : index
    %c0_97 = arith.constant 0 : index
    %c0_98 = arith.constant 0 : index
    %c0_99 = arith.constant 0 : index
    %81 = vector.load %arg7[%c0_96, %c0_97, %c0_98, %c0_99] : memref<1x16x8x128xf32, #tpu.memory_space<vmem>>, vector<1x16x8x128xf32>
    %82 = vector.shape_cast %81 : vector<1x16x8x128xf32> to vector<16x8x128xf32>
    %83 = vector.shape_cast %80 : vector<16x8x128xf32> to vector<1x16x8x128xf32>
    tpu.vector_store %arg7[%c0_96, %c0_97, %c0_98, %c0_99], %83 {strides = array<i32>} : memref<1x16x8x128xf32, #tpu.memory_space<vmem>>, vector<1x16x8x128xf32>,
    return
  }
  func.func @transform_0(%arg0: i32, %arg1: i32) -> (i32, i32, i32, i32) {
    %c0_i32 = arith.constant 0 : i32
    %c0_i32_0 = arith.constant 0 : i32
    %c0_i32_1 = arith.constant 0 : i32
    return %arg0, %arg1, %c0_i32, %c0_i32_0 : i32, i32, i32, i32
  }
  func.func @transform_1(%arg0: i32, %arg1: i32) -> (i32, i32, i32, i32) {
    %c0_i32 = arith.constant 0 : i32
    %c0_i32_0 = arith.constant 0 : i32
    %c0_i32_1 = arith.constant 0 : i32
    return %arg0, %arg1, %c0_i32, %c0_i32_0 : i32, i32, i32, i32
  }
  func.func @transform_2(%arg0: i32, %arg1: i32) -> (i32, i32, i32, i32) {
    %c0_i32 = arith.constant 0 : i32
    %c0_i32_0 = arith.constant 0 : i32
    %c0_i32_1 = arith.constant 0 : i32
    %c0_i32_2 = arith.constant 0 : i32
    %c0_i32_3 = arith.constant 0 : i32
    return %c0_i32, %c0_i32_0, %c0_i32_1, %c0_i32_2 : i32, i32, i32, i32
  }
  func.func @transform_3(%arg0: i32, %arg1: i32) -> (i32, i32) {
    %c0_i32 = arith.constant 0 : i32
    %c0_i32_0 = arith.constant 0 : i32
    %c0_i32_1 = arith.constant 0 : i32
    return %c0_i32, %c0_i32_0 : i32, i32
  }
  func.func @transform_4(%arg0: i32, %arg1: i32) -> (i32, i32, i32, i32) {
    %c0_i32 = arith.constant 0 : i32
    %c0_i32_0 = arith.constant 0 : i32
    %c0_i32_1 = arith.constant 0 : i32
    return %arg0, %arg1, %c0_i32, %c0_i32_0 : i32, i32, i32, i32
  }
  func.func @transform_5(%arg0: i32, %arg1: i32) -> (i32, i32, i32, i32) {
    %c0_i32 = arith.constant 0 : i32
    %c0_i32_0 = arith.constant 0 : i32
    %c0_i32_1 = arith.constant 0 : i32
    return %arg0, %arg1, %c0_i32, %c0_i32_0 : i32, i32, i32, i32
  }
}

</mosaic_0001>

<bundles_post_ra>
// kernel: siren_res_block_forward.3
= control target key start
LH: loop header
LB: loop body
LE: loop exit
PB: predicated region body
PF: predicated region fallthrough
CT: control target
= control target key end

     0   :  { %s6960_s18 = smov 0   ;;  %s6962_s19 = smov 0   ;;  %s9535_s0 = inlined_call_operand.vmem [shape: bf16[2,18,16,128], index: 0, kind: input, shape index: {}]   ;;  %s9536_s1 = inlined_call_operand.vmem [shape: bf16[2,2,16,128], index: 1, kind: input, shape index: {}]   ;;  %s9537_s2 = inlined_call_operand.vmem [shape: bf16[3,3,128,128], index: 2, kind: input, shape index: {}]   ;;  %s9538_s3 = inlined_call_operand.vmem [shape: f32[1,128], index: 3, kind: input, shape index: {}]   ;;  %s9539_s4 = inlined_call_operand.vmem [shape: bf16[2,16,8,128], index: 4, kind: input, shape index: {}]   ;;  %s9540_s5 = inlined_call_operand.vmem [shape: f32[2,16,8,128], index: 5, kind: output, shape index: {}]  }
   0x1   :  { %s6964_s20 = smov 0  }
   0x2 LB: > { %s27_s21 = sadd.s32 1, %s6918_s19  ;;  %p5649_p0 = scmp.ge.s32.totalorder %s6922_s20, 1  ;;  %s6922_s20 = sphi %s6964_s20, %s15_s20   ;;  %s6918_s19 = sphi %s6962_s19, %s9651_s19   ;;  %s6914_s18 = sphi %s6960_s18, %s9650_s18  }
   0x3   : > { %p29_p1 = scmp.ge.s32.totalorder %s27_s21, 2  ;;  %p254_p2 = scmp.lt.s32.totalorder %s6922_s20, 3 }
   0x5   : > { %s9653_s21 = smov (%p29_p1, %s27_s21), 0  ;;  %p255_p3 = pnand %p5649_p0, %p254_p2 }
   0x7   : > { %258 = sbr.rel (%p255_p3) target bundleno = 971 (0x3cb), region = 40 }
   0xe   : > { %v6743_v0 = vld [vmem:[%s9537_s2] sm:$0xff]   ;;  %p321_p4 = scmp.lt.s32.totalorder %s6914_s18, 1  ;;  %v6744_v1 = vld [vmem:[%s9537_s2 + $0x8] sm:$0xff]   ;;  %v6745_v2 = vld [vmem:[%s9537_s2 + $0x10] sm:$0xff]  }
   0xf   : > { %6200 = vmatprep.subr.bf16.mxu0 %v6743_v0  ;;  %6632 = vmatprep.subr.bf16.mxu1 %v6743_v0  ;;  %v6746_v3 = vld [vmem:[%s9537_s2 + $0x18] sm:$0xff]   ;;  %v6747_v6 = vld [vmem:[%s9537_s2 + $0x20] sm:$0xff]   ;;  %v6748_v7 = vld [vmem:[%s9537_s2 + $0x28] sm:$0xff]  }
  0x10   : > { %s9655_s18 = smov (!%p321_p4, %s6914_s18), 1  ;;  %6201 = vmatpush3.bf16.msra.mxu0 %v6743_v0  ;;  %6640 = vmatpush3.bf16.msra.mxu1 %v6743_v0  ;;  %v6749_v8 = vld [vmem:[%s9537_s2 + $0x30] sm:$0xff]   ;;  %v6750_v9 = vld [vmem:[%s9537_s2 + $0x38] sm:$0xff]   ;;  %v6755_v10 = vld [vmem:[%s9537_s2 + $0x40] sm:$0xff]  }
  0x11   : > { %6202 = vmatprep.subr.bf16.mxu0 %v6744_v1  ;;  %6633 = vmatprep.subr.bf16.mxu1 %v6744_v1  ;;  %s6648_s28 = smul.u32 144, %s9655_s18  ;;  %v6756_v12 = vld [vmem:[%s9537_s2 + $0x80] sm:$0xff]   ;;  %v6757_v14 = vld [vmem:[%s9537_s2 + $0x48] sm:$0xff]   ;;  %v6763_v18 = vld [vmem:[%s9537_s2 + $0x50] sm:$0xff]   ;;  %s5942_s17 = sshll.u32 %s9655_s18, 4 }
  0x12   : > { %v6758_v15 = vld [vmem:[%s9537_s2 + $0x88] sm:$0xff]   ;;  %v6764_v20 = vld [vmem:[%s9537_s2 + $0x90] sm:$0xff]   ;;  %v6765_v22 = vld [vmem:[%s9537_s2 + $0x58] sm:$0xff]   ;;  %s5943_s13 = sshll.u32 %s9655_s18, 6 }
  0x13   : > { %s6993_s6 = scalar_lea.vmem %s9535_s0, %s6648_s28  ;;  %v6766_v23 = vld [vmem:[%s9537_s2 + $0x98] sm:$0xff]   ;;  %v6771_v26 = vld [vmem:[%s9537_s2 + $0x60] sm:$0xff]   ;;  %v6773_v30 = vld [vmem:[%s9537_s2 + $0x68] sm:$0xff]   ;;  %s7150_s28 = scalar_lea.vmem %s9536_s1, %s5942_s17 }
  0x14   : > { %6203 = vmatpush3.bf16.msra.mxu0 %v6744_v1  ;;  %6641 = vmatpush3.bf16.msra.mxu1 %v6744_v1  ;;  %v6999_v4 = vld [vmem:[%s6993_s6] sm:$0xff]   ;;  %v7022_v11 = vld [vmem:[%s6993_s6 + $0x8] sm:$0xff]   ;;  %v7037_v16 = vld [vmem:[%s6993_s6 + $0x10] sm:$0xff]   ;;  %s8010_s16 = scalar_lea.vmem %s9539_s4, %s5943_s13  ;;  %s5944_s17 = sshll.u32 %s9655_s18, 7 }
  0x15   : > { %6204 = vmatprep.subr.bf16.mxu0 %v6745_v2  ;;  %6634 = vmatprep.subr.bf16.mxu1 %v6745_v2  ;;  %v7002_v5 = vld [vmem:[%s6993_s6 + $0x40] sm:$0xff]   ;;  %v7028_v13 = vld [vmem:[%s6993_s6 + $0x48] sm:$0xff]   ;;  %v7040_v17 = vld [vmem:[%s6993_s6 + $0x50] sm:$0xff]   ;;  %s8103_s23 = scalar_lea.vmem %s9540_s5, %s5944_s17 }
  0x16   : > { %6216 = vmatprep.mubr.bf16.mxu0 %v6999_v4  ;;  %6232 = vmatprep.mubr.bf16.mxu1 %v7002_v5  ;;  %v7048_v19 = vld [vmem:[%s6993_s6 + $0x18] sm:$0xff]   ;;  %v7065_v24 = vld [vmem:[%s6993_s6 + $0x20] sm:$0xff]   ;;  %v7076_v27 = vld [vmem:[%s6993_s6 + $0x28] sm:$0xff]  }
  0x17   : > { %v7056_v21 = vld [vmem:[%s6993_s6 + $0x58] sm:$0xff]   ;;  %v7068_v25 = vld [vmem:[%s6993_s6 + $0x60] sm:$0xff]   ;;  %v7084_v29 = vld [vmem:[%s6993_s6 + $0x68] sm:$0xff]  }
  0x18   : > { %6205 = vmatpush3.bf16.msra.mxu0 %v6745_v2  ;;  %6642 = vmatpush3.bf16.msra.mxu1 %v6745_v2  ;;  %v6772_v28 = vld [vmem:[%s9537_s2 + $0xa0] sm:$0xff]   ;;  %v6774_v31 = vld [vmem:[%s9537_s2 + $0xa8] sm:$0xff]   ;;  %v7093_v32 = vld [vmem:[%s6993_s6 + $0x30] sm:$0xff]  }
  0x19   : > { %6206 = vmatprep.subr.bf16.mxu0 %v6746_v3  ;;  %6635 = vmatprep.subr.bf16.mxu1 %v6746_v3  ;;  %v7096_v33 = vld [vmem:[%s6993_s6 + $0x70] sm:$0xff]   ;;  %v7109_v36 = vld [vmem:[%s6993_s6 + $0x38] sm:$0xff]   ;;  %v6783_v40 = vld [vmem:[%s9537_s2 + $0xc0] sm:$0xff]  }
  0x1a   : > { %v6779_v34 = vld [vmem:[%s9537_s2 + $0x70] sm:$0xff]   ;;  %v7112_v37 = vld [vmem:[%s6993_s6 + $0x78] sm:$0xff]   ;;  %v6784_v41 = vld [vmem:[%s9537_s2 + $0x100] sm:$0xff]  }
  0x1b   : > { %v6780_v35 = vld [vmem:[%s9537_s2 + $0xb0] sm:$0xff]   ;;  %v6781_v38 = vld [vmem:[%s9537_s2 + $0x78] sm:$0xff]   ;;  %v6785_v42 = vld [vmem:[%s9537_s2 + $0xc8] sm:$0xff]  }
  0x1c   : > { %6207 = vmatpush3.bf16.msra.mxu0 %v6746_v3  ;;  %6643 = vmatpush3.bf16.msra.mxu1 %v6746_v3  ;;  %v6782_v39 = vld [vmem:[%s9537_s2 + $0xb8] sm:$0xff]   ;;  %v6786_v43 = vld [vmem:[%s9537_s2 + $0x108] sm:$0xff]   ;;  %v6787_v44 = vld [vmem:[%s9537_s2 + $0xd0] sm:$0xff]  }
  0x1d   : > { %6208 = vmatprep.subr.bf16.mxu0 %v6747_v6  ;;  %6636 = vmatprep.subr.bf16.mxu1 %v6747_v6  ;;  %v6788_v45 = vld [vmem:[%s9537_s2 + $0x110] sm:$0xff]   ;;  %v6789_v46 = vld [vmem:[%s9537_s2 + $0xd8] sm:$0xff]   ;;  %v6791_v48 = vld [vmem:[%s9537_s2 + $0xe0] sm:$0xff]  }
  0x1e   : > { %v6790_v47 = vld [vmem:[%s9537_s2 + $0x118] sm:$0xff]   ;;  %v6792_v49 = vld [vmem:[%s9537_s2 + $0x120] sm:$0xff]   ;;  %v6793_v50 = vld [vmem:[%s9537_s2 + $0xe8] sm:$0xff]  }
  0x1f   : > { %v6794_v51 = vld [vmem:[%s9537_s2 + $0x128] sm:$0xff]   ;;  %v6795_v52 = vld [vmem:[%s9537_s2 + $0xf0] sm:$0xff]   ;;  %v6797_v54 = vld [vmem:[%s9537_s2 + $0xf8] sm:$0xff]  }
  0x20   : > { %6209 = vmatpush3.bf16.msra.mxu0 %v6747_v6  ;;  %6644 = vmatpush3.bf16.msra.mxu1 %v6747_v6  ;;  %v6796_v53 = vld [vmem:[%s9537_s2 + $0x130] sm:$0xff]   ;;  %v6798_v55 = vld [vmem:[%s9537_s2 + $0x138] sm:$0xff]   ;;  %v6799_v56 = vld [vmem:[%s9537_s2 + $0x140] sm:$0xff]  }
  0x21   : > { %6210 = vmatprep.subr.bf16.mxu0 %v6748_v7  ;;  %6637 = vmatprep.subr.bf16.mxu1 %v6748_v7  ;;  %v6800_v57 = vld [vmem:[%s9537_s2 + $0x180] sm:$0xff]   ;;  %v6801_v58 = vld [vmem:[%s9537_s2 + $0x148] sm:$0xff]   ;;  %v6803_v60 = vld [vmem:[%s9537_s2 + $0x150] sm:$0xff]  }
  0x22   : > { %v6802_v59 = vld [vmem:[%s9537_s2 + $0x188] sm:$0xff]   ;;  %v6804_v61 = vld [vmem:[%s9537_s2 + $0x190] sm:$0xff]   ;;  %v6805_v62 = vld [vmem:[%s9537_s2 + $0x158] sm:$0xff]  }
  0x23   : > { %v6806_v63 = vld [vmem:[%s9537_s2 + $0x198] sm:$0xff]   ;;  %v6807_v0 = vld [vmem:[%s9537_s2 + $0x160] sm:$0xff]   ;;  %v6809_v2 = vld [vmem:[%s9537_s2 + $0x168] sm:$0xff]  }
  0x24   : > { %6211 = vmatpush3.bf16.msra.mxu0 %v6748_v7  ;;  %6645 = vmatpush3.bf16.msra.mxu1 %v6748_v7  ;;  %v6808_v1 = vld [vmem:[%s9537_s2 + $0x1a0] sm:$0xff]   ;;  %v6810_v3 = vld [vmem:[%s9537_s2 + $0x1a8] sm:$0xff]   ;;  %v6812_v6 = vld [vmem:[%s9537_s2 + $0x1b0] sm:$0xff]  }
  0x25   : > { %6212 = vmatprep.subr.bf16.mxu0 %v6749_v8  ;;  %6638 = vmatprep.subr.bf16.mxu1 %v6749_v8  ;;  %v6814_v7 = vld [vmem:[%s9537_s2 + $0x178] sm:$0xff]  }
  0x28   : > { %6213 = vmatpush3.bf16.msra.mxu0 %v6749_v8  ;;  %6646 = vmatpush3.bf16.msra.mxu1 %v6749_v8  ;;  %v6815_v8 = vld [vmem:[%s9537_s2 + $0x1b8] sm:$0xff]  }
  0x29   : > { %6214 = vmatprep.subr.bf16.mxu0 %v6750_v9  ;;  %6639 = vmatprep.subr.bf16.mxu1 %v6750_v9 }
  0x2c   : > { %6215 = vmatpush3.bf16.msra.mxu0 %v6750_v9  ;;  %6647 = vmatpush3.bf16.msra.mxu1 %v6750_v9  ;;  %v6816_v9 = vld [vmem:[%s9537_s2 + $0x1c0] sm:$0xff]  }
  0x2d   : > { %6248 = vmatprep.subr.bf16.mxu1 %v6755_v10  ;;  %6296 = vmatprep.subr.bf16.mxu0 %v6756_v12 }
  0x2f   : > { %6217 = vmatmul.mubr.bf16.vlgmr.msra.gmra.mrb[0].mxu0 %v7022_v11  ;;  %6233 = vmatmul.mubr.bf16.vlgmr.msra.gmra.mrb[0].mxu1 %v7028_v13 }
  0x30   : > { %6249 = vmatpush3.bf16.msra.mxu1 %v6755_v10  ;;  %6297 = vmatpush3.bf16.msra.mxu0 %v6756_v12  ;;  %v6817_v10 = vld [vmem:[%s9537_s2 + $0x200] sm:$0xff]  }
  0x31   : > { %6250 = vmatprep.subr.bf16.mxu1 %v6757_v14  ;;  %6298 = vmatprep.subr.bf16.mxu0 %v6758_v15  ;;  %v7293_v12 = vld [vmem:[%s7150_s28] sm:$0xff]  }
  0x32   : > { %6220 = vmatprep.mubr.bf16.mxu0 %v7037_v16  ;;  %6236 = vmatprep.mubr.bf16.mxu1 %v7040_v17 }
  0x34   : > { %6251 = vmatpush3.bf16.msra.mxu1 %v6757_v14  ;;  %6299 = vmatpush3.bf16.msra.mxu0 %v6758_v15  ;;  %v6818_v14 = vld [vmem:[%s9537_s2 + $0x1c8] sm:$0xff]  }
  0x35   : > { %6252 = vmatprep.subr.bf16.mxu1 %v6763_v18  ;;  %6300 = vmatprep.subr.bf16.mxu0 %v6764_v20  ;;  %v6819_v15 = vld [vmem:[%s9537_s2 + $0x208] sm:$0xff]  }
  0x37   : > { %6221 = vmatmul.mubr.bf16.gmra.mrb[4].mxu0 %v7048_v19  ;;  %6237 = vmatmul.mubr.bf16.gmra.mrb[4].mxu1 %v7056_v21 }
  0x38   : > { %6253 = vmatpush3.bf16.msra.mxu1 %v6763_v18  ;;  %6301 = vmatpush3.bf16.msra.mxu0 %v6764_v20  ;;  %v6821_v18 = vld [vmem:[%s9537_s2 + $0x210] sm:$0xff]   ;;  %v6822_v20 = vld [vmem:[%s9537_s2 + $0x1d8] sm:$0xff]  }
  0x39   : > { %6254 = vmatprep.subr.bf16.mxu1 %v6765_v22  ;;  %6302 = vmatprep.subr.bf16.mxu0 %v6766_v23 }
  0x3a   : > { %6224 = vmatprep.mubr.bf16.mxu0 %v7065_v24  ;;  %6240 = vmatprep.mubr.bf16.mxu1 %v7068_v25 }
  0x3c   : > { %6255 = vmatpush3.bf16.msra.mxu1 %v6765_v22  ;;  %6303 = vmatpush3.bf16.msra.mxu0 %v6766_v23  ;;  %v6823_v22 = vld [vmem:[%s9537_s2 + $0x218] sm:$0xff]   ;;  %v6824_v23 = vld [vmem:[%s9537_s2 + $0x1e0] sm:$0xff]  }
  0x3d   : > { %6256 = vmatprep.subr.bf16.mxu1 %v6771_v26  ;;  %6304 = vmatprep.subr.bf16.mxu0 %v6772_v28 }
  0x3f   : > { %6225 = vmatmul.mubr.bf16.gmra.mrb[8].mxu0 %v7076_v27  ;;  %6241 = vmatmul.mubr.bf16.gmra.mrb[8].mxu1 %v7084_v29 }
  0x40   : > { %6257 = vmatpush3.bf16.msra.mxu1 %v6771_v26  ;;  %6305 = vmatpush3.bf16.msra.mxu0 %v6772_v28  ;;  %v6825_v26 = vld [vmem:[%s9537_s2 + $0x220] sm:$0xff]   ;;  %v6826_v28 = vld [vmem:[%s9537_s2 + $0x1e8] sm:$0xff]  }
  0x41   : > { %6258 = vmatprep.subr.bf16.mxu1 %v6773_v30  ;;  %6306 = vmatprep.subr.bf16.mxu0 %v6774_v31 }
  0x42   : > { %6228 = vmatprep.mubr.bf16.mxu0 %v7093_v32  ;;  %6244 = vmatprep.mubr.bf16.mxu1 %v7096_v33 }
  0x44   : > { %6259 = vmatpush3.bf16.msra.mxu1 %v6773_v30  ;;  %6307 = vmatpush3.bf16.msra.mxu0 %v6774_v31  ;;  %v6827_v30 = vld [vmem:[%s9537_s2 + $0x228] sm:$0xff]   ;;  %v6828_v31 = vld [vmem:[%s9537_s2 + $0x1f0] sm:$0xff]  }
  0x45   : > { %6260 = vmatprep.subr.bf16.mxu1 %v6779_v34  ;;  %6308 = vmatprep.subr.bf16.mxu0 %v6780_v35 }
  0x47   : > { %6229 = vmatmul.mubr.bf16.gmra.mrb[12].mxu0 %v7109_v36  ;;  %6245 = vmatmul.mubr.bf16.gmra.mrb[12].mxu1 %v7112_v37 }
  0x48   : > { %6261 = vmatpush3.bf16.msra.mxu1 %v6779_v34  ;;  %6309 = vmatpush3.bf16.msra.mxu0 %v6780_v35  ;;  %v6829_v34 = vld [vmem:[%s9537_s2 + $0x230] sm:$0xff]   ;;  %v6831_v35 = vld [vmem:[%s9537_s2 + $0x1f8] sm:$0xff]  }
  0x49   : > { %6262 = vmatprep.subr.bf16.mxu1 %v6781_v38  ;;  %6310 = vmatprep.subr.bf16.mxu0 %v6782_v39 }
  0x4a   : > { %6264 = vmatprep.mubr.bf16.mxu1 %v6999_v4  ;;  %6312 = vmatprep.mubr.bf16.mxu0 %v6999_v4  ;;  %v6811_v4 = vld [vmem:[%s9537_s2 + $0x170] sm:$0xff]  }
  0x4c   : > { %6263 = vmatpush3.bf16.msra.mxu1 %v6781_v38  ;;  %6311 = vmatpush3.bf16.msra.mxu0 %v6782_v39  ;;  %v6832_v38 = vld [vmem:[%s9537_s2 + $0x238] sm:$0xff]  }
  0x4d   : > { %6344 = vmatprep.subr.bf16.mxu1 %v6783_v40  ;;  %6392 = vmatprep.subr.bf16.mxu0 %v6784_v41 }
  0x4f   : > { %6265 = vmatmul.mubr.bf16.vlgmr.msra.gmra.mrb[16].mxu1 %v7022_v11  ;;  %6313 = vmatmul.mubr.bf16.vlgmr.msra.gmra.mrb[16].mxu0 %v7022_v11 }
  0x50   : > { %6345 = vmatpush3.bf16.msra.mxu1 %v6783_v40  ;;  %6393 = vmatpush3.bf16.msra.mxu0 %v6784_v41 }
  0x51   : > { %6268 = vmatprep.mubr.bf16.mxu1 %v7037_v16  ;;  %6316 = vmatprep.mubr.bf16.mxu0 %v7037_v16 }
  0x52   : > { %6346 = vmatprep.subr.bf16.mxu1 %v6785_v42  ;;  %6394 = vmatprep.subr.bf16.mxu0 %v6786_v43 }
  0x54   : > { %6347 = vmatpush3.bf16.msra.mxu1 %v6785_v42  ;;  %6395 = vmatpush3.bf16.msra.mxu0 %v6786_v43  ;;  %v7378_v42 = vld [vmem:[%s7150_s28 + $0x8] sm:$0xff]  }
  0x55   : > { %6348 = vmatprep.subr.bf16.mxu1 %v6787_v44  ;;  %6396 = vmatprep.subr.bf16.mxu0 %v6788_v45 }
  0x57   : > { %6269 = vmatmul.mubr.bf16.gmra.mrb[20].mxu1 %v7048_v19  ;;  %6317 = vmatmul.mubr.bf16.gmra.mrb[20].mxu0 %v7048_v19 }
  0x58   : > { %6272 = vmatprep.mubr.bf16.mxu1 %v7065_v24  ;;  %6320 = vmatprep.mubr.bf16.mxu0 %v7065_v24 }
  0x59   : > { %6349 = vmatpush3.bf16.msra.mxu1 %v6787_v44  ;;  %6397 = vmatpush3.bf16.msra.mxu0 %v6788_v45 }
  0x5a   : > { %6350 = vmatprep.subr.bf16.mxu1 %v6789_v46  ;;  %6398 = vmatprep.subr.bf16.mxu0 %v6790_v47 }
  0x5d   : > { %6351 = vmatpush3.bf16.msra.mxu1 %v6789_v46  ;;  %6399 = vmatpush3.bf16.msra.mxu0 %v6790_v47 }
  0x5e   : > { %6352 = vmatprep.subr.bf16.mxu1 %v6791_v48  ;;  %6400 = vmatprep.subr.bf16.mxu0 %v6792_v49 }
  0x5f   : > { %6273 = vmatmul.mubr.bf16.gmra.mrb[24].mxu1 %v7076_v27  ;;  %6321 = vmatmul.mubr.bf16.gmra.mrb[24].mxu0 %v7076_v27 }
  0x60   : > { %6276 = vmatprep.mubr.bf16.mxu1 %v7093_v32  ;;  %6324 = vmatprep.mubr.bf16.mxu0 %v7093_v32 }
  0x61   : > { %6353 = vmatpush3.bf16.msra.mxu1 %v6791_v48  ;;  %6401 = vmatpush3.bf16.msra.mxu0 %v6792_v49 }
  0x62   : > { %6354 = vmatprep.subr.bf16.mxu1 %v6793_v50  ;;  %6402 = vmatprep.subr.bf16.mxu0 %v6794_v51 }
  0x65   : > { %6355 = vmatpush3.bf16.msra.mxu1 %v6793_v50  ;;  %6403 = vmatpush3.bf16.msra.mxu0 %v6794_v51 }
  0x66   : > { %6356 = vmatprep.subr.bf16.mxu1 %v6795_v52  ;;  %6404 = vmatprep.subr.bf16.mxu0 %v6796_v53 }
  0x67   : > { %6277 = vmatmul.mubr.bf16.gmra.mrb[28].mxu1 %v7109_v36  ;;  %6325 = vmatmul.mubr.bf16.gmra.mrb[28].mxu0 %v7109_v36 }
  0x68   : > { %6280 = vmatprep.mubr.bf16.mxu1 %v7002_v5  ;;  %6328 = vmatprep.mubr.bf16.mxu0 %v7002_v5 }
  0x69   : > { %6357 = vmatpush3.bf16.msra.mxu1 %v6795_v52  ;;  %6405 = vmatpush3.bf16.msra.mxu0 %v6796_v53 }
  0x6a   : > { %6358 = vmatprep.subr.bf16.mxu1 %v6797_v54  ;;  %6406 = vmatprep.subr.bf16.mxu0 %v6798_v55 }
  0x6d   : > { %6359 = vmatpush3.bf16.msra.mxu1 %v6797_v54  ;;  %6407 = vmatpush3.bf16.msra.mxu0 %v6798_v55 }
  0x6e   : > { %6440 = vmatprep.subr.bf16.mxu1 %v6799_v56  ;;  %6488 = vmatprep.subr.bf16.mxu0 %v6800_v57 }
  0x6f   : > { %6281 = vmatmul.mubr.bf16.gmra.mrb[32].mxu1 %v7028_v13  ;;  %6329 = vmatmul.mubr.bf16.gmra.mrb[32].mxu0 %v7028_v13 }
  0x70   : > { %6284 = vmatprep.mubr.bf16.mxu1 %v7040_v17  ;;  %6332 = vmatprep.mubr.bf16.mxu0 %v7040_v17 }
  0x77   : > { %6285 = vmatmul.mubr.bf16.gmra.mrb[36].mxu1 %v7056_v21  ;;  %6333 = vmatmul.mubr.bf16.gmra.mrb[36].mxu0 %v7056_v21 }
  0x78   : > { %6288 = vmatprep.mubr.bf16.mxu1 %v7068_v25  ;;  %6336 = vmatprep.mubr.bf16.mxu0 %v7068_v25 }
  0x7f   : > { %6289 = vmatmul.mubr.bf16.gmra.mrb[40].mxu1 %v7084_v29  ;;  %6337 = vmatmul.mubr.bf16.gmra.mrb[40].mxu0 %v7084_v29 }
  0x80   : > { %6292 = vmatprep.mubr.bf16.mxu1 %v7096_v33  ;;  %6340 = vmatprep.mubr.bf16.mxu0 %v7096_v33 }
  0x87   : > { %6293 = vmatmul.mubr.bf16.gmra.mrb[44].mxu1 %v7112_v37  ;;  %6341 = vmatmul.mubr.bf16.gmra.mrb[44].mxu0 %v7112_v37 }
  0x88   : > { %6360 = vmatprep.mubr.bf16.mxu1 %v7022_v11  ;;  %6408 = vmatprep.mubr.bf16.mxu0 %v7022_v11 }
  0x8f   : > { %6361 = vmatmul.mubr.bf16.vlgmr.msra.gmra.mrb[48].mxu1 %v7037_v16  ;;  %6409 = vmatmul.mubr.bf16.vlgmr.msra.gmra.mrb[48].mxu0 %v7037_v16 }
  0x90   : > { %6441 = vmatpush3.bf16.msra.mxu1 %v6799_v56  ;;  %6489 = vmatpush3.bf16.msra.mxu0 %v6800_v57 }
  0x91   : > { %6364 = vmatprep.mubr.bf16.mxu1 %v7048_v19  ;;  %6412 = vmatprep.mubr.bf16.mxu0 %v7048_v19 }
  0x92   : > { %6442 = vmatprep.subr.bf16.mxu1 %v6801_v58  ;;  %6490 = vmatprep.subr.bf16.mxu0 %v6802_v59 }
  0x94   : > { %6443 = vmatpush3.bf16.msra.mxu1 %v6801_v58  ;;  %6491 = vmatpush3.bf16.msra.mxu0 %v6802_v59 }
  0x95   : > { %6444 = vmatprep.subr.bf16.mxu1 %v6803_v60  ;;  %6492 = vmatprep.subr.bf16.mxu0 %v6804_v61 }
  0x97   : > { %6365 = vmatmul.mubr.bf16.gmra.mrb[52].mxu1 %v7065_v24  ;;  %6413 = vmatmul.mubr.bf16.gmra.mrb[52].mxu0 %v7065_v24 }
  0x98   : > { %6368 = vmatprep.mubr.bf16.mxu1 %v7076_v27  ;;  %6416 = vmatprep.mubr.bf16.mxu0 %v7076_v27 }
  0x99   : > { %6445 = vmatpush3.bf16.msra.mxu1 %v6803_v60  ;;  %6493 = vmatpush3.bf16.msra.mxu0 %v6804_v61 }
  0x9a   : > { %6446 = vmatprep.subr.bf16.mxu1 %v6805_v62  ;;  %6494 = vmatprep.subr.bf16.mxu0 %v6806_v63 }
  0x9d   : > { %6447 = vmatpush3.bf16.msra.mxu1 %v6805_v62  ;;  %6495 = vmatpush3.bf16.msra.mxu0 %v6806_v63 }
  0x9e   : > { %6448 = vmatprep.subr.bf16.mxu1 %v6807_v0  ;;  %6496 = vmatprep.subr.bf16.mxu0 %v6808_v1 }
  0x9f   : > { %6369 = vmatmul.mubr.bf16.gmra.mrb[56].mxu1 %v7093_v32  ;;  %6417 = vmatmul.mubr.bf16.gmra.mrb[56].mxu0 %v7093_v32 }
  0xa0   : > { %6372 = vmatprep.mubr.bf16.mxu1 %v7109_v36  ;;  %6420 = vmatprep.mubr.bf16.mxu0 %v7109_v36 }
  0xa1   : > { %6449 = vmatpush3.bf16.msra.mxu1 %v6807_v0  ;;  %6497 = vmatpush3.bf16.msra.mxu0 %v6808_v1 }
  0xa2   : > { %6450 = vmatprep.subr.bf16.mxu1 %v6809_v2  ;;  %6498 = vmatprep.subr.bf16.mxu0 %v6810_v3 }
  0xa5   : > { %6451 = vmatpush3.bf16.msra.mxu1 %v6809_v2  ;;  %6499 = vmatpush3.bf16.msra.mxu0 %v6810_v3  ;;  %v1015_v2 = vlaneseq }
  0xa6   : > { %6452 = vmatprep.subr.bf16.mxu1 %v6811_v4  ;;  %6500 = vmatprep.subr.bf16.mxu0 %v6812_v6 }
  0xa7   : > { %6373 = vmatmul.mubr.bf16.gmra.mrb[60].mxu1 %v7002_v5  ;;  %6421 = vmatmul.mubr.bf16.gmra.mrb[60].mxu0 %v7002_v5 }
  0xa8   : > { %6376 = vmatprep.mubr.bf16.mxu1 %v7028_v13  ;;  %6424 = vmatprep.mubr.bf16.mxu0 %v7028_v13 }
  0xa9   : > { %6453 = vmatpush3.bf16.msra.mxu1 %v6811_v4  ;;  %6501 = vmatpush3.bf16.msra.mxu0 %v6812_v6 }
  0xaa   : > { %6454 = vmatprep.subr.bf16.mxu1 %v6814_v7  ;;  %6502 = vmatprep.subr.bf16.mxu0 %v6815_v8 }
  0xad   : > { %6455 = vmatpush3.bf16.msra.mxu1 %v6814_v7  ;;  %6503 = vmatpush3.bf16.msra.mxu0 %v6815_v8 }
  0xae   : > { %6536 = vmatprep.subr.bf16.mxu1 %v6816_v9  ;;  %6584 = vmatprep.subr.bf16.mxu0 %v6817_v10 }
  0xaf   : > { %6377 = vmatmul.mubr.bf16.gmra.mrb[64].mxu1 %v7040_v17  ;;  %6425 = vmatmul.mubr.bf16.gmra.mrb[64].mxu0 %v7040_v17 }
  0xb0   : > { %6380 = vmatprep.mubr.bf16.mxu1 %v7056_v21  ;;  %6428 = vmatprep.mubr.bf16.mxu0 %v7056_v21 }
  0xb7   : > { %6381 = vmatmul.mubr.bf16.gmra.mrb[68].mxu1 %v7068_v25  ;;  %6429 = vmatmul.mubr.bf16.gmra.mrb[68].mxu0 %v7068_v25 }
  0xb8   : > { %6384 = vmatprep.mubr.bf16.mxu1 %v7084_v29  ;;  %6432 = vmatprep.mubr.bf16.mxu0 %v7084_v29 }
  0xbf   : > { %6385 = vmatmul.mubr.bf16.gmra.mrb[72].mxu1 %v7096_v33  ;;  %6433 = vmatmul.mubr.bf16.gmra.mrb[72].mxu0 %v7096_v33 }
  0xc0   : > { %6388 = vmatprep.mubr.bf16.mxu1 %v7112_v37  ;;  %6436 = vmatprep.mubr.bf16.mxu0 %v7112_v37 }
  0xc7   : > { %6389 = vmatmul.mubr.bf16.gmra.mrb[76].mxu1 %v7293_v12  ;;  %6437 = vmatmul.mubr.bf16.gmra.mrb[76].mxu0 %v7293_v12 }
  0xc8   : > { %6456 = vmatprep.mubr.bf16.mxu1 %v7022_v11  ;;  %6504 = vmatprep.mubr.bf16.mxu0 %v7037_v16  ;;  %v6820_v11 = vld [vmem:[%s9537_s2 + $0x1d0] sm:$0xff]  }
  0xcf   : > { %6457 = vmatmul.mubr.bf16.vlgmr.msra.gmra.mrb[80].mxu1 %v7037_v16  ;;  %6505 = vmatmul.mubr.bf16.vlgmr.msra.gmra.mrb[80].mxu0 %v7048_v19 }
  0xd0   : > { %6537 = vmatpush3.bf16.msra.mxu1 %v6816_v9  ;;  %6585 = vmatpush3.bf16.msra.mxu0 %v6817_v10 }
  0xd1   : > { %6460 = vmatprep.mubr.bf16.mxu1 %v7048_v19  ;;  %6508 = vmatprep.mubr.bf16.mxu0 %v7065_v24 }
  0xd2   : > { %6538 = vmatprep.subr.bf16.mxu1 %v6818_v14  ;;  %6586 = vmatprep.subr.bf16.mxu0 %v6819_v15 }
  0xd4   : > { %6539 = vmatpush3.bf16.msra.mxu1 %v6818_v14  ;;  %6587 = vmatpush3.bf16.msra.mxu0 %v6819_v15 }
  0xd5   : > { %6540 = vmatprep.subr.bf16.mxu1 %v6820_v11  ;;  %6588 = vmatprep.subr.bf16.mxu0 %v6821_v18 }
  0xd7   : > { %6461 = vmatmul.mubr.bf16.gmra.mrb[84].mxu1 %v7065_v24  ;;  %6509 = vmatmul.mubr.bf16.gmra.mrb[84].mxu0 %v7076_v27 }
  0xd8   : > { %6464 = vmatprep.mubr.bf16.mxu1 %v7076_v27  ;;  %6512 = vmatprep.mubr.bf16.mxu0 %v7093_v32 }
  0xd9   : > { %6541 = vmatpush3.bf16.msra.mxu1 %v6820_v11  ;;  %6589 = vmatpush3.bf16.msra.mxu0 %v6821_v18 }
  0xda   : > { %6542 = vmatprep.subr.bf16.mxu1 %v6822_v20  ;;  %6590 = vmatprep.subr.bf16.mxu0 %v6823_v22 }
  0xdd   : > { %6543 = vmatpush3.bf16.msra.mxu1 %v6822_v20  ;;  %6591 = vmatpush3.bf16.msra.mxu0 %v6823_v22 }
  0xde   : > { %6544 = vmatprep.subr.bf16.mxu1 %v6824_v23  ;;  %6592 = vmatprep.subr.bf16.mxu0 %v6825_v26 }
  0xdf   : > { %6465 = vmatmul.mubr.bf16.gmra.mrb[88].mxu1 %v7093_v32  ;;  %6513 = vmatmul.mubr.bf16.gmra.mrb[88].mxu0 %v7109_v36 }
  0xe0   : > { %6468 = vmatprep.mubr.bf16.mxu1 %v7109_v36  ;;  %6516 = vmatprep.mubr.bf16.mxu0 %v7002_v5 }
  0xe1   : > { %6545 = vmatpush3.bf16.msra.mxu1 %v6824_v23  ;;  %6593 = vmatpush3.bf16.msra.mxu0 %v6825_v26 }
  0xe2   : > { %6546 = vmatprep.subr.bf16.mxu1 %v6826_v28  ;;  %6594 = vmatprep.subr.bf16.mxu0 %v6827_v30 }
  0xe5   : > { %6547 = vmatpush3.bf16.msra.mxu1 %v6826_v28  ;;  %6595 = vmatpush3.bf16.msra.mxu0 %v6827_v30 }
  0xe6   : > { %6548 = vmatprep.subr.bf16.mxu1 %v6828_v31  ;;  %6596 = vmatprep.subr.bf16.mxu0 %v6829_v34 }
  0xe7   : > { %6469 = vmatmul.mubr.bf16.gmra.mrb[92].mxu1 %v7002_v5  ;;  %6517 = vmatmul.mubr.bf16.gmra.mrb[92].mxu0 %v7028_v13 }
  0xe8   : > { %6472 = vmatprep.mubr.bf16.mxu1 %v7028_v13  ;;  %6520 = vmatprep.mubr.bf16.mxu0 %v7040_v17 }
  0xe9   : > { %6549 = vmatpush3.bf16.msra.mxu1 %v6828_v31  ;;  %6597 = vmatpush3.bf16.msra.mxu0 %v6829_v34 }
  0xea   : > { %6550 = vmatprep.subr.bf16.mxu1 %v6831_v35  ;;  %6598 = vmatprep.subr.bf16.mxu0 %v6832_v38 }
  0xed   : > { %6551 = vmatpush3.bf16.msra.mxu1 %v6831_v35  ;;  %6599 = vmatpush3.bf16.msra.mxu0 %v6832_v38 }
  0xef   : > { %6473 = vmatmul.mubr.bf16.gmra.mrb[96].mxu1 %v7040_v17  ;;  %6521 = vmatmul.mubr.bf16.gmra.mrb[96].mxu0 %v7056_v21 }
  0xf0   : > { %6476 = vmatprep.mubr.bf16.mxu1 %v7056_v21  ;;  %6524 = vmatprep.mubr.bf16.mxu0 %v7068_v25 }
  0xf7   : > { %6477 = vmatmul.mubr.bf16.gmra.mrb[100].mxu1 %v7068_v25  ;;  %6525 = vmatmul.mubr.bf16.gmra.mrb[100].mxu0 %v7084_v29 }
  0xf8   : > { %6480 = vmatprep.mubr.bf16.mxu1 %v7084_v29  ;;  %6528 = vmatprep.mubr.bf16.mxu0 %v7096_v33 }
  0xff   : > { %6481 = vmatmul.mubr.bf16.gmra.mrb[104].mxu1 %v7096_v33  ;;  %6529 = vmatmul.mubr.bf16.gmra.mrb[104].mxu0 %v7112_v37 }
 0x100   : > { %6484 = vmatprep.mubr.bf16.mxu1 %v7112_v37  ;;  %6532 = vmatprep.mubr.bf16.mxu0 %v7293_v12 }
 0x102   : > { %v7369_v5 = vpop.f32.mrb[0].mxu0  ;;  %v7371_v39 = vpop.f32.mrb[0].mxu1 }
 0x103   : > { %v7373_v40 = vpop.f32.mrb[1].mxu0  ;;  %v7375_v41 = vpop.f32.mrb[1].mxu1 }
 0x104   : > { %v6219_v43 = vpop.f32.mrb[2].mxu0  ;;  %v6235_v44 = vpop.f32.mrb[2].mxu1 }
 0x105   : > { %v601_v45 = vpop.f32.mrb[3].mxu0  ;;  %v665_v46 = vpop.f32.mrb[3].mxu1 }
 0x107   : > { %6485 = vmatmul.mubr.bf16.gmra.mrb[108].mxu1 %v7293_v12  ;;  %6533 = vmatmul.mubr.bf16.gmra.mrb[108].mxu0 %v7378_v42 }
 0x108   : > { %6552 = vmatprep.mubr.bf16.mxu1 %v7037_v16  ;;  %6600 = vmatprep.mubr.bf16.mxu0 %v7037_v16 }
 0x10a   : > { %v7384_v47 = vpop.f32.mrb[4].mxu0  ;;  %v7386_v48 = vpop.f32.mrb[4].mxu1 }
 0x10b   : > { %v7388_v49 = vpop.f32.mrb[5].mxu0  ;;  %v7390_v50 = vpop.f32.mrb[5].mxu1 }
 0x10c   : > { %v6223_v51 = vpop.f32.mrb[6].mxu0  ;;  %v6239_v52 = vpop.f32.mrb[6].mxu1 }
 0x10d   : > { %v617_v53 = vpop.f32.mrb[7].mxu0  ;;  %v681_v54 = vpop.f32.mrb[7].mxu1 }
 0x10f   : > { %6553 = vmatmul.mubr.bf16.vlgmr.msra.gmra.mrb[112].mxu1 %v7048_v19  ;;  %6601 = vmatmul.mubr.bf16.vlgmr.msra.gmra.mrb[112].mxu0 %v7048_v19 }
 0x110   : > { %6556 = vmatprep.mubr.bf16.mxu1 %v7065_v24  ;;  %6604 = vmatprep.mubr.bf16.mxu0 %v7065_v24 }
 0x112   : > { %v7396_v16 = vpop.f32.mrb[8].mxu0  ;;  %v7398_v55 = vpop.f32.mrb[8].mxu1 }
 0x113   : > { %v7400_v56 = vpop.f32.mrb[9].mxu0  ;;  %v7402_v57 = vpop.f32.mrb[9].mxu1 }
 0x114   : > { %v6227_v58 = vpop.f32.mrb[10].mxu0  ;;  %v6243_v59 = vpop.f32.mrb[10].mxu1 }
 0x115   : > { %v633_v60 = vpop.f32.mrb[11].mxu0  ;;  %v697_v61 = vpop.f32.mrb[11].mxu1 }
 0x117   : > { %6557 = vmatmul.mubr.bf16.gmra.mrb[116].mxu1 %v7076_v27  ;;  %6605 = vmatmul.mubr.bf16.gmra.mrb[116].mxu0 %v7076_v27  ;;  %v7418_v27 = vshrl.u32 %v1015_v2, 7 }
 0x118   : > { %6560 = vmatprep.mubr.bf16.mxu1 %v7093_v32  ;;  %6608 = vmatprep.mubr.bf16.mxu0 %v7093_v32  ;;  %v6897_v32 = vld [vmem:[%s6993_s6 + $0x40] sm:$0xff]  }
 0x119   : > { %vm1017_vm0 = vcmp.lt.s32.totalorder %v7418_v27, 7  ;;  %vm1404_vm1 = vcmp.lt.s32.totalorder %v7418_v27, 6 }
 0x11a   : > { %v7408_v19 = vpop.f32.mrb[12].mxu0  ;;  %v7410_v24 = vpop.f32.mrb[12].mxu1 }
 0x11b   : > { %v7412_v62 = vpop.f32.mrb[13].mxu0  ;;  %v7414_v63 = vpop.f32.mrb[13].mxu1 }
 0x11c   : > { %v6231_v0 = vpop.f32.mrb[14].mxu0  ;;  %v6247_v1 = vpop.f32.mrb[14].mxu1 }
 0x11d   : > { %v649_v3 = vpop.f32.mrb[15].mxu0  ;;  %v713_v4 = vpop.f32.mrb[15].mxu1 }
 0x11f   : > { %6561 = vmatmul.mubr.bf16.gmra.mrb[120].mxu1 %v7109_v36  ;;  %6609 = vmatmul.mubr.bf16.gmra.mrb[120].mxu0 %v7109_v36 }
 0x120   : > { %6564 = vmatprep.mubr.bf16.mxu1 %v6897_v32  ;;  %6612 = vmatprep.mubr.bf16.mxu0 %v6897_v32 }
 0x122   : > { %v6266_v6 = vpop.f32.mrb[16].mxu1  ;;  %v6314_v7 = vpop.f32.mrb[16].mxu0 }
 0x123   : > { %v1374_v8 = vrot.slane %v6314_v7, 2  ;;  %v856_v9 = vpop.f32.mrb[17].mxu1  ;;  %v1245_v10 = vpop.f32.mrb[17].mxu0  ;;  %v985_v18 = vrot.slane %v6266_v6, 1 }
 0x124   : > { %v1372_v14 = vrot.slane %v1245_v10, 2  ;;  %v6267_v15 = vpop.f32.mrb[18].mxu1  ;;  %v6315_v11 = vpop.f32.mrb[18].mxu0  ;;  %v983_v26 = vrot.slane %v856_v9, 1 }
 0x125   : > { %v986_v20 = vrot.slane %v6267_v15, 1  ;;  %v1375_v36 = vrot.slane %v6315_v11, 2  ;;  %v859_v22 = vpop.f32.mrb[19].mxu1  ;;  %v1248_v23 = vpop.f32.mrb[19].mxu0 }
 0x126   : > { %v984_v28 = vrot.slane %v859_v22, 1  ;;  %v1373_v30 = vrot.slane %v1248_v23, 2 }
 0x127   : > { %v1046_v31 = vsel %vm1017_vm0, %v985_v18, %v986_v20  ;;  %6565 = vmatmul.mubr.bf16.gmra.mrb[124].mxu1 %v7028_v13  ;;  %6613 = vmatmul.mubr.bf16.gmra.mrb[124].mxu0 %v7028_v13  ;;  %v1433_v34 = vsel %vm1404_vm1, %v1374_v8, %v1375_v36 }
 0x128   : > { %v1048_v35 = vsel %vm1017_vm0, %v983_v26, %v984_v28  ;;  %6568 = vmatprep.mubr.bf16.mxu1 %v7040_v17  ;;  %6616 = vmatprep.mubr.bf16.mxu0 %v7040_v17  ;;  %v1084_v38 = vadd.f32 %v7369_v5, %v1046_v31  ;;  %v1435_v43 = vsel %vm1404_vm1, %v1372_v14, %v1373_v30 }
 0x129   : > { %v1082_v44 = vadd.f32 %v1048_v35, %v7373_v40 }
 0x12a   : > { %v6270_v45 = vpop.f32.mrb[20].mxu1  ;;  %v6318_v46 = vpop.f32.mrb[20].mxu0  ;;  %v7437_v13 = vadd.f32 %v1433_v34, %v1084_v38 }
 0x12b   : > { %v1378_v51 = vrot.slane %v6318_v46, 2  ;;  %v872_v52 = vpop.f32.mrb[21].mxu1  ;;  %v1261_v53 = vpop.f32.mrb[21].mxu0  ;;  %v7439_v54 = vadd.f32 %v1435_v43, %v1082_v44  ;;  %v989_v17 = vrot.slane %v6270_v45, 1 }
 0x12c   : > { %v1376_v58 = vrot.slane %v1261_v53, 2  ;;  %v6271_v59 = vpop.f32.mrb[22].mxu1  ;;  %v6319_v60 = vpop.f32.mrb[22].mxu0  ;;  %v987_v2 = vrot.slane %v872_v52, 1 }
 0x12d   : > { %v990_v61 = vrot.slane %v6271_v59, 1  ;;  %v1379_v5 = vrot.slane %v6319_v60, 2  ;;  %v875_v0 = vpop.f32.mrb[23].mxu1  ;;  %v1264_v1 = vpop.f32.mrb[23].mxu0 }
 0x12e   : > { %v988_v3 = vrot.slane %v875_v0, 1  ;;  %v1377_v40 = vrot.slane %v1264_v1, 2 }
 0x12f   : > { %v1042_v4 = vsel %vm1017_vm0, %v989_v17, %v990_v61  ;;  %6569 = vmatmul.mubr.bf16.gmra.mrb[128].mxu1 %v7056_v21  ;;  %6617 = vmatmul.mubr.bf16.gmra.mrb[128].mxu0 %v7056_v21  ;;  %v1429_v32 = vsel %vm1404_vm1, %v1378_v51, %v1379_v5 }
 0x130   : > { %v1044_v6 = vsel %vm1017_vm0, %v987_v2, %v988_v3  ;;  %6572 = vmatprep.mubr.bf16.mxu1 %v7068_v25  ;;  %6620 = vmatprep.mubr.bf16.mxu0 %v7068_v25  ;;  %v1088_v7 = vadd.f32 %v7384_v47, %v1042_v4  ;;  %v1431_v8 = vsel %vm1404_vm1, %v1376_v58, %v1377_v40 }
 0x131   : > { %v1086_v9 = vadd.f32 %v1044_v6, %v7388_v49 }
 0x132   : > { %v6274_v10 = vpop.f32.mrb[24].mxu1  ;;  %v6322_v14 = vpop.f32.mrb[24].mxu0  ;;  %v7455_v21 = vadd.f32 %v1429_v32, %v1088_v7 }
 0x133   : > { %v1382_v15 = vrot.slane %v6322_v14, 2  ;;  %v888_v11 = vpop.f32.mrb[25].mxu1  ;;  %v1277_v18 = vpop.f32.mrb[25].mxu0  ;;  %v7457_v20 = vadd.f32 %v1431_v8, %v1086_v9  ;;  %v993_v25 = vrot.slane %v6274_v10, 1 }
 0x134   : > { %v1380_v36 = vrot.slane %v1277_v18, 2  ;;  %v6275_v22 = vpop.f32.mrb[26].mxu1  ;;  %v6323_v23 = vpop.f32.mrb[26].mxu0  ;;  %v991_v31 = vrot.slane %v888_v11, 1 }
 0x135   : > { %v994_v26 = vrot.slane %v6275_v22, 1  ;;  %v1383_v47 = vrot.slane %v6323_v23, 2  ;;  %v891_v28 = vpop.f32.mrb[27].mxu1  ;;  %v1280_v30 = vpop.f32.mrb[27].mxu0 }
 0x136   : > { %v992_v34 = vrot.slane %v891_v28, 1  ;;  %v1381_v49 = vrot.slane %v1280_v30, 2 }
 0x137   : > { %v1038_v35 = vsel %vm1017_vm0, %v993_v25, %v994_v26  ;;  %6573 = vmatmul.mubr.bf16.gmra.mrb[132].mxu1 %v7084_v29  ;;  %6621 = vmatmul.mubr.bf16.gmra.mrb[132].mxu0 %v7084_v29  ;;  %v1425_v38 = vsel %vm1404_vm1, %v1382_v15, %v1383_v47 }
 0x138   : > { %v1040_v43 = vsel %vm1017_vm0, %v991_v31, %v992_v34  ;;  %6576 = vmatprep.mubr.bf16.mxu1 %v7096_v33  ;;  %6624 = vmatprep.mubr.bf16.mxu0 %v7096_v33  ;;  %v1092_v44 = vadd.f32 %v7396_v16, %v1038_v35  ;;  %v1427_v45 = vsel %vm1404_vm1, %v1380_v36, %v1381_v49 }
 0x139   : > { %v1090_v46 = vadd.f32 %v1040_v43, %v7400_v56 }
 0x13a   : > { %v6278_v51 = vpop.f32.mrb[28].mxu1  ;;  %v6326_v52 = vpop.f32.mrb[28].mxu0  ;;  %v7473_v29 = vadd.f32 %v1425_v38, %v1092_v44 }
 0x13b   : > { %v1386_v53 = vrot.slane %v6326_v52, 2  ;;  %v904_v58 = vpop.f32.mrb[29].mxu1  ;;  %v1293_v59 = vpop.f32.mrb[29].mxu0  ;;  %v7475_v60 = vadd.f32 %v1427_v45, %v1090_v46  ;;  %v997_v33 = vrot.slane %v6278_v51, 1 }
 0x13c   : > { %v1384_v17 = vrot.slane %v1293_v59, 2  ;;  %v6279_v61 = vpop.f32.mrb[30].mxu1  ;;  %v6327_v5 = vpop.f32.mrb[30].mxu0  ;;  %v995_v3 = vrot.slane %v904_v58, 1 }
 0x13d   : > { %v998_v0 = vrot.slane %v6279_v61, 1  ;;  %v1387_v16 = vrot.slane %v6327_v5, 2  ;;  %v907_v1 = vpop.f32.mrb[31].mxu1  ;;  %v1296_v2 = vpop.f32.mrb[31].mxu0 }
 0x13e   : > { %v996_v40 = vrot.slane %v907_v1, 1  ;;  %v1385_v56 = vrot.slane %v1296_v2, 2 }
 0x13f   : > { %v1034_v4 = vsel %vm1017_vm0, %v997_v33, %v998_v0  ;;  %6577 = vmatmul.mubr.bf16.gmra.mrb[136].mxu1 %v7112_v37  ;;  %6625 = vmatmul.mubr.bf16.gmra.mrb[136].mxu0 %v7112_v37  ;;  %v1421_v32 = vsel %vm1404_vm1, %v1386_v53, %v1387_v16 }
 0x140   : > { %v1036_v6 = vsel %vm1017_vm0, %v995_v3, %v996_v40  ;;  %6580 = vmatprep.mubr.bf16.mxu1 %v7293_v12  ;;  %6628 = vmatprep.mubr.bf16.mxu0 %v7293_v12  ;;  %v1096_v7 = vadd.f32 %v7408_v19, %v1034_v4  ;;  %v1423_v8 = vsel %vm1404_vm1, %v1384_v17, %v1385_v56 }
 0x141   : > { %v1094_v9 = vadd.f32 %v1036_v6, %v7412_v62 }
 0x142   : > { %v6282_v10 = vpop.f32.mrb[32].mxu1  ;;  %v6330_v14 = vpop.f32.mrb[32].mxu0  ;;  %v7491_v37 = vadd.f32 %v1421_v32, %v1096_v7 }
 0x143   : > { %v1390_v15 = vrot.slane %v6330_v14, 2  ;;  %v920_v11 = vpop.f32.mrb[33].mxu1  ;;  %v1309_v18 = vpop.f32.mrb[33].mxu0  ;;  %v7493_v36 = vadd.f32 %v1423_v8, %v1094_v9  ;;  %v1001_v12 = vrot.slane %v6282_v10, 1 }
 0x144   : > { %v1388_v22 = vrot.slane %v1309_v18, 2  ;;  %v6283_v23 = vpop.f32.mrb[34].mxu1  ;;  %v6331_v25 = vpop.f32.mrb[34].mxu0  ;;  %v999_v30 = vrot.slane %v920_v11, 1 }
 0x145   : > { %v1002_v26 = vrot.slane %v6283_v23, 1  ;;  %v1391_v19 = vrot.slane %v6331_v25, 2  ;;  %v923_v47 = vpop.f32.mrb[35].mxu1  ;;  %v1312_v28 = vpop.f32.mrb[35].mxu0 }
 0x146   : > { %v1000_v31 = vrot.slane %v923_v47, 1  ;;  %v1389_v62 = vrot.slane %v1312_v28, 2 }
 0x147   : > { %v1030_v34 = vsel %vm1017_vm0, %v1001_v12, %v1002_v26  ;;  %6581 = vmatmul.mubr.bf16.gmra.mrb[140].mxu1 %v7378_v42  ;;  %6629 = vmatmul.mubr.bf16.gmra.mrb[140].mxu0 %v7378_v42  ;;  %v1417_v49 = vsel %vm1404_vm1, %v1390_v15, %v1391_v19 }
 0x148   : > { %v1032_v35 = vsel %vm1017_vm0, %v999_v30, %v1000_v31  ;;  %v1100_v38 = vadd.f32 %v7371_v39, %v1030_v34  ;;  %v1419_v43 = vsel %vm1404_vm1, %v1388_v22, %v1389_v62 }
 0x149   : > { %v1098_v44 = vadd.f32 %v1032_v35, %v7375_v41 }
 0x14a   : > { %v6286_v45 = vpop.f32.mrb[36].mxu1  ;;  %v6334_v46 = vpop.f32.mrb[36].mxu0  ;;  %v7507_v51 = vadd.f32 %v1417_v49, %v1100_v38 }
 0x14b   : > { %v1394_v52 = vrot.slane %v6334_v46, 2  ;;  %v936_v53 = vpop.f32.mrb[37].mxu1  ;;  %v1325_v42 = vpop.f32.mrb[37].mxu0  ;;  %v7509_v58 = vadd.f32 %v1419_v43, %v1098_v44  ;;  %v1005_v5 = vrot.slane %v6286_v45, 1 }
 0x14c   : > { %v1392_v59 = vrot.slane %v1325_v42, 2  ;;  %v6287_v17 = vpop.f32.mrb[38].mxu1  ;;  %v6335_v61 = vpop.f32.mrb[38].mxu0  ;;  %v1003_v1 = vrot.slane %v936_v53, 1 }
 0x14d   : > { %v1006_v33 = vrot.slane %v6287_v17, 1  ;;  %v1395_v39 = vrot.slane %v6335_v61, 2  ;;  %v939_v0 = vpop.f32.mrb[39].mxu1  ;;  %v1328_v16 = vpop.f32.mrb[39].mxu0 }
 0x14e   : > { %v1004_v2 = vrot.slane %v939_v0, 1  ;;  %v1393_v41 = vrot.slane %v1328_v16, 2 }
 0x14f   : > { %v1026_v3 = vsel %vm1017_vm0, %v1005_v5, %v1006_v33  ;;  %v1413_v40 = vsel %vm1404_vm1, %v1394_v52, %v1395_v39 }
 0x150   : > { %v1028_v56 = vsel %vm1017_vm0, %v1003_v1, %v1004_v2  ;;  %v1104_v4 = vadd.f32 %v7386_v48, %v1026_v3  ;;  %v1415_v32 = vsel %vm1404_vm1, %v1392_v59, %v1393_v41 }
 0x151   : > { %v1102_v6 = vadd.f32 %v1028_v56, %v7390_v50 }
 0x152   : > { %v6290_v7 = vpop.f32.mrb[40].mxu1  ;;  %v6338_v8 = vpop.f32.mrb[40].mxu0  ;;  %v7521_v9 = vadd.f32 %v1413_v40, %v1104_v4 }
 0x153   : > { %v1398_v10 = vrot.slane %v6338_v8, 2  ;;  %v952_v14 = vpop.f32.mrb[41].mxu1  ;;  %v1341_v15 = vpop.f32.mrb[41].mxu0  ;;  %v7523_v11 = vadd.f32 %v1415_v32, %v1102_v6  ;;  %v1009_v25 = vrot.slane %v6290_v7, 1 }
 0x154   : > { %v1396_v18 = vrot.slane %v1341_v15, 2  ;;  %v6291_v22 = vpop.f32.mrb[42].mxu1  ;;  %v6339_v23 = vpop.f32.mrb[42].mxu0  ;;  %v1007_v47 = vrot.slane %v952_v14, 1 }
 0x155   : > { %v1010_v12 = vrot.slane %v6291_v22, 1  ;;  %v1399_v48 = vrot.slane %v6339_v23, 2  ;;  %v955_v26 = vpop.f32.mrb[43].mxu1  ;;  %v1344_v19 = vpop.f32.mrb[43].mxu0 }
 0x156   : > { %v1008_v28 = vrot.slane %v955_v26, 1  ;;  %v1397_v50 = vrot.slane %v1344_v19, 2 }
 0x157   : > { %v1022_v30 = vsel %vm1017_vm0, %v1009_v25, %v1010_v12  ;;  %v1409_v31 = vsel %vm1404_vm1, %v1398_v10, %v1399_v48 }
 0x158   : > { %v1024_v62 = vsel %vm1017_vm0, %v1007_v47, %v1008_v28  ;;  %v1108_v34 = vadd.f32 %v7398_v55, %v1022_v30  ;;  %v1411_v49 = vsel %vm1404_vm1, %v1396_v18, %v1397_v50 }
 0x159   : > { %v1106_v35 = vadd.f32 %v1024_v62, %v7402_v57 }
 0x15a   : > { %v6294_v38 = vpop.f32.mrb[44].mxu1  ;;  %v6342_v43 = vpop.f32.mrb[44].mxu0  ;;  %v7535_v44 = vadd.f32 %v1409_v31, %v1108_v34 }
 0x15b   : > { %v1402_v45 = vrot.slane %v6342_v43, 2  ;;  %v968_v46 = vpop.f32.mrb[45].mxu1  ;;  %v1357_v52 = vpop.f32.mrb[45].mxu0  ;;  %v7537_v53 = vadd.f32 %v1411_v49, %v1106_v35  ;;  %v1013_v61 = vrot.slane %v6294_v38, 1 }
 0x15c   : > { %v1400_v42 = vrot.slane %v1357_v52, 2  ;;  %v6295_v59 = vpop.f32.mrb[46].mxu1  ;;  %v6343_v17 = vpop.f32.mrb[46].mxu0  ;;  %v1011_v0 = vrot.slane %v968_v46, 1 }
 0x15d   : > { %v1014_v5 = vrot.slane %v6295_v59, 1  ;;  %v1403_v55 = vrot.slane %v6343_v17, 2  ;;  %v971_v33 = vpop.f32.mrb[47].mxu1  ;;  %v1360_v39 = vpop.f32.mrb[47].mxu0 }
 0x15e   : > { %v1012_v16 = vrot.slane %v971_v33, 1  ;;  %v1401_v57 = vrot.slane %v1360_v39, 2 }
 0x15f   : > { %v1018_v1 = vsel %vm1017_vm0, %v1013_v61, %v1014_v5  ;;  %v1405_v2 = vsel %vm1404_vm1, %v1402_v45, %v1403_v55 }
 0x160   : > { %v1020_v41 = vsel %vm1017_vm0, %v1011_v0, %v1012_v16  ;;  %v1112_v3 = vadd.f32 %v7410_v24, %v1018_v1  ;;  %v1407_v40 = vsel %vm1404_vm1, %v1400_v42, %v1401_v57 }
 0x161   : > { %v1110_v56 = vadd.f32 %v1020_v41, %v7414_v63 }
 0x162   : > { %v6362_v4 = vpop.f32.mrb[48].mxu1  ;;  %v6410_v32 = vpop.f32.mrb[48].mxu0  ;;  %v7549_v6 = vadd.f32 %v1405_v2, %v1112_v3 }
 0x163   : > { %v1799_v7 = vadd.f32 %v6362_v4, %v7437_v13  ;;  %v2089_v8 = vrot.slane %v6410_v32, 1  ;;  %v1638_v10 = vpop.f32.mrb[49].mxu1  ;;  %v1960_v14 = vpop.f32.mrb[49].mxu0  ;;  %v7552_v15 = vadd.f32 %v1407_v40, %v1110_v56 }
 0x164   : > { %v1797_v18 = vadd.f32 %v1638_v10, %v7439_v54  ;;  %v2087_v22 = vrot.slane %v1960_v14, 1  ;;  %v6363_v24 = vpop.f32.mrb[50].mxu1  ;;  %v6411_v23 = vpop.f32.mrb[50].mxu0 }
 0x165   : > { %v2090_v25 = vrot.slane %v6411_v23, 1  ;;  %v1641_v12 = vpop.f32.mrb[51].mxu1  ;;  %v1963_v48 = vpop.f32.mrb[51].mxu0 }
 0x166   : > { %v2088_v63 = vrot.slane %v1963_v48, 1 }
 0x167   : > { %v2147_v26 = vsel %vm1017_vm0, %v2089_v8, %v2090_v25 }
 0x168   : > { %v7557_v19 = vadd.f32 %v2147_v26, %v1799_v7  ;;  %v2149_v13 = vsel %vm1017_vm0, %v2087_v22, %v2088_v63 }
 0x169   : > { %v7561_v47 = vadd.f32 %v2149_v13, %v1797_v18 }
 0x16a   : > { %v6366_v28 = vpop.f32.mrb[52].mxu1  ;;  %v6414_v50 = vpop.f32.mrb[52].mxu0 }
 0x16b   : > { %v1803_v54 = vadd.f32 %v6366_v28, %v7455_v21  ;;  %v2093_v30 = vrot.slane %v6414_v50, 1  ;;  %v1654_v31 = vpop.f32.mrb[53].mxu1  ;;  %v1976_v62 = vpop.f32.mrb[53].mxu0 }
 0x16c   : > { %v1801_v34 = vadd.f32 %v1654_v31, %v7457_v20  ;;  %v2091_v49 = vrot.slane %v1976_v62, 1  ;;  %v6367_v35 = vpop.f32.mrb[54].mxu1  ;;  %v6415_v38 = vpop.f32.mrb[54].mxu0 }
 0x16d   : > { %v2094_v43 = vrot.slane %v6415_v38, 1  ;;  %v1657_v45 = vpop.f32.mrb[55].mxu1  ;;  %v1979_v46 = vpop.f32.mrb[55].mxu0 }
 0x16e   : > { %v2092_v52 = vrot.slane %v1979_v46, 1 }
 0x16f   : > { %v2143_v42 = vsel %vm1017_vm0, %v2093_v30, %v2094_v43 }
 0x170   : > { %v7567_v59 = vadd.f32 %v2143_v42, %v1803_v54  ;;  %v2145_v21 = vsel %vm1017_vm0, %v2091_v49, %v2092_v52 }
 0x171   : > { %v7571_v17 = vadd.f32 %v2145_v21, %v1801_v34 }
 0x172   : > { %v6370_v61 = vpop.f32.mrb[56].mxu1  ;;  %v6418_v5 = vpop.f32.mrb[56].mxu0 }
 0x173   : > { %v1807_v20 = vadd.f32 %v6370_v61, %v7473_v29  ;;  %v2097_v55 = vrot.slane %v6418_v5, 1  ;;  %v1670_v33 = vpop.f32.mrb[57].mxu1  ;;  %v1992_v39 = vpop.f32.mrb[57].mxu0 }
 0x174   : > { %v1805_v0 = vadd.f32 %v1670_v33, %v7475_v60  ;;  %v2095_v16 = vrot.slane %v1992_v39, 1  ;;  %v6371_v57 = vpop.f32.mrb[58].mxu1  ;;  %v6419_v1 = vpop.f32.mrb[58].mxu0 }
 0x175   : > { %v2098_v2 = vrot.slane %v6419_v1, 1  ;;  %v1673_v41 = vpop.f32.mrb[59].mxu1  ;;  %v1995_v3 = vpop.f32.mrb[59].mxu0 }
 0x176   : > { %v2096_v40 = vrot.slane %v1995_v3, 1 }
 0x177   : > { %v2139_v56 = vsel %vm1017_vm0, %v2097_v55, %v2098_v2 }
 0x178   : > { %v7577_v4 = vadd.f32 %v2139_v56, %v1807_v20  ;;  %v2141_v29 = vsel %vm1017_vm0, %v2095_v16, %v2096_v40 }
 0x179   : > { %v7581_v32 = vadd.f32 %v2141_v29, %v1805_v0 }
 0x17a   : > { %v6374_v7 = vpop.f32.mrb[60].mxu1  ;;  %v6422_v8 = vpop.f32.mrb[60].mxu0 }
 0x17b   : > { %v1811_v60 = vadd.f32 %v6374_v7, %v7491_v37  ;;  %v2101_v10 = vrot.slane %v6422_v8, 1  ;;  %v1686_v14 = vpop.f32.mrb[61].mxu1  ;;  %v2008_v18 = vpop.f32.mrb[61].mxu0 }
 0x17c   : > { %v1809_v22 = vadd.f32 %v1686_v14, %v7493_v36  ;;  %v2099_v24 = vrot.slane %v2008_v18, 1  ;;  %v6375_v23 = vpop.f32.mrb[62].mxu1  ;;  %v6423_v25 = vpop.f32.mrb[62].mxu0 }
 0x17d   : > { %v2102_v12 = vrot.slane %v6423_v25, 1  ;;  %v1689_v48 = vpop.f32.mrb[63].mxu1  ;;  %v2011_v63 = vpop.f32.mrb[63].mxu0 }
 0x17e   : > { %v2100_v26 = vrot.slane %v2011_v63, 1 }
 0x17f   : > { %v2135_v13 = vsel %vm1017_vm0, %v2101_v10, %v2102_v12 }
 0x180   : > { %v7587_v28 = vadd.f32 %v2135_v13, %v1811_v60  ;;  %v2137_v37 = vsel %vm1017_vm0, %v2099_v24, %v2100_v26 }
 0x181   : > { %v7591_v50 = vadd.f32 %v2137_v37, %v1809_v22 }
 0x182   : > { %v6378_v54 = vpop.f32.mrb[64].mxu1  ;;  %v6426_v30 = vpop.f32.mrb[64].mxu0 }
 0x183   : > { %v1815_v36 = vadd.f32 %v6378_v54, %v7507_v51  ;;  %v2105_v31 = vrot.slane %v6426_v30, 1  ;;  %v1702_v62 = vpop.f32.mrb[65].mxu1  ;;  %v2024_v34 = vpop.f32.mrb[65].mxu0 }
 0x184   : > { %v1813_v49 = vadd.f32 %v1702_v62, %v7509_v58  ;;  %v2103_v35 = vrot.slane %v2024_v34, 1  ;;  %v6379_v38 = vpop.f32.mrb[66].mxu1  ;;  %v6427_v43 = vpop.f32.mrb[66].mxu0 }
 0x185   : > { %v2106_v45 = vrot.slane %v6427_v43, 1  ;;  %v1705_v46 = vpop.f32.mrb[67].mxu1  ;;  %v2027_v52 = vpop.f32.mrb[67].mxu0 }
 0x186   : > { %v2104_v42 = vrot.slane %v2027_v52, 1 }
 0x187   : > { %v2131_v21 = vsel %vm1017_vm0, %v2105_v31, %v2106_v45 }
 0x188   : > { %v7597_v61 = vadd.f32 %v2131_v21, %v1815_v36  ;;  %v2133_v51 = vsel %vm1017_vm0, %v2103_v35, %v2104_v42 }
 0x189   : > { %v7601_v5 = vadd.f32 %v2133_v51, %v1813_v49 }
 0x18a   : > { %v6382_v20 = vpop.f32.mrb[68].mxu1  ;;  %v6430_v55 = vpop.f32.mrb[68].mxu0 }
 0x18b   : > { %v1819_v58 = vadd.f32 %v6382_v20, %v7521_v9  ;;  %v2109_v33 = vrot.slane %v6430_v55, 1  ;;  %v1718_v39 = vpop.f32.mrb[69].mxu1  ;;  %v2040_v0 = vpop.f32.mrb[69].mxu0 }
 0x18c   : > { %v1817_v16 = vadd.f32 %v1718_v39, %v7523_v11  ;;  %v2107_v57 = vrot.slane %v2040_v0, 1  ;;  %v6383_v1 = vpop.f32.mrb[70].mxu1  ;;  %v6431_v2 = vpop.f32.mrb[70].mxu0 }
 0x18d   : > { %v2110_v41 = vrot.slane %v6431_v2, 1  ;;  %v1721_v3 = vpop.f32.mrb[71].mxu1  ;;  %v2043_v40 = vpop.f32.mrb[71].mxu0 }
 0x18e   : > { %v2108_v56 = vrot.slane %v2043_v40, 1 }
 0x18f   : > { %v2127_v29 = vsel %vm1017_vm0, %v2109_v33, %v2110_v41 }
 0x190   : > { %v7607_v7 = vadd.f32 %v2127_v29, %v1819_v58  ;;  %v2129_v9 = vsel %vm1017_vm0, %v2107_v57, %v2108_v56 }
 0x191   : > { %v7611_v8 = vadd.f32 %v2129_v9, %v1817_v16 }
 0x192   : > { %v6386_v60 = vpop.f32.mrb[72].mxu1  ;;  %v6434_v10 = vpop.f32.mrb[72].mxu0 }
 0x193   : > { %v1823_v11 = vadd.f32 %v6386_v60, %v7535_v44  ;;  %v2113_v14 = vrot.slane %v6434_v10, 1  ;;  %v1734_v18 = vpop.f32.mrb[73].mxu1  ;;  %v2056_v22 = vpop.f32.mrb[73].mxu0 }
 0x194   : > { %v1821_v24 = vadd.f32 %v1734_v18, %v7537_v53  ;;  %v2111_v23 = vrot.slane %v2056_v22, 1  ;;  %v6387_v25 = vpop.f32.mrb[74].mxu1  ;;  %v6435_v12 = vpop.f32.mrb[74].mxu0 }
 0x195   : > { %v2114_v48 = vrot.slane %v6435_v12, 1  ;;  %v1737_v63 = vpop.f32.mrb[75].mxu1  ;;  %v2059_v26 = vpop.f32.mrb[75].mxu0 }
 0x196   : > { %v2112_v13 = vrot.slane %v2059_v26, 1 }
 0x197   : > { %v2123_v37 = vsel %vm1017_vm0, %v2113_v14, %v2114_v48 }
 0x198   : > { %v7617_v54 = vadd.f32 %v2123_v37, %v1823_v11  ;;  %v2125_v44 = vsel %vm1017_vm0, %v2111_v23, %v2112_v13 }
 0x199   : > { %v7621_v30 = vadd.f32 %v2125_v44, %v1821_v24 }
 0x19a   : > { %v6390_v36 = vpop.f32.mrb[76].mxu1  ;;  %v6438_v31 = vpop.f32.mrb[76].mxu0 }
 0x19b   : > { %v1827_v53 = vadd.f32 %v6390_v36, %v7549_v6  ;;  %v2117_v62 = vrot.slane %v6438_v31, 1  ;;  %v1750_v34 = vpop.f32.mrb[77].mxu1  ;;  %v2072_v49 = vpop.f32.mrb[77].mxu0 }
 0x19c   : > { %v1825_v35 = vadd.f32 %v1750_v34, %v7552_v15  ;;  %v2115_v38 = vrot.slane %v2072_v49, 1  ;;  %v6391_v43 = vpop.f32.mrb[78].mxu1  ;;  %v6439_v45 = vpop.f32.mrb[78].mxu0 }
 0x19d   : > { %v2118_v46 = vrot.slane %v6439_v45, 1  ;;  %v1753_v52 = vpop.f32.mrb[79].mxu1  ;;  %v2075_v42 = vpop.f32.mrb[79].mxu0 }
 0x19e   : > { %v2116_v21 = vrot.slane %v2075_v42, 1 }
 0x19f   : > { %v2119_v51 = vsel %vm1017_vm0, %v2117_v62, %v2118_v46 }
 0x1a0   : > { %v7627_v20 = vadd.f32 %v2119_v51, %v1827_v53  ;;  %v2121_v6 = vsel %vm1017_vm0, %v2115_v38, %v2116_v21 }
 0x1a1   : > { %v7631_v55 = vadd.f32 %v2121_v6, %v1825_v35 }
 0x1a2   : > { %v6458_v58 = vpop.f32.mrb[80].mxu1  ;;  %v6506_v33 = vpop.f32.mrb[80].mxu0 }
 0x1a3   : > { %v2346_v15 = vpop.f32.mrb[81].mxu1  ;;  %v2738_v39 = vpop.f32.mrb[81].mxu0  ;;  %v2475_v57 = vrot.slane %v6458_v58, 2 }
 0x1a4   : > { %v6459_v0 = vpop.f32.mrb[82].mxu1  ;;  %v6507_v16 = vpop.f32.mrb[82].mxu0  ;;  %v2473_v3 = vrot.slane %v2346_v15, 2 }
 0x1a5   : > { %v2476_v1 = vrot.slane %v6459_v0, 2  ;;  %v2349_v2 = vpop.f32.mrb[83].mxu1  ;;  %v2741_v41 = vpop.f32.mrb[83].mxu0 }
 0x1a6   : > { %v2474_v40 = vrot.slane %v2349_v2, 2 }
 0x1a7   : > { %v2533_v56 = vsel %vm1404_vm1, %v2475_v57, %v2476_v1 }
 0x1a8   : > { %v2571_v29 = vadd.f32 %v2533_v56, %v7557_v19  ;;  %v2535_v9 = vsel %vm1404_vm1, %v2473_v3, %v2474_v40 }
 0x1a9   : > { %v2569_v60 = vadd.f32 %v2535_v9, %v7561_v47 }
 0x1aa   : > { %v6462_v10 = vpop.f32.mrb[84].mxu1  ;;  %v6510_v11 = vpop.f32.mrb[84].mxu0  ;;  %v7639_v14 = vadd.f32 %v6506_v33, %v2571_v29 }
 0x1ab   : > { %v2362_v18 = vpop.f32.mrb[85].mxu1  ;;  %v2754_v22 = vpop.f32.mrb[85].mxu0  ;;  %v7641_v24 = vadd.f32 %v2738_v39, %v2569_v60  ;;  %v2479_v12 = vrot.slane %v6462_v10, 2 }
 0x1ac   : > { %v6463_v23 = vpop.f32.mrb[86].mxu1  ;;  %v6511_v25 = vpop.f32.mrb[86].mxu0  ;;  %v2477_v19 = vrot.slane %v2362_v18, 2 }
 0x1ad   : > { %v2480_v48 = vrot.slane %v6463_v23, 2  ;;  %v2365_v63 = vpop.f32.mrb[87].mxu1  ;;  %v2757_v26 = vpop.f32.mrb[87].mxu0 }
 0x1ae   : > { %v2478_v13 = vrot.slane %v2365_v63, 2 }
 0x1af   : > { %v2529_v37 = vsel %vm1404_vm1, %v2479_v12, %v2480_v48 }
 0x1b0   : > { %v2575_v47 = vadd.f32 %v2529_v37, %v7567_v59  ;;  %v2531_v44 = vsel %vm1404_vm1, %v2477_v19, %v2478_v13 }
 0x1b1   : > { %v2573_v36 = vadd.f32 %v2531_v44, %v7571_v17 }
 0x1b2   : > { %v6466_v31 = vpop.f32.mrb[88].mxu1  ;;  %v6514_v53 = vpop.f32.mrb[88].mxu0  ;;  %v7649_v62 = vadd.f32 %v6510_v11, %v2575_v47 }
 0x1b3   : > { %v2378_v34 = vpop.f32.mrb[89].mxu1  ;;  %v2770_v49 = vpop.f32.mrb[89].mxu0  ;;  %v7651_v35 = vadd.f32 %v2754_v22, %v2573_v36  ;;  %v2483_v45 = vrot.slane %v6466_v31, 2 }
 0x1b4   : > { %v6467_v38 = vpop.f32.mrb[90].mxu1  ;;  %v6515_v43 = vpop.f32.mrb[90].mxu0  ;;  %v2481_v59 = vrot.slane %v2378_v34, 2 }
 0x1b5   : > { %v2484_v46 = vrot.slane %v6467_v38, 2  ;;  %v2381_v52 = vpop.f32.mrb[91].mxu1  ;;  %v2773_v42 = vpop.f32.mrb[91].mxu0 }
 0x1b6   : > { %v2482_v21 = vrot.slane %v2381_v52, 2 }
 0x1b7   : > { %v2525_v51 = vsel %vm1404_vm1, %v2483_v45, %v2484_v46 }
 0x1b8   : > { %v2579_v17 = vadd.f32 %v2525_v51, %v7577_v4  ;;  %v2527_v6 = vsel %vm1404_vm1, %v2481_v59, %v2482_v21 }
 0x1b9   : > { %v2577_v58 = vadd.f32 %v2527_v6, %v7581_v32 }
 0x1ba   : > { %v6470_v33 = vpop.f32.mrb[92].mxu1  ;;  %v6518_v15 = vpop.f32.mrb[92].mxu0  ;;  %v7659_v39 = vadd.f32 %v6514_v53, %v2579_v17 }
 0x1bb   : > { %v2394_v0 = vpop.f32.mrb[93].mxu1  ;;  %v2786_v16 = vpop.f32.mrb[93].mxu0  ;;  %v7661_v57 = vadd.f32 %v2770_v49, %v2577_v58  ;;  %v2487_v41 = vrot.slane %v6470_v33, 2 }
 0x1bc   : > { %v6471_v1 = vpop.f32.mrb[94].mxu1  ;;  %v6519_v2 = vpop.f32.mrb[94].mxu0  ;;  %v2485_v4 = vrot.slane %v2394_v0, 2 }
 0x1bd   : > { %v2488_v3 = vrot.slane %v6471_v1, 2  ;;  %v2397_v40 = vpop.f32.mrb[95].mxu1  ;;  %v2789_v56 = vpop.f32.mrb[95].mxu0 }
 0x1be   : > { %v2486_v29 = vrot.slane %v2397_v40, 2 }
 0x1bf   : > { %v2521_v9 = vsel %vm1404_vm1, %v2487_v41, %v2488_v3 }
 0x1c0   : > { %v2583_v32 = vadd.f32 %v2521_v9, %v7587_v28  ;;  %v2523_v60 = vsel %vm1404_vm1, %v2485_v4, %v2486_v29 }
 0x1c1   : > { %v2581_v10 = vadd.f32 %v2523_v60, %v7591_v50 }
 0x1c2   : > { %v6474_v11 = vpop.f32.mrb[96].mxu1  ;;  %v7669_v18 = vpop.f32.mrb[96].mxu0  ;;  %v7671_v22 = vadd.f32 %v6518_v15, %v2583_v32 }
 0x1c3   : > { %v2410_v23 = vpop.f32.mrb[97].mxu1  ;;  %v7673_v25 = vpop.f32.mrb[97].mxu0  ;;  %v7675_v12 = vadd.f32 %v2786_v16, %v2581_v10  ;;  %v2491_v26 = vrot.slane %v6474_v11, 2 }
 0x1c4   : > { %9558 = vst [vmem:[#allocation3_spill] sm:$0xff] %v7673_v25  ;;  %v6475_v48 = vpop.f32.mrb[98].mxu1  ;;  %v6523_v63 = vpop.f32.mrb[98].mxu0  ;;  %v2489_v37 = vrot.slane %v2410_v23, 2 }
 0x1c5   : > { %9559 = vst [vmem:[#allocation4_spill] sm:$0xff] %v7675_v12  ;;  %v2492_v19 = vrot.slane %v6475_v48, 2  ;;  %v2413_v28 = vpop.f32.mrb[99].mxu1  ;;  %v2805_v13 = vpop.f32.mrb[99].mxu0 }
 0x1c6   : > { %v2490_v47 = vrot.slane %v2413_v28, 2 }
 0x1c7   : > { %v2517_v50 = vsel %vm1404_vm1, %v2491_v26, %v2492_v19 }
 0x1c8   : > { %v7680_v44 = vadd.f32 %v2517_v50, %v7597_v61  ;;  %v2519_v36 = vsel %vm1404_vm1, %v2489_v37, %v2490_v47 }
 0x1c9   : > { %v7685_v31 = vadd.f32 %v2519_v36, %v7601_v5 }
 0x1ca   : > { %v6478_v53 = vpop.f32.mrb[100].mxu1  ;;  %v7687_v34 = vpop.f32.mrb[100].mxu0 }
 0x1cb   : > { %9560 = vst [vmem:[#allocation5_spill] sm:$0xff] %v7685_v31  ;;  %9561 = vst [vmem:[#allocation6_spill] sm:$0xff] %v7687_v34  ;;  %v2426_v49 = vpop.f32.mrb[101].mxu1  ;;  %v7689_v38 = vpop.f32.mrb[101].mxu0  ;;  %v2495_v46 = vrot.slane %v6478_v53, 2 }
 0x1cc   : > { %9562 = vst [vmem:[#allocation7_spill] sm:$0xff] %v7689_v38  ;;  %v6479_v43 = vpop.f32.mrb[102].mxu1  ;;  %v6527_v45 = vpop.f32.mrb[102].mxu0  ;;  %v2493_v61 = vrot.slane %v2426_v49, 2 }
 0x1cd   : > { %v2496_v52 = vrot.slane %v6479_v43, 2  ;;  %v2429_v42 = vpop.f32.mrb[103].mxu1  ;;  %v2821_v59 = vpop.f32.mrb[103].mxu0 }
 0x1ce   : > { %v2494_v21 = vrot.slane %v2429_v42, 2 }
 0x1cf   : > { %v2513_v51 = vsel %vm1404_vm1, %v2495_v46, %v2496_v52 }
 0x1d0   : > { %v7694_v5 = vadd.f32 %v2513_v51, %v7607_v7  ;;  %v2515_v17 = vsel %vm1404_vm1, %v2493_v61, %v2494_v21 }
 0x1d1   : > { %v7699_v6 = vadd.f32 %v2515_v17, %v7611_v8  ;;  %v7731_v17 = vadd.f32 %v7669_v18, %v7680_v44  ;;  %v7745_v18 = vld [vmem:[%s9538_s3] ss:$0 sm:$0xff] }
 0x1d2   : > { %9563 = vst [vmem:[#allocation8_spill] sm:$0xff] %v7694_v5  ;;  %v6482_v58 = vpop.f32.mrb[104].mxu1  ;;  %v7701_v33 = vpop.f32.mrb[104].mxu0 }
 0x1d3   : > { %9564 = vst [vmem:[#allocation9_spill] sm:$0xff] %v7699_v6  ;;  %9565 = vst [vmem:[#allocation10_spill] sm:$0xff] %v7701_v33  ;;  %v2442_v15 = vpop.f32.mrb[105].mxu1  ;;  %v7703_v0 = vpop.f32.mrb[105].mxu0  ;;  %v2499_v2 = vrot.slane %v6482_v58, 2 }
 0x1d4   : > { %9566 = vst [vmem:[#allocation11_spill] sm:$0xff] %v7703_v0  ;;  %v6483_v16 = vpop.f32.mrb[106].mxu1  ;;  %v6531_v1 = vpop.f32.mrb[106].mxu0  ;;  %v2497_v7 = vrot.slane %v2442_v15, 2  ;;  %9573 = vst [vmem:[#allocation18_spill] sm:$0xff] %v7731_v17 }
 0x1d5   : > { %v2500_v41 = vrot.slane %v6483_v16, 2  ;;  %v2445_v3 = vpop.f32.mrb[107].mxu1  ;;  %v2837_v40 = vpop.f32.mrb[107].mxu0 }
 0x1d6   : > { %v2498_v56 = vrot.slane %v2445_v3, 2 }
 0x1d7   : > { %v2509_v4 = vsel %vm1404_vm1, %v2499_v2, %v2500_v41 }
 0x1d8   : > { %v7708_v8 = vadd.f32 %v2509_v4, %v7617_v54  ;;  %v2511_v29 = vsel %vm1404_vm1, %v2497_v7, %v2498_v56 }
 0x1d9   : > { %v7713_v9 = vadd.f32 %v2511_v29, %v7621_v30 }
 0x1da   : > { %9567 = vst [vmem:[#allocation12_spill] sm:$0xff] %v7708_v8  ;;  %v6486_v32 = vpop.f32.mrb[108].mxu1  ;;  %v7715_v60 = vpop.f32.mrb[108].mxu0 }
 0x1db   : > { %9568 = vst [vmem:[#allocation13_spill] sm:$0xff] %v7713_v9  ;;  %9569 = vst [vmem:[#allocation14_spill] sm:$0xff] %v7715_v60  ;;  %v2458_v10 = vpop.f32.mrb[109].mxu1  ;;  %v7717_v11 = vpop.f32.mrb[109].mxu0  ;;  %v2503_v63 = vrot.slane %v6486_v32, 2 }
 0x1dc   : > { %9570 = vst [vmem:[#allocation15_spill] sm:$0xff] %v7717_v11  ;;  %v6487_v23 = vpop.f32.mrb[110].mxu1  ;;  %v6535_v48 = vpop.f32.mrb[110].mxu0  ;;  %v2501_v54 = vrot.slane %v2458_v10, 2 }
 0x1dd   : > { %v2504_v26 = vrot.slane %v6487_v23, 2  ;;  %v2461_v19 = vpop.f32.mrb[111].mxu1  ;;  %v2853_v28 = vpop.f32.mrb[111].mxu0 }
 0x1de   : > { %v2502_v13 = vrot.slane %v2461_v19, 2 }
 0x1df   : > { %v2505_v37 = vsel %vm1404_vm1, %v2503_v63, %v2504_v26 }
 0x1e0   : > { %v7722_v30 = vadd.f32 %v2505_v37, %v7627_v20  ;;  %v2507_v47 = vsel %vm1404_vm1, %v2501_v54, %v2502_v13 }
 0x1e1   : > { %v7727_v50 = vadd.f32 %v2507_v47, %v7631_v55 }
 0x1e2   : > { %9571 = vst [vmem:[#allocation16_spill] sm:$0xff] %v7722_v30  ;;  %v6554_v36 = vpop.f32.mrb[112].mxu1  ;;  %v6602_v53 = vpop.f32.mrb[112].mxu0 }
 0x1e3   : > { %9572 = vst [vmem:[#allocation17_spill] sm:$0xff] %v7727_v50  ;;  %v3575_v49 = vrot.slane %v6602_v53, 2  ;;  %v3060_v43 = vpop.f32.mrb[113].mxu1  ;;  %v3446_v45 = vpop.f32.mrb[113].mxu0  ;;  %v3189_v59 = vrot.slane %v6554_v36, 1 }
 0x1e4   : > { %v3573_v46 = vrot.slane %v3446_v45, 2  ;;  %v6555_v52 = vpop.f32.mrb[114].mxu1  ;;  %v6603_v42 = vpop.f32.mrb[114].mxu0  ;;  %v3187_v58 = vrot.slane %v3060_v43, 1 }
 0x1e5   : > { %v3190_v61 = vrot.slane %v6555_v52, 1  ;;  %v3576_v21 = vrot.slane %v6603_v42, 2  ;;  %v3063_v51 = vpop.f32.mrb[115].mxu1  ;;  %v3449_v20 = vpop.f32.mrb[115].mxu0 }
 0x1e6   : > { %v3188_v55 = vrot.slane %v3063_v51, 1  ;;  %v3574_v15 = vrot.slane %v3449_v20, 2 }
 0x1e7   : > { %v3247_v16 = vsel %vm1017_vm0, %v3189_v59, %v3190_v61  ;;  %v3633_v1 = vsel %vm1404_vm1, %v3575_v49, %v3576_v21 }
 0x1e8   : > { %v3285_v2 = vadd.f32 %v3247_v16, %v7639_v14  ;;  %v3249_v41 = vsel %vm1017_vm0, %v3187_v58, %v3188_v55  ;;  %v3635_v3 = vsel %vm1404_vm1, %v3573_v46, %v3574_v15 }
 0x1e9   : > { %v3283_v44 = vadd.f32 %v3249_v41, %v7641_v24 }
 0x1ea   : > { %v3671_v40 = vadd.f32 %v3633_v1, %v3285_v2  ;;  %v6558_v7 = vpop.f32.mrb[116].mxu1  ;;  %v6606_v56 = vpop.f32.mrb[116].mxu0 }
 0x1eb   : > { %v3669_v4 = vadd.f32 %v3635_v3, %v3283_v44  ;;  %v3076_v29 = vpop.f32.mrb[117].mxu1  ;;  %v3462_v32 = vpop.f32.mrb[117].mxu0  ;;  %v3193_v63 = vrot.slane %v6558_v7, 1  ;;  %v3579_v13 = vrot.slane %v6606_v56, 2 }
 0x1ec   : > { %v7749_v14 = vadd.f32 %v7745_v18, %v3671_v40  ;;  %v6559_v10 = vpop.f32.mrb[118].mxu1  ;;  %v6607_v23 = vpop.f32.mrb[118].mxu0  ;;  %v3191_v52 = vrot.slane %v3076_v29, 1  ;;  %v3577_v61 = vrot.slane %v3462_v32, 2 }
 0x1ed   : > { %v7752_v48 = vadd.f32 %v7745_v18, %v3669_v4  ;;  %v3194_v26 = vrot.slane %v6559_v10, 1  ;;  %v3079_v19 = vpop.f32.mrb[119].mxu1  ;;  %v3465_v28 = vpop.f32.mrb[119].mxu0  ;;  %v3580_v37 = vrot.slane %v6607_v23, 2 }
 0x1ee   : > { %v9542_v24 = vand.u32 2147483647, %v7749_v14  ;;  %v3879_v54 = vand.u32 2139095040, %v7749_v14  ;;  %v3192_v51 = vrot.slane %v3079_v19, 1  ;;  %v3578_v16 = vrot.slane %v3465_v28, 2 }
 0x1ef   : > { %v9541_v47 = vand.u32 2147483647, %v7752_v48  ;;  %v3775_v36 = vand.u32 2139095040, %v7752_v48  ;;  %v3243_v43 = vsel %vm1017_vm0, %v3193_v63, %v3194_v26  ;;  %v3629_v21 = vsel %vm1404_vm1, %v3579_v13, %v3580_v37 }
 0x1f0   : > { %v3880_v53 = vshrl.u32 %v3879_v54, 23  ;;  %v3883_v49 = vand.u32 8388607, %v9542_v24  ;;  %v3289_v42 = vadd.f32 %v3243_v43, %v7649_v62  ;;  %v3245_v62 = vsel %vm1017_vm0, %v3191_v52, %v3192_v51 }
 0x1f1   : > { %v3776_v45 = vshrl.u32 %v3775_v36, 23  ;;  %v3779_v46 = vand.u32 8388607, %v9541_v47  ;;  %v7785_v29 = vadd.f32 %v3245_v62, %v7651_v35  ;;  %v7793_v23 = vsel %vm1404_vm1, %v3577_v61, %v3578_v16 }
 0x1f2   : > { %v5880_v59 = vadd.s32 4294967169, %v3880_v53  ;;  %v7767_v20 = vpop.f32.mrb[120].mxu1  ;;  %v7769_v58 = vpop.f32.mrb[120].mxu0  ;;  %v3675_v15 = vadd.f32 %v3629_v21, %v3289_v42  ;;  %v3884_v41 = vor.u32 8388608, %v3883_v49  ;;  %v9549_v53 = vmov 683565275  }
 0x1f3   : > { %v5876_v55 = vadd.s32 4294967169, %v3776_v45  ;;  %v7771_v1 = vpop.f32.mrb[121].mxu1  ;;  %v7773_v2 = vpop.f32.mrb[121].mxu0  ;;  %v3780_v7 = vor.u32 8388608, %v3779_v46  ;;  %v9543_v42 = vmov 2475754826  }
 0x1f4   : > { %v3886_v3 = vadd.s32 1, %v5880_v59  ;;  %v7777_v44 = vpop.f32.mrb[122].mxu1  ;;  %v7779_v40 = vpop.f32.mrb[122].mxu0  ;;  %v7782_v4 = vadd.f32 %v7745_v18, %v3675_v15  ;;  %v7795_v54 = vshll.u32 %v3884_v41, 8  ;;  %v9545_v61 = vmov 2131351028  }
 0x1f5   : > { %v3782_v56 = vadd.s32 1, %v5876_v55  ;;  %v7787_v32 = vpop.f32.mrb[123].mxu1  ;;  %v7789_v10 = vpop.f32.mrb[123].mxu0  ;;  %v7797_v13 = vshll.u32 %v3780_v7, 8  ;;  %v9547_v51 = vmov 2102212464  }
 0x1f6   : > { %vm3887_vm2 = vcmp.gt.s32.totalorder %v3886_v3, 0  ;;  %v9551_v15 = vmov 920167782   ;;  %vm3878_vm15 = vcmp.lt.s32.totalorder %v7749_v14, 0 }
 0x1f7   : > { %v3888_v63 = vsel %vm3887_vm2, %v3886_v3, 0  ;;  %vm3783_vm3 = vcmp.gt.s32.totalorder %v3782_v56, 0 }
 0x1f8   : > { %v3889_v26 = vshrl.u32 %v3888_v63, 5  ;;  %v3890_v19 = vand.u32 31, %v3888_v63  ;;  %v3784_v28 = vsel %vm3783_vm3, %v3782_v56, 0  ;;  %vm3774_vm3 = vcmp.lt.s32.totalorder %v7752_v48, 0 }
 0x1f9   : > { %v7802_v43 = vshrl.u32 %v3784_v28, 5  ;;  %v7804_v45 = vand.u32 31, %v3784_v28 }
 0x1fa   : > { %v3891_v36 = vsub.s32 32, %v3890_v19  ;;  %v3893_v49 = vshll.u32 %v9549_v53, %v3890_v19  ;;  %v7806_v46 = vpop.f32.mrb[124].mxu1  ;;  %v7808_v52 = vpop.f32.mrb[124].mxu0  ;;  %v3896_v59 = vshll.u32 %v9543_v42, %v3890_v19  ;;  %v3899_v21 = vshll.u32 %v9545_v61, %v3890_v19 }
 0x1fb   : > { %v3902_v55 = vshll.u32 %v9547_v51, %v3890_v19  ;;  %v3905_v16 = vshll.u32 %v9551_v15, %v3890_v19  ;;  %v7814_v41 = vpop.f32.mrb[125].mxu1  ;;  %v7816_v3 = vpop.f32.mrb[125].mxu0  ;;  %vm3908_vm4 = vcmp.lt.s32.totalorder %v3889_v26, 1  ;;  %v9553_v19 = vmov 1326507024  }
 0x1fc   : > { %9574 = vst [vmem:[#allocation19_spill] sm:$0xff] %v7816_v3  ;;  %v3894_v62 = vshrl.u32 %v9543_v42, %v3891_v36  ;;  %v3897_v7 = vshrl.u32 %v9545_v61, %v3891_v36  ;;  %v3900_v56 = vshrl.u32 %v9547_v51, %v3891_v36  ;;  %v7821_v63 = vpop.f32.mrb[126].mxu1  ;;  %v7823_v28 = vpop.f32.mrb[126].mxu0  ;;  %v3892_v47 = vshrl.u32 %v9549_v53, %v3891_v36 }
 0x1fd   : > { %v3903_v24 = vshrl.u32 %v9551_v15, %v3891_v36  ;;  %v3906_v35 = vshrl.u32 %v9553_v19, %v3891_v36  ;;  %vm3909_vm5 = vcmp.lt.s32.totalorder %v3889_v26, 2  ;;  %v7828_v37 = vpop.f32.mrb[127].mxu1  ;;  %v3787_v51 = vsub.s32 32, %v7804_v45  ;;  %v7831_v30 = vpop.f32.mrb[127].mxu0 }
 0x1fe   : > { %9575 = vst [vmem:[#allocation20_spill] sm:$0xff] %v7828_v37  ;;  %v3895_v42 = vor.u32 %v3894_v62, %v3893_v49  ;;  %v3898_v11 = vor.u32 %v3897_v7, %v3896_v59  ;;  %v3901_v61 = vor.u32 %v3900_v56, %v3899_v21  ;;  %vm3910_vm6 = vcmp.lt.s32.totalorder %v3889_v26, 3  ;;  %9576 = vst [vmem:[#allocation21_spill] sm:$0xff] %v7831_v30 }
 0x1ff   : > { %v3904_v50 = vor.u32 %v3903_v24, %v3902_v55  ;;  %v3907_v60 = vor.u32 %v3906_v35, %v3905_v16  ;;  %vm3911_vm7 = vcmp.lt.s32.totalorder %v3889_v26, 4  ;;  %v9577_v59 = vmov 683565275  }
 0x200   : > { %v3912_v53 = vsel %vm3908_vm4, %v3892_v47, %v3895_v42  ;;  %v3913_v15 = vsel %vm3911_vm7, %v3901_v61, 2102212464  ;;  %v3916_v0 = vsel %vm3908_vm4, %v3895_v42, %v3898_v11  ;;  %v3920_v36 = vsel %vm3908_vm4, %v3898_v11, %v3901_v61 }
 0x201   : > { %v3914_v19 = vsel %vm3910_vm6, %v3898_v11, %v3913_v15  ;;  %v3917_v9 = vsel %vm3911_vm7, %v3904_v50, 920167782  ;;  %v3921_v49 = vsel %vm3911_vm7, %v3907_v60, 1326507024  ;;  %v3789_v21 = vshll.u32 %v9577_v59, %v7804_v45 }
 0x202   : > { %v3918_v62 = vsel %vm3910_vm6, %v3901_v61, %v3917_v9  ;;  %v3922_v24 = vsel %vm3910_vm6, %v3904_v50, %v3921_v49  ;;  %v9578_v35 = vmov 2475754826   ;;  %v3915_v47 = vsel %vm3909_vm5, %v3912_v53, %v3914_v19 }
 0x203   : > { %v3790_v55 = vshrl.u32 %v9578_v35, %v3787_v51  ;;  %v3792_v16 = vshll.u32 %v9578_v35, %v7804_v45  ;;  %v3919_v7 = vsel %vm3909_vm5, %v3916_v0, %v3918_v62  ;;  %v3923_v42 = vsel %vm3909_vm5, %v3920_v36, %v3922_v24 }
 0x204   : > { %v9579_v56 = vmov 2131351028   ;;  %v7846_v60 = vmul.u32.u64.low %v7795_v54, %v3923_v42  ;;  %v7847_v15 = vmul.u32.u64.high %v7795_v54, %v3923_v42, %v7846_v60  ;;  %v9580_v19 = vmov 2102212464  }
 0x205   : > { %v3793_v11 = vshrl.u32 %v9579_v56, %v3787_v51  ;;  %v7850_v9 = vmul.u32.u64.low %v7795_v54, %v3919_v7  ;;  %v7851_v50 = vmul.u32.u64.high %v7795_v54, %v3919_v7, %v7850_v9  ;;  %v3791_v61 = vor.u32 %v3790_v55, %v3789_v21 }
 0x206   : > { %v3795_v53 = vshll.u32 %v9579_v56, %v7804_v45  ;;  %v3796_v0 = vshrl.u32 %v9580_v19, %v3787_v51  ;;  %v3788_v26 = vshrl.u32 %v9577_v59, %v3787_v51  ;;  %v3798_v36 = vshll.u32 %v9580_v19, %v7804_v45 }
 0x207   : > { %v3794_v49 = vor.u32 %v3793_v11, %v3792_v16  ;;  %v9581_v62 = vmov 920167782   ;;  %v9582_v42 = vmov 1326507024   ;;  %v3931_v7 = vmul.u32 %v7795_v54, %v3915_v47 }
 0x208   : > { %v3799_v24 = vshrl.u32 %v9581_v62, %v3787_v51  ;;  %v3802_v60 = vshrl.u32 %v9582_v42, %v3787_v51  ;;  %v3797_v33 = vor.u32 %v3796_v0, %v3795_v53  ;;  %v3801_v21 = vshll.u32 %v9581_v62, %v7804_v45 }
 0x209   : > { %vm3804_vm8 = vcmp.lt.s32.totalorder %v7802_v43, 1  ;;  %vm3933_vm9 = vc.u32 %v7847_v15, %v7850_v9  ;;  %v3934_v55 = vadd.s32 1, %v7851_v50  ;;  %vm3805_vm10 = vcmp.lt.s32.totalorder %v7802_v43, 2 }
 0x20a   : > { %v3800_v16 = vor.u32 %v3799_v24, %v3798_v36  ;;  %v3803_v11 = vor.u32 %v3802_v60, %v3801_v21  ;;  %vm3806_vm11 = vcmp.lt.s32.totalorder %v7802_v43, 3  ;;  %vm3807_vm12 = vcmp.lt.s32.totalorder %v7802_v43, 4 }
 0x20b   : > { %v3812_v54 = vsel %vm3804_vm8, %v3791_v61, %v3794_v49  ;;  %v3935_v51 = vsel %vm3933_vm9, %v3934_v55, %v7851_v50  ;;  %v3809_v47 = vsel %vm3807_vm12, %v3797_v33, 2102212464  ;;  %v3816_v53 = vsel %vm3804_vm8, %v3794_v49, %v3797_v33 }
 0x20c   : > { %v3813_v45 = vsel %vm3807_vm12, %v3800_v16, 920167782  ;;  %v3936_v0 = vadd.s32 %v3935_v51, %v3931_v7  ;;  %v3808_v8 = vsel %vm3804_vm8, %v3788_v26, %v3791_v61  ;;  %v3817_v6 = vsel %vm3807_vm12, %v3803_v11, 1326507024 }
 0x20d   : > { %v3814_v38 = vsel %vm3806_vm11, %v3797_v33, %v3813_v45  ;;  %v3810_v34 = vsel %vm3806_vm11, %v3794_v49, %v3809_v47  ;;  %v3818_v24 = vsel %vm3806_vm11, %v3800_v16, %v3817_v6  ;;  %v9583_v60 = vand.u32 2139095040, %v7782_v4 }
 0x20e   : > { %v3815_v36 = vsel %vm3805_vm10, %v3812_v54, %v3814_v38  ;;  %v3937_v5 = vadd.s32 536870912, %v3936_v0  ;;  %v3819_v25 = vsel %vm3805_vm10, %v3816_v53, %v3818_v24  ;;  %v3811_v38 = vsel %vm3805_vm10, %v3808_v8, %v3810_v34 }
 0x20f   : > { %v4088_v21 = vshrl.u32 %v9583_v60, 23  ;;  %v7880_v50 = vmul.u32.u64.low %v7797_v13, %v3815_v36  ;;  %v7881_v55 = vmul.u32.u64.high %v7797_v13, %v3815_v36, %v7880_v50  ;;  %v3673_v6 = vadd.f32 %v7793_v23, %v7785_v29 }
 0x210   : > { %v7884_v61 = vmul.u32.u64.low %v7797_v13, %v3819_v25  ;;  %v7885_v33 = vmul.u32.u64.high %v7797_v13, %v3819_v25, %v7884_v61  ;;  %v3938_v26 = vshrl.u32 %v3937_v5, 30  ;;  %v9584_v51 = vand.u32 2147483647, %v7782_v4 }
 0x211   : > { %v5888_v49 = vadd.s32 4294967169, %v4088_v21  ;;  %v3830_v54 = vadd.s32 1, %v7881_v55  ;;  %v3827_v45 = vmul.u32 %v7797_v13, %v3811_v38  ;;  %v9585_v43 = vand.u32 2147483647, %v7749_v14 }
 0x212   : > { %v3939_v16 = vshll.u32 %v3938_v26, 30  ;;  %v3962_v11 = vsub.s32 4, %v3938_v26  ;;  %v4091_v47 = vand.u32 8388607, %v9584_v51  ;;  %vm3829_vm13 = vc.u32 %v7885_v33, %v7880_v50 }
 0x213   : > { %v4094_v7 = vadd.s32 1, %v5888_v49  ;;  %v3831_v34 = vsel %vm3829_vm13, %v3830_v54, %v7881_v55  ;;  %vm7904_vm2 = vcmp.le.f32.partialorder %v9585_v43, 0.7853982  ;;  %v3932_v38 = vadd.s32 %v7850_v9, %v7847_v15 }
 0x214   : > { %v7897_v25 = vsub.s32 %v3936_v0, %v3939_v16  ;;  %v3963_v8 = vsel %vm3878_vm15, %v3962_v11, %v3938_v26  ;;  %v3832_v29 = vadd.s32 %v3831_v34, %v3827_v45  ;;  %v4092_v36 = vor.u32 8388608, %v4091_v47  ;;  %v7944_v16 = vpop.f32.mrb[128].mxu1  ;;  %v7946_v26 = vpop.f32.mrb[128].mxu0 }
 0x215   : > { %vm4095_vm14 = vcmp.gt.s32.totalorder %v4094_v7, 0  ;;  %v7910_v0 = vadd.f32 %v7745_v18, %v3673_v6  ;;  %v3965_v61 = vsel %vm7904_vm2, 0, %v3963_v8  ;;  %v7924_v54 = vadd.s32 %v7880_v50, %v7885_v33  ;;  %9588 = vst [vmem:[#allocation22_spill] sm:$0xff] %v7944_v16  ;;  %9589 = vst [vmem:[#allocation23_spill] sm:$0xff] %v7946_v26  ;;  %v7950_v60 = vpop.f32.mrb[129].mxu1  ;;  %v7952_v6 = vpop.f32.mrb[129].mxu0 }
 0x216   : > { %v4096_v5 = vsel %vm4095_vm14, %v4094_v7, 0  ;;  %v3942_v13 = vsub.s32 0, %v7897_v25  ;;  %v3833_v24 = vadd.s32 536870912, %v3832_v29  ;;  %v7928_v47 = vshll.u32 %v4092_v36, 8  ;;  %9590 = vst [vmem:[#allocation24_spill] sm:$0xff] %v7950_v60  ;;  %9591 = vst [vmem:[#allocation25_spill] sm:$0xff] %v7952_v6 }
 0x217   : > { %v4098_v23 = vand.u32 31, %v4096_v5  ;;  %v7926_v51 = vshrl.u32 %v4096_v5, 5  ;;  %v7930_v45 = vadd.s32 3, %v3965_v61  ;;  %v7955_v37 = vpop.f32.mrb[130].mxu1  ;;  %v7957_v16 = vpop.f32.mrb[130].mxu0  ;;  %vm3968_vm14 = vweird.f32 %v7749_v14 }
 0x218   : > { %v5881_v55 = vmin.u32 %v3942_v13, %v7897_v25  ;;  %v3834_v7 = vshrl.u32 %v3833_v24, 30  ;;  %v9592_v6 = vand.u32 2147483647, %v7752_v48 }
 0x219   : > { %v4099_v49 = vsub.s32 32, %v4098_v23  ;;  %v4101_v15 = vshll.u32 %v9577_v59, %v4098_v23  ;;  %v4107_v13 = vshll.u32 %v9579_v56, %v4098_v23  ;;  %v4104_v61 = vshll.u32 %v9578_v35, %v4098_v23 }
 0x21a   : > { %v3944_v11 = vclz %v5881_v55  ;;  %v3835_v34 = vshll.u32 %v3834_v7, 30  ;;  %v3858_v55 = vsub.s32 4, %v3834_v7  ;;  %v4113_v9 = vshll.u32 %v9581_v62, %v4098_v23 }
 0x21b   : > { %v4102_v43 = vshrl.u32 %v9578_v35, %v4099_v49  ;;  %v4108_v24 = vshrl.u32 %v9580_v19, %v4099_v49  ;;  %v4105_v33 = vshrl.u32 %v9579_v56, %v4099_v49  ;;  %v4111_v5 = vshrl.u32 %v9581_v62, %v4099_v49 }
 0x21c   : > { %v5882_v8 = vadd.s32 4294967294, %v3944_v11  ;;  %v7937_v50 = vsub.s32 %v3832_v29, %v3835_v34  ;;  %v4114_v36 = vshrl.u32 %v9582_v42, %v4099_v49  ;;  %v4110_v11 = vshll.u32 %v9580_v19, %v4098_v23 }
 0x21d   : > { %v4109_v34 = vor.u32 %v4108_v24, %v4107_v13  ;;  %v4100_v12 = vshrl.u32 %v9577_v59, %v4099_v49  ;;  %v4103_v30 = vor.u32 %v4102_v43, %v4101_v15  ;;  %v4106_v26 = vor.u32 %v4105_v33, %v4104_v61 }
 0x21e   : > { %vm5883_vm4 = vcmp.lt.s32.totalorder %v5882_v8, 0  ;;  %v3838_v29 = vsub.s32 0, %v7937_v50  ;;  %v4112_v3 = vor.u32 %v4111_v5, %v4110_v11  ;;  %v4115_v13 = vor.u32 %v4114_v36, %v4113_v9 }
 0x21f   : > { %v3947_v21 = vsel %vm5883_vm4, 0, %v5882_v8  ;;  %vm4119_vm5 = vcmp.lt.s32.totalorder %v7926_v51, 4  ;;  %vm7964_vm6 = vcmp.le.f32.partialorder %v9592_v6, 0.7853982  ;;  %v3859_v43 = vsel %vm3774_vm3, %v3858_v55, %v3834_v7 }
 0x220   : > { %v3948_v31 = vsub.s32 32, %v3947_v21  ;;  %v3952_v17 = vsub.s32 4294967266, %v3947_v21  ;;  %v5877_v8 = vmin.u32 %v3838_v29, %v7937_v50  ;;  %v3949_v23 = vshll.u32 %v7897_v25, %v3947_v21 }
 0x221   : > { %vm4116_vm7 = vcmp.lt.s32.totalorder %v7926_v51, 1  ;;  %v4121_v9 = vsel %vm4119_vm5, %v4109_v34, 2102212464  ;;  %vm4118_vm8 = vcmp.lt.s32.totalorder %v7926_v51, 3  ;;  %v4125_v6 = vsel %vm4119_vm5, %v4112_v3, 920167782 }
 0x222   : > { %v3950_v24 = vshrl.u32 %v3932_v38, %v3948_v31  ;;  %v3953_v60 = vadd.s32 127, %v3952_v17  ;;  %v3840_v15 = vclz %v5877_v8  ;;  %v4120_v17 = vsel %vm4116_vm7, %v4100_v12, %v4103_v30 }
 0x223   : > { %v4124_v38 = vsel %vm4116_vm7, %v4103_v30, %v4106_v26  ;;  %v4128_v33 = vsel %vm4116_vm7, %v4106_v26, %v4109_v34  ;;  %v4122_v36 = vsel %vm4118_vm8, %v4106_v26, %v4121_v9  ;;  %v4126_v61 = vsel %vm4118_vm8, %v4109_v34, %v4125_v6 }
 0x224   : > { %v3951_v25 = vor.u32 %v3950_v24, %v3949_v23  ;;  %v3954_v31 = vshll.u32 %v3953_v60, 23  ;;  %v5878_v21 = vadd.s32 4294967294, %v3840_v15  ;;  %v4129_v7 = vsel %vm4119_vm5, %v4115_v13, 1326507024 }
 0x225   : > { %vm4117_vm10 = vcmp.lt.s32.totalorder %v7926_v51, 2  ;;  %v4130_v60 = vsel %vm4118_vm8, %v4112_v3, %v4129_v7  ;;  %v3983_v15 = vand.u32 2139095040, %v7910_v0  ;;  %vm4086_vm4 = vcmp.lt.s32.totalorder %v7782_v4, 0 }
 0x226   : > { %v3955_v5 = vor.u32 4788187, %v3954_v31  ;;  %v3958_v55 = vcvt.s32.f32 %v3951_v25  ;;  %vm5879_vm9 = vcmp.lt.s32.totalorder %v5878_v21, 0  ;;  %v4127_v29 = vsel %vm4117_vm10, %v4124_v38, %v4126_v61 }
 0x227   : > { %v3843_v12 = vsel %vm5879_vm9, 0, %v5878_v21  ;;  %v4131_v30 = vsel %vm4117_vm10, %v4128_v33, %v4130_v60  ;;  %v4123_v24 = vsel %vm4117_vm10, %v4120_v17, %v4122_v36  ;;  %v7992_v17 = vand.u32 3, %v7930_v45 }
 0x228   : > { %v3956_v11 = vand.u32 2147483647, %v3955_v5  ;;  %v3844_v8 = vsub.s32 32, %v3843_v12  ;;  %v3848_v23 = vsub.s32 4294967266, %v3843_v12  ;;  %v3845_v34 = vshll.u32 %v7937_v50, %v3843_v12 }
 0x229   : > { %v7982_v13 = vmul.u32.u64.low %v7928_v47, %v4131_v30  ;;  %v7983_v9 = vmul.u32.u64.high %v7928_v47, %v4131_v30, %v7982_v13  ;;  %v7987_v3 = vmul.u32.u64.low %v7928_v47, %v4127_v29  ;;  %v7988_v31 = vmul.u32.u64.high %v7928_v47, %v4127_v29, %v7987_v3 }
 0x22a   : > { %v3959_v26 = vmul.f32 %v3958_v55, %v3956_v11  ;;  %v3846_v51 = vshrl.u32 %v7924_v54, %v3844_v8  ;;  %v3849_v25 = vadd.s32 127, %v3848_v23  ;;  %v3861_v38 = vsel %vm7964_vm6, 0, %v3859_v43  ;;  %v8025_v23 = vld [vmem:[%s8010_s16] sm:$0xff]  }
 0x22b   : > { %v3984_v50 = vshrl.u32 %v3983_v15, 23  ;;  %v9595_v5 = vrot.slane %v7777_v44, 1  ;;  %v9596_v54 = vrot.slane %v7767_v20, 1  ;;  %v3584_v61 = vrot.slane %v7779_v40, 2 }
 0x22c   : > { %v3960_v21 = vxor.u32 2147483648, %v3959_v26  ;;  %v3847_v6 = vor.u32 %v3846_v51, %v3845_v34  ;;  %v3850_v33 = vshll.u32 %v3849_v25, 23  ;;  %v4139_v45 = vmul.u32 %v7928_v47, %v4123_v24 }
 0x22d   : > { %v3239_v36 = vsel %vm1017_vm0, %v9596_v54, %v9595_v5  ;;  %vm4141_vm11 = vc.u32 %v7983_v9, %v7987_v3  ;;  %v5884_v43 = vadd.s32 4294967169, %v3984_v50  ;;  %v4142_v40 = vadd.s32 1, %v7988_v31 }
 0x22e   : > { %v3961_v7 = vsel %vm3878_vm15, %v3960_v21, %v3959_v26  ;;  %v3851_v44 = vor.u32 4788187, %v3850_v33  ;;  %v9597_v55 = vand.u32 2147483647, %v7910_v0  ;;  %v3854_v47 = vcvt.s32.f32 %v3847_v6 }
 0x22f   : > { %v3964_v20 = vsel %vm7904_vm2, %v7749_v14, %v3961_v7  ;;  %v3990_v11 = vadd.s32 1, %v5884_v43  ;;  %v3293_v12 = vadd.f32 %v3239_v36, %v7659_v39  ;;  %v4143_v30 = vsel %vm4141_vm11, %v4142_v40, %v7988_v31 }
 0x230   : > { %v3987_v60 = vand.u32 8388607, %v9597_v55  ;;  %6833 = vcosq.f32 %v3964_v20  ;;  %v3852_v29 = vand.u32 2147483647, %v3851_v44  ;;  %v9598_v8 = vrot.slane %v7769_v58, 2 }
 0x231   : > { %6835 = vsinq.f32 %v3964_v20  ;;  %v3865_v24 = vadd.s32 3, %v3861_v38  ;;  %v4144_v15 = vadd.s32 %v4143_v30, %v4139_v45  ;;  %vm3991_vm12 = vcmp.gt.s32.totalorder %v3990_v11, 0 }
 0x232   : > { %v3625_v53 = vsel %vm1404_vm1, %v9598_v8, %v3584_v61  ;;  %v3855_v34 = vmul.f32 %v3854_v47, %v3852_v29  ;;  %v3992_v13 = vsel %vm3991_vm12, %v3990_v11, 0  ;;  %v3196_v51 = vrot.slane %v7787_v32, 1 }
 0x233   : > { %v3679_v26 = vadd.f32 %v3625_v53, %v3293_v12  ;;  %v3582_v39 = vrot.slane %v7789_v10, 2  ;;  %v4145_v25 = vadd.s32 536870912, %v4144_v15  ;;  %v3988_v21 = vor.u32 8388608, %v3987_v60 }
 0x234   : > { %v3994_v31 = vand.u32 31, %v3992_v13  ;;  %v5948_v58 = vunpack.c.h.bf16 %v8025_v23  ;;  %v3856_v50 = vxor.u32 2147483648, %v3855_v34  ;;  %v9599_v6 = vrot.slane %v7771_v1, 1 }
 0x235   : > { %v9600_v33 = vrot.slane %v7773_v2, 2  ;;  %vm3971_vm13 = vcmp.lt.s32.totalorder %v7992_v17, 2  ;;  %v5947_v32 = vunpack.c.l.bf16 %v8025_v23  ;;  %v4146_v10 = vshrl.u32 %v4145_v25, 30 }
 0x236   : > { %v8034_v38 = vsel %vm1017_vm0, %v9599_v6, %v3196_v51  ;;  %v3995_v54 = vsub.s32 32, %v3994_v31  ;;  %vm3972_vm15 = vcmp.eq.s32.totalorder %v7992_v17, 0  ;;  %vm3975_vm2 = vcmp.eq.s32.totalorder %v7992_v17, 2 }
 0x237   : > { %v8040_v5 = vsel %vm1404_vm1, %v9600_v33, %v3582_v39  ;;  %v3857_v1 = vsel %vm3774_vm3, %v3856_v50, %v3855_v34  ;;  %v8049_v2 = vand.u32 3, %v3865_v24  ;;  %v8056_v61 = vadd.s32 %v7987_v3, %v7983_v9 }
 0x238   : > { %v3860_v36 = vsel %vm7964_vm6, %v7752_v48, %v3857_v1  ;;  %v4147_v7 = vshll.u32 %v4146_v10, 30  ;;  %v8058_v45 = vshll.u32 %v3988_v21, 8  ;;  %v8060_v43 = vshrl.u32 %v3992_v13, 5 }
 0x239   : > { %6837 = vcosq.f32 %v3860_v36  ;;  %v3997_v20 = vshll.u32 %v9577_v59, %v3994_v31  ;;  %v3998_v44 = vshrl.u32 %v9578_v35, %v3995_v54  ;;  %v4001_v49 = vshrl.u32 %v9579_v56, %v3995_v54 }
 0x23a   : > { %v6834_v40 = vpop.eup %6833  ;;  %6839 = vsinq.f32 %v3860_v36  ;;  %v8064_v55 = vsub.s32 %v4144_v15, %v4147_v7  ;;  %v4007_v60 = vshrl.u32 %v9581_v62, %v3995_v54  ;;  %v4000_v47 = vshll.u32 %v9578_v35, %v3994_v31 }
 0x23b   : > { %v6836_v9 = vpop.eup %6835  ;;  %v3976_v3 = vxor.u32 2147483648, %v6834_v40  ;;  %v4003_v11 = vshll.u32 %v9579_v56, %v3994_v31  ;;  %v4004_v12 = vshrl.u32 %v9580_v19, %v3995_v54  ;;  %v4170_v8 = vsub.s32 4, %v4146_v10 }
 0x23c   : > { %v3973_v29 = vxor.u32 2147483648, %v6836_v9  ;;  %v4150_v30 = vsub.s32 0, %v8064_v55  ;;  %v4006_v53 = vshll.u32 %v9580_v19, %v3994_v31  ;;  %vm3871_vm3 = vcmp.eq.s32.totalorder %v8049_v2, 2 }
 0x23d   : > { %v3977_v24 = vsel %vm3975_vm2, %v3976_v3, %v6836_v9  ;;  %v3999_v15 = vor.u32 %v3998_v44, %v3997_v20  ;;  %v4009_v34 = vshll.u32 %v9581_v62, %v3994_v31  ;;  %v4010_v13 = vshrl.u32 %v9582_v42, %v3995_v54 }
 0x23e   : > { %v3974_v51 = vsel %vm3972_vm15, %v6834_v40, %v3973_v29  ;;  %vm3868_vm5 = vcmp.eq.s32.totalorder %v8049_v2, 0  ;;  %v5889_v39 = vmin.u32 %v4150_v30, %v8064_v55  ;;  %v4002_v25 = vor.u32 %v4001_v49, %v4000_v47 }
 0x23f   : > { %v4008_v21 = vor.u32 %v4007_v60, %v4006_v53  ;;  %v3978_v50 = vsel %vm3971_vm13, %v3974_v51, %v3977_v24  ;;  %vm3867_vm6 = vcmp.lt.s32.totalorder %v8049_v2, 2  ;;  %v3996_v6 = vshrl.u32 %v9577_v59, %v3995_v54 }
 0x240   : > { %v4005_v31 = vor.u32 %v4004_v12, %v4003_v11  ;;  %v8088_v33 = vadd.f32 %v7745_v18, %v3679_v26  ;;  %v3979_v1 = vsel %vm3968_vm14, nan, %v3978_v50  ;;  %vm3864_vm7 = vweird.f32 %v7752_v48 }
 0x241   : > { %v4152_v36 = vclz %v5889_v39  ;;  %v8095_v7 = vsel %vm4086_vm4, %v4170_v8, %v4146_v10  ;;  %v4011_v17 = vor.u32 %v4010_v13, %v4009_v34  ;;  %v5469_v20 = vadd.f32 %v5948_v58, %v3979_v1 }
 0x242   : > { %vm4012_vm8 = vcmp.lt.s32.totalorder %v8060_v43, 1  ;;  %vm4013_vm9 = vcmp.lt.s32.totalorder %v8060_v43, 2  ;;  %vm4015_vm10 = vcmp.lt.s32.totalorder %v8060_v43, 4  ;;  %vm4014_vm11 = vcmp.lt.s32.totalorder %v8060_v43, 3 }
 0x243   : > { %v5890_v14 = vadd.s32 4294967294, %v4152_v36  ;;  %v4020_v26 = vsel %vm4012_vm8, %v3999_v15, %v4002_v25  ;;  %v4021_v10 = vsel %vm4015_vm10, %v4008_v21, 920167782  ;;  %v6838_v58 = vpop.eup %6837  ;;  %v5485_v54 = vmul.f32 0.5, %v5469_v20 }
 0x244   : > { %v4017_v44 = vsel %vm4015_vm10, %v4005_v31, 2102212464  ;;  %v4022_v40 = vsel %vm4014_vm11, %v4005_v31, %v4021_v10  ;;  %v4024_v49 = vsel %vm4012_vm8, %v4002_v25, %v4005_v31  ;;  %v6840_v60 = vpop.eup %6839  ;;  %v3872_v9 = vxor.u32 2147483648, %v6838_v58 }
 0x245   : > { %vm5891_vm12 = vcmp.lt.s32.totalorder %v5890_v14, 0  ;;  %v4023_v3 = vsel %vm4013_vm9, %v4020_v26, %v4022_v40  ;;  %v4025_v47 = vsel %vm4015_vm10, %v4011_v17, 1326507024  ;;  %5501 = vst [vmem:[%s8103_s23 + $0x8] sm:$0xff] %v5485_v54  ;;  %v3869_v11 = vxor.u32 2147483648, %v6840_v60 }
 0x246   : > { %v4155_v12 = vsel %vm5891_vm12, 0, %v5890_v14  ;;  %v4016_v29 = vsel %vm4012_vm8, %v3996_v6, %v3999_v15  ;;  %v4026_v30 = vsel %vm4014_vm11, %v4008_v21, %v4025_v47  ;;  %v3873_v8 = vsel %vm3871_vm3, %v3872_v9, %v6840_v60 }
 0x247   : > { %v4156_v53 = vsub.s32 32, %v4155_v12  ;;  %v4160_v24 = vsub.s32 4294967266, %v4155_v12  ;;  %v4018_v34 = vsel %vm4014_vm11, %v4002_v25, %v4017_v44  ;;  %v3870_v13 = vsel %vm3868_vm5, %v6838_v58, %v3869_v11 }
 0x248   : > { %v4027_v51 = vsel %vm4013_vm9, %v4024_v49, %v4026_v30  ;;  %v8128_v39 = vmul.u32.u64.low %v8058_v45, %v4023_v3  ;;  %v8129_v15 = vmul.u32.u64.high %v8058_v45, %v4023_v3, %v8128_v39  ;;  %v3874_v21 = vsel %vm3867_vm6, %v3870_v13, %v3873_v8 }
 0x249   : > { %v4157_v50 = vshll.u32 %v8064_v55, %v4155_v12  ;;  %v4158_v6 = vshrl.u32 %v8056_v61, %v4156_v53  ;;  %v4161_v31 = vadd.s32 127, %v4160_v24  ;;  %v3875_v25 = vsel %vm3864_vm7, nan, %v3874_v21  ;;  %v8171_v12 = vld [vmem:[%s8010_s16 + $0x8] sm:$0xff]  }
 0x24a   : > { %v8138_v1 = vmul.u32.u64.low %v8058_v45, %v4027_v51  ;;  %v8139_v36 = vmul.u32.u64.high %v8058_v45, %v4027_v51, %v8138_v1  ;;  %v4292_v17 = vand.u32 2147483647, %v8088_v33  ;;  %v5468_v20 = vadd.f32 %v5947_v32, %v3875_v25 }
 0x24b   : > { %v4159_v2 = vor.u32 %v4158_v6, %v4157_v50  ;;  %v4162_v14 = vshll.u32 %v4161_v31, 23  ;;  %v4019_v55 = vsel %vm4013_vm9, %v4016_v29, %v4018_v34  ;;  %v9601_v61 = vand.u32 2147483647, %v7782_v4 }
 0x24c   : > { %v4038_v26 = vadd.s32 1, %v8129_v15  ;;  %v4295_v10 = vand.u32 2139095040, %v8088_v33  ;;  %v5484_v58 = vmul.f32 0.5, %v5468_v20  ;;  %v3291_v32 = vadd.f32 %v8034_v38, %v7661_v57 }
 0x24d   : > { %vm8148_vm13 = vcmp.le.f32.partialorder %v9601_v61, 0.7853982  ;;  %v4163_v54 = vor.u32 4788187, %v4162_v14  ;;  %v4035_v43 = vmul.u32 %v8058_v45, %v4019_v55  ;;  %vm4037_vm14 = vc.u32 %v8139_v36, %v8128_v39 }
 0x24e   : > { %v4173_v23 = vsel %vm8148_vm13, 0, %v8095_v7  ;;  %v4296_v44 = vshrl.u32 %v4295_v10, 23  ;;  %v4299_v40 = vand.u32 8388607, %v4292_v17  ;;  %5500 = vst [vmem:[%s8103_s23] sm:$0xff] %v5484_v58  ;;  %v4166_v60 = vcvt.s32.f32 %v4159_v2 }
 0x24f   : > { %v4164_v49 = vand.u32 2147483647, %v4163_v54  ;;  %v4039_v9 = vsel %vm4037_vm14, %v4038_v26, %v8129_v15  ;;  %v3677_v3 = vadd.f32 %v8040_v5, %v3291_v32  ;;  %v3201_v38 = vrot.slane %v7806_v46, 1 }
 0x250   : > { %v4040_v7 = vadd.s32 %v4039_v9, %v4035_v43  ;;  %v5896_v47 = vadd.s32 4294967169, %v4296_v44  ;;  %v4177_v45 = vadd.s32 3, %v4173_v23  ;;  %v3202_v8 = vrot.slane %v7821_v63, 1 }
 0x251   : > { %v4167_v11 = vmul.f32 %v4166_v60, %v4164_v49  ;;  %v8167_v57 = vadd.f32 %v7745_v18, %v3677_v3  ;;  %v4300_v24 = vor.u32 8388608, %v4299_v40  ;;  %v5952_v46 = vunpack.c.h.bf16 %v8171_v12 }
 0x252   : > { %v4041_v29 = vadd.s32 536870912, %v4040_v7  ;;  %v4302_v30 = vadd.s32 1, %v5896_v47  ;;  %v8176_v5 = vsel %vm1017_vm0, %v3201_v38, %v3202_v8  ;;  %v8185_v15 = vand.u32 3, %v4177_v45  ;;  %v8217_v47 = vpop.f32.mrb[131].mxu0 }
 0x253   : > { %v4168_v53 = vxor.u32 2147483648, %v4167_v11  ;;  %v4191_v51 = vand.u32 2139095040, %v8167_v57  ;;  %vm3982_vm2 = vcmp.lt.s32.totalorder %v7910_v0, 0  ;;  %v8189_v50 = vadd.s32 %v8128_v39, %v8139_v36 }
 0x254   : > { %v4042_v34 = vshrl.u32 %v4041_v29, 30  ;;  %vm4303_vm15 = vcmp.gt.s32.totalorder %v4302_v30, 0  ;;  %v8191_v31 = vshll.u32 %v4300_v24, 8  ;;  %v3587_v1 = vrot.slane %v7808_v52, 2 }
 0x255   : > { %v4169_v18 = vsel %vm4086_vm4, %v4168_v53, %v4167_v11  ;;  %v4304_v13 = vsel %vm4303_vm15, %v4302_v30, 0  ;;  %v3588_v20 = vrot.slane %v7823_v28, 2  ;;  %v4188_v55 = vand.u32 2147483647, %v8167_v57 }
 0x256   : > { %v4172_v63 = vsel %vm8148_vm13, %v7782_v4, %v4169_v18  ;;  %v4043_v21 = vshll.u32 %v4042_v34, 30  ;;  %v4306_v6 = vand.u32 31, %v4304_v13  ;;  %v4066_v2 = vsub.s32 4, %v4042_v34 }
 0x257   : > { %6841 = vcosq.f32 %v4172_v63  ;;  %v4192_v61 = vshrl.u32 %v4191_v51, 23  ;;  %v8199_v26 = vshrl.u32 %v4304_v13, 5  ;;  %vm4183_vm4 = vcmp.eq.s32.totalorder %v8185_v15, 2 }
 0x258   : > { %6843 = vsinq.f32 %v4172_v63  ;;  %v8193_v25 = vsub.s32 %v4040_v7, %v4043_v21  ;;  %v4307_v14 = vsub.s32 32, %v4306_v6  ;;  %v4309_v39 = vshll.u32 %v9577_v59, %v4306_v6  ;;  %v8215_v7 = vpop.f32.mrb[131].mxu1 }
 0x259   : > { %v4312_v36 = vshll.u32 %v9578_v35, %v4306_v6  ;;  %v4315_v54 = vshll.u32 %v9579_v56, %v4306_v6  ;;  %vm4180_vm3 = vcmp.eq.s32.totalorder %v8185_v15, 0  ;;  %v4318_v43 = vshll.u32 %v9580_v19, %v4306_v6 }
 0x25a   : > { %v4046_v48 = vsub.s32 0, %v8193_v25  ;;  %v4310_v10 = vshrl.u32 %v9578_v35, %v4307_v14  ;;  %v4313_v58 = vshrl.u32 %v9579_v56, %v4307_v14  ;;  %v4316_v23 = vshrl.u32 %v9580_v19, %v4307_v14 }
 0x25b   : > { %v4319_v44 = vshrl.u32 %v9581_v62, %v4307_v14  ;;  %v4321_v40 = vshll.u32 %v9581_v62, %v4306_v6  ;;  %vm4179_vm5 = vcmp.lt.s32.totalorder %v8185_v15, 2  ;;  %v4322_v3 = vshrl.u32 %v9582_v42, %v4307_v14 }
 0x25c   : > { %v5885_v32 = vmin.u32 %v4046_v48, %v8193_v25  ;;  %v4311_v49 = vor.u32 %v4310_v10, %v4309_v39  ;;  %v4314_v60 = vor.u32 %v4313_v58, %v4312_v36  ;;  %v4317_v9 = vor.u32 %v4316_v23, %v4315_v54  ;;  %v8235_v39 = vpop.f32.mrb[132].mxu1  ;;  %v8237_v36 = vpop.f32.mrb[132].mxu0 }
 0x25d   : > { %vm4176_vm6 = vweird.f32 %v7782_v4  ;;  %v9604_v11 = vand.u32 2147483647, %v7910_v0  ;;  %v4067_v29 = vsel %vm3982_vm2, %v4066_v2, %v4042_v34  ;;  %vm4324_vm8 = vcmp.lt.s32.totalorder %v8199_v26, 1 }
 0x25e   : > { %v4048_v45 = vclz %v5885_v32  ;;  %v5892_v30 = vadd.s32 4294967169, %v4192_v61  ;;  %v4308_v8 = vshrl.u32 %v9577_v59, %v4307_v14  ;;  %v4320_v53 = vor.u32 %v4319_v44, %v4318_v43  ;;  %v8243_v32 = vpop.f32.mrb[133].mxu1  ;;  %v8245_v43 = vpop.f32.mrb[133].mxu0 }
 0x25f   : > { %vm8222_vm7 = vcmp.le.f32.partialorder %v9604_v11, 0.7853982  ;;  %v4323_v24 = vor.u32 %v4322_v3, %v4321_v40  ;;  %vm4325_vm9 = vcmp.lt.s32.totalorder %v8199_v26, 2  ;;  %vm4326_vm10 = vcmp.lt.s32.totalorder %v8199_v26, 3 }
 0x260   : > { %v5886_v18 = vadd.s32 4294967294, %v4048_v45  ;;  %vm4327_vm11 = vcmp.lt.s32.totalorder %v8199_v26, 4  ;;  %v4332_v13 = vsel %vm4324_vm8, %v4311_v49, %v4314_v60  ;;  %v4328_v63 = vsel %vm4324_vm8, %v4308_v8, %v4311_v49 }
 0x261   : > { %v6842_v51 = vpop.eup %6841  ;;  %v4329_v21 = vsel %vm4327_vm11, %v4317_v9, 2102212464  ;;  %v4333_v6 = vsel %vm4327_vm11, %v4320_v53, 920167782  ;;  %v4336_v34 = vsel %vm4324_vm8, %v4314_v60, %v4317_v9  ;;  %v4337_v61 = vsel %vm4327_vm11, %v4323_v24, 1326507024 }
 0x262   : > { %v6844_v2 = vpop.eup %6843  ;;  %v4184_v48 = vxor.u32 2147483648, %v6842_v51  ;;  %vm5887_vm12 = vcmp.lt.s32.totalorder %v5886_v18, 0  ;;  %v4334_v14 = vsel %vm4326_vm10, %v4317_v9, %v4333_v6  ;;  %v4330_v54 = vsel %vm4326_vm10, %v4314_v60, %v4329_v21 }
 0x263   : > { %v4181_v10 = vxor.u32 2147483648, %v6844_v2  ;;  %v4051_v58 = vsel %vm5887_vm12, 0, %v5886_v18  ;;  %v4335_v23 = vsel %vm4325_vm9, %v4332_v13, %v4334_v14  ;;  %v4338_v60 = vsel %vm4326_vm10, %v4320_v53, %v4337_v61 }
 0x264   : > { %v4185_v44 = vsel %vm4183_vm4, %v4184_v48, %v6844_v2  ;;  %v4052_v40 = vsub.s32 32, %v4051_v58  ;;  %v4053_v49 = vshll.u32 %v8193_v25, %v4051_v58  ;;  %v4056_v9 = vsub.s32 4294967266, %v4051_v58 }
 0x265   : > { %v4182_v3 = vsel %vm4180_vm3, %v6842_v51, %v4181_v10  ;;  %v8255_v11 = vmul.u32.u64.low %v8191_v31, %v4335_v23  ;;  %v8256_v45 = vmul.u32.u64.high %v8191_v31, %v4335_v23, %v8255_v11  ;;  %v4339_v25 = vsel %vm4325_vm9, %v4336_v34, %v4338_v60 }
 0x266   : > { %v4186_v8 = vsel %vm4179_vm5, %v4182_v3, %v4185_v44  ;;  %v4054_v24 = vshrl.u32 %v8189_v50, %v4052_v40  ;;  %v4057_v18 = vadd.s32 127, %v4056_v9  ;;  %v4069_v53 = vsel %vm8222_vm7, 0, %v4067_v29 }
 0x267   : > { %v4187_v13 = vsel %vm4176_vm6, nan, %v4186_v8  ;;  %v8269_v51 = vmul.u32.u64.low %v8191_v31, %v4339_v25  ;;  %v8270_v21 = vmul.u32.u64.high %v8191_v31, %v4339_v25, %v8269_v51  ;;  %v4331_v2 = vsel %vm4325_vm9, %v4328_v63, %v4330_v54 }
 0x268   : > { %v5471_v15 = vadd.f32 %v5952_v46, %v4187_v13  ;;  %v4055_v6 = vor.u32 %v4054_v24, %v4053_v49  ;;  %v4058_v50 = vshll.u32 %v4057_v18, 23  ;;  %v4350_v34 = vadd.s32 1, %v8256_v45 }
 0x269   : > { %v4198_v4 = vadd.s32 1, %v5892_v30  ;;  %v3297_v48 = vadd.f32 %v8176_v5, %v7671_v22  ;;  %v3621_v29 = vsel %vm1404_vm1, %v3587_v1, %v3588_v20  ;;  %v4073_v61 = vadd.s32 3, %v4069_v53 }
 0x26a   : > { %v5487_v46 = vmul.f32 0.5, %v5471_v15  ;;  %v4059_v14 = vor.u32 4788187, %v4058_v50  ;;  %v4195_v26 = vand.u32 8388607, %v4188_v55  ;;  %v4347_v63 = vmul.u32 %v8191_v31, %v4331_v2 }
 0x26b   : > { %vm4349_vm13 = vc.u32 %v8270_v21, %v8255_v11  ;;  %vm4199_vm14 = vcmp.gt.s32.totalorder %v4198_v4, 0  ;;  %v3683_v22 = vadd.f32 %v3621_v29, %v3297_v48  ;;  %v4062_v5 = vcvt.s32.f32 %v4055_v6 }
 0x26c   : > { %5503 = vst [vmem:[%s8103_s23 + $0x18] sm:$0xff] %v5487_v46  ;;  %v4060_v28 = vand.u32 2147483647, %v4059_v14  ;;  %v4351_v52 = vsel %vm4349_vm13, %v4350_v34, %v8256_v45  ;;  %v4200_v30 = vsel %vm4199_vm14, %v4198_v4, 0  ;;  %v8292_v58 = vand.u32 3, %v4073_v61 }
 0x26d   : > { %v4352_v1 = vadd.s32 %v4351_v52, %v4347_v63  ;;  %v4202_v20 = vand.u32 31, %v4200_v30  ;;  %v4196_v23 = vor.u32 8388608, %v4195_v26  ;;  %v8294_v44 = vshrl.u32 %v4200_v30, 5  ;;  %v9609_v26 = vld [vmem:[#allocation19_spill] sm:$0xff] }
 0x26e   : > { %v4063_v10 = vmul.f32 %v4062_v5, %v4060_v28  ;;  %v5951_v48 = vunpack.c.l.bf16 %v8171_v12  ;;  %vm4294_vm15 = vcmp.lt.s32.totalorder %v8088_v33, 0  ;;  %v3199_v61 = vrot.slane %v7814_v41, 1 }
 0x26f   : > { %v4353_v54 = vadd.s32 536870912, %v4352_v1  ;;  %v4203_v31 = vsub.s32 32, %v4202_v20  ;;  %v4205_v49 = vshll.u32 %v9577_v59, %v4202_v20  ;;  %v4208_v9 = vshll.u32 %v9578_v35, %v4202_v20 }
 0x270   : > { %v4064_v40 = vxor.u32 2147483648, %v4063_v10  ;;  %v4211_v3 = vshll.u32 %v9579_v56, %v4202_v20  ;;  %v4214_v24 = vshll.u32 %v9580_v19, %v4202_v20  ;;  %v4217_v50 = vshll.u32 %v9581_v62, %v4202_v20 }
 0x271   : > { %v4354_v60 = vshrl.u32 %v4353_v54, 30  ;;  %v4206_v45 = vshrl.u32 %v9578_v35, %v4203_v31  ;;  %v4209_v8 = vshrl.u32 %v9579_v56, %v4203_v31  ;;  %v4212_v25 = vshrl.u32 %v9580_v19, %v4203_v31 }
 0x272   : > { %v4065_v18 = vsel %vm3982_vm2, %v4064_v40, %v4063_v10  ;;  %v4215_v13 = vshrl.u32 %v9581_v62, %v4203_v31  ;;  %v4218_v53 = vshrl.u32 %v9582_v42, %v4203_v31  ;;  %vm8317_vm2 = vcmp.le.f32.partialorder %v4292_v17, 0.7853982  ;;  %v8346_v40 = vld [vmem:[%s9538_s3] ss:$0 sm:$0xff] }
 0x273   : > { %v4068_v51 = vsel %vm8222_vm7, %v7910_v0, %v4065_v18  ;;  %v4355_v15 = vshll.u32 %v4354_v60, 30  ;;  %v4207_v6 = vor.u32 %v4206_v45, %v4205_v49  ;;  %v4210_v2 = vor.u32 %v4209_v8, %v4208_v9  ;;  %v8351_v49 = vpop.f32.mrb[134].mxu1  ;;  %v8353_v9 = vpop.f32.mrb[134].mxu0 }
 0x274   : > { %6845 = vcosq.f32 %v4068_v51  ;;  %v4213_v34 = vor.u32 %v4212_v25, %v4211_v3  ;;  %v4216_v4 = vor.u32 %v4215_v13, %v4214_v24  ;;  %v4219_v46 = vor.u32 %v4218_v53, %v4217_v50  ;;  %v9610_v24 = vld [vmem:[#allocation20_spill] sm:$0xff]  ;;  %v9611_v50 = vld [vmem:[#allocation21_spill] sm:$0xff] }
 0x275   : > { %6847 = vsinq.f32 %v4068_v51  ;;  %v8313_v29 = vsub.s32 %v4352_v1, %v4355_v15  ;;  %v8321_v14 = vshll.u32 %v4196_v23, 8  ;;  %v3585_v63 = vrot.slane %v9609_v26, 2 }
 0x276   : > { %v4378_v5 = vsub.s32 4, %v4354_v60  ;;  %vm4220_vm4 = vcmp.lt.s32.totalorder %v8294_v44, 1  ;;  %vm4223_vm3 = vcmp.lt.s32.totalorder %v8294_v44, 4  ;;  %vm4079_vm5 = vcmp.eq.s32.totalorder %v8292_v58, 2 }
 0x277   : > { %v4358_v28 = vsub.s32 0, %v8313_v29  ;;  %vm4222_vm6 = vcmp.lt.s32.totalorder %v8294_v44, 3  ;;  %v4225_v17 = vsel %vm4223_vm3, %v4213_v34, 2102212464  ;;  %v4228_v52 = vsel %vm4220_vm4, %v4207_v6, %v4210_v2 }
 0x278   : > { %v4229_v30 = vsel %vm4223_vm3, %v4216_v4, 920167782  ;;  %vm4076_vm7 = vcmp.eq.s32.totalorder %v8292_v58, 0  ;;  %v4204_v1 = vshrl.u32 %v9577_v59, %v4203_v31  ;;  %vm4221_vm8 = vcmp.lt.s32.totalorder %v8294_v44, 2 }
 0x279   : > { %v5897_v41 = vmin.u32 %v4358_v28, %v8313_v29  ;;  %v4230_v20 = vsel %vm4222_vm6, %v4213_v34, %v4229_v30  ;;  %vm4075_vm9 = vcmp.lt.s32.totalorder %v8292_v58, 2  ;;  %v4232_v54 = vsel %vm4220_vm4, %v4210_v2, %v4213_v34  ;;  %v9612_v58 = vld [vmem:[#allocation4_spill] sm:$0xff] }
 0x27a   : > { %v4231_v10 = vsel %vm4221_vm8, %v4228_v52, %v4230_v20  ;;  %v4233_v23 = vsel %vm4223_vm3, %v4219_v46, 1326507024  ;;  %v8349_v31 = vadd.f32 %v8346_v40, %v3683_v22  ;;  %vm4072_vm10 = vweird.f32 %v7910_v0 }
 0x27b   : > { %v4360_v3 = vclz %v5897_v41  ;;  %v4224_v45 = vsel %vm4220_vm4, %v4204_v1, %v4207_v6  ;;  %v4226_v8 = vsel %vm4222_vm6, %v4210_v2, %v4225_v17  ;;  %v3200_v18 = vrot.slane %v9610_v24, 1 }
 0x27c   : > { %v4379_v25 = vsel %vm4294_vm15, %v4378_v5, %v4354_v60  ;;  %v4234_v22 = vsel %vm4222_vm6, %v4216_v4, %v4233_v23  ;;  %v8366_v13 = vmul.u32.u64.low %v8321_v14, %v4231_v10  ;;  %v8367_v53 = vmul.u32.u64.high %v8321_v14, %v4231_v10, %v8366_v13 }
 0x27d   : > { %v4348_v51 = vadd.s32 %v8255_v11, %v8270_v21  ;;  %v5898_v15 = vadd.s32 4294967294, %v4360_v3  ;;  %v4235_v6 = vsel %vm4221_vm8, %v4232_v54, %v4234_v22  ;;  %v3586_v2 = vrot.slane %v9611_v50, 2 }
 0x27e   : > { %v6846_v34 = vpop.eup %6845  ;;  %v4227_v60 = vsel %vm4221_vm8, %v4224_v45, %v4226_v8  ;;  %v8378_v4 = vmul.u32.u64.low %v8321_v14, %v4235_v6  ;;  %v8379_v46 = vmul.u32.u64.high %v8321_v14, %v4235_v6, %v8378_v4  ;;  %v4503_v28 = vand.u32 2139095040, %v8349_v31 }
 0x27f   : > { %v6848_v5 = vpop.eup %6847  ;;  %v4080_v17 = vxor.u32 2147483648, %v6846_v34  ;;  %vm5899_vm11 = vcmp.lt.s32.totalorder %v5898_v15, 0  ;;  %v4381_v11 = vsel %vm8317_vm2, 0, %v4379_v25  ;;  %v3237_v21 = vsel %vm1017_vm0, %v3199_v61, %v3200_v18 }
 0x280   : > { %v4077_v52 = vxor.u32 2147483648, %v6848_v5  ;;  %v4363_v30 = vsel %vm5899_vm11, 0, %v5898_v15  ;;  %v4246_v44 = vadd.s32 1, %v8367_v53  ;;  %v4504_v41 = vshrl.u32 %v4503_v28, 23 }
 0x281   : > { %v4081_v1 = vsel %vm4079_vm5, %v4080_v17, %v6848_v5  ;;  %v4364_v20 = vsub.s32 32, %v4363_v30  ;;  %v4368_v10 = vsub.s32 4294967266, %v4363_v30  ;;  %v4243_v54 = vmul.u32 %v8321_v14, %v4227_v60  ;;  %v8409_v5 = vld [vmem:[%s8010_s16 + $0x10] sm:$0xff]  }
 0x282   : > { %v4078_v23 = vsel %vm4076_vm7, %v6846_v34, %v4077_v52  ;;  %v4365_v3 = vshll.u32 %v8313_v29, %v4363_v30  ;;  %vm4245_vm12 = vc.u32 %v8379_v46, %v8366_v13  ;;  %v5904_v61 = vadd.s32 4294967169, %v4504_v41 }
 0x283   : > { %v4082_v45 = vsel %vm4075_vm9, %v4078_v23, %v4081_v1  ;;  %v4366_v8 = vshrl.u32 %v4348_v51, %v4364_v20  ;;  %v4369_v24 = vadd.s32 127, %v4368_v10  ;;  %v4247_v18 = vsel %vm4245_vm12, %v4246_v44, %v8367_v53  ;;  %v9613_v44 = vld [vmem:[#allocation22_spill] sm:$0xff] }
 0x284   : > { %v4083_v14 = vsel %vm4072_vm10, nan, %v4082_v45  ;;  %v4248_v25 = vadd.s32 %v4247_v18, %v4243_v54  ;;  %v4500_v22 = vand.u32 2147483647, %v8349_v31  ;;  %v4510_v15 = vadd.s32 1, %v5904_v61 }
 0x285   : > { %v5470_v29 = vadd.f32 %v5951_v48, %v4083_v14  ;;  %v4367_v6 = vor.u32 %v4366_v8, %v4365_v3  ;;  %v4370_v50 = vshll.u32 %v4369_v24, 23  ;;  %v3295_v34 = vadd.f32 %v3237_v21, %v9612_v58 }
 0x286   : > { %v4249_v51 = vadd.s32 536870912, %v4248_v25  ;;  %vm4511_vm13 = vcmp.gt.s32.totalorder %v4510_v15, 0  ;;  %v3623_v0 = vsel %vm1404_vm1, %v3585_v63, %v3586_v2  ;;  %v4385_v4 = vadd.s32 3, %v4381_v11 }
 0x287   : > { %v5486_v53 = vmul.f32 0.5, %v5470_v29  ;;  %v4371_v60 = vor.u32 4788187, %v4370_v50  ;;  %v4512_v28 = vsel %vm4511_vm13, %v4510_v15, 0  ;;  %v4507_v48 = vand.u32 8388607, %v4500_v22 }
 0x288   : > { %v8411_v12 = vshrl.u32 %v4249_v51, 30  ;;  %v4514_v17 = vand.u32 31, %v4512_v28  ;;  %v8415_v21 = vadd.f32 %v3623_v0, %v3295_v34  ;;  %v4374_v26 = vcvt.s32.f32 %v4367_v6 }
 0x289   : > { %5502 = vst [vmem:[%s8103_s23 + $0x10] sm:$0xff] %v5486_v53  ;;  %v4372_v52 = vand.u32 2147483647, %v4371_v60  ;;  %v5956_v11 = vunpack.c.h.bf16 %v8409_v5  ;;  %v3205_v41 = vrot.slane %v9613_v44, 1  ;;  %v8421_v1 = vand.u32 3, %v4385_v4 }
 0x28a   : > { %v4251_v30 = vshll.u32 %v8411_v12, 30  ;;  %v4515_v63 = vsub.s32 32, %v4514_v17  ;;  %v4508_v10 = vor.u32 8388608, %v4507_v48  ;;  %v4517_v3 = vshll.u32 %v9577_v59, %v4514_v17 }
 0x28b   : > { %v4375_v2 = vmul.f32 %v4374_v26, %v4372_v52  ;;  %v4520_v24 = vshll.u32 %v9578_v35, %v4514_v17  ;;  %v4523_v18 = vshll.u32 %v9579_v56, %v4514_v17  ;;  %v4513_v15 = vshrl.u32 %v4512_v28, 5 }
 0x28c   : > { %v8423_v20 = vsub.s32 %v4248_v25, %v4251_v30  ;;  %v4518_v54 = vshrl.u32 %v9578_v35, %v4515_v63  ;;  %v4521_v61 = vshrl.u32 %v9579_v56, %v4515_v63  ;;  %v4524_v45 = vshrl.u32 %v9580_v19, %v4515_v63 }
 0x28d   : > { %v4376_v23 = vxor.u32 2147483648, %v4375_v2  ;;  %v4527_v14 = vshrl.u32 %v9581_v62, %v4515_v63  ;;  %v4526_v6 = vshll.u32 %v9580_v19, %v4514_v17  ;;  %vm4190_vm14 = vcmp.lt.s32.totalorder %v8167_v57, 0 }
 0x28e   : > { %v4254_v8 = vsub.s32 0, %v8423_v20  ;;  %v4519_v29 = vor.u32 %v4518_v54, %v4517_v3  ;;  %v4522_v34 = vor.u32 %v4521_v61, %v4520_v24  ;;  %v4525_v51 = vor.u32 %v4524_v45, %v4523_v18  ;;  %v8459_v3 = vpop.f32.mrb[135].mxu0 }
 0x28f   : > { %v4377_v25 = vsel %vm4294_vm15, %v4376_v23, %v4375_v2  ;;  %v4528_v0 = vor.u32 %v4527_v14, %v4526_v6  ;;  %v4529_v53 = vshll.u32 %v9581_v62, %v4514_v17  ;;  %v4530_v60 = vshrl.u32 %v9582_v42, %v4515_v63  ;;  %v8457_v23 = vpop.f32.mrb[135].mxu1 }
 0x290   : > { %v4380_v50 = vsel %vm8317_vm2, %v8088_v33, %v4377_v25  ;;  %v5893_v58 = vmin.u32 %v4254_v8, %v8423_v20  ;;  %v4244_v4 = vadd.s32 %v8366_v13, %v8379_v46  ;;  %v8445_v48 = vshll.u32 %v4508_v10, 8 }
 0x291   : > { %6849 = vcosq.f32 %v4380_v50  ;;  %v4274_v38 = vsub.s32 4, %v8411_v12  ;;  %v4531_v52 = vor.u32 %v4530_v60, %v4529_v53  ;;  %vm4532_vm15 = vcmp.lt.s32.totalorder %v4513_v15, 1 }
 0x292   : > { %6851 = vsinq.f32 %v4380_v50  ;;  %v4256_v28 = vclz %v5893_v58  ;;  %vm4535_vm2 = vcmp.lt.s32.totalorder %v4513_v15, 4  ;;  %vm8450_vm4 = vcmp.le.f32.partialorder %v4188_v55, 0.7853982 }
 0x293   : > { %vm4534_vm3 = vcmp.lt.s32.totalorder %v4513_v15, 3  ;;  %v4537_v30 = vsel %vm4535_vm2, %v4525_v51, 2102212464  ;;  %v4540_v2 = vsel %vm4532_vm15, %v4519_v29, %v4522_v34  ;;  %v4516_v13 = vshrl.u32 %v9577_v59, %v4515_v63 }
 0x294   : > { %v5894_v17 = vadd.s32 4294967294, %v4256_v28  ;;  %v4541_v46 = vsel %vm4535_vm2, %v4528_v0, 920167782  ;;  %v4544_v10 = vsel %vm4532_vm15, %v4522_v34, %v4525_v51  ;;  %v4545_v54 = vsel %vm4535_vm2, %v4531_v52, 1326507024  ;;  %v8487_v28 = vpop.f32.mrb[136].mxu1 }
 0x295   : > { %vm4388_vm5 = vcmp.eq.s32.totalorder %v8421_v1, 0  ;;  %vm4533_vm7 = vcmp.lt.s32.totalorder %v4513_v15, 2  ;;  %v4542_v55 = vsel %vm4534_vm3, %v4525_v51, %v4541_v46  ;;  %v4546_v61 = vsel %vm4534_vm3, %v4528_v0, %v4545_v54 }
 0x296   : > { %vm5895_vm6 = vcmp.lt.s32.totalorder %v5894_v17, 0  ;;  %vm4387_vm8 = vcmp.lt.s32.totalorder %v8421_v1, 2  ;;  %v4536_v63 = vsel %vm4532_vm15, %v4516_v13, %v4519_v29  ;;  %v4543_v8 = vsel %vm4533_vm7, %v4540_v2, %v4542_v55 }
 0x297   : > { %v4259_v45 = vsel %vm5895_vm6, 0, %v5894_v17  ;;  %v4547_v24 = vsel %vm4533_vm7, %v4544_v10, %v4546_v61  ;;  %vm4384_vm9 = vweird.f32 %v8088_v33  ;;  %v4538_v25 = vsel %vm4534_vm3, %v4522_v34, %v4537_v30  ;;  %v9616_v10 = vld [vmem:[#allocation23_spill] sm:$0xff] }
 0x298   : > { %v4260_v18 = vsub.s32 32, %v4259_v45  ;;  %v4264_v14 = vsub.s32 4294967266, %v4259_v45  ;;  %v8472_v6 = vadd.f32 %v8346_v40, %v8415_v21  ;;  %v4261_v0 = vshll.u32 %v8423_v20, %v4259_v45  ;;  %v8489_v21 = vpop.f32.mrb[136].mxu0  ;;  %v8495_v20 = vpop.f32.mrb[137].mxu1 }
 0x299   : > { %v8475_v50 = vmul.u32.u64.low %v8445_v48, %v4547_v24  ;;  %v8476_v58 = vmul.u32.u64.high %v8445_v48, %v4547_v24, %v8475_v50  ;;  %v8479_v29 = vmul.u32.u64.low %v8445_v48, %v4543_v8  ;;  %v8480_v51 = vmul.u32.u64.high %v8445_v48, %v4543_v8, %v8479_v29 }
 0x29a   : > { %v4262_v53 = vshrl.u32 %v4244_v4, %v4260_v18  ;;  %v4265_v60 = vadd.s32 127, %v4264_v14  ;;  %v4275_v34 = vsel %vm4190_vm14, %v4274_v38, %v8411_v12  ;;  %vm4391_vm10 = vcmp.eq.s32.totalorder %v8421_v1, 2  ;;  %v8497_v4 = vpop.f32.mrb[137].mxu0 }
 0x29b   : > { %v6850_v52 = vpop.eup %6849  ;;  %v4539_v17 = vsel %vm4533_vm7, %v4536_v63, %v4538_v25  ;;  %v4399_v30 = vand.u32 2139095040, %v8472_v6  ;;  %v3206_v2 = vrot.slane %v7955_v37, 1  ;;  %v3591_v54 = vrot.slane %v9616_v10, 2 }
 0x29c   : > { %v6852_v13 = vpop.eup %6851  ;;  %v4392_v46 = vxor.u32 2147483648, %v6850_v52  ;;  %v4263_v12 = vor.u32 %v4262_v53, %v4261_v0  ;;  %v4266_v38 = vshll.u32 %v4265_v60, 23  ;;  %v4277_v61 = vsel %vm8450_vm4, 0, %v4275_v34 }
 0x29d   : > { %v4389_v55 = vxor.u32 2147483648, %v6852_v13  ;;  %vm4557_vm11 = vc.u32 %v8476_v58, %v8479_v29  ;;  %v4558_v15 = vadd.s32 1, %v8480_v51  ;;  %v4555_v63 = vmul.u32 %v8445_v48, %v4539_v17 }
 0x29e   : > { %v4393_v37 = vsel %vm4391_vm10, %v4392_v46, %v6852_v13  ;;  %v4267_v45 = vor.u32 4788187, %v4266_v38  ;;  %v4400_v8 = vshrl.u32 %v4399_v30, 23  ;;  %v4270_v18 = vcvt.s32.f32 %v4263_v12  ;;  %v9618_v13 = vld [vmem:[#allocation24_spill] sm:$0xff]  ;;  %v9619_v12 = vld [vmem:[#allocation5_spill] sm:$0xff]  ;;  %v9620_v38 = vld [vmem:[#allocation3_spill] sm:$0xff] }
 0x29f   : > { %v4390_v24 = vsel %vm4388_vm5, %v6850_v52, %v4389_v55  ;;  %v4559_v14 = vsel %vm4557_vm11, %v4558_v15, %v8480_v51  ;;  %v3231_v25 = vsel %vm1017_vm0, %v3205_v41, %v3206_v2  ;;  %v4396_v34 = vand.u32 2147483647, %v8472_v6  ;;  %v9617_v52 = vld [vmem:[#allocation18_spill] sm:$0xff] }
 0x2a0   : > { %v4394_v50 = vsel %vm4387_vm8, %v4390_v24, %v4393_v37  ;;  %v4268_v0 = vand.u32 2147483647, %v4267_v45  ;;  %v4560_v53 = vadd.s32 %v4559_v14, %v4555_v63  ;;  %v5900_v60 = vadd.s32 4294967169, %v4400_v8 }
 0x2a1   : > { %v4395_v48 = vsel %vm4384_vm9, nan, %v4394_v50  ;;  %v3301_v17 = vadd.f32 %v3231_v25, %v9617_v52  ;;  %v3592_v51 = vrot.slane %v7957_v16, 2  ;;  %v4281_v2 = vadd.s32 3, %v4277_v61  ;;  %v9621_v52 = vld [vmem:[#allocation25_spill] sm:$0xff] }
 0x2a2   : > { %v5473_v44 = vadd.f32 %v5956_v11, %v4395_v48  ;;  %v4271_v41 = vmul.f32 %v4270_v18, %v4268_v0  ;;  %v4561_v30 = vadd.s32 536870912, %v4560_v53  ;;  %v4406_v1 = vadd.s32 1, %v5900_v60 }
 0x2a3   : > { %v3203_v46 = vrot.slane %v9618_v13, 1  ;;  %v3617_v33 = vsel %vm1404_vm1, %v3591_v54, %v3592_v51  ;;  %v8529_v10 = vadd.f32 %v9620_v38, %v9619_v12  ;;  %v4403_v11 = vand.u32 8388607, %v4396_v34 }
 0x2a4   : > { %v5489_v55 = vmul.f32 0.5, %v5473_v44  ;;  %v4272_v15 = vxor.u32 2147483648, %v4271_v41  ;;  %v8531_v16 = vshrl.u32 %v4561_v30, 30  ;;  %vm4407_vm12 = vcmp.gt.s32.totalorder %v4406_v1, 0 }
 0x2a5   : > { %v4408_v37 = vsel %vm4407_vm12, %v4406_v1, 0  ;;  %v3687_v45 = vadd.f32 %v3617_v33, %v3301_v17  ;;  %v3204_v61 = vrot.slane %v8215_v7, 1  ;;  %v8547_v14 = vand.u32 3, %v4281_v2 }
 0x2a6   : > { %5505 = vst [vmem:[%s8103_s23 + $0x28] sm:$0xff] %v5489_v55  ;;  %v4273_v54 = vsel %vm4190_vm14, %v4272_v15, %v4271_v41  ;;  %v4563_v63 = vshll.u32 %v8531_v16, 30  ;;  %v4410_v24 = vand.u32 31, %v4408_v37  ;;  %v5955_v7 = vunpack.c.l.bf16 %v8409_v5 }
 0x2a7   : > { %v4276_v8 = vsel %vm8450_vm4, %v8167_v57, %v4273_v54  ;;  %v8545_v18 = vsel %vm1017_vm0, %v3203_v46, %v3204_v61  ;;  %v4404_v50 = vor.u32 8388608, %v4403_v11  ;;  %v8553_v48 = vshrl.u32 %v4408_v37, 5 }
 0x2a8   : > { %6853 = vcosq.f32 %v4276_v8  ;;  %v8549_v25 = vsub.s32 %v4560_v53, %v4563_v63  ;;  %v4411_v0 = vsub.s32 32, %v4410_v24  ;;  %v4413_v26 = vshll.u32 %v9577_v59, %v4410_v24 }
 0x2a9   : > { %6855 = vsinq.f32 %v4276_v8  ;;  %v3589_v17 = vrot.slane %v9621_v52, 2  ;;  %v4416_v44 = vshll.u32 %v9578_v35, %v4410_v24  ;;  %vm4287_vm13 = vcmp.eq.s32.totalorder %v8547_v14, 2 }
 0x2aa   : > { %v4566_v60 = vsub.s32 0, %v8549_v25  ;;  %v4414_v51 = vshrl.u32 %v9578_v35, %v4411_v0  ;;  %v4417_v53 = vshrl.u32 %v9579_v56, %v4411_v0  ;;  %v4420_v41 = vshrl.u32 %v9580_v19, %v4411_v0 }
 0x2ab   : > { %v4556_v30 = vadd.s32 %v8479_v29, %v8476_v58  ;;  %v4419_v2 = vshll.u32 %v9579_v56, %v4410_v24  ;;  %v4423_v13 = vshrl.u32 %v9581_v62, %v4411_v0  ;;  %vm4284_vm14 = vcmp.eq.s32.totalorder %v8547_v14, 0 }
 0x2ac   : > { %v5905_v1 = vmin.u32 %v4566_v60, %v8549_v25  ;;  %v4415_v46 = vor.u32 %v4414_v51, %v4413_v26  ;;  %v4418_v33 = vor.u32 %v4417_v53, %v4416_v44  ;;  %v4422_v12 = vshll.u32 %v9580_v19, %v4410_v24 }
 0x2ad   : > { %v8569_v38 = vshll.u32 %v4404_v50, 8  ;;  %vm4283_vm15 = vcmp.lt.s32.totalorder %v8547_v14, 2  ;;  %v4586_v15 = vsub.s32 4, %v8531_v16  ;;  %v4421_v58 = vor.u32 %v4420_v41, %v4419_v2 }
 0x2ae   : > { %v4568_v55 = vclz %v5905_v1  ;;  %v3590_v29 = vrot.slane %v8217_v47, 2  ;;  %vm4280_vm2 = vweird.f32 %v8167_v57  ;;  %vm4502_vm4 = vcmp.lt.s32.totalorder %v8349_v31, 0 }
 0x2af   : > { %v4424_v11 = vor.u32 %v4423_v13, %v4422_v12  ;;  %v4425_v37 = vshll.u32 %v9581_v62, %v4410_v24  ;;  %v4426_v61 = vshrl.u32 %v9582_v42, %v4411_v0  ;;  %vm4428_vm3 = vcmp.lt.s32.totalorder %v8553_v48, 1 }
 0x2b0   : > { %v5906_v54 = vadd.s32 4294967294, %v4568_v55  ;;  %vm4431_vm5 = vcmp.lt.s32.totalorder %v8553_v48, 4  ;;  %v4436_v63 = vsel %vm4428_vm3, %v4415_v46, %v4418_v33  ;;  %v8583_v8 = vadd.f32 %v8346_v40, %v3687_v45 }
 0x2b1   : > { %v4412_v47 = vshrl.u32 %v9577_v59, %v4411_v0  ;;  %v4427_v50 = vor.u32 %v4426_v61, %v4425_v37  ;;  %vm4430_vm6 = vcmp.lt.s32.totalorder %v8553_v48, 3  ;;  %v4437_v24 = vsel %vm4431_vm5, %v4424_v11, 920167782 }
 0x2b2   : > { %v6854_v60 = vpop.eup %6853  ;;  %vm5907_vm7 = vcmp.lt.s32.totalorder %v5906_v54, 0  ;;  %vm4429_vm8 = vcmp.lt.s32.totalorder %v8553_v48, 2  ;;  %v4433_v26 = vsel %vm4431_vm5, %v4421_v58, 2102212464  ;;  %v4438_v51 = vsel %vm4430_vm6, %v4421_v58, %v4437_v24 }
 0x2b3   : > { %v6856_v45 = vpop.eup %6855  ;;  %v4288_v44 = vxor.u32 2147483648, %v6854_v60  ;;  %v4571_v53 = vsel %vm5907_vm7, 0, %v5906_v54  ;;  %v4439_v0 = vsel %vm4429_vm8, %v4436_v63, %v4438_v51  ;;  %v4440_v41 = vsel %vm4428_vm3, %v4418_v33, %v4421_v58 }
 0x2b4   : > { %v4285_v1 = vxor.u32 2147483648, %v6856_v45  ;;  %v4572_v2 = vsub.s32 32, %v4571_v53  ;;  %v4573_v13 = vshll.u32 %v8549_v25, %v4571_v53  ;;  %v4576_v12 = vsub.s32 4294967266, %v4571_v53 }
 0x2b5   : > { %v4289_v55 = vsel %vm4287_vm13, %v4288_v44, %v6856_v45  ;;  %v4441_v37 = vsel %vm4431_vm5, %v4427_v50, 1326507024  ;;  %v8604_v61 = vmul.u32.u64.low %v8569_v38, %v4439_v0  ;;  %v8605_v54 = vmul.u32.u64.high %v8569_v38, %v4439_v0, %v8604_v61 }
 0x2b6   : > { %v4286_v63 = vsel %vm4284_vm14, %v6854_v60, %v4285_v1  ;;  %v4574_v24 = vshrl.u32 %v4556_v30, %v4572_v2  ;;  %v4577_v58 = vadd.s32 127, %v4576_v12  ;;  %v4442_v51 = vsel %vm4430_vm6, %v4424_v11, %v4441_v37 }
 0x2b7   : > { %v4290_v25 = vsel %vm4283_vm15, %v4286_v63, %v4289_v55  ;;  %v4432_v45 = vsel %vm4428_vm3, %v4412_v47, %v4415_v46  ;;  %v4434_v50 = vsel %vm4430_vm6, %v4418_v33, %v4433_v26  ;;  %v4443_v44 = vsel %vm4429_vm8, %v4440_v41, %v4442_v51 }
 0x2b8   : > { %v4291_v60 = vsel %vm4280_vm2, nan, %v4290_v25  ;;  %v4575_v30 = vor.u32 %v4574_v24, %v4573_v13  ;;  %v4578_v53 = vshll.u32 %v4577_v58, 23  ;;  %v4587_v14 = vsel %vm4502_vm4, %v4586_v15, %v8531_v16  ;;  %v9624_v24 = vld [vmem:[#allocation8_spill] sm:$0xff]  ;;  %v9625_v58 = vld [vmem:[#allocation6_spill] sm:$0xff] }
 0x2b9   : > { %v5472_v11 = vadd.f32 %v5955_v7, %v4291_v60  ;;  %v8627_v46 = vmul.u32.u64.low %v8569_v38, %v4443_v44  ;;  %v8628_v47 = vmul.u32.u64.high %v8569_v38, %v4443_v44, %v8627_v46  ;;  %v4708_v33 = vand.u32 2147483647, %v8583_v8  ;;  %v8660_v25 = vld [vmem:[%s8010_s16 + $0x18] sm:$0xff]  }
 0x2ba   : > { %v4579_v26 = vor.u32 4788187, %v4578_v53  ;;  %v4435_v57 = vsel %vm4429_vm8, %v4432_v45, %v4434_v50  ;;  %v4454_v0 = vadd.s32 1, %v8605_v54  ;;  %v4711_v41 = vand.u32 2139095040, %v8583_v8 }
 0x2bb   : > { %v5488_v1 = vmul.f32 0.5, %v5472_v11  ;;  %v3299_v16 = vadd.f32 %v8545_v18, %v8529_v10  ;;  %v3619_v5 = vsel %vm1404_vm1, %v3589_v17, %v3590_v29  ;;  %vm8643_vm9 = vcmp.le.f32.partialorder %v4500_v22, 0.7853982 }
 0x2bc   : > { %v4580_v48 = vand.u32 2147483647, %v4579_v26  ;;  %v4582_v15 = vcvt.s32.f32 %v4575_v30  ;;  %v4712_v2 = vshrl.u32 %v4711_v41, 23  ;;  %v4589_v13 = vsel %vm8643_vm9, 0, %v4587_v14 }
 0x2bd   : > { %5504 = vst [vmem:[%s8103_s23 + $0x20] sm:$0xff] %v5488_v1  ;;  %v4451_v10 = vmul.u32 %v8569_v38, %v4435_v57  ;;  %vm4453_vm10 = vc.u32 %v8628_v47, %v8604_v61  ;;  %v3685_v18 = vadd.f32 %v3619_v5, %v3299_v16  ;;  %v4715_v29 = vand.u32 8388607, %v4708_v33 }
 0x2be   : > { %v4583_v52 = vmul.f32 %v4582_v15, %v4580_v48  ;;  %v4455_v17 = vsel %vm4453_vm10, %v4454_v0, %v8605_v54  ;;  %v5912_v22 = vadd.s32 4294967169, %v4712_v2  ;;  %v4593_v37 = vadd.s32 3, %v4589_v13 }
 0x2bf   : > { %v4456_v12 = vadd.s32 %v4455_v17, %v4451_v10  ;;  %v8657_v51 = vadd.f32 %v9625_v58, %v9624_v24  ;;  %v4716_v50 = vor.u32 8388608, %v4715_v29  ;;  %v8665_v54 = vadd.f32 %v8346_v40, %v3685_v18  ;;  %v8702_v58 = vpop.f32.mrb[138].mxu1 }
 0x2c0   : > { %v4584_v55 = vxor.u32 2147483648, %v4583_v52  ;;  %v4718_v63 = vadd.s32 1, %v5912_v22  ;;  %v8670_v53 = vand.u32 3, %v4593_v37  ;;  %v5960_v14 = vunpack.c.h.bf16 %v8660_v25 }
 0x2c1   : > { %v4457_v38 = vadd.s32 536870912, %v4456_v12  ;;  %vm4398_vm12 = vcmp.lt.s32.totalorder %v8472_v6, 0  ;;  %v8675_v46 = vadd.s32 %v8604_v61, %v8628_v47  ;;  %v8677_v0 = vshll.u32 %v4716_v50, 8 }
 0x2c2   : > { %v4585_v45 = vsel %vm4502_vm4, %v4584_v55, %v4583_v52  ;;  %vm4719_vm11 = vcmp.gt.s32.totalorder %v4718_v63, 0  ;;  %v4607_v41 = vand.u32 2139095040, %v8665_v54  ;;  %v3209_v1 = vrot.slane %v8235_v39, 1 }
 0x2c3   : > { %v4588_v44 = vsel %vm8643_vm9, %v8349_v31, %v4585_v45  ;;  %v4458_v60 = vshrl.u32 %v4457_v38, 30  ;;  %v4720_v30 = vsel %vm4719_vm11, %v4718_v63, 0  ;;  %vm4599_vm13 = vcmp.eq.s32.totalorder %v8670_v53, 2  ;;  %v8704_v38 = vpop.f32.mrb[138].mxu0 }
 0x2c4   : > { %6857 = vcosq.f32 %v4588_v44  ;;  %v4722_v11 = vand.u32 31, %v4720_v30  ;;  %v8683_v7 = vshrl.u32 %v4720_v30, 5  ;;  %vm4596_vm14 = vcmp.eq.s32.totalorder %v8670_v53, 0 }
 0x2c5   : > { %6859 = vsinq.f32 %v4588_v44  ;;  %v4459_v26 = vshll.u32 %v4458_v60, 30  ;;  %v4482_v5 = vsub.s32 4, %v4458_v60  ;;  %vm4595_vm15 = vcmp.lt.s32.totalorder %v8670_v53, 2 }
 0x2c6   : > { %v4723_v57 = vsub.s32 32, %v4722_v11  ;;  %v4725_v48 = vshll.u32 %v9577_v59, %v4722_v11  ;;  %v4728_v47 = vshll.u32 %v9578_v35, %v4722_v11  ;;  %v4731_v2 = vshll.u32 %v9579_v56, %v4722_v11 }
 0x2c7   : > { %v8681_v16 = vsub.s32 %v4456_v12, %v4459_v26  ;;  %v4734_v18 = vshll.u32 %v9580_v19, %v4722_v11  ;;  %v3595_v12 = vrot.slane %v8237_v36, 2  ;;  %vm4592_vm2 = vweird.f32 %v8349_v31 }
 0x2c8   : > { %v4726_v61 = vshrl.u32 %v9578_v35, %v4723_v57  ;;  %v4729_v15 = vshrl.u32 %v9579_v56, %v4723_v57  ;;  %v4732_v10 = vshrl.u32 %v9580_v19, %v4723_v57  ;;  %v4735_v52 = vshrl.u32 %v9581_v62, %v4723_v57 }
 0x2c9   : > { %v4462_v13 = vsub.s32 0, %v8681_v16  ;;  %v4738_v29 = vshrl.u32 %v9582_v42, %v4723_v57  ;;  %v4737_v24 = vshll.u32 %v9581_v62, %v4722_v11  ;;  %v8708_v45 = vsel %vm4398_vm12, %v4482_v5, %v4458_v60 }
 0x2ca   : > { %v4727_v17 = vor.u32 %v4726_v61, %v4725_v48  ;;  %v4730_v22 = vor.u32 %v4729_v15, %v4728_v47  ;;  %v4733_v37 = vor.u32 %v4732_v10, %v4731_v2  ;;  %v4736_v63 = vor.u32 %v4735_v52, %v4734_v18 }
 0x2cb   : > { %v5901_v55 = vmin.u32 %v4462_v13, %v8681_v16  ;;  %v4604_v50 = vand.u32 2147483647, %v8665_v54  ;;  %v4608_v44 = vshrl.u32 %v4607_v41, 23  ;;  %v3210_v30 = vrot.slane %v8351_v49, 1 }
 0x2cc   : > { %v4739_v48 = vor.u32 %v4738_v29, %v4737_v24  ;;  %vm4740_vm4 = vcmp.lt.s32.totalorder %v8683_v7, 1  ;;  %vm4743_vm3 = vcmp.lt.s32.totalorder %v8683_v7, 4  ;;  %v4724_v61 = vshrl.u32 %v9577_v59, %v4723_v57 }
 0x2cd   : > { %v4464_v26 = vclz %v5901_v55  ;;  %vm4742_vm5 = vcmp.lt.s32.totalorder %v8683_v7, 3  ;;  %v4748_v60 = vsel %vm4740_vm4, %v4727_v17, %v4730_v22  ;;  %v4749_v5 = vsel %vm4743_vm3, %v4736_v63, 920167782 }
 0x2ce   : > { %v6858_v11 = vpop.eup %6857  ;;  %vm4741_vm6 = vcmp.lt.s32.totalorder %v8683_v7, 2  ;;  %v4750_v15 = vsel %vm4742_vm5, %v4733_v37, %v4749_v5  ;;  %vm8725_vm7 = vcmp.le.f32.partialorder %v4396_v34, 0.7853982  ;;  %v4744_v13 = vsel %vm4740_vm4, %v4724_v61, %v4727_v17 }
 0x2cf   : > { %v6860_v41 = vpop.eup %6859  ;;  %v4600_v47 = vxor.u32 2147483648, %v6858_v11  ;;  %v5902_v49 = vadd.s32 4294967294, %v4464_v26  ;;  %v4745_v10 = vsel %vm4743_vm3, %v4733_v37, 2102212464  ;;  %v4751_v18 = vsel %vm4741_vm6, %v4748_v60, %v4750_v15 }
 0x2d0   : > { %v4597_v2 = vxor.u32 2147483648, %v6860_v41  ;;  %v4752_v29 = vsel %vm4740_vm4, %v4730_v22, %v4733_v37  ;;  %v4753_v34 = vsel %vm4743_vm3, %v4739_v48, 1326507024  ;;  %v5908_v26 = vadd.s32 4294967169, %v4608_v44 }
 0x2d1   : > { %v4601_v52 = vsel %vm4599_vm13, %v4600_v47, %v6860_v41  ;;  %vm5903_vm8 = vcmp.lt.s32.totalorder %v5902_v49, 0  ;;  %v4754_v24 = vsel %vm4742_vm5, %v4736_v63, %v4753_v34  ;;  %v4746_v41 = vsel %vm4742_vm5, %v4730_v22, %v4745_v10 }
 0x2d2   : > { %v4598_v55 = vsel %vm4596_vm14, %v6858_v11, %v4597_v2  ;;  %v4467_v17 = vsel %vm5903_vm8, 0, %v5902_v49  ;;  %v4755_v48 = vsel %vm4741_vm6, %v4752_v29, %v4754_v24  ;;  %v4614_v15 = vadd.s32 1, %v5908_v26  ;;  %v9629_v24 = vld [vmem:[#allocation7_spill] sm:$0xff] }
 0x2d3   : > { %v4602_v61 = vsel %vm4595_vm15, %v4598_v55, %v4601_v52  ;;  %v4468_v60 = vsub.s32 32, %v4467_v17  ;;  %v4472_v5 = vsub.s32 4294967266, %v4467_v17  ;;  %v4469_v63 = vshll.u32 %v8681_v16, %v4467_v17 }
 0x2d4   : > { %v4603_v37 = vsel %vm4592_vm2, nan, %v4602_v61  ;;  %v8754_v11 = vmul.u32.u64.low %v8677_v0, %v4751_v18  ;;  %v8755_v47 = vmul.u32.u64.high %v8677_v0, %v4751_v18, %v8754_v11  ;;  %v3227_v2 = vsel %vm1017_vm0, %v3209_v1, %v3210_v30 }
 0x2d5   : > { %v5475_v53 = vadd.f32 %v5960_v14, %v4603_v37  ;;  %v4470_v44 = vshrl.u32 %v8675_v46, %v4468_v60  ;;  %v4473_v22 = vadd.s32 127, %v4472_v5  ;;  %v4747_v14 = vsel %vm4741_vm6, %v4744_v13, %v4746_v41 }
 0x2d6   : > { %v8763_v31 = vmul.u32.u64.low %v8677_v0, %v4755_v48  ;;  %v8764_v49 = vmul.u32.u64.high %v8677_v0, %v4755_v48, %v8763_v31  ;;  %v4766_v16 = vadd.s32 1, %v8755_v47  ;;  %vm4615_vm9 = vcmp.gt.s32.totalorder %v4614_v15, 0 }
 0x2d7   : > { %v5491_v10 = vmul.f32 0.5, %v5475_v53  ;;  %v4471_v18 = vor.u32 %v4470_v44, %v4469_v63  ;;  %v4474_v52 = vshll.u32 %v4473_v22, 23  ;;  %v8774_v46 = vadd.f32 %v3227_v2, %v8657_v51 }
 0x2d8   : > { %v3596_v29 = vrot.slane %v8353_v9, 2  ;;  %v4485_v39 = vsel %vm8725_vm7, 0, %v8708_v45  ;;  %v4611_v1 = vand.u32 8388607, %v4604_v50  ;;  %v4616_v30 = vsel %vm4615_vm9, %v4614_v15, 0  ;;  %v9628_v45 = vld [vmem:[#allocation9_spill] sm:$0xff] }
 0x2d9   : > { %5507 = vst [vmem:[%s8103_s23 + $0x38] sm:$0xff] %v5491_v10  ;;  %v4475_v34 = vor.u32 4788187, %v4474_v52  ;;  %v4478_v7 = vcvt.s32.f32 %v4471_v18  ;;  %v4763_v13 = vmul.u32 %v8677_v0, %v4747_v14  ;;  %vm4765_vm10 = vc.u32 %v8764_v49, %v8754_v11 }
 0x2da   : > { %v4618_v51 = vand.u32 31, %v4616_v30  ;;  %v4767_v9 = vsel %vm4765_vm10, %v4766_v16, %v8755_v47  ;;  %v8791_v17 = vsel %vm1404_vm1, %v3595_v12, %v3596_v29  ;;  %v8795_v26 = vadd.f32 %v9629_v24, %v9628_v45 }
 0x2db   : > { %v4476_v55 = vand.u32 2147483647, %v4475_v34  ;;  %v4489_v61 = vadd.s32 3, %v4485_v39  ;;  %v5959_v0 = vunpack.c.l.bf16 %v8660_v25  ;;  %v4768_v60 = vadd.s32 %v4767_v9, %v4763_v13  ;;  %v8813_v39 = vpop.f32.mrb[139].mxu1 }
 0x2dc   : > { %v4619_v5 = vsub.s32 32, %v4618_v51  ;;  %v4612_v37 = vor.u32 8388608, %v4611_v1  ;;  %v4621_v48 = vshll.u32 %v9577_v59, %v4618_v51  ;;  %v4624_v47 = vshll.u32 %v9578_v35, %v4618_v51  ;;  %v8815_v1 = vpop.f32.mrb[139].mxu0 }
 0x2dd   : > { %v4479_v41 = vmul.f32 %v4478_v7, %v4476_v55  ;;  %v4769_v36 = vadd.s32 536870912, %v4768_v60  ;;  %v4630_v63 = vshll.u32 %v9580_v19, %v4618_v51  ;;  %v8806_v10 = vshrl.u32 %v4616_v30, 5 }
 0x2de   : > { %v4622_v53 = vshrl.u32 %v9578_v35, %v4619_v5  ;;  %v4625_v12 = vshrl.u32 %v9579_v56, %v4619_v5  ;;  %v4628_v22 = vshrl.u32 %v9580_v19, %v4619_v5  ;;  %v4631_v31 = vshrl.u32 %v9581_v62, %v4619_v5 }
 0x2df   : > { %v4480_v44 = vxor.u32 2147483648, %v4479_v41  ;;  %v4634_v15 = vshrl.u32 %v9582_v42, %v4619_v5  ;;  %v4770_v2 = vshrl.u32 %v4769_v36, 30  ;;  %v4627_v18 = vshll.u32 %v9579_v56, %v4618_v51 }
 0x2e0   : > { %v4633_v52 = vshll.u32 %v9581_v62, %v4618_v51  ;;  %vm4710_vm11 = vcmp.lt.s32.totalorder %v8583_v8, 0  ;;  %v4623_v16 = vor.u32 %v4622_v53, %v4621_v48  ;;  %v4626_v29 = vor.u32 %v4625_v12, %v4624_v47  ;;  %v8841_v47 = vpop.f32.mrb[140].mxu1 }
 0x2e1   : > { %v4481_v14 = vsel %vm4398_vm12, %v4480_v44, %v4479_v41  ;;  %v4632_v34 = vor.u32 %v4631_v31, %v4630_v63  ;;  %v4771_v7 = vshll.u32 %v4770_v2, 30  ;;  %v4629_v13 = vor.u32 %v4628_v22, %v4627_v18  ;;  %v8849_v63 = vpop.f32.mrb[141].mxu1 }
 0x2e2   : > { %v4484_v30 = vsel %vm8725_vm7, %v8472_v6, %v4481_v14  ;;  %v3207_v51 = vrot.slane %v8243_v32, 1  ;;  %v8821_v55 = vand.u32 3, %v4489_v61  ;;  %v4635_v9 = vor.u32 %v4634_v15, %v4633_v52 }
 0x2e3   : > { %6861 = vcosq.f32 %v4484_v30  ;;  %v3593_v45 = vrot.slane %v8245_v43, 2  ;;  %v8824_v24 = vsub.s32 %v4768_v60, %v4771_v7  ;;  %vm4636_vm12 = vcmp.lt.s32.totalorder %v8806_v10, 1 }
 0x2e4   : > { %6863 = vsinq.f32 %v4484_v30  ;;  %vm4639_vm13 = vcmp.lt.s32.totalorder %v8806_v10, 4  ;;  %vm8830_vm14 = vcmp.le.f32.partialorder %v4708_v33, 0.7853982  ;;  %vm4638_vm15 = vcmp.lt.s32.totalorder %v8806_v10, 3  ;;  %v8843_v33 = vpop.f32.mrb[140].mxu0 }
 0x2e5   : > { %v4644_v32 = vsel %vm4636_vm12, %v4623_v16, %v4626_v29  ;;  %v4645_v61 = vsel %vm4639_vm13, %v4632_v34, 920167782  ;;  %v4652_v43 = vshll.u32 %v4612_v37, 8  ;;  %v4774_v60 = vsub.s32 0, %v8824_v24  ;;  %v8851_v44 = vpop.f32.mrb[141].mxu0 }
 0x2e6   : > { %v4794_v41 = vsub.s32 4, %v4770_v2  ;;  %vm4637_vm2 = vcmp.lt.s32.totalorder %v8806_v10, 2  ;;  %v4646_v48 = vsel %vm4638_vm15, %v4629_v13, %v4645_v61  ;;  %v4641_v36 = vsel %vm4639_vm13, %v4629_v13, 2102212464 }
 0x2e7   : > { %v4647_v53 = vsel %vm4637_vm2, %v4644_v32, %v4646_v48  ;;  %v4648_v12 = vsel %vm4636_vm12, %v4626_v29, %v4629_v13  ;;  %v4649_v37 = vsel %vm4639_vm13, %v4635_v9, 1326507024  ;;  %vm4492_vm4 = vcmp.eq.s32.totalorder %v8821_v55, 0 }
 0x2e8   : > { %v5913_v22 = vmin.u32 %v4774_v60, %v8824_v24  ;;  %v4620_v31 = vshrl.u32 %v9577_v59, %v4619_v5  ;;  %v4650_v15 = vsel %vm4638_vm15, %v4632_v34, %v4649_v37  ;;  %v3691_v18 = vadd.f32 %v8791_v17, %v8774_v46 }
 0x2e9   : > { %vm4491_vm3 = vcmp.lt.s32.totalorder %v8821_v55, 2  ;;  %v4651_v52 = vsel %vm4637_vm2, %v4648_v12, %v4650_v15  ;;  %v8863_v14 = vmul.u32.u64.low %v4652_v43, %v4647_v53  ;;  %v8864_v30 = vmul.u32.u64.high %v4652_v43, %v4647_v53, %v8863_v14 }
 0x2ea   : > { %v3208_v7 = vrot.slane %v8457_v23, 1  ;;  %vm4488_vm5 = vweird.f32 %v8472_v6  ;;  %v4776_v5 = vclz %v5913_v22  ;;  %v4795_v34 = vsel %vm4710_vm11, %v4794_v41, %v4770_v2 }
 0x2eb   : > { %v4640_v46 = vsel %vm4636_vm12, %v4620_v31, %v4623_v16  ;;  %v4642_v17 = vsel %vm4638_vm15, %v4626_v29, %v4641_v36  ;;  %v8875_v13 = vmul.u32.u64.low %v4652_v43, %v4651_v52  ;;  %v8876_v9 = vmul.u32.u64.high %v4652_v43, %v4651_v52, %v8875_v13 }
 0x2ec   : > { %v8879_v32 = vadd.f32 %v8346_v40, %v3691_v18  ;;  %v3229_v23 = vsel %vm1017_vm0, %v3207_v51, %v3208_v7  ;;  %vm4495_vm6 = vcmp.eq.s32.totalorder %v8821_v55, 2  ;;  %v5914_v61 = vadd.s32 4294967294, %v4776_v5 }
 0x2ed   : > { %v3303_v2 = vadd.f32 %v3229_v23, %v8795_v26  ;;  %v3594_v60 = vrot.slane %v8459_v3, 2  ;;  %v6862_v16 = vpop.eup %6861  ;;  %v4764_v29 = vadd.s32 %v8754_v11, %v8764_v49  ;;  %v4643_v41 = vsel %vm4637_vm2, %v4640_v46, %v4642_v17 }
 0x2ee   : > { %v4662_v40 = vadd.s32 1, %v8864_v30  ;;  %v4919_v48 = vand.u32 2139095040, %v8879_v32  ;;  %v6864_v36 = vpop.eup %6863  ;;  %v4496_v51 = vxor.u32 2147483648, %v6862_v16  ;;  %vm5915_vm7 = vcmp.lt.s32.totalorder %v5914_v61, 0 }
 0x2ef   : > { %v4797_v53 = vsel %vm8830_vm14, 0, %v4795_v34  ;;  %v3615_v3 = vsel %vm1404_vm1, %v3593_v45, %v3594_v60  ;;  %v4493_v26 = vxor.u32 2147483648, %v6864_v36  ;;  %v4779_v12 = vsel %vm5915_vm7, 0, %v5914_v61 }
 0x2f0   : > { %vm4661_vm8 = vc.u32 %v8876_v9, %v8863_v14  ;;  %v4916_v11 = vand.u32 2147483647, %v8879_v32  ;;  %v4497_v49 = vsel %vm4495_vm6, %v4496_v51, %v6864_v36  ;;  %v4780_v10 = vsub.s32 32, %v4779_v12 }
 0x2f1   : > { %v4784_v37 = vsub.s32 4294967266, %v4779_v12  ;;  %v4659_v22 = vmul.u32 %v4652_v43, %v4643_v41  ;;  %v4494_v31 = vsel %vm4492_vm4, %v6862_v16, %v4493_v26  ;;  %v4781_v15 = vshll.u32 %v8824_v24, %v4779_v12  ;;  %v8921_v26 = vld [vmem:[%s9538_s3] ss:$0 sm:$0xff] }
 0x2f2   : > { %v4663_v45 = vsel %vm4661_vm8, %v4662_v40, %v8864_v30  ;;  %v4920_v18 = vshrl.u32 %v4919_v48, 23  ;;  %v4498_v52 = vsel %vm4491_vm3, %v4494_v31, %v4497_v49  ;;  %v4782_v7 = vshrl.u32 %v4764_v29, %v4780_v10  ;;  %v8914_v29 = vld [vmem:[%s8010_s16 + $0x20] sm:$0xff]  }
 0x2f3   : > { %v4785_v5 = vadd.s32 127, %v4784_v37  ;;  %v4664_v34 = vadd.s32 %v4663_v45, %v4659_v22  ;;  %v4499_v46 = vsel %vm4488_vm5, nan, %v4498_v52  ;;  %v4923_v43 = vand.u32 8388607, %v4916_v11 }
 0x2f4   : > { %v5920_v17 = vadd.s32 4294967169, %v4920_v18  ;;  %v3689_v13 = vadd.f32 %v3615_v3, %v3303_v2  ;;  %v5474_v24 = vadd.f32 %v5959_v0, %v4499_v46  ;;  %v4783_v30 = vor.u32 %v4782_v7, %v4781_v15 }
 0x2f5   : > { %v4786_v23 = vshll.u32 %v4785_v5, 23  ;;  %v4665_v55 = vadd.s32 536870912, %v4664_v34  ;;  %v4801_v40 = vadd.s32 3, %v4797_v53  ;;  %v4924_v48 = vor.u32 8388608, %v4923_v43 }
 0x2f6   : > { %v4926_v61 = vadd.s32 1, %v5920_v17  ;;  %v5490_v60 = vmul.f32 0.5, %v5474_v24  ;;  %v4790_v6 = vcvt.s32.f32 %v4783_v30  ;;  %v5964_v25 = vunpack.c.h.bf16 %v8914_v29 }
 0x2f7   : > { %v4787_v16 = vor.u32 4788187, %v4786_v23  ;;  %v4666_v41 = vshrl.u32 %v4665_v55, 30  ;;  %v8924_v12 = vadd.f32 %v8921_v26, %v3689_v13  ;;  %vm8928_vm10 = vcmp.le.f32.partialorder %v4604_v50, 0.7853982 }
 0x2f8   : > { %vm4927_vm9 = vcmp.gt.s32.totalorder %v4926_v61, 0  ;;  %5506 = vst [vmem:[%s8103_s23 + $0x30] sm:$0xff] %v5490_v60  ;;  %vm4606_vm12 = vcmp.lt.s32.totalorder %v8665_v54, 0  ;;  %v8935_v37 = vand.u32 3, %v4801_v40  ;;  %v4660_v22 = vadd.s32 %v8863_v14, %v8876_v9 }
 0x2f9   : > { %v4788_v36 = vand.u32 2147483647, %v4787_v16  ;;  %v4667_v51 = vshll.u32 %v4666_v41, 30  ;;  %v4690_v2 = vsub.s32 4, %v4666_v41  ;;  %v4928_v3 = vsel %vm4927_vm9, %v4926_v61, 0  ;;  %v8963_v16 = vpop.f32.mrb[142].mxu1 }
 0x2fa   : > { %v4930_v0 = vand.u32 31, %v4928_v3  ;;  %v8939_v15 = vshll.u32 %v4924_v48, 8  ;;  %v4929_v52 = vshrl.u32 %v4928_v3, 5  ;;  %v4815_v46 = vand.u32 2139095040, %v8924_v12 }
 0x2fb   : > { %v4791_v49 = vmul.f32 %v4790_v6, %v4788_v36  ;;  %v8933_v10 = vsub.s32 %v4664_v34, %v4667_v51  ;;  %v8944_v50 = vsel %vm4606_vm12, %v4690_v2, %v4666_v41  ;;  %v8965_v41 = vpop.f32.mrb[142].mxu0  ;;  %vm4803_vm4 = vcmp.lt.s32.totalorder %v8935_v37, 2 }
 0x2fc   : > { %v4931_v31 = vsub.s32 32, %v4930_v0  ;;  %v4933_v17 = vshll.u32 %v9577_v59, %v4930_v0  ;;  %v4939_v43 = vshll.u32 %v9579_v56, %v4930_v0  ;;  %v4693_v24 = vsel %vm8928_vm10, 0, %v8944_v50 }
 0x2fd   : > { %v4792_v45 = vxor.u32 2147483648, %v4791_v49  ;;  %v4670_v18 = vsub.s32 0, %v8933_v10  ;;  %v4936_v23 = vshll.u32 %v9578_v35, %v4930_v0  ;;  %v4942_v57 = vshll.u32 %v9580_v19, %v4930_v0 }
 0x2fe   : > { %v4934_v7 = vshrl.u32 %v9578_v35, %v4931_v31  ;;  %v4937_v5 = vshrl.u32 %v9579_v56, %v4931_v31  ;;  %v4940_v34 = vshrl.u32 %v9580_v19, %v4931_v31  ;;  %v4932_v30 = vshrl.u32 %v9577_v59, %v4931_v31 }
 0x2ff   : > { %v4793_v14 = vsel %vm4710_vm11, %v4792_v45, %v4791_v49  ;;  %v5909_v9 = vmin.u32 %v4670_v18, %v8933_v10  ;;  %v4943_v40 = vshrl.u32 %v9581_v62, %v4931_v31  ;;  %v4945_v36 = vshll.u32 %v9581_v62, %v4930_v0 }
 0x300   : > { %v4796_v13 = vsel %vm8830_vm14, %v8583_v8, %v4793_v14  ;;  %v4935_v61 = vor.u32 %v4934_v7, %v4933_v17  ;;  %v4941_v60 = vor.u32 %v4940_v34, %v4939_v43  ;;  %v4938_v6 = vor.u32 %v4937_v5, %v4936_v23  ;;  %v8976_v5 = vpop.f32.mrb[143].mxu1 }
 0x301   : > { %6865 = vcosq.f32 %v4796_v13  ;;  %v4672_v55 = vclz %v5909_v9  ;;  %v4946_v51 = vshrl.u32 %v9582_v42, %v4931_v31  ;;  %vm4948_vm11 = vcmp.lt.s32.totalorder %v4929_v52, 1  ;;  %v8978_v31 = vpop.f32.mrb[143].mxu0 }
 0x302   : > { %6867 = vsinq.f32 %v4796_v13  ;;  %v4944_v2 = vor.u32 %v4943_v40, %v4942_v57  ;;  %vm4949_vm13 = vcmp.lt.s32.totalorder %v4929_v52, 2  ;;  %vm4950_vm14 = vcmp.lt.s32.totalorder %v4929_v52, 3 }
 0x303   : > { %v5910_v48 = vadd.s32 4294967294, %v4672_v55  ;;  %vm4951_vm15 = vcmp.lt.s32.totalorder %v4929_v52, 4  ;;  %v4947_v3 = vor.u32 %v4946_v51, %v4945_v36  ;;  %v4952_v49 = vsel %vm4948_vm11, %v4932_v30, %v4935_v61 }
 0x304   : > { %v4953_v45 = vsel %vm4951_vm15, %v4941_v60, 2102212464  ;;  %v4956_v7 = vsel %vm4948_vm11, %v4935_v61, %v4938_v6  ;;  %v4957_v0 = vsel %vm4951_vm15, %v4944_v2, 920167782  ;;  %v4960_v17 = vsel %vm4948_vm11, %v4938_v6, %v4941_v60 }
 0x305   : > { %vm5911_vm2 = vcmp.lt.s32.totalorder %v5910_v48, 0  ;;  %v4954_v50 = vsel %vm4950_vm14, %v4938_v6, %v4953_v45  ;;  %vm4800_vm3 = vweird.f32 %v8583_v8  ;;  %v4958_v13 = vsel %vm4950_vm14, %v4941_v60, %v4957_v0 }
 0x306   : > { %v4675_v18 = vsel %vm5911_vm2, 0, %v5910_v48  ;;  %v4955_v43 = vsel %vm4949_vm13, %v4952_v49, %v4954_v50  ;;  %v4961_v30 = vsel %vm4951_vm15, %v4947_v3, 1326507024  ;;  %v4816_v23 = vshrl.u32 %v4815_v46, 23 }
 0x307   : > { %v4676_v34 = vsub.s32 32, %v4675_v18  ;;  %v4677_v14 = vshll.u32 %v8933_v10, %v4675_v18  ;;  %v4680_v9 = vsub.s32 4294967266, %v4675_v18  ;;  %v4959_v57 = vsel %vm4949_vm13, %v4956_v7, %v4958_v13 }
 0x308   : > { %v4962_v40 = vsel %vm4950_vm14, %v4944_v2, %v4961_v30  ;;  %v8991_v48 = vmul.u32.u64.low %v8939_v15, %v4959_v57  ;;  %v8992_v6 = vmul.u32.u64.high %v8939_v15, %v4959_v57, %v8991_v48  ;;  %v5916_v36 = vadd.s32 4294967169, %v4816_v23 }
 0x309   : > { %v4678_v55 = vshrl.u32 %v4660_v22, %v4676_v34  ;;  %v4681_v61 = vadd.s32 127, %v4680_v9  ;;  %v4963_v10 = vsel %vm4949_vm13, %v4960_v17, %v4962_v40  ;;  %vm4804_vm5 = vcmp.eq.s32.totalorder %v8935_v37, 0 }
 0x30a   : > { %v8996_v3 = vmul.u32.u64.low %v8939_v15, %v4963_v10  ;;  %v8997_v46 = vmul.u32.u64.high %v8939_v15, %v4963_v10, %v8996_v3  ;;  %v4812_v52 = vand.u32 2147483647, %v8924_v12  ;;  %v4822_v2 = vadd.s32 1, %v5916_v36  ;;  %v9635_v36 = vld [vmem:[#allocation10_spill] sm:$0xff] }
 0x30b   : > { %v6866_v51 = vpop.eup %6865  ;;  %v4679_v49 = vor.u32 %v4678_v55, %v4677_v14  ;;  %v4682_v60 = vshll.u32 %v4681_v61, 23  ;;  %vm4807_vm6 = vcmp.eq.s32.totalorder %v8935_v37, 2  ;;  %v4697_v7 = vadd.s32 3, %v4693_v24  ;;  %v9634_v37 = vld [vmem:[#allocation12_spill] sm:$0xff] }
 0x30c   : > { %v6868_v22 = vpop.eup %6867  ;;  %v4808_v45 = vxor.u32 2147483648, %v6866_v51  ;;  %v4971_v34 = vmul.u32 %v8939_v15, %v4955_v43  ;;  %v4974_v14 = vadd.s32 1, %v8992_v6  ;;  %vm4823_vm7 = vcmp.gt.s32.totalorder %v4822_v2, 0 }
 0x30d   : > { %v4805_v18 = vxor.u32 2147483648, %v6868_v22  ;;  %v4683_v50 = vor.u32 4788187, %v4682_v60  ;;  %v4686_v13 = vcvt.s32.f32 %v4679_v49  ;;  %vm4973_vm8 = vc.u32 %v8997_v46, %v8991_v48 }
 0x30e   : > { %v4809_v0 = vsel %vm4807_vm6, %v4808_v45, %v6868_v22  ;;  %v4975_v23 = vsel %vm4973_vm8, %v4974_v14, %v8992_v6  ;;  %v4819_v24 = vand.u32 8388607, %v4812_v52  ;;  %v4824_v55 = vsel %vm4823_vm7, %v4822_v2, 0 }
 0x30f   : > { %v4806_v9 = vsel %vm4804_vm5, %v6866_v51, %v4805_v18  ;;  %v4684_v17 = vand.u32 2147483647, %v4683_v50  ;;  %v4976_v61 = vadd.s32 %v4975_v23, %v4971_v34  ;;  %v5963_v40 = vunpack.c.l.bf16 %v8914_v29 }
 0x310   : > { %v4810_v30 = vsel %vm4803_vm4, %v4806_v9, %v4809_v0  ;;  %v4826_v10 = vand.u32 31, %v4824_v55  ;;  %v9018_v51 = vadd.f32 %v9635_v36, %v9634_v37  ;;  %v9020_v49 = vand.u32 3, %v4697_v7 }
 0x311   : > { %v4811_v15 = vsel %vm4800_vm3, nan, %v4810_v30  ;;  %v4687_v43 = vmul.f32 %v4686_v13, %v4684_v17  ;;  %v4977_v60 = vadd.s32 536870912, %v4976_v61  ;;  %v3213_v8 = vrot.slane %v8487_v28, 1 }
 0x312   : > { %v5477_v57 = vadd.f32 %v5964_v25, %v4811_v15  ;;  %v4820_v22 = vor.u32 8388608, %v4819_v24  ;;  %v9023_v45 = vshrl.u32 %v4824_v55, 5  ;;  %v4827_v2 = vsub.s32 32, %v4826_v10 }
 0x313   : > { %v4688_v6 = vxor.u32 2147483648, %v4687_v43  ;;  %v4978_v18 = vshrl.u32 %v4977_v60, 30  ;;  %v4829_v50 = vshll.u32 %v9577_v59, %v4826_v10  ;;  %v4832_v0 = vshll.u32 %v9578_v35, %v4826_v10 }
 0x314   : > { %v5493_v3 = vmul.f32 0.5, %v5477_v57  ;;  %v4830_v34 = vshrl.u32 %v9578_v35, %v4827_v2  ;;  %v4833_v14 = vshrl.u32 %v9579_v56, %v4827_v2  ;;  %v4835_v9 = vshll.u32 %v9579_v56, %v4826_v10 }
 0x315   : > { %v4689_v25 = vsel %vm4606_vm12, %v4688_v6, %v4687_v43  ;;  %vm4918_vm9 = vcmp.lt.s32.totalorder %v8879_v32, 0  ;;  %v4979_v17 = vshll.u32 %v4978_v18, 30  ;;  %v4836_v13 = vshrl.u32 %v9580_v19, %v4827_v2 }
 0x316   : > { %5509 = vst [vmem:[%s8103_s23 + $0x48] sm:$0xff] %v5493_v3  ;;  %v4692_v7 = vsel %vm8928_vm10, %v8665_v54, %v4689_v25  ;;  %v4838_v30 = vshll.u32 %v9580_v19, %v4826_v10  ;;  %v4831_v23 = vor.u32 %v4830_v34, %v4829_v50  ;;  %v4834_v24 = vor.u32 %v4833_v14, %v4832_v0 }
 0x317   : > { %6869 = vcosq.f32 %v4692_v7  ;;  %v4839_v53 = vshrl.u32 %v9581_v62, %v4827_v2  ;;  %v9040_v55 = vsub.s32 %v4976_v61, %v4979_v17  ;;  %v4837_v15 = vor.u32 %v4836_v13, %v4835_v9 }
 0x318   : > { %6871 = vsinq.f32 %v4692_v7  ;;  %v9042_v43 = vshll.u32 %v4820_v22, 8  ;;  %v3599_v57 = vrot.slane %v8489_v21, 2  ;;  %v4841_v36 = vshll.u32 %v9581_v62, %v4826_v10 }
 0x319   : > { %v4840_v37 = vor.u32 %v4839_v53, %v4838_v30  ;;  %v4842_v6 = vshrl.u32 %v9582_v42, %v4827_v2  ;;  %vm4844_vm10 = vcmp.lt.s32.totalorder %v9023_v45, 1  ;;  %vm4703_vm12 = vcmp.eq.s32.totalorder %v9020_v49, 2 }
 0x31a   : > { %v4982_v60 = vsub.s32 0, %v9040_v55  ;;  %v5002_v3 = vsub.s32 4, %v4978_v18  ;;  %vm4846_vm11 = vcmp.lt.s32.totalorder %v9023_v45, 3  ;;  %vm4847_vm13 = vcmp.lt.s32.totalorder %v9023_v45, 4 }
 0x31b   : > { %vm4700_vm14 = vcmp.eq.s32.totalorder %v9020_v49, 0  ;;  %v4843_v61 = vor.u32 %v4842_v6, %v4841_v36  ;;  %v4849_v21 = vsel %vm4847_vm13, %v4837_v15, 2102212464  ;;  %v4852_v10 = vsel %vm4844_vm10, %v4831_v23, %v4834_v24 }
 0x31c   : > { %v4853_v22 = vsel %vm4847_vm13, %v4840_v37, 920167782  ;;  %vm4699_vm15 = vcmp.lt.s32.totalorder %v9020_v49, 2  ;;  %v5921_v25 = vmin.u32 %v4982_v60, %v9040_v55  ;;  %v4828_v50 = vshrl.u32 %v9577_v59, %v4827_v2 }
 0x31d   : > { %vm4845_vm2 = vcmp.lt.s32.totalorder %v9023_v45, 2  ;;  %v4854_v0 = vsel %vm4846_vm11, %v4837_v15, %v4853_v22  ;;  %vm4696_vm4 = vweird.f32 %v8665_v54  ;;  %v4972_v7 = vadd.s32 %v8991_v48, %v8997_v46 }
 0x31e   : > { %v4855_v34 = vsel %vm4845_vm2, %v4852_v10, %v4854_v0  ;;  %v4856_v14 = vsel %vm4844_vm10, %v4834_v24, %v4837_v15  ;;  %v4857_v9 = vsel %vm4847_vm13, %v4843_v61, 1326507024  ;;  %v4984_v17 = vclz %v5921_v25 }
 0x31f   : > { %v4848_v2 = vsel %vm4844_vm10, %v4828_v50, %v4831_v23  ;;  %v4850_v13 = vsel %vm4846_vm11, %v4834_v24, %v4849_v21  ;;  %v3597_v30 = vrot.slane %v8497_v4, 2  ;;  %v5003_v53 = vsel %vm4918_vm9, %v5002_v3, %v4978_v18 }
 0x320   : > { %v4858_v48 = vsel %vm4846_vm11, %v4840_v37, %v4857_v9  ;;  %v9078_v46 = vmul.u32.u64.low %v9042_v43, %v4855_v34  ;;  %v9079_v36 = vmul.u32.u64.high %v9042_v43, %v4855_v34, %v9078_v46  ;;  %v5922_v6 = vadd.s32 4294967294, %v4984_v17 }
 0x321   : > { %v6870_v15 = vpop.eup %6869  ;;  %v4859_v23 = vsel %vm4845_vm2, %v4856_v14, %v4858_v48  ;;  %v3214_v24 = vrot.slane %v8702_v58, 1  ;;  %v3600_v4 = vrot.slane %v8704_v38, 2  ;;  %v4851_v18 = vsel %vm4845_vm2, %v4848_v2, %v4850_v13  ;;  %v9637_v48 = vld [vmem:[#allocation11_spill] sm:$0xff] }
 0x322   : > { %v6872_v60 = vpop.eup %6871  ;;  %v4704_v61 = vxor.u32 2147483648, %v6870_v15  ;;  %v9089_v37 = vmul.u32.u64.low %v9042_v43, %v4859_v23  ;;  %v9090_v3 = vmul.u32.u64.high %v9042_v43, %v4859_v23, %v9089_v37  ;;  %vm5923_vm3 = vcmp.lt.s32.totalorder %v5922_v6, 0 }
 0x323   : > { %v4701_v21 = vxor.u32 2147483648, %v6872_v60  ;;  %v3223_v10 = vsel %vm1017_vm0, %v3213_v8, %v3214_v24  ;;  %v3609_v58 = vsel %vm1404_vm1, %v3599_v57, %v3600_v4  ;;  %v4987_v22 = vsel %vm5923_vm3, 0, %v5922_v6 }
 0x324   : > { %v4705_v38 = vsel %vm4703_vm12, %v4704_v61, %v6872_v60  ;;  %v4870_v45 = vadd.s32 1, %v9079_v36  ;;  %v3309_v25 = vadd.f32 %v3223_v10, %v9018_v51  ;;  %v4988_v0 = vsub.s32 32, %v4987_v22 }
 0x325   : > { %v4702_v50 = vsel %vm4700_vm14, %v6870_v15, %v4701_v21  ;;  %v4992_v34 = vsub.s32 4294967266, %v4987_v22  ;;  %v4867_v28 = vmul.u32 %v9042_v43, %v4851_v18  ;;  %v4989_v57 = vshll.u32 %v9040_v55, %v4987_v22  ;;  %v9636_v55 = vld [vmem:[#allocation13_spill] sm:$0xff] }
 0x326   : > { %v4706_v8 = vsel %vm4699_vm15, %v4702_v50, %v4705_v38  ;;  %vm4869_vm5 = vc.u32 %v9090_v3, %v9078_v46  ;;  %v3695_v14 = vadd.f32 %v3609_v58, %v3309_v25  ;;  %v4990_v51 = vshrl.u32 %v4972_v7, %v4988_v0  ;;  %v9141_v50 = vld [vmem:[%s8010_s16 + $0x28] sm:$0xff]  }
 0x327   : > { %v4707_v9 = vsel %vm4696_vm4, nan, %v4706_v8  ;;  %v4993_v17 = vadd.s32 127, %v4992_v34  ;;  %v4871_v2 = vsel %vm4869_vm5, %v4870_v45, %v9079_v36  ;;  %v2921_v15 = vadd.f32 %v9637_v48, %v9636_v55 }
 0x328   : > { %v5476_v43 = vadd.f32 %v5963_v40, %v4707_v9  ;;  %v4872_v13 = vadd.s32 %v4871_v2, %v4867_v28  ;;  %v9116_v49 = vadd.f32 %v8921_v26, %v3695_v14  ;;  %v4991_v6 = vor.u32 %v4990_v51, %v4989_v57 }
 0x329   : > { %v4994_v23 = vshll.u32 %v4993_v17, 23  ;;  %v3212_v54 = vrot.slane %v8813_v39, 1  ;;  %v3598_v7 = vrot.slane %v8815_v1, 2  ;;  %v3211_v36 = vrot.slane %v8495_v20, 1 }
 0x32a   : > { %v5492_v24 = vmul.f32 0.5, %v5476_v43  ;;  %v4873_v4 = vadd.s32 536870912, %v4872_v13  ;;  %v5124_v29 = vand.u32 2147483647, %v9116_v49  ;;  %vm9126_vm6 = vcmp.le.f32.partialorder %v4916_v11, 0.7853982 }
 0x32b   : > { %v4995_v60 = vor.u32 4788187, %v4994_v23  ;;  %v5127_v61 = vand.u32 2139095040, %v9116_v49  ;;  %v4998_v39 = vcvt.s32.f32 %v4991_v6  ;;  %v5005_v1 = vsel %vm9126_vm6, 0, %v5003_v53 }
 0x32c   : > { %5508 = vst [vmem:[%s8103_s23 + $0x40] sm:$0xff] %v5492_v24  ;;  %v4874_v18 = vshrl.u32 %v4873_v4, 30  ;;  %v3225_v20 = vsel %vm1017_vm0, %v3211_v36, %v3212_v54  ;;  %v3611_v11 = vsel %vm1404_vm1, %v3597_v30, %v3598_v7  ;;  %v5131_v22 = vand.u32 8388607, %v5124_v29 }
 0x32d   : > { %v4996_v37 = vand.u32 2147483647, %v4995_v60  ;;  %v5128_v21 = vshrl.u32 %v5127_v61, 23  ;;  %v3307_v10 = vadd.f32 %v3225_v20, %v2921_v15  ;;  %v5009_v25 = vadd.s32 3, %v5005_v1 }
 0x32e   : > { %v4875_v58 = vshll.u32 %v4874_v18, 30  ;;  %v4898_v38 = vsub.s32 4, %v4874_v18  ;;  %vm4814_vm7 = vcmp.lt.s32.totalorder %v8924_v12, 0  ;;  %v5968_v57 = vunpack.c.h.bf16 %v9141_v50 }
 0x32f   : > { %v4999_v45 = vmul.f32 %v4998_v39, %v4996_v37  ;;  %v5928_v53 = vadd.s32 4294967169, %v5128_v21  ;;  %v3693_v0 = vadd.f32 %v3611_v11, %v3307_v10  ;;  %v5132_v9 = vor.u32 8388608, %v5131_v22 }
 0x330   : > { %v9144_v34 = vsub.s32 %v4872_v13, %v4875_v58  ;;  %v4899_v8 = vsel %vm4814_vm7, %v4898_v38, %v4874_v18  ;;  %v9152_v17 = vand.u32 3, %v5009_v25  ;;  %vm9156_vm8 = vcmp.le.f32.partialorder %v4812_v52, 0.7853982 }
 0x331   : > { %v5000_v28 = vxor.u32 2147483648, %v4999_v45  ;;  %v5134_v30 = vadd.s32 1, %v5928_v53  ;;  %v4901_v55 = vsel %vm9156_vm8, 0, %v4899_v8  ;;  %v4868_v15 = vadd.s32 %v9078_v46, %v9090_v3 }
 0x332   : > { %v4878_v14 = vsub.s32 0, %v9144_v34  ;;  %v3217_v52 = vrot.slane %v8841_v47, 1  ;;  %v9169_v54 = vshll.u32 %v5132_v9, 8  ;;  %v3603_v7 = vrot.slane %v8843_v33, 2 }
 0x333   : > { %v5001_v51 = vsel %vm4918_vm9, %v5000_v28, %v4999_v45  ;;  %vm5135_vm10 = vcmp.gt.s32.totalorder %v5134_v30, 0  ;;  %v9172_v24 = vadd.s32 3, %v4901_v55  ;;  %v9177_v40 = vadd.f32 %v8921_v26, %v3693_v0 }
 0x334   : > { %v5004_v43 = vsel %vm9126_vm6, %v8879_v32, %v5001_v51  ;;  %v5917_v13 = vmin.u32 %v4878_v14, %v9144_v34  ;;  %v5136_v48 = vsel %vm5135_vm10, %v5134_v30, 0  ;;  %vm5015_vm9 = vcmp.eq.s32.totalorder %v9152_v17, 2 }
 0x335   : > { %6873 = vcosq.f32 %v5004_v43  ;;  %v5138_v6 = vand.u32 31, %v5136_v48  ;;  %v9174_v4 = vshrl.u32 %v5136_v48, 5  ;;  %vm5012_vm12 = vcmp.eq.s32.totalorder %v9152_v17, 0 }
 0x336   : > { %6875 = vsinq.f32 %v5004_v43  ;;  %v4880_v23 = vclz %v5917_v13  ;;  %vm5011_vm13 = vcmp.lt.s32.totalorder %v9152_v17, 2  ;;  %vm5008_vm14 = vweird.f32 %v8879_v32 }
 0x337   : > { %v5139_v36 = vsub.s32 32, %v5138_v6  ;;  %v5141_v46 = vshll.u32 %v9577_v59, %v5138_v6  ;;  %v5144_v3 = vshll.u32 %v9578_v35, %v5138_v6  ;;  %v5147_v61 = vshll.u32 %v9579_v56, %v5138_v6 }
 0x338   : > { %v5918_v60 = vadd.s32 4294967294, %v4880_v23  ;;  %v5150_v20 = vshll.u32 %v9580_v19, %v5138_v6  ;;  %v5153_v21 = vshll.u32 %v9581_v62, %v5138_v6  ;;  %vm5156_vm15 = vcmp.lt.s32.totalorder %v9174_v4, 1 }
 0x339   : > { %v5142_v39 = vshrl.u32 %v9578_v35, %v5139_v36  ;;  %v5145_v1 = vshrl.u32 %v9579_v56, %v5139_v36  ;;  %v5148_v18 = vshrl.u32 %v9580_v19, %v5139_v36  ;;  %v5151_v37 = vshrl.u32 %v9581_v62, %v5139_v36 }
 0x33a   : > { %vm5919_vm11 = vcmp.lt.s32.totalorder %v5918_v60, 0  ;;  %v5154_v10 = vshrl.u32 %v9582_v42, %v5139_v36  ;;  %v5140_v53 = vshrl.u32 %v9577_v59, %v5139_v36  ;;  %vm5159_vm2 = vcmp.lt.s32.totalorder %v9174_v4, 4 }
 0x33b   : > { %v4883_v11 = vsel %vm5919_vm11, 0, %v5918_v60  ;;  %v5143_v58 = vor.u32 %v5142_v39, %v5141_v46  ;;  %v5146_v38 = vor.u32 %v5145_v1, %v5144_v3  ;;  %v5149_v22 = vor.u32 %v5148_v18, %v5147_v61 }
 0x33c   : > { %v4884_v45 = vsub.s32 32, %v4883_v11  ;;  %v4888_v25 = vsub.s32 4294967266, %v4883_v11  ;;  %v5152_v0 = vor.u32 %v5151_v37, %v5150_v20  ;;  %v4885_v28 = vshll.u32 %v9144_v34, %v4883_v11 }
 0x33d   : > { %v5155_v8 = vor.u32 %v5154_v10, %v5153_v21  ;;  %vm5157_vm4 = vcmp.lt.s32.totalorder %v9174_v4, 2  ;;  %v5161_v9 = vsel %vm5159_vm2, %v5149_v22, 2102212464  ;;  %vm5158_vm3 = vcmp.lt.s32.totalorder %v9174_v4, 3 }
 0x33e   : > { %v4886_v30 = vshrl.u32 %v4868_v15, %v4884_v45  ;;  %v4889_v14 = vadd.s32 127, %v4888_v25  ;;  %v5160_v43 = vsel %vm5156_vm15, %v5140_v53, %v5143_v58  ;;  %v5164_v34 = vsel %vm5156_vm15, %v5143_v58, %v5146_v38 }
 0x33f   : > { %v6874_v51 = vpop.eup %6873  ;;  %v5165_v13 = vsel %vm5159_vm2, %v5152_v0, 920167782  ;;  %v5162_v23 = vsel %vm5158_vm3, %v5146_v38, %v5161_v9  ;;  %v5168_v46 = vsel %vm5156_vm15, %v5146_v38, %v5149_v22  ;;  %v5169_v3 = vsel %vm5159_vm2, %v5155_v8, 1326507024  ;;  %v9642_v9 = vld [vmem:[#allocation16_spill] sm:$0xff] }
 0x340   : > { %v6876_v55 = vpop.eup %6875  ;;  %v5016_v48 = vxor.u32 2147483648, %v6874_v51  ;;  %v4887_v15 = vor.u32 %v4886_v30, %v4885_v28  ;;  %v4890_v6 = vshll.u32 %v4889_v14, 23  ;;  %v5166_v60 = vsel %vm5158_vm3, %v5149_v22, %v5165_v13 }
 0x341   : > { %v5013_v36 = vxor.u32 2147483648, %v6876_v55  ;;  %v5167_v18 = vsel %vm5157_vm4, %v5164_v34, %v5166_v60  ;;  %v5170_v37 = vsel %vm5158_vm3, %v5152_v0, %v5169_v3  ;;  %v5023_v22 = vand.u32 2139095040, %v9177_v40  ;;  %v9644_v60 = vld [vmem:[#allocation17_spill] sm:$0xff] }
 0x342   : > { %v5017_v61 = vsel %vm5015_vm9, %v5016_v48, %v6876_v55  ;;  %v4891_v39 = vor.u32 4788187, %v4890_v6  ;;  %v4894_v1 = vcvt.s32.f32 %v4887_v15  ;;  %v5171_v38 = vsel %vm5157_vm4, %v5168_v46, %v5170_v37  ;;  %v9645_v46 = vld [vmem:[#allocation15_spill] sm:$0xff] }
 0x343   : > { %v5014_v20 = vsel %vm5012_vm12, %v6874_v51, %v5013_v36  ;;  %v9224_v21 = vmul.u32.u64.low %v9169_v54, %v5167_v18  ;;  %v9225_v10 = vmul.u32.u64.high %v9169_v54, %v5167_v18, %v9224_v21  ;;  %v3215_v0 = vrot.slane %v8849_v63, 1  ;;  %v9643_v51 = vld [vmem:[#allocation14_spill] sm:$0xff] }
 0x344   : > { %v5018_v11 = vsel %vm5011_vm13, %v5014_v20, %v5017_v61  ;;  %v4892_v58 = vand.u32 2147483647, %v4891_v39  ;;  %v9236_v25 = vmul.u32.u64.low %v9169_v54, %v5171_v38  ;;  %v9237_v53 = vmul.u32.u64.high %v9169_v54, %v5171_v38, %v9236_v25 }
 0x345   : > { %v5019_v45 = vsel %vm5008_vm14, nan, %v5018_v11  ;;  %v5163_v8 = vsel %vm5157_vm4, %v5160_v43, %v5162_v23  ;;  %v5024_v30 = vshrl.u32 %v5023_v22, 23  ;;  %v5182_v14 = vadd.s32 1, %v9225_v10 }
 0x346   : > { %v5479_v28 = vadd.f32 %v5968_v57, %v5019_v45  ;;  %v4895_v17 = vmul.f32 %v4894_v1, %v4892_v58  ;;  %v5020_v32 = vand.u32 2147483647, %v9177_v40  ;;  %v2927_v34 = vadd.f32 %v9643_v51, %v9642_v9 }
 0x347   : > { %v3218_v13 = vrot.slane %v8963_v16, 1  ;;  %v5924_v48 = vadd.s32 4294967169, %v5024_v30  ;;  %v3604_v57 = vrot.slane %v8965_v41, 2  ;;  %v9251_v15 = vand.u32 3, %v9172_v24 }
 0x348   : > { %v5495_v55 = vmul.f32 0.5, %v5479_v28  ;;  %v4896_v63 = vxor.u32 2147483648, %v4895_v17  ;;  %v5179_v4 = vmul.u32 %v9169_v54, %v5163_v8  ;;  %vm5181_vm5 = vc.u32 %v9237_v53, %v9224_v21 }
 0x349   : > { %v3219_v43 = vsel %vm1017_vm0, %v3217_v52, %v3218_v13  ;;  %v5183_v6 = vsel %vm5181_vm5, %v5182_v14, %v9225_v10  ;;  %v5030_v41 = vadd.s32 1, %v5924_v48  ;;  %v5027_v36 = vand.u32 8388607, %v5020_v32 }
 0x34a   : > { %5511 = vst [vmem:[%s8103_s23 + $0x58] sm:$0xff] %v5495_v55  ;;  %v4897_v16 = vsel %vm4814_vm7, %v4896_v63, %v4895_v17  ;;  %v3313_v23 = vadd.f32 %v3219_v43, %v2927_v34  ;;  %v5184_v24 = vadd.s32 %v5183_v6, %v5179_v4  ;;  %v3605_v47 = vsel %vm1404_vm1, %v3603_v7, %v3604_v57 }
 0x34b   : > { %v4900_v54 = vsel %vm9156_vm8, %v8924_v12, %v4897_v16  ;;  %vm5031_vm6 = vcmp.gt.s32.totalorder %v5030_v41, 0  ;;  %v9275_v3 = vadd.f32 %v9645_v46, %v9644_v60  ;;  %v3216_v39 = vrot.slane %v8976_v5, 1 }
 0x34c   : > { %6877 = vcosq.f32 %v4900_v54  ;;  %v3699_v52 = vadd.f32 %v3605_v47, %v3313_v23  ;;  %v5185_v61 = vadd.s32 536870912, %v5184_v24  ;;  %v5032_v2 = vsel %vm5031_vm6, %v5030_v41, 0 }
 0x34d   : > { %6879 = vsinq.f32 %v4900_v54  ;;  %v5034_v1 = vand.u32 31, %v5032_v2  ;;  %v9282_v33 = vsel %vm1017_vm0, %v3215_v0, %v3216_v39  ;;  %v5967_v7 = vunpack.c.l.bf16 %v9141_v50 }
 0x34e   : > { %v9278_v18 = vshrl.u32 %v5185_v61, 30  ;;  %v3601_v37 = vrot.slane %v8851_v44, 2  ;;  %vm4908_vm7 = vcmp.eq.s32.totalorder %v9251_v15, 0  ;;  %v5028_v11 = vor.u32 8388608, %v5027_v36 }
 0x34f   : > { %v5035_v20 = vsub.s32 32, %v5034_v1  ;;  %v5037_v58 = vshll.u32 %v9577_v59, %v5034_v1  ;;  %vm4907_vm8 = vcmp.lt.s32.totalorder %v9251_v15, 2  ;;  %v5040_v38 = vshll.u32 %v9578_v35, %v5034_v1 }
 0x350   : > { %v5187_v10 = vshll.u32 %v9278_v18, 30  ;;  %vm4904_vm0 = vweird.f32 %v8924_v12  ;;  %v5033_v25 = vshrl.u32 %v5032_v2, 5  ;;  %v5046_v0 = vshll.u32 %v9580_v19, %v5034_v1 }
 0x351   : > { %v5038_v5 = vshrl.u32 %v9578_v35, %v5035_v20  ;;  %v5041_v22 = vshrl.u32 %v9579_v56, %v5035_v20  ;;  %v5044_v50 = vshrl.u32 %v9580_v19, %v5035_v20  ;;  %v5047_v28 = vshrl.u32 %v9581_v62, %v5035_v20 }
 0x352   : > { %v9295_v45 = vsub.s32 %v5184_v24, %v5187_v10  ;;  %v5043_v30 = vshll.u32 %v9579_v56, %v5034_v1  ;;  %v5050_v14 = vshrl.u32 %v9582_v42, %v5035_v20  ;;  %vm4911_vm10 = vcmp.eq.s32.totalorder %v9251_v15, 2 }
 0x353   : > { %v5039_v17 = vor.u32 %v5038_v5, %v5037_v58  ;;  %v5042_v8 = vor.u32 %v5041_v22, %v5040_v38  ;;  %v5180_v9 = vadd.s32 %v9224_v21, %v9237_v53  ;;  %v5048_v34 = vor.u32 %v5047_v28, %v5046_v0 }
 0x354   : > { %v5190_v51 = vsub.s32 0, %v9295_v45  ;;  %v5045_v55 = vor.u32 %v5044_v50, %v5043_v30  ;;  %v5049_v63 = vshll.u32 %v9581_v62, %v5034_v1  ;;  %v9306_v48 = vshll.u32 %v5028_v11, 8 }
 0x355   : > { %v9309_v57 = vadd.f32 %v8921_v26, %v3699_v52  ;;  %vm5052_vm9 = vcmp.lt.s32.totalorder %v5033_v25, 1  ;;  %vm5055_vm12 = vcmp.lt.s32.totalorder %v5033_v25, 4  ;;  %v5036_v24 = vshrl.u32 %v9577_v59, %v5035_v20 }
 0x356   : > { %v6878_v13 = vpop.eup %6877  ;;  %v5929_v16 = vmin.u32 %v5190_v51, %v9295_v45  ;;  %v5051_v21 = vor.u32 %v5050_v14, %v5049_v63  ;;  %v5060_v53 = vsel %vm5052_vm9, %v5039_v17, %v5042_v8  ;;  %v5061_v41 = vsel %vm5055_vm12, %v5048_v34, 920167782 }
 0x357   : > { %v6880_v4 = vpop.eup %6879  ;;  %v4912_v43 = vxor.u32 2147483648, %v6878_v13  ;;  %vm5054_vm11 = vcmp.lt.s32.totalorder %v5033_v25, 3  ;;  %vm5053_vm13 = vcmp.lt.s32.totalorder %v5033_v25, 2  ;;  %v5057_v47 = vsel %vm5055_vm12, %v5045_v55, 2102212464 }
 0x358   : > { %v4909_v6 = vxor.u32 2147483648, %v6880_v4  ;;  %v5192_v54 = vclz %v5929_v16  ;;  %v5062_v52 = vsel %vm5054_vm11, %v5045_v55, %v5061_v41  ;;  %v3602_v2 = vrot.slane %v8978_v31, 2 }
 0x359   : > { %v4913_v23 = vsel %vm4911_vm10, %v4912_v43, %v6880_v4  ;;  %v5063_v61 = vsel %vm5053_vm13, %v5060_v53, %v5062_v52  ;;  %v5056_v1 = vsel %vm5052_vm9, %v5036_v24, %v5039_v17  ;;  %v5064_v20 = vsel %vm5052_vm9, %v5042_v8, %v5045_v55  ;;  %v9375_v24 = vld [vmem:[%s8010_s16 + $0x30] sm:$0xff]  }
 0x35a   : > { %v4910_v36 = vsel %vm4908_vm7, %v6878_v13, %v4909_v6  ;;  %v5930_v46 = vadd.s32 4294967294, %v5192_v54  ;;  %v5065_v10 = vsel %vm5055_vm12, %v5051_v21, 1326507024  ;;  %v5058_v15 = vsel %vm5054_vm11, %v5042_v8, %v5057_v47 }
 0x35b   : > { %v4914_v60 = vsel %vm4907_vm8, %v4910_v36, %v4913_v23  ;;  %v5066_v58 = vsel %vm5054_vm11, %v5048_v34, %v5065_v10  ;;  %v9334_v31 = vmul.u32.u64.low %v9306_v48, %v5063_v61  ;;  %v9335_v12 = vmul.u32.u64.high %v9306_v48, %v5063_v61, %v9334_v31 }
 0x35c   : > { %v4915_v39 = vsel %vm4904_vm0, nan, %v4914_v60  ;;  %vm5931_vm14 = vcmp.lt.s32.totalorder %v5930_v46, 0  ;;  %v5067_v38 = vsel %vm5053_vm13, %v5064_v20, %v5066_v58  ;;  %v5210_v28 = vsub.s32 4, %v9278_v18 }
 0x35d   : > { %v5478_v11 = vadd.f32 %v5967_v7, %v4915_v39  ;;  %v5195_v5 = vsel %vm5931_vm14, 0, %v5930_v46  ;;  %v5059_v7 = vsel %vm5053_vm13, %v5056_v1, %v5058_v15  ;;  %v5335_v34 = vand.u32 2139095040, %v9309_v57 }
 0x35e   : > { %v5196_v50 = vsub.s32 32, %v5195_v5  ;;  %v5200_v0 = vsub.s32 4294967266, %v5195_v5  ;;  %v9341_v17 = vmul.u32.u64.low %v9306_v48, %v5067_v38  ;;  %v9342_v8 = vmul.u32.u64.high %v9306_v48, %v5067_v38, %v9341_v17 }
 0x35f   : > { %v5494_v22 = vmul.f32 0.5, %v5478_v11  ;;  %v5197_v30 = vshll.u32 %v9295_v45, %v5195_v5  ;;  %vm5126_vm15 = vcmp.lt.s32.totalorder %v9116_v49, 0  ;;  %v5078_v13 = vadd.s32 1, %v9335_v12 }
 0x360   : > { %v5198_v14 = vshrl.u32 %v5180_v9, %v5196_v50  ;;  %v5201_v51 = vadd.s32 127, %v5200_v0  ;;  %v3311_v55 = vadd.f32 %v9282_v33, %v9275_v3  ;;  %v3607_v25 = vsel %vm1404_vm1, %v3601_v37, %v3602_v2 }
 0x361   : > { %5510 = vst [vmem:[%s8103_s23 + $0x50] sm:$0xff] %v5494_v22  ;;  %v5211_v45 = vsel %vm5126_vm15, %v5210_v28, %v9278_v18  ;;  %v5336_v9 = vshrl.u32 %v5335_v34, 23  ;;  %v5075_v43 = vmul.u32 %v9306_v48, %v5059_v7  ;;  %vm5077_vm2 = vc.u32 %v9342_v8, %v9334_v31 }
 0x362   : > { %v5199_v63 = vor.u32 %v5198_v14, %v5197_v30  ;;  %v5202_v4 = vshll.u32 %v5201_v51, 23  ;;  %v3697_v16 = vadd.f32 %v3607_v25, %v3311_v55  ;;  %vm9363_vm4 = vcmp.le.f32.partialorder %v5124_v29, 0.7853982 }
 0x363   : > { %v5079_v3 = vsel %vm5077_vm2, %v5078_v13, %v9335_v12  ;;  %v5936_v33 = vadd.s32 4294967169, %v5336_v9  ;;  %v5213_v18 = vsel %vm9363_vm4, 0, %v5211_v45  ;;  %v5332_v48 = vand.u32 2147483647, %v9309_v57 }
 0x364   : > { %v5203_v27 = vor.u32 4788187, %v5202_v4  ;;  %v5080_v37 = vadd.s32 %v5079_v3, %v5075_v43  ;;  %v9372_v6 = vadd.f32 %v8921_v26, %v3697_v16  ;;  %v5206_v53 = vcvt.s32.f32 %v5199_v63 }
 0x365   : > { %v5342_v41 = vadd.s32 1, %v5936_v33  ;;  %v5217_v54 = vadd.s32 3, %v5213_v18  ;;  %v5339_v47 = vand.u32 8388607, %v5332_v48  ;;  %v5972_v1 = vunpack.c.h.bf16 %v9375_v24 }
 0x366   : > { %v5204_v21 = vand.u32 2147483647, %v5203_v27  ;;  %v5081_v29 = vadd.s32 536870912, %v5080_v37  ;;  %v5231_v60 = vand.u32 2139095040, %v9372_v6  ;;  %v5076_v14 = vadd.s32 %v9334_v31, %v9342_v8 }
 0x367   : > { %vm5343_vm1 = vcmp.gt.s32.totalorder %v5342_v41, 0  ;;  %v9385_v39 = vand.u32 3, %v5217_v54  ;;  %v5340_v15 = vor.u32 8388608, %v5339_v47  ;;  %vm5022_vm6 = vcmp.lt.s32.totalorder %v9177_v40, 0 }
 0x368   : > { %v5207_v23 = vmul.f32 %v5206_v53, %v5204_v21  ;;  %v9377_v36 = vshrl.u32 %v5081_v29, 30  ;;  %v5344_v52 = vsel %vm5343_vm1, %v5342_v41, 0  ;;  %v5232_v58 = vshrl.u32 %v5231_v60, 23 }
 0x369   : > { %v5346_v26 = vand.u32 31, %v5344_v52  ;;  %v9393_v5 = vshrl.u32 %v5344_v52, 5  ;;  %vm5223_vm3 = vcmp.eq.s32.totalorder %v9385_v39, 2  ;;  %vm5220_vm5 = vcmp.eq.s32.totalorder %v9385_v39, 0 }
 0x36a   : > { %v5208_v46 = vxor.u32 2147483648, %v5207_v23  ;;  %v5083_v61 = vshll.u32 %v9377_v36, 30  ;;  %v5106_v9 = vsub.s32 4, %v9377_v36  ;;  %v9413_v31 = vshll.u32 %v5340_v15, 8 }
 0x36b   : > { %v5347_v20 = vsub.s32 32, %v5346_v26  ;;  %v5349_v38 = vshll.u32 %v9577_v59, %v5346_v26  ;;  %v5352_v50 = vshll.u32 %v9578_v35, %v5346_v26  ;;  %v5355_v28 = vshll.u32 %v9579_v56, %v5346_v26 }
 0x36c   : > { %v5209_v2 = vsel %vm5126_vm15, %v5208_v46, %v5207_v23  ;;  %v9391_v11 = vsub.s32 %v5080_v37, %v5083_v61  ;;  %v5358_v17 = vshll.u32 %v9580_v19, %v5346_v26  ;;  %v5361_v63 = vshll.u32 %v9581_v62, %v5346_v26 }
 0x36d   : > { %v5212_v10 = vsel %vm9363_vm4, %v9116_v49, %v5209_v2  ;;  %v5350_v12 = vshrl.u32 %v9578_v35, %v5347_v20  ;;  %v5353_v0 = vshrl.u32 %v9579_v56, %v5347_v20  ;;  %v5356_v7 = vshrl.u32 %v9580_v19, %v5347_v20 }
 0x36e   : > { %6881 = vcosq.f32 %v5212_v10  ;;  %v5086_v22 = vsub.s32 0, %v9391_v11  ;;  %v5359_v30 = vshrl.u32 %v9581_v62, %v5347_v20  ;;  %v5362_v4 = vshrl.u32 %v9582_v42, %v5347_v20 }
 0x36f   : > { %6883 = vsinq.f32 %v5212_v10  ;;  %v5351_v34 = vor.u32 %v5350_v12, %v5349_v38  ;;  %v5354_v13 = vor.u32 %v5353_v0, %v5352_v50  ;;  %v5357_v55 = vor.u32 %v5356_v7, %v5355_v28 }
 0x370   : > { %v5925_v51 = vmin.u32 %v5086_v22, %v9391_v11  ;;  %v5360_v25 = vor.u32 %v5359_v30, %v5358_v17  ;;  %v5228_v8 = vand.u32 2147483647, %v9372_v6  ;;  %vm5219_vm7 = vcmp.lt.s32.totalorder %v9385_v39, 2 }
 0x371   : > { %v5348_v43 = vshrl.u32 %v9577_v59, %v5347_v20  ;;  %v5363_v16 = vor.u32 %v5362_v4, %v5361_v63  ;;  %vm5367_vm8 = vcmp.lt.s32.totalorder %v9393_v5, 4  ;;  %v5932_v44 = vadd.s32 4294967169, %v5232_v58 }
 0x372   : > { %v5088_v45 = vclz %v5925_v51  ;;  %vm5216_vm0 = vweird.f32 %v9116_v49  ;;  %vm5364_vm10 = vcmp.lt.s32.totalorder %v9393_v5, 1  ;;  %vm5366_vm9 = vcmp.lt.s32.totalorder %v9393_v5, 3 }
 0x373   : > { %v5369_v3 = vsel %vm5367_vm8, %v5357_v55, 2102212464  ;;  %v5372_v33 = vsel %vm5364_vm10, %v5351_v34, %v5354_v13  ;;  %v5373_v18 = vsel %vm5367_vm8, %v5360_v25, 920167782  ;;  %v5376_v37 = vsel %vm5364_vm10, %v5354_v13, %v5357_v55 }
 0x374   : > { %v5926_v27 = vadd.s32 4294967294, %v5088_v45  ;;  %v5377_v21 = vsel %vm5367_vm8, %v5363_v16, 1326507024  ;;  %vm5365_vm11 = vcmp.lt.s32.totalorder %v9393_v5, 2  ;;  %v5374_v53 = vsel %vm5366_vm9, %v5357_v55, %v5373_v18 }
 0x375   : > { %v5378_v41 = vsel %vm5366_vm9, %v5360_v25, %v5377_v21  ;;  %v5368_v54 = vsel %vm5364_vm10, %v5348_v43, %v5351_v34  ;;  %v5370_v47 = vsel %vm5366_vm9, %v5354_v13, %v5369_v3  ;;  %v5375_v2 = vsel %vm5365_vm11, %v5372_v33, %v5374_v53 }
 0x376   : > { %vm5927_vm12 = vcmp.lt.s32.totalorder %v5926_v27, 0  ;;  %v5379_v52 = vsel %vm5365_vm11, %v5376_v37, %v5378_v41  ;;  %v5238_v50 = vadd.s32 1, %v5932_v44  ;;  %v5107_v28 = vsel %vm5022_vm6, %v5106_v9, %v9377_v36 }
 0x377   : > { %v5091_v23 = vsel %vm5927_vm12, 0, %v5926_v27  ;;  %v9429_v15 = vmul.u32.u64.low %v9413_v31, %v5379_v52  ;;  %v9430_v58 = vmul.u32.u64.high %v9413_v31, %v5379_v52, %v9429_v15  ;;  %v5371_v34 = vsel %vm5365_vm11, %v5368_v54, %v5370_v47 }
 0x378   : > { %v6882_v29 = vpop.eup %6881  ;;  %v5092_v26 = vsub.s32 32, %v5091_v23  ;;  %v5096_v61 = vsub.s32 4294967266, %v5091_v23  ;;  %v5093_v10 = vshll.u32 %v9391_v11, %v5091_v23  ;;  %vm5239_vm13 = vcmp.gt.s32.totalorder %v5238_v50, 0 }
 0x379   : > { %v6884_v60 = vpop.eup %6883  ;;  %v5224_v46 = vxor.u32 2147483648, %v6882_v29  ;;  %v9440_v7 = vmul.u32.u64.low %v9413_v31, %v5375_v2  ;;  %v9441_v11 = vmul.u32.u64.high %v9413_v31, %v5375_v2, %v9440_v7  ;;  %v5240_v13 = vsel %vm5239_vm13, %v5238_v50, 0 }
 0x37a   : > { %v5221_v20 = vxor.u32 2147483648, %v6884_v60  ;;  %v5094_v12 = vshrl.u32 %v5076_v14, %v5092_v26  ;;  %v5097_v22 = vadd.s32 127, %v5096_v61  ;;  %vm9454_vm14 = vcmp.le.f32.partialorder %v5020_v32, 0.7853982 }
 0x37b   : > { %v5225_v38 = vsel %vm5223_vm3, %v5224_v46, %v6884_v60  ;;  %vm5389_vm15 = vc.u32 %v9430_v58, %v9440_v7  ;;  %v5109_v49 = vsel %vm9454_vm14, 0, %v5107_v28  ;;  %v5390_v5 = vadd.s32 1, %v9441_v11 }
 0x37c   : > { %v5222_v0 = vsel %vm5220_vm5, %v6882_v29, %v5221_v20  ;;  %v5095_v30 = vor.u32 %v5094_v12, %v5093_v10  ;;  %v5098_v51 = vshll.u32 %v5097_v22, 23  ;;  %v5235_v25 = vand.u32 8388607, %v5228_v8 }
 0x37d   : > { %v5226_v17 = vsel %vm5219_vm7, %v5222_v0, %v5225_v38  ;;  %v5387_v32 = vmul.u32 %v9413_v31, %v5371_v34  ;;  %v5391_v9 = vsel %vm5389_vm15, %v5390_v5, %v9441_v11  ;;  %v5241_v43 = vshrl.u32 %v5240_v13, 5 }
 0x37e   : > { %v5227_v14 = vsel %vm5216_vm0, nan, %v5226_v17  ;;  %v5099_v39 = vor.u32 4788187, %v5098_v51  ;;  %v5102_v45 = vcvt.s32.f32 %v5095_v30  ;;  %v5113_v26 = vadd.s32 3, %v5109_v49 }
 0x37f   : > { %v5481_v36 = vadd.f32 %v5972_v1, %v5227_v14  ;;  %v5242_v1 = vand.u32 31, %v5240_v13  ;;  %v5392_v3 = vadd.s32 %v5391_v9, %v5387_v32  ;;  %v5236_v2 = vor.u32 8388608, %v5235_v25 }
 0x380   : > { %v5100_v4 = vand.u32 2147483647, %v5099_v39  ;;  %vm5260_vm2 = vcmp.lt.s32.totalorder %v5241_v43, 1  ;;  %vm5262_vm4 = vcmp.lt.s32.totalorder %v5241_v43, 3  ;;  %vm5263_vm1 = vcmp.lt.s32.totalorder %v5241_v43, 4 }
 0x381   : > { %v5497_v63 = vmul.f32 0.5, %v5481_v36  ;;  %v5243_v16 = vsub.s32 32, %v5242_v1  ;;  %v5245_v44 = vshll.u32 %v9577_v59, %v5242_v1  ;;  %v5248_v33 = vshll.u32 %v9578_v35, %v5242_v1 }
 0x382   : > { %v5103_v27 = vmul.f32 %v5102_v45, %v5100_v4  ;;  %v5251_v18 = vshll.u32 %v9579_v56, %v5242_v1  ;;  %v5254_v31 = vshll.u32 %v9580_v19, %v5242_v1  ;;  %v5393_v29 = vadd.s32 536870912, %v5392_v3 }
 0x383   : > { %5513 = vst [vmem:[%s8103_s23 + $0x68] sm:$0xff] %v5497_v63  ;;  %v5246_v37 = vshrl.u32 %v9578_v35, %v5243_v16  ;;  %v5249_v21 = vshrl.u32 %v9579_v56, %v5243_v16  ;;  %v5252_v53 = vshrl.u32 %v9580_v19, %v5243_v16  ;;  %v5255_v23 = vshrl.u32 %v9581_v62, %v5243_v16 }
 0x384   : > { %v5104_v41 = vxor.u32 2147483648, %v5103_v27  ;;  %v5257_v54 = vshll.u32 %v9581_v62, %v5242_v1  ;;  %v5258_v46 = vshrl.u32 %v9582_v42, %v5243_v16  ;;  %v9480_v56 = vshrl.u32 %v5393_v29, 30 }
 0x385   : > { %v5247_v47 = vor.u32 %v5246_v37, %v5245_v44  ;;  %v5250_v52 = vor.u32 %v5249_v21, %v5248_v33  ;;  %v5253_v60 = vor.u32 %v5252_v53, %v5251_v18  ;;  %v5256_v61 = vor.u32 %v5255_v23, %v5254_v31 }
 0x386   : > { %v5105_v35 = vsel %vm5022_vm6, %v5104_v41, %v5103_v27  ;;  %v5259_v20 = vor.u32 %v5258_v46, %v5257_v54  ;;  %v5395_v62 = vshll.u32 %v9480_v56, 30  ;;  %v5244_v12 = vshrl.u32 %v9577_v59, %v5243_v16 }
 0x387   : > { %v5108_v19 = vsel %vm9454_vm14, %v9177_v40, %v5105_v35  ;;  %v5265_v42 = vsel %vm5263_vm1, %v5253_v60, 2102212464  ;;  %v5268_v10 = vsel %vm5260_vm2, %v5247_v47, %v5250_v52  ;;  %v5269_v15 = vsel %vm5263_vm1, %v5256_v61, 920167782 }
 0x388   : > { %6885 = vcosq.f32 %v5108_v19  ;;  %v5396_v38 = vsub.s32 %v5392_v3, %v5395_v62  ;;  %vm5261_vm3 = vcmp.lt.s32.totalorder %v5241_v43, 2  ;;  %v5270_v22 = vsel %vm5262_vm4, %v5253_v60, %v5269_v15 }
 0x389   : > { %6887 = vsinq.f32 %v5108_v19  ;;  %v5271_v50 = vsel %vm5261_vm3, %v5268_v10, %v5270_v22  ;;  %v5272_v0 = vsel %vm5260_vm2, %v5250_v52, %v5253_v60  ;;  %v5273_v28 = vsel %vm5263_vm1, %v5259_v20, 1326507024 }
 0x38a   : > { %v5276_v11 = vshll.u32 %v5236_v2, 8  ;;  %v5398_v17 = vsub.s32 0, %v5396_v38  ;;  %v5264_v30 = vsel %vm5260_vm2, %v5244_v12, %v5247_v47  ;;  %v5266_v51 = vsel %vm5262_vm4, %v5250_v52, %v5265_v42 }
 0x38b   : > { %v5274_v14 = vsel %vm5262_vm4, %v5256_v61, %v5273_v28  ;;  %v5267_v49 = vsel %vm5261_vm3, %v5264_v30, %v5266_v51  ;;  %v5114_v5 = vand.u32 3, %v5113_v26  ;;  %v5971_v43 = vunpack.c.l.bf16 %v9375_v24 }
 0x38c   : > { %v5275_v34 = vsel %vm5261_vm3, %v5272_v0, %v5274_v14  ;;  %v9493_v13 = vmul.u32.u64.low %v5276_v11, %v5271_v50  ;;  %v9494_v36 = vmul.u32.u64.high %v5276_v11, %v5271_v50, %v9493_v13  ;;  %v5937_v59 = vmin.u32 %v5398_v17, %v5396_v38 }
 0x38d   : > { %v9497_v55 = vmul.u32.u64.low %v5276_v11, %v5275_v34  ;;  %v9498_v39 = vmul.u32.u64.high %v5276_v11, %v5275_v34, %v9497_v55  ;;  %v5283_v45 = vmul.u32 %v5276_v11, %v5267_v49  ;;  %vm5119_vm6 = vcmp.eq.s32.totalorder %v5114_v5, 2 }
 0x38e   : > { %v5400_v25 = vclz %v5937_v59  ;;  %v5286_v1 = vadd.s32 1, %v9494_v36  ;;  %vm5115_vm8 = vcmp.lt.s32.totalorder %v5114_v5, 2  ;;  %vm5116_vm0 = vcmp.eq.s32.totalorder %v5114_v5, 0  ;;  %v5983_v59 = vld [vmem:[%s8010_s16 + $0x38] sm:$0xff]  }
 0x38f   : > { %vm5285_vm5 = vc.u32 %v9498_v39, %v9493_v13  ;;  %v5388_v37 = vadd.s32 %v9440_v7, %v9430_v58  ;;  %vm5112_vm10 = vweird.f32 %v9177_v40  ;;  %v5418_v40 = vsub.s32 4, %v9480_v56 }
 0x390   : > { %v5938_v4 = vadd.s32 4294967294, %v5400_v25  ;;  %v5287_v16 = vsel %vm5285_vm5, %v5286_v1, %v9494_v36  ;;  %vm5334_vm9 = vcmp.lt.s32.totalorder %v9309_v57, 0  ;;  %vm5333_vm12 = vcmp.le.f32.partialorder %v5332_v48, 0.7853982 }
 0x391   : > { %v5288_v27 = vadd.s32 %v5287_v16, %v5283_v45  ;;  %v5284_v28 = vadd.s32 %v9493_v13, %v9498_v39  ;;  %v5976_v45 = vunpack.c.h.bf16 %v5983_v59  ;;  %vm5424_vm2 = vweird.f32 %v9309_v57 }
 0x392   : > { %v6886_v63 = vpop.eup %6885  ;;  %vm5939_vm7 = vcmp.lt.s32.totalorder %v5938_v4, 0  ;;  %vm5230_vm4 = vcmp.lt.s32.totalorder %v9372_v6, 0  ;;  %vm5229_vm1 = vcmp.le.f32.partialorder %v5228_v8, 0.7853982  ;;  %v5975_v8 = vunpack.c.l.bf16 %v5983_v59 }
 0x393   : > { %v6888_v32 = vpop.eup %6887  ;;  %v5120_v9 = vxor.u32 2147483648, %v6886_v63  ;;  %v5403_v33 = vsel %vm5939_vm7, 0, %v5938_v4  ;;  %v5289_v31 = vadd.s32 536870912, %v5288_v27  ;;  %vm5320_vm7 = vweird.f32 %v9372_v6 }
 0x394   : > { %v5117_v44 = vxor.u32 2147483648, %v6888_v32  ;;  %v5404_v21 = vsub.s32 32, %v5403_v33  ;;  %v5408_v53 = vsub.s32 4294967266, %v5403_v33  ;;  %v5405_v29 = vshll.u32 %v5396_v38, %v5403_v33 }
 0x395   : > { %v5121_v3 = vsel %vm5119_vm6, %v5120_v9, %v6888_v32  ;;  %v5290_v52 = vshrl.u32 %v5289_v31, 30  ;;  %v5419_v38 = vsel %vm5334_vm9, %v5418_v40, %v9480_v56 }
 0x396   : > { %v5118_v18 = vsel %vm5116_vm0, %v6886_v63, %v5117_v44  ;;  %v5406_v23 = vshrl.u32 %v5388_v37, %v5404_v21  ;;  %v5409_v54 = vadd.s32 127, %v5408_v53  ;;  %v5421_v50 = vsel %vm5333_vm12, 0, %v5419_v38 }
 0x397   : > { %v5122_v24 = vsel %vm5115_vm8, %v5118_v18, %v5121_v3  ;;  %v5291_v26 = vshll.u32 %v5290_v52, 30  ;;  %v5425_v30 = vadd.s32 3, %v5421_v50  ;;  %v5314_v32 = vsub.s32 4, %v5290_v52 }
 0x398   : > { %v5123_v41 = vsel %vm5112_vm10, nan, %v5122_v24  ;;  %v5407_v60 = vor.u32 %v5406_v23, %v5405_v29  ;;  %v5410_v46 = vshll.u32 %v5409_v54, 23 }
 0x399   : > { %v5480_v47 = vadd.f32 %v5971_v43, %v5123_v41  ;;  %v5292_v58 = vsub.s32 %v5288_v27, %v5291_v26  ;;  %v5426_v36 = vand.u32 3, %v5425_v30  ;;  %v5315_v33 = vsel %vm5230_vm4, %v5314_v32, %v5290_v52 }
 0x39a   : > { %v5411_v61 = vor.u32 4788187, %v5410_v46  ;;  %v5414_v19 = vcvt.s32.f32 %v5407_v60  ;;  %v5317_v21 = vsel %vm5229_vm1, 0, %v5315_v33 }
 0x39b   : > { %v5496_v35 = vmul.f32 0.5, %v5480_v47  ;;  %v5294_v2 = vsub.s32 0, %v5292_v58  ;;  %vm5431_vm13 = vcmp.eq.s32.totalorder %v5426_v36, 2  ;;  %vm5428_vm14 = vcmp.eq.s32.totalorder %v5426_v36, 0 }
 0x39c   : > { %v5412_v7 = vand.u32 2147483647, %v5411_v61  ;;  %vm5427_vm15 = vcmp.lt.s32.totalorder %v5426_v36, 2  ;;  %v5321_v53 = vadd.s32 3, %v5317_v21 }
 0x39d   : > { %5512 = vst [vmem:[%s8103_s23 + $0x60] sm:$0xff] %v5496_v35  ;;  %v5933_v62 = vmin.u32 %v5294_v2, %v5292_v58 }
 0x39e   : > { %v5415_v20 = vmul.f32 %v5414_v19, %v5412_v7 }
 0x39f   : > { %v5296_v10 = vclz %v5933_v62 }
 0x3a0   : > { %v5416_v42 = vxor.u32 2147483648, %v5415_v20 }
 0x3a1   : > { %v5934_v22 = vadd.s32 4294967294, %v5296_v10 }
 0x3a2   : > { %v5417_v15 = vsel %vm5334_vm9, %v5416_v42, %v5415_v20 }
 0x3a3   : > { %v5420_v12 = vsel %vm5333_vm12, %v9309_v57, %v5417_v15  ;;  %vm5935_vm11 = vcmp.lt.s32.totalorder %v5934_v22, 0  ;;  %v5322_v57 = vand.u32 3, %v5321_v53 }
 0x3a4   : > { %6889 = vcosq.f32 %v5420_v12  ;;  %v5299_v0 = vsel %vm5935_vm11, 0, %v5934_v22 }
 0x3a5   : > { %6891 = vsinq.f32 %v5420_v12  ;;  %v5300_v11 = vsub.s32 32, %v5299_v0  ;;  %v5304_v17 = vsub.s32 4294967266, %v5299_v0  ;;  %v5301_v51 = vshll.u32 %v5292_v58, %v5299_v0 }
 0x3a6   : > { %vm5327_vm3 = vcmp.eq.s32.totalorder %v5322_v57, 2  ;;  %vm5324_vm5 = vcmp.eq.s32.totalorder %v5322_v57, 0  ;;  %vm5323_vm6 = vcmp.lt.s32.totalorder %v5322_v57, 2 }
 0x3a7   : > { %v5302_v48 = vshrl.u32 %v5284_v28, %v5300_v11  ;;  %v5305_v14 = vadd.s32 127, %v5304_v17 }
 0x3a9   : > { %v5303_v34 = vor.u32 %v5302_v48, %v5301_v51  ;;  %v5306_v56 = vshll.u32 %v5305_v14, 23 }
 0x3ab   : > { %v5307_v55 = vor.u32 4788187, %v5306_v56  ;;  %v5310_v63 = vcvt.s32.f32 %v5303_v34 }
 0x3ad   : > { %v5308_v1 = vand.u32 2147483647, %v5307_v55 }
 0x3ae   : > { %v6890_v49 = vpop.eup %6889 }
 0x3af   : > { %v6892_v5 = vpop.eup %6891  ;;  %v5432_v25 = vxor.u32 2147483648, %v6890_v49  ;;  %v5311_v39 = vmul.f32 %v5310_v63, %v5308_v1 }
 0x3b0   : > { %v5429_v4 = vxor.u32 2147483648, %v6892_v5 }
 0x3b1   : > { %v5433_v13 = vsel %vm5431_vm13, %v5432_v25, %v6892_v5  ;;  %v5312_v16 = vxor.u32 2147483648, %v5311_v39 }
 0x3b2   : > { %v5430_v9 = vsel %vm5428_vm14, %v6890_v49, %v5429_v4 }
 0x3b3   : > { %v5434_v43 = vsel %vm5427_vm15, %v5430_v9, %v5433_v13  ;;  %v5313_v3 = vsel %vm5230_vm4, %v5312_v16, %v5311_v39 }
 0x3b4   : > { %v5435_v44 = vsel %vm5424_vm2, nan, %v5434_v43  ;;  %v5316_v18 = vsel %vm5229_vm1, %v9372_v6, %v5313_v3 }
 0x3b5   : > { %v5483_v27 = vadd.f32 %v5976_v45, %v5435_v44  ;;  %6893 = vcosq.f32 %v5316_v18 }
 0x3b6   : > { %6895 = vsinq.f32 %v5316_v18 }
 0x3b7   : > { %v5499_v37 = vmul.f32 0.5, %v5483_v27 }
 0x3b9   : > { %5515 = vst [vmem:[%s8103_s23 + $0x78] sm:$0xff] %v5499_v37 }
 0x3bf   : > { %v6894_v24 = vpop.eup %6893 }
 0x3c0   : > { %v6896_v31 = vpop.eup %6895  ;;  %v5328_v41 = vxor.u32 2147483648, %v6894_v24 }
 0x3c1   : > { %v5325_v29 = vxor.u32 2147483648, %v6896_v31 }
 0x3c2   : > { %v5329_v23 = vsel %vm5327_vm3, %v5328_v41, %v6896_v31 }
 0x3c3   : > { %v5326_v54 = vsel %vm5324_vm5, %v6894_v24, %v5325_v29 }
 0x3c4   : > { %v5330_v47 = vsel %vm5323_vm6, %v5326_v54, %v5329_v23 }
 0x3c5   : > { %v5331_v52 = vsel %vm5320_vm7, nan, %v5330_v47 }
 0x3c6   : > { %v5482_v60 = vadd.f32 %v5975_v8, %v5331_v52 }
 0x3c8   : > { %v5498_v46 = vmul.f32 0.5, %v5482_v60 }
 0x3ca   : > { %5514 = vst [vmem:[%s8103_s23 + $0x70] sm:$0xff] %v5498_v46 }
 0x3cb PF: > { %s15_s20 = sadd.s32 1, %s6922_s20   ;;  %s9650_s18 = smov %s6918_s19 }
 0x3cc   : > { %p12_p5 = scmp.ge.s32.totalorder %s15_s20, 4   ;;  %s9651_s19 = smov %s9653_s21 }
 0x3ce   :  { %14 = sbr.rel (!%p12_p5) target bundleno = 2 (0x2), region = 84 }

// kernel: siren_res_block_forward.2
= control target key start
LH: loop header
LB: loop body
LE: loop exit
PB: predicated region body
PF: predicated region fallthrough
CT: control target
= control target key end

     0   :  { %s6831_s15 = smov 0   ;;  %s6833_s16 = smov 0   ;;  %s9262_s0 = inlined_call_operand.vmem [shape: bf16[2,18,16,128], index: 0, kind: input, shape index: {}]   ;;  %s9263_s1 = inlined_call_operand.vmem [shape: bf16[2,2,16,128], index: 1, kind: input, shape index: {}]   ;;  %s9264_s2 = inlined_call_operand.vmem [shape: bf16[3,3,128,128], index: 2, kind: input, shape index: {}]   ;;  %s9265_s3 = inlined_call_operand.vmem [shape: f32[1,128], index: 3, kind: input, shape index: {}]   ;;  %s9266_s4 = inlined_call_operand.vmem [shape: bf16[2,16,8,128], index: 4, kind: output, shape index: {}]  }
   0x1   :  { %s6835_s17 = smov 0  }
   0x2 LB: > { %s26_s18 = sadd.s32 1, %s6794_s16  ;;  %p5520_p0 = scmp.ge.s32.totalorder %s6798_s17, 1  ;;  %s6798_s17 = sphi %s6835_s17, %s14_s17   ;;  %s6794_s16 = sphi %s6833_s16, %s9389_s16   ;;  %s6790_s15 = sphi %s6831_s15, %s9388_s15  }
   0x3   : > { %p28_p1 = scmp.ge.s32.totalorder %s26_s18, 2  ;;  %p212_p2 = scmp.lt.s32.totalorder %s6798_s17, 3 }
   0x5   : > { %s9391_s18 = smov (%p28_p1, %s26_s18), 0  ;;  %p213_p3 = pnand %p5520_p0, %p212_p2 }
   0x7   : > { %216 = sbr.rel (%p213_p3) target bundleno = 962 (0x3c2), region = 36 }
   0xe   : > { %v6619_v0 = vld [vmem:[%s9264_s2] sm:$0xff]   ;;  %p268_p4 = scmp.lt.s32.totalorder %s6790_s15, 1  ;;  %v6620_v1 = vld [vmem:[%s9264_s2 + $0x8] sm:$0xff]   ;;  %v6621_v2 = vld [vmem:[%s9264_s2 + $0x10] sm:$0xff]  }
   0xf   : > { %6076 = vmatprep.subr.bf16.mxu0 %v6619_v0  ;;  %6508 = vmatprep.subr.bf16.mxu1 %v6619_v0  ;;  %v6622_v3 = vld [vmem:[%s9264_s2 + $0x18] sm:$0xff]   ;;  %v6623_v6 = vld [vmem:[%s9264_s2 + $0x20] sm:$0xff]   ;;  %v6624_v7 = vld [vmem:[%s9264_s2 + $0x28] sm:$0xff]  }
  0x10   : > { %s9393_s15 = smov (!%p268_p4, %s6790_s15), 1  ;;  %6077 = vmatpush3.bf16.msra.mxu0 %v6619_v0  ;;  %6516 = vmatpush3.bf16.msra.mxu1 %v6619_v0  ;;  %v6625_v8 = vld [vmem:[%s9264_s2 + $0x30] sm:$0xff]   ;;  %v6626_v9 = vld [vmem:[%s9264_s2 + $0x38] sm:$0xff]   ;;  %v6631_v10 = vld [vmem:[%s9264_s2 + $0x40] sm:$0xff]  }
  0x11   : > { %6078 = vmatprep.subr.bf16.mxu0 %v6620_v1  ;;  %6509 = vmatprep.subr.bf16.mxu1 %v6620_v1  ;;  %s6524_s25 = smul.u32 144, %s9393_s15  ;;  %v6632_v12 = vld [vmem:[%s9264_s2 + $0x80] sm:$0xff]   ;;  %v6633_v14 = vld [vmem:[%s9264_s2 + $0x48] sm:$0xff]   ;;  %v6639_v18 = vld [vmem:[%s9264_s2 + $0x50] sm:$0xff]   ;;  %s5811_s11 = sshll.u32 %s9393_s15, 4 }
  0x12   : > { %v6634_v15 = vld [vmem:[%s9264_s2 + $0x88] sm:$0xff]   ;;  %v6640_v20 = vld [vmem:[%s9264_s2 + $0x90] sm:$0xff]   ;;  %v6641_v22 = vld [vmem:[%s9264_s2 + $0x58] sm:$0xff]   ;;  %s7021_s22 = scalar_lea.vmem %s9263_s1, %s5811_s11  ;;  %s5812_s27 = sshll.u32 %s9393_s15, 6 }
  0x13   : > { %s6864_s28 = scalar_lea.vmem %s9262_s0, %s6524_s25  ;;  %v6642_v23 = vld [vmem:[%s9264_s2 + $0x98] sm:$0xff]   ;;  %v6647_v26 = vld [vmem:[%s9264_s2 + $0x60] sm:$0xff]   ;;  %v6649_v30 = vld [vmem:[%s9264_s2 + $0x68] sm:$0xff]   ;;  %s7994_s30 = scalar_lea.vmem %s9266_s4, %s5812_s27 }
  0x14   : > { %6079 = vmatpush3.bf16.msra.mxu0 %v6620_v1  ;;  %6517 = vmatpush3.bf16.msra.mxu1 %v6620_v1  ;;  %v6870_v4 = vld [vmem:[%s6864_s28] sm:$0xff]   ;;  %v6893_v11 = vld [vmem:[%s6864_s28 + $0x8] sm:$0xff]   ;;  %v6908_v16 = vld [vmem:[%s6864_s28 + $0x10] sm:$0xff]  }
  0x15   : > { %6080 = vmatprep.subr.bf16.mxu0 %v6621_v2  ;;  %6510 = vmatprep.subr.bf16.mxu1 %v6621_v2  ;;  %v6873_v5 = vld [vmem:[%s6864_s28 + $0x40] sm:$0xff]   ;;  %v6899_v13 = vld [vmem:[%s6864_s28 + $0x48] sm:$0xff]   ;;  %v6911_v17 = vld [vmem:[%s6864_s28 + $0x50] sm:$0xff]  }
  0x16   : > { %6092 = vmatprep.mubr.bf16.mxu0 %v6870_v4  ;;  %6108 = vmatprep.mubr.bf16.mxu1 %v6873_v5  ;;  %v6919_v19 = vld [vmem:[%s6864_s28 + $0x18] sm:$0xff]   ;;  %v6936_v24 = vld [vmem:[%s6864_s28 + $0x20] sm:$0xff]   ;;  %v6947_v27 = vld [vmem:[%s6864_s28 + $0x28] sm:$0xff]  }
  0x17   : > { %v6927_v21 = vld [vmem:[%s6864_s28 + $0x58] sm:$0xff]   ;;  %v6939_v25 = vld [vmem:[%s6864_s28 + $0x60] sm:$0xff]   ;;  %v6955_v29 = vld [vmem:[%s6864_s28 + $0x68] sm:$0xff]  }
  0x18   : > { %6081 = vmatpush3.bf16.msra.mxu0 %v6621_v2  ;;  %6518 = vmatpush3.bf16.msra.mxu1 %v6621_v2  ;;  %v6648_v28 = vld [vmem:[%s9264_s2 + $0xa0] sm:$0xff]   ;;  %v6650_v31 = vld [vmem:[%s9264_s2 + $0xa8] sm:$0xff]   ;;  %v6964_v32 = vld [vmem:[%s6864_s28 + $0x30] sm:$0xff]  }
  0x19   : > { %6082 = vmatprep.subr.bf16.mxu0 %v6622_v3  ;;  %6511 = vmatprep.subr.bf16.mxu1 %v6622_v3  ;;  %v6967_v33 = vld [vmem:[%s6864_s28 + $0x70] sm:$0xff]   ;;  %v6980_v36 = vld [vmem:[%s6864_s28 + $0x38] sm:$0xff]   ;;  %v6659_v40 = vld [vmem:[%s9264_s2 + $0xc0] sm:$0xff]  }
  0x1a   : > { %v6655_v34 = vld [vmem:[%s9264_s2 + $0x70] sm:$0xff]   ;;  %v6983_v37 = vld [vmem:[%s6864_s28 + $0x78] sm:$0xff]   ;;  %v6660_v41 = vld [vmem:[%s9264_s2 + $0x100] sm:$0xff]  }
  0x1b   : > { %v6656_v35 = vld [vmem:[%s9264_s2 + $0xb0] sm:$0xff]   ;;  %v6657_v38 = vld [vmem:[%s9264_s2 + $0x78] sm:$0xff]   ;;  %v6661_v42 = vld [vmem:[%s9264_s2 + $0xc8] sm:$0xff]  }
  0x1c   : > { %6083 = vmatpush3.bf16.msra.mxu0 %v6622_v3  ;;  %6519 = vmatpush3.bf16.msra.mxu1 %v6622_v3  ;;  %v6658_v39 = vld [vmem:[%s9264_s2 + $0xb8] sm:$0xff]   ;;  %v6662_v43 = vld [vmem:[%s9264_s2 + $0x108] sm:$0xff]   ;;  %v6663_v44 = vld [vmem:[%s9264_s2 + $0xd0] sm:$0xff]  }
  0x1d   : > { %6084 = vmatprep.subr.bf16.mxu0 %v6623_v6  ;;  %6512 = vmatprep.subr.bf16.mxu1 %v6623_v6  ;;  %v6664_v45 = vld [vmem:[%s9264_s2 + $0x110] sm:$0xff]   ;;  %v6665_v46 = vld [vmem:[%s9264_s2 + $0xd8] sm:$0xff]   ;;  %v6667_v48 = vld [vmem:[%s9264_s2 + $0xe0] sm:$0xff]  }
  0x1e   : > { %v6666_v47 = vld [vmem:[%s9264_s2 + $0x118] sm:$0xff]   ;;  %v6668_v49 = vld [vmem:[%s9264_s2 + $0x120] sm:$0xff]   ;;  %v6669_v50 = vld [vmem:[%s9264_s2 + $0xe8] sm:$0xff]  }
  0x1f   : > { %v6670_v51 = vld [vmem:[%s9264_s2 + $0x128] sm:$0xff]   ;;  %v6671_v52 = vld [vmem:[%s9264_s2 + $0xf0] sm:$0xff]   ;;  %v6673_v54 = vld [vmem:[%s9264_s2 + $0xf8] sm:$0xff]  }
  0x20   : > { %6085 = vmatpush3.bf16.msra.mxu0 %v6623_v6  ;;  %6520 = vmatpush3.bf16.msra.mxu1 %v6623_v6  ;;  %v6672_v53 = vld [vmem:[%s9264_s2 + $0x130] sm:$0xff]   ;;  %v6674_v55 = vld [vmem:[%s9264_s2 + $0x138] sm:$0xff]   ;;  %v6675_v56 = vld [vmem:[%s9264_s2 + $0x140] sm:$0xff]  }
  0x21   : > { %6086 = vmatprep.subr.bf16.mxu0 %v6624_v7  ;;  %6513 = vmatprep.subr.bf16.mxu1 %v6624_v7  ;;  %v6676_v57 = vld [vmem:[%s9264_s2 + $0x180] sm:$0xff]   ;;  %v6677_v58 = vld [vmem:[%s9264_s2 + $0x148] sm:$0xff]   ;;  %v6679_v60 = vld [vmem:[%s9264_s2 + $0x150] sm:$0xff]  }
  0x22   : > { %v6678_v59 = vld [vmem:[%s9264_s2 + $0x188] sm:$0xff]   ;;  %v6680_v61 = vld [vmem:[%s9264_s2 + $0x190] sm:$0xff]   ;;  %v6681_v62 = vld [vmem:[%s9264_s2 + $0x158] sm:$0xff]  }
  0x23   : > { %v6682_v63 = vld [vmem:[%s9264_s2 + $0x198] sm:$0xff]   ;;  %v6683_v0 = vld [vmem:[%s9264_s2 + $0x160] sm:$0xff]   ;;  %v6685_v2 = vld [vmem:[%s9264_s2 + $0x168] sm:$0xff]  }
  0x24   : > { %6087 = vmatpush3.bf16.msra.mxu0 %v6624_v7  ;;  %6521 = vmatpush3.bf16.msra.mxu1 %v6624_v7  ;;  %v6684_v1 = vld [vmem:[%s9264_s2 + $0x1a0] sm:$0xff]   ;;  %v6686_v3 = vld [vmem:[%s9264_s2 + $0x1a8] sm:$0xff]   ;;  %v6688_v6 = vld [vmem:[%s9264_s2 + $0x1b0] sm:$0xff]  }
  0x25   : > { %6088 = vmatprep.subr.bf16.mxu0 %v6625_v8  ;;  %6514 = vmatprep.subr.bf16.mxu1 %v6625_v8  ;;  %v6690_v7 = vld [vmem:[%s9264_s2 + $0x178] sm:$0xff]  }
  0x28   : > { %6089 = vmatpush3.bf16.msra.mxu0 %v6625_v8  ;;  %6522 = vmatpush3.bf16.msra.mxu1 %v6625_v8  ;;  %v6691_v8 = vld [vmem:[%s9264_s2 + $0x1b8] sm:$0xff]  }
  0x29   : > { %6090 = vmatprep.subr.bf16.mxu0 %v6626_v9  ;;  %6515 = vmatprep.subr.bf16.mxu1 %v6626_v9 }
  0x2c   : > { %6091 = vmatpush3.bf16.msra.mxu0 %v6626_v9  ;;  %6523 = vmatpush3.bf16.msra.mxu1 %v6626_v9  ;;  %v6692_v9 = vld [vmem:[%s9264_s2 + $0x1c0] sm:$0xff]  }
  0x2d   : > { %6124 = vmatprep.subr.bf16.mxu1 %v6631_v10  ;;  %6172 = vmatprep.subr.bf16.mxu0 %v6632_v12 }
  0x2f   : > { %6093 = vmatmul.mubr.bf16.vlgmr.msra.gmra.mrb[0].mxu0 %v6893_v11  ;;  %6109 = vmatmul.mubr.bf16.vlgmr.msra.gmra.mrb[0].mxu1 %v6899_v13 }
  0x30   : > { %6125 = vmatpush3.bf16.msra.mxu1 %v6631_v10  ;;  %6173 = vmatpush3.bf16.msra.mxu0 %v6632_v12  ;;  %v6693_v10 = vld [vmem:[%s9264_s2 + $0x200] sm:$0xff]  }
  0x31   : > { %6126 = vmatprep.subr.bf16.mxu1 %v6633_v14  ;;  %6174 = vmatprep.subr.bf16.mxu0 %v6634_v15  ;;  %v7164_v12 = vld [vmem:[%s7021_s22] sm:$0xff]  }
  0x32   : > { %6096 = vmatprep.mubr.bf16.mxu0 %v6908_v16  ;;  %6112 = vmatprep.mubr.bf16.mxu1 %v6911_v17 }
  0x34   : > { %6127 = vmatpush3.bf16.msra.mxu1 %v6633_v14  ;;  %6175 = vmatpush3.bf16.msra.mxu0 %v6634_v15  ;;  %v6694_v14 = vld [vmem:[%s9264_s2 + $0x1c8] sm:$0xff]  }
  0x35   : > { %6128 = vmatprep.subr.bf16.mxu1 %v6639_v18  ;;  %6176 = vmatprep.subr.bf16.mxu0 %v6640_v20  ;;  %v6695_v15 = vld [vmem:[%s9264_s2 + $0x208] sm:$0xff]  }
  0x37   : > { %6097 = vmatmul.mubr.bf16.gmra.mrb[4].mxu0 %v6919_v19  ;;  %6113 = vmatmul.mubr.bf16.gmra.mrb[4].mxu1 %v6927_v21 }
  0x38   : > { %6129 = vmatpush3.bf16.msra.mxu1 %v6639_v18  ;;  %6177 = vmatpush3.bf16.msra.mxu0 %v6640_v20  ;;  %v6697_v18 = vld [vmem:[%s9264_s2 + $0x210] sm:$0xff]   ;;  %v6698_v20 = vld [vmem:[%s9264_s2 + $0x1d8] sm:$0xff]  }
  0x39   : > { %6130 = vmatprep.subr.bf16.mxu1 %v6641_v22  ;;  %6178 = vmatprep.subr.bf16.mxu0 %v6642_v23 }
  0x3a   : > { %6100 = vmatprep.mubr.bf16.mxu0 %v6936_v24  ;;  %6116 = vmatprep.mubr.bf16.mxu1 %v6939_v25 }
  0x3c   : > { %6131 = vmatpush3.bf16.msra.mxu1 %v6641_v22  ;;  %6179 = vmatpush3.bf16.msra.mxu0 %v6642_v23  ;;  %v6699_v22 = vld [vmem:[%s9264_s2 + $0x218] sm:$0xff]   ;;  %v6700_v23 = vld [vmem:[%s9264_s2 + $0x1e0] sm:$0xff]  }
  0x3d   : > { %6132 = vmatprep.subr.bf16.mxu1 %v6647_v26  ;;  %6180 = vmatprep.subr.bf16.mxu0 %v6648_v28 }
  0x3f   : > { %6101 = vmatmul.mubr.bf16.gmra.mrb[8].mxu0 %v6947_v27  ;;  %6117 = vmatmul.mubr.bf16.gmra.mrb[8].mxu1 %v6955_v29 }
  0x40   : > { %6133 = vmatpush3.bf16.msra.mxu1 %v6647_v26  ;;  %6181 = vmatpush3.bf16.msra.mxu0 %v6648_v28  ;;  %v6701_v26 = vld [vmem:[%s9264_s2 + $0x220] sm:$0xff]   ;;  %v6702_v28 = vld [vmem:[%s9264_s2 + $0x1e8] sm:$0xff]  }
  0x41   : > { %6134 = vmatprep.subr.bf16.mxu1 %v6649_v30  ;;  %6182 = vmatprep.subr.bf16.mxu0 %v6650_v31 }
  0x42   : > { %6104 = vmatprep.mubr.bf16.mxu0 %v6964_v32  ;;  %6120 = vmatprep.mubr.bf16.mxu1 %v6967_v33 }
  0x44   : > { %6135 = vmatpush3.bf16.msra.mxu1 %v6649_v30  ;;  %6183 = vmatpush3.bf16.msra.mxu0 %v6650_v31  ;;  %v6703_v30 = vld [vmem:[%s9264_s2 + $0x228] sm:$0xff]   ;;  %v6704_v31 = vld [vmem:[%s9264_s2 + $0x1f0] sm:$0xff]  }
  0x45   : > { %6136 = vmatprep.subr.bf16.mxu1 %v6655_v34  ;;  %6184 = vmatprep.subr.bf16.mxu0 %v6656_v35 }
  0x47   : > { %6105 = vmatmul.mubr.bf16.gmra.mrb[12].mxu0 %v6980_v36  ;;  %6121 = vmatmul.mubr.bf16.gmra.mrb[12].mxu1 %v6983_v37 }
  0x48   : > { %6137 = vmatpush3.bf16.msra.mxu1 %v6655_v34  ;;  %6185 = vmatpush3.bf16.msra.mxu0 %v6656_v35  ;;  %v6705_v34 = vld [vmem:[%s9264_s2 + $0x230] sm:$0xff]   ;;  %v6707_v35 = vld [vmem:[%s9264_s2 + $0x1f8] sm:$0xff]  }
  0x49   : > { %6138 = vmatprep.subr.bf16.mxu1 %v6657_v38  ;;  %6186 = vmatprep.subr.bf16.mxu0 %v6658_v39 }
  0x4a   : > { %6140 = vmatprep.mubr.bf16.mxu1 %v6870_v4  ;;  %6188 = vmatprep.mubr.bf16.mxu0 %v6870_v4  ;;  %v6687_v4 = vld [vmem:[%s9264_s2 + $0x170] sm:$0xff]  }
  0x4c   : > { %6139 = vmatpush3.bf16.msra.mxu1 %v6657_v38  ;;  %6187 = vmatpush3.bf16.msra.mxu0 %v6658_v39  ;;  %v6708_v38 = vld [vmem:[%s9264_s2 + $0x238] sm:$0xff]  }
  0x4d   : > { %6220 = vmatprep.subr.bf16.mxu1 %v6659_v40  ;;  %6268 = vmatprep.subr.bf16.mxu0 %v6660_v41 }
  0x4f   : > { %6141 = vmatmul.mubr.bf16.vlgmr.msra.gmra.mrb[16].mxu1 %v6893_v11  ;;  %6189 = vmatmul.mubr.bf16.vlgmr.msra.gmra.mrb[16].mxu0 %v6893_v11 }
  0x50   : > { %6221 = vmatpush3.bf16.msra.mxu1 %v6659_v40  ;;  %6269 = vmatpush3.bf16.msra.mxu0 %v6660_v41 }
  0x51   : > { %6144 = vmatprep.mubr.bf16.mxu1 %v6908_v16  ;;  %6192 = vmatprep.mubr.bf16.mxu0 %v6908_v16 }
  0x52   : > { %6222 = vmatprep.subr.bf16.mxu1 %v6661_v42  ;;  %6270 = vmatprep.subr.bf16.mxu0 %v6662_v43 }
  0x54   : > { %6223 = vmatpush3.bf16.msra.mxu1 %v6661_v42  ;;  %6271 = vmatpush3.bf16.msra.mxu0 %v6662_v43  ;;  %v7249_v42 = vld [vmem:[%s7021_s22 + $0x8] sm:$0xff]  }
  0x55   : > { %6224 = vmatprep.subr.bf16.mxu1 %v6663_v44  ;;  %6272 = vmatprep.subr.bf16.mxu0 %v6664_v45 }
  0x57   : > { %6145 = vmatmul.mubr.bf16.gmra.mrb[20].mxu1 %v6919_v19  ;;  %6193 = vmatmul.mubr.bf16.gmra.mrb[20].mxu0 %v6919_v19 }
  0x58   : > { %6148 = vmatprep.mubr.bf16.mxu1 %v6936_v24  ;;  %6196 = vmatprep.mubr.bf16.mxu0 %v6936_v24 }
  0x59   : > { %6225 = vmatpush3.bf16.msra.mxu1 %v6663_v44  ;;  %6273 = vmatpush3.bf16.msra.mxu0 %v6664_v45 }
  0x5a   : > { %6226 = vmatprep.subr.bf16.mxu1 %v6665_v46  ;;  %6274 = vmatprep.subr.bf16.mxu0 %v6666_v47 }
  0x5d   : > { %6227 = vmatpush3.bf16.msra.mxu1 %v6665_v46  ;;  %6275 = vmatpush3.bf16.msra.mxu0 %v6666_v47 }
  0x5e   : > { %6228 = vmatprep.subr.bf16.mxu1 %v6667_v48  ;;  %6276 = vmatprep.subr.bf16.mxu0 %v6668_v49 }
  0x5f   : > { %6149 = vmatmul.mubr.bf16.gmra.mrb[24].mxu1 %v6947_v27  ;;  %6197 = vmatmul.mubr.bf16.gmra.mrb[24].mxu0 %v6947_v27 }
  0x60   : > { %6152 = vmatprep.mubr.bf16.mxu1 %v6964_v32  ;;  %6200 = vmatprep.mubr.bf16.mxu0 %v6964_v32 }
  0x61   : > { %6229 = vmatpush3.bf16.msra.mxu1 %v6667_v48  ;;  %6277 = vmatpush3.bf16.msra.mxu0 %v6668_v49 }
  0x62   : > { %6230 = vmatprep.subr.bf16.mxu1 %v6669_v50  ;;  %6278 = vmatprep.subr.bf16.mxu0 %v6670_v51 }
  0x65   : > { %6231 = vmatpush3.bf16.msra.mxu1 %v6669_v50  ;;  %6279 = vmatpush3.bf16.msra.mxu0 %v6670_v51 }
  0x66   : > { %6232 = vmatprep.subr.bf16.mxu1 %v6671_v52  ;;  %6280 = vmatprep.subr.bf16.mxu0 %v6672_v53 }
  0x67   : > { %6153 = vmatmul.mubr.bf16.gmra.mrb[28].mxu1 %v6980_v36  ;;  %6201 = vmatmul.mubr.bf16.gmra.mrb[28].mxu0 %v6980_v36 }
  0x68   : > { %6156 = vmatprep.mubr.bf16.mxu1 %v6873_v5  ;;  %6204 = vmatprep.mubr.bf16.mxu0 %v6873_v5 }
  0x69   : > { %6233 = vmatpush3.bf16.msra.mxu1 %v6671_v52  ;;  %6281 = vmatpush3.bf16.msra.mxu0 %v6672_v53 }
  0x6a   : > { %6234 = vmatprep.subr.bf16.mxu1 %v6673_v54  ;;  %6282 = vmatprep.subr.bf16.mxu0 %v6674_v55 }
  0x6d   : > { %6235 = vmatpush3.bf16.msra.mxu1 %v6673_v54  ;;  %6283 = vmatpush3.bf16.msra.mxu0 %v6674_v55 }
  0x6e   : > { %6316 = vmatprep.subr.bf16.mxu1 %v6675_v56  ;;  %6364 = vmatprep.subr.bf16.mxu0 %v6676_v57 }
  0x6f   : > { %6157 = vmatmul.mubr.bf16.gmra.mrb[32].mxu1 %v6899_v13  ;;  %6205 = vmatmul.mubr.bf16.gmra.mrb[32].mxu0 %v6899_v13 }
  0x70   : > { %6160 = vmatprep.mubr.bf16.mxu1 %v6911_v17  ;;  %6208 = vmatprep.mubr.bf16.mxu0 %v6911_v17 }
  0x77   : > { %6161 = vmatmul.mubr.bf16.gmra.mrb[36].mxu1 %v6927_v21  ;;  %6209 = vmatmul.mubr.bf16.gmra.mrb[36].mxu0 %v6927_v21 }
  0x78   : > { %6164 = vmatprep.mubr.bf16.mxu1 %v6939_v25  ;;  %6212 = vmatprep.mubr.bf16.mxu0 %v6939_v25 }
  0x7f   : > { %6165 = vmatmul.mubr.bf16.gmra.mrb[40].mxu1 %v6955_v29  ;;  %6213 = vmatmul.mubr.bf16.gmra.mrb[40].mxu0 %v6955_v29 }
  0x80   : > { %6168 = vmatprep.mubr.bf16.mxu1 %v6967_v33  ;;  %6216 = vmatprep.mubr.bf16.mxu0 %v6967_v33 }
  0x87   : > { %6169 = vmatmul.mubr.bf16.gmra.mrb[44].mxu1 %v6983_v37  ;;  %6217 = vmatmul.mubr.bf16.gmra.mrb[44].mxu0 %v6983_v37 }
  0x88   : > { %6236 = vmatprep.mubr.bf16.mxu1 %v6893_v11  ;;  %6284 = vmatprep.mubr.bf16.mxu0 %v6893_v11 }
  0x8f   : > { %6237 = vmatmul.mubr.bf16.vlgmr.msra.gmra.mrb[48].mxu1 %v6908_v16  ;;  %6285 = vmatmul.mubr.bf16.vlgmr.msra.gmra.mrb[48].mxu0 %v6908_v16 }
  0x90   : > { %6317 = vmatpush3.bf16.msra.mxu1 %v6675_v56  ;;  %6365 = vmatpush3.bf16.msra.mxu0 %v6676_v57 }
  0x91   : > { %6240 = vmatprep.mubr.bf16.mxu1 %v6919_v19  ;;  %6288 = vmatprep.mubr.bf16.mxu0 %v6919_v19 }
  0x92   : > { %6318 = vmatprep.subr.bf16.mxu1 %v6677_v58  ;;  %6366 = vmatprep.subr.bf16.mxu0 %v6678_v59 }
  0x94   : > { %6319 = vmatpush3.bf16.msra.mxu1 %v6677_v58  ;;  %6367 = vmatpush3.bf16.msra.mxu0 %v6678_v59 }
  0x95   : > { %6320 = vmatprep.subr.bf16.mxu1 %v6679_v60  ;;  %6368 = vmatprep.subr.bf16.mxu0 %v6680_v61 }
  0x97   : > { %6241 = vmatmul.mubr.bf16.gmra.mrb[52].mxu1 %v6936_v24  ;;  %6289 = vmatmul.mubr.bf16.gmra.mrb[52].mxu0 %v6936_v24 }
  0x98   : > { %6244 = vmatprep.mubr.bf16.mxu1 %v6947_v27  ;;  %6292 = vmatprep.mubr.bf16.mxu0 %v6947_v27 }
  0x99   : > { %6321 = vmatpush3.bf16.msra.mxu1 %v6679_v60  ;;  %6369 = vmatpush3.bf16.msra.mxu0 %v6680_v61 }
  0x9a   : > { %6322 = vmatprep.subr.bf16.mxu1 %v6681_v62  ;;  %6370 = vmatprep.subr.bf16.mxu0 %v6682_v63 }
  0x9d   : > { %6323 = vmatpush3.bf16.msra.mxu1 %v6681_v62  ;;  %6371 = vmatpush3.bf16.msra.mxu0 %v6682_v63 }
  0x9e   : > { %6324 = vmatprep.subr.bf16.mxu1 %v6683_v0  ;;  %6372 = vmatprep.subr.bf16.mxu0 %v6684_v1 }
  0x9f   : > { %6245 = vmatmul.mubr.bf16.gmra.mrb[56].mxu1 %v6964_v32  ;;  %6293 = vmatmul.mubr.bf16.gmra.mrb[56].mxu0 %v6964_v32 }
  0xa0   : > { %6248 = vmatprep.mubr.bf16.mxu1 %v6980_v36  ;;  %6296 = vmatprep.mubr.bf16.mxu0 %v6980_v36 }
  0xa1   : > { %6325 = vmatpush3.bf16.msra.mxu1 %v6683_v0  ;;  %6373 = vmatpush3.bf16.msra.mxu0 %v6684_v1 }
  0xa2   : > { %6326 = vmatprep.subr.bf16.mxu1 %v6685_v2  ;;  %6374 = vmatprep.subr.bf16.mxu0 %v6686_v3 }
  0xa5   : > { %6327 = vmatpush3.bf16.msra.mxu1 %v6685_v2  ;;  %6375 = vmatpush3.bf16.msra.mxu0 %v6686_v3  ;;  %v952_v2 = vlaneseq }
  0xa6   : > { %6328 = vmatprep.subr.bf16.mxu1 %v6687_v4  ;;  %6376 = vmatprep.subr.bf16.mxu0 %v6688_v6 }
  0xa7   : > { %6249 = vmatmul.mubr.bf16.gmra.mrb[60].mxu1 %v6873_v5  ;;  %6297 = vmatmul.mubr.bf16.gmra.mrb[60].mxu0 %v6873_v5 }
  0xa8   : > { %6252 = vmatprep.mubr.bf16.mxu1 %v6899_v13  ;;  %6300 = vmatprep.mubr.bf16.mxu0 %v6899_v13 }
  0xa9   : > { %6329 = vmatpush3.bf16.msra.mxu1 %v6687_v4  ;;  %6377 = vmatpush3.bf16.msra.mxu0 %v6688_v6 }
  0xaa   : > { %6330 = vmatprep.subr.bf16.mxu1 %v6690_v7  ;;  %6378 = vmatprep.subr.bf16.mxu0 %v6691_v8 }
  0xad   : > { %6331 = vmatpush3.bf16.msra.mxu1 %v6690_v7  ;;  %6379 = vmatpush3.bf16.msra.mxu0 %v6691_v8 }
  0xae   : > { %6412 = vmatprep.subr.bf16.mxu1 %v6692_v9  ;;  %6460 = vmatprep.subr.bf16.mxu0 %v6693_v10 }
  0xaf   : > { %6253 = vmatmul.mubr.bf16.gmra.mrb[64].mxu1 %v6911_v17  ;;  %6301 = vmatmul.mubr.bf16.gmra.mrb[64].mxu0 %v6911_v17 }
  0xb0   : > { %6256 = vmatprep.mubr.bf16.mxu1 %v6927_v21  ;;  %6304 = vmatprep.mubr.bf16.mxu0 %v6927_v21 }
  0xb7   : > { %6257 = vmatmul.mubr.bf16.gmra.mrb[68].mxu1 %v6939_v25  ;;  %6305 = vmatmul.mubr.bf16.gmra.mrb[68].mxu0 %v6939_v25 }
  0xb8   : > { %6260 = vmatprep.mubr.bf16.mxu1 %v6955_v29  ;;  %6308 = vmatprep.mubr.bf16.mxu0 %v6955_v29 }
  0xbf   : > { %6261 = vmatmul.mubr.bf16.gmra.mrb[72].mxu1 %v6967_v33  ;;  %6309 = vmatmul.mubr.bf16.gmra.mrb[72].mxu0 %v6967_v33 }
  0xc0   : > { %6264 = vmatprep.mubr.bf16.mxu1 %v6983_v37  ;;  %6312 = vmatprep.mubr.bf16.mxu0 %v6983_v37 }
  0xc7   : > { %6265 = vmatmul.mubr.bf16.gmra.mrb[76].mxu1 %v7164_v12  ;;  %6313 = vmatmul.mubr.bf16.gmra.mrb[76].mxu0 %v7164_v12 }
  0xc8   : > { %6332 = vmatprep.mubr.bf16.mxu1 %v6893_v11  ;;  %6380 = vmatprep.mubr.bf16.mxu0 %v6908_v16  ;;  %v6696_v11 = vld [vmem:[%s9264_s2 + $0x1d0] sm:$0xff]  }
  0xcf   : > { %6333 = vmatmul.mubr.bf16.vlgmr.msra.gmra.mrb[80].mxu1 %v6908_v16  ;;  %6381 = vmatmul.mubr.bf16.vlgmr.msra.gmra.mrb[80].mxu0 %v6919_v19 }
  0xd0   : > { %6413 = vmatpush3.bf16.msra.mxu1 %v6692_v9  ;;  %6461 = vmatpush3.bf16.msra.mxu0 %v6693_v10 }
  0xd1   : > { %6336 = vmatprep.mubr.bf16.mxu1 %v6919_v19  ;;  %6384 = vmatprep.mubr.bf16.mxu0 %v6936_v24 }
  0xd2   : > { %6414 = vmatprep.subr.bf16.mxu1 %v6694_v14  ;;  %6462 = vmatprep.subr.bf16.mxu0 %v6695_v15 }
  0xd4   : > { %6415 = vmatpush3.bf16.msra.mxu1 %v6694_v14  ;;  %6463 = vmatpush3.bf16.msra.mxu0 %v6695_v15 }
  0xd5   : > { %6416 = vmatprep.subr.bf16.mxu1 %v6696_v11  ;;  %6464 = vmatprep.subr.bf16.mxu0 %v6697_v18 }
  0xd7   : > { %6337 = vmatmul.mubr.bf16.gmra.mrb[84].mxu1 %v6936_v24  ;;  %6385 = vmatmul.mubr.bf16.gmra.mrb[84].mxu0 %v6947_v27 }
  0xd8   : > { %6340 = vmatprep.mubr.bf16.mxu1 %v6947_v27  ;;  %6388 = vmatprep.mubr.bf16.mxu0 %v6964_v32 }
  0xd9   : > { %6417 = vmatpush3.bf16.msra.mxu1 %v6696_v11  ;;  %6465 = vmatpush3.bf16.msra.mxu0 %v6697_v18 }
  0xda   : > { %6418 = vmatprep.subr.bf16.mxu1 %v6698_v20  ;;  %6466 = vmatprep.subr.bf16.mxu0 %v6699_v22 }
  0xdd   : > { %6419 = vmatpush3.bf16.msra.mxu1 %v6698_v20  ;;  %6467 = vmatpush3.bf16.msra.mxu0 %v6699_v22 }
  0xde   : > { %6420 = vmatprep.subr.bf16.mxu1 %v6700_v23  ;;  %6468 = vmatprep.subr.bf16.mxu0 %v6701_v26 }
  0xdf   : > { %6341 = vmatmul.mubr.bf16.gmra.mrb[88].mxu1 %v6964_v32  ;;  %6389 = vmatmul.mubr.bf16.gmra.mrb[88].mxu0 %v6980_v36 }
  0xe0   : > { %6344 = vmatprep.mubr.bf16.mxu1 %v6980_v36  ;;  %6392 = vmatprep.mubr.bf16.mxu0 %v6873_v5 }
  0xe1   : > { %6421 = vmatpush3.bf16.msra.mxu1 %v6700_v23  ;;  %6469 = vmatpush3.bf16.msra.mxu0 %v6701_v26 }
  0xe2   : > { %6422 = vmatprep.subr.bf16.mxu1 %v6702_v28  ;;  %6470 = vmatprep.subr.bf16.mxu0 %v6703_v30 }
  0xe5   : > { %6423 = vmatpush3.bf16.msra.mxu1 %v6702_v28  ;;  %6471 = vmatpush3.bf16.msra.mxu0 %v6703_v30 }
  0xe6   : > { %6424 = vmatprep.subr.bf16.mxu1 %v6704_v31  ;;  %6472 = vmatprep.subr.bf16.mxu0 %v6705_v34 }
  0xe7   : > { %6345 = vmatmul.mubr.bf16.gmra.mrb[92].mxu1 %v6873_v5  ;;  %6393 = vmatmul.mubr.bf16.gmra.mrb[92].mxu0 %v6899_v13 }
  0xe8   : > { %6348 = vmatprep.mubr.bf16.mxu1 %v6899_v13  ;;  %6396 = vmatprep.mubr.bf16.mxu0 %v6911_v17 }
  0xe9   : > { %6425 = vmatpush3.bf16.msra.mxu1 %v6704_v31  ;;  %6473 = vmatpush3.bf16.msra.mxu0 %v6705_v34 }
  0xea   : > { %6426 = vmatprep.subr.bf16.mxu1 %v6707_v35  ;;  %6474 = vmatprep.subr.bf16.mxu0 %v6708_v38 }
  0xed   : > { %6427 = vmatpush3.bf16.msra.mxu1 %v6707_v35  ;;  %6475 = vmatpush3.bf16.msra.mxu0 %v6708_v38 }
  0xef   : > { %6349 = vmatmul.mubr.bf16.gmra.mrb[96].mxu1 %v6911_v17  ;;  %6397 = vmatmul.mubr.bf16.gmra.mrb[96].mxu0 %v6927_v21 }
  0xf0   : > { %6352 = vmatprep.mubr.bf16.mxu1 %v6927_v21  ;;  %6400 = vmatprep.mubr.bf16.mxu0 %v6939_v25 }
  0xf7   : > { %6353 = vmatmul.mubr.bf16.gmra.mrb[100].mxu1 %v6939_v25  ;;  %6401 = vmatmul.mubr.bf16.gmra.mrb[100].mxu0 %v6955_v29 }
  0xf8   : > { %6356 = vmatprep.mubr.bf16.mxu1 %v6955_v29  ;;  %6404 = vmatprep.mubr.bf16.mxu0 %v6967_v33 }
  0xff   : > { %6357 = vmatmul.mubr.bf16.gmra.mrb[104].mxu1 %v6967_v33  ;;  %6405 = vmatmul.mubr.bf16.gmra.mrb[104].mxu0 %v6983_v37 }
 0x100   : > { %6360 = vmatprep.mubr.bf16.mxu1 %v6983_v37  ;;  %6408 = vmatprep.mubr.bf16.mxu0 %v7164_v12 }
 0x102   : > { %v7240_v5 = vpop.f32.mrb[0].mxu0  ;;  %v7242_v39 = vpop.f32.mrb[0].mxu1 }
 0x103   : > { %v7244_v40 = vpop.f32.mrb[1].mxu0  ;;  %v7246_v41 = vpop.f32.mrb[1].mxu1 }
 0x104   : > { %v6095_v43 = vpop.f32.mrb[2].mxu0  ;;  %v6111_v44 = vpop.f32.mrb[2].mxu1 }
 0x105   : > { %v538_v45 = vpop.f32.mrb[3].mxu0  ;;  %v602_v46 = vpop.f32.mrb[3].mxu1 }
 0x107   : > { %6361 = vmatmul.mubr.bf16.gmra.mrb[108].mxu1 %v7164_v12  ;;  %6409 = vmatmul.mubr.bf16.gmra.mrb[108].mxu0 %v7249_v42 }
 0x108   : > { %6428 = vmatprep.mubr.bf16.mxu1 %v6908_v16  ;;  %6476 = vmatprep.mubr.bf16.mxu0 %v6908_v16 }
 0x10a   : > { %v7255_v47 = vpop.f32.mrb[4].mxu0  ;;  %v7257_v48 = vpop.f32.mrb[4].mxu1 }
 0x10b   : > { %v7259_v49 = vpop.f32.mrb[5].mxu0  ;;  %v7261_v50 = vpop.f32.mrb[5].mxu1 }
 0x10c   : > { %v6099_v51 = vpop.f32.mrb[6].mxu0  ;;  %v6115_v52 = vpop.f32.mrb[6].mxu1 }
 0x10d   : > { %v554_v53 = vpop.f32.mrb[7].mxu0  ;;  %v618_v54 = vpop.f32.mrb[7].mxu1 }
 0x10f   : > { %6429 = vmatmul.mubr.bf16.vlgmr.msra.gmra.mrb[112].mxu1 %v6919_v19  ;;  %6477 = vmatmul.mubr.bf16.vlgmr.msra.gmra.mrb[112].mxu0 %v6919_v19 }
 0x110   : > { %6432 = vmatprep.mubr.bf16.mxu1 %v6936_v24  ;;  %6480 = vmatprep.mubr.bf16.mxu0 %v6936_v24 }
 0x112   : > { %v7267_v16 = vpop.f32.mrb[8].mxu0  ;;  %v7269_v55 = vpop.f32.mrb[8].mxu1 }
 0x113   : > { %v7271_v56 = vpop.f32.mrb[9].mxu0  ;;  %v7273_v57 = vpop.f32.mrb[9].mxu1 }
 0x114   : > { %v6103_v58 = vpop.f32.mrb[10].mxu0  ;;  %v6119_v59 = vpop.f32.mrb[10].mxu1 }
 0x115   : > { %v570_v60 = vpop.f32.mrb[11].mxu0  ;;  %v634_v61 = vpop.f32.mrb[11].mxu1 }
 0x117   : > { %6433 = vmatmul.mubr.bf16.gmra.mrb[116].mxu1 %v6947_v27  ;;  %6481 = vmatmul.mubr.bf16.gmra.mrb[116].mxu0 %v6947_v27  ;;  %v7289_v27 = vshrl.u32 %v952_v2, 7 }
 0x118   : > { %6436 = vmatprep.mubr.bf16.mxu1 %v6964_v32  ;;  %6484 = vmatprep.mubr.bf16.mxu0 %v6964_v32  ;;  %v6773_v32 = vld [vmem:[%s6864_s28 + $0x40] sm:$0xff]  }
 0x119   : > { %vm954_vm0 = vcmp.lt.s32.totalorder %v7289_v27, 7  ;;  %vm1341_vm1 = vcmp.lt.s32.totalorder %v7289_v27, 6 }
 0x11a   : > { %v7279_v19 = vpop.f32.mrb[12].mxu0  ;;  %v7281_v24 = vpop.f32.mrb[12].mxu1 }
 0x11b   : > { %v7283_v62 = vpop.f32.mrb[13].mxu0  ;;  %v7285_v63 = vpop.f32.mrb[13].mxu1 }
 0x11c   : > { %v6107_v0 = vpop.f32.mrb[14].mxu0  ;;  %v6123_v1 = vpop.f32.mrb[14].mxu1 }
 0x11d   : > { %v586_v3 = vpop.f32.mrb[15].mxu0  ;;  %v650_v4 = vpop.f32.mrb[15].mxu1 }
 0x11f   : > { %6437 = vmatmul.mubr.bf16.gmra.mrb[120].mxu1 %v6980_v36  ;;  %6485 = vmatmul.mubr.bf16.gmra.mrb[120].mxu0 %v6980_v36 }
 0x120   : > { %6440 = vmatprep.mubr.bf16.mxu1 %v6773_v32  ;;  %6488 = vmatprep.mubr.bf16.mxu0 %v6773_v32 }
 0x122   : > { %v6142_v6 = vpop.f32.mrb[16].mxu1  ;;  %v6190_v7 = vpop.f32.mrb[16].mxu0 }
 0x123   : > { %v1311_v8 = vrot.slane %v6190_v7, 2  ;;  %v793_v9 = vpop.f32.mrb[17].mxu1  ;;  %v1182_v10 = vpop.f32.mrb[17].mxu0  ;;  %v922_v18 = vrot.slane %v6142_v6, 1 }
 0x124   : > { %v1309_v14 = vrot.slane %v1182_v10, 2  ;;  %v6143_v15 = vpop.f32.mrb[18].mxu1  ;;  %v6191_v11 = vpop.f32.mrb[18].mxu0  ;;  %v920_v26 = vrot.slane %v793_v9, 1 }
 0x125   : > { %v923_v20 = vrot.slane %v6143_v15, 1  ;;  %v1312_v36 = vrot.slane %v6191_v11, 2  ;;  %v796_v22 = vpop.f32.mrb[19].mxu1  ;;  %v1185_v23 = vpop.f32.mrb[19].mxu0 }
 0x126   : > { %v921_v28 = vrot.slane %v796_v22, 1  ;;  %v1310_v30 = vrot.slane %v1185_v23, 2 }
 0x127   : > { %v983_v31 = vsel %vm954_vm0, %v922_v18, %v923_v20  ;;  %6441 = vmatmul.mubr.bf16.gmra.mrb[124].mxu1 %v6899_v13  ;;  %6489 = vmatmul.mubr.bf16.gmra.mrb[124].mxu0 %v6899_v13  ;;  %v1370_v34 = vsel %vm1341_vm1, %v1311_v8, %v1312_v36 }
 0x128   : > { %v985_v35 = vsel %vm954_vm0, %v920_v26, %v921_v28  ;;  %6444 = vmatprep.mubr.bf16.mxu1 %v6911_v17  ;;  %6492 = vmatprep.mubr.bf16.mxu0 %v6911_v17  ;;  %v1021_v38 = vadd.f32 %v7240_v5, %v983_v31  ;;  %v1372_v43 = vsel %vm1341_vm1, %v1309_v14, %v1310_v30 }
 0x129   : > { %v1019_v44 = vadd.f32 %v985_v35, %v7244_v40 }
 0x12a   : > { %v6146_v45 = vpop.f32.mrb[20].mxu1  ;;  %v6194_v46 = vpop.f32.mrb[20].mxu0  ;;  %v7308_v13 = vadd.f32 %v1370_v34, %v1021_v38 }
 0x12b   : > { %v1315_v51 = vrot.slane %v6194_v46, 2  ;;  %v809_v52 = vpop.f32.mrb[21].mxu1  ;;  %v1198_v53 = vpop.f32.mrb[21].mxu0  ;;  %v7310_v54 = vadd.f32 %v1372_v43, %v1019_v44  ;;  %v926_v17 = vrot.slane %v6146_v45, 1 }
 0x12c   : > { %v1313_v58 = vrot.slane %v1198_v53, 2  ;;  %v6147_v59 = vpop.f32.mrb[22].mxu1  ;;  %v6195_v60 = vpop.f32.mrb[22].mxu0  ;;  %v924_v2 = vrot.slane %v809_v52, 1 }
 0x12d   : > { %v927_v61 = vrot.slane %v6147_v59, 1  ;;  %v1316_v5 = vrot.slane %v6195_v60, 2  ;;  %v812_v0 = vpop.f32.mrb[23].mxu1  ;;  %v1201_v1 = vpop.f32.mrb[23].mxu0 }
 0x12e   : > { %v925_v3 = vrot.slane %v812_v0, 1  ;;  %v1314_v40 = vrot.slane %v1201_v1, 2 }
 0x12f   : > { %v979_v4 = vsel %vm954_vm0, %v926_v17, %v927_v61  ;;  %6445 = vmatmul.mubr.bf16.gmra.mrb[128].mxu1 %v6927_v21  ;;  %6493 = vmatmul.mubr.bf16.gmra.mrb[128].mxu0 %v6927_v21  ;;  %v1366_v32 = vsel %vm1341_vm1, %v1315_v51, %v1316_v5 }
 0x130   : > { %v981_v6 = vsel %vm954_vm0, %v924_v2, %v925_v3  ;;  %6448 = vmatprep.mubr.bf16.mxu1 %v6939_v25  ;;  %6496 = vmatprep.mubr.bf16.mxu0 %v6939_v25  ;;  %v1025_v7 = vadd.f32 %v7255_v47, %v979_v4  ;;  %v1368_v8 = vsel %vm1341_vm1, %v1313_v58, %v1314_v40 }
 0x131   : > { %v1023_v9 = vadd.f32 %v981_v6, %v7259_v49 }
 0x132   : > { %v6150_v10 = vpop.f32.mrb[24].mxu1  ;;  %v6198_v14 = vpop.f32.mrb[24].mxu0  ;;  %v7326_v21 = vadd.f32 %v1366_v32, %v1025_v7 }
 0x133   : > { %v1319_v15 = vrot.slane %v6198_v14, 2  ;;  %v825_v11 = vpop.f32.mrb[25].mxu1  ;;  %v1214_v18 = vpop.f32.mrb[25].mxu0  ;;  %v7328_v20 = vadd.f32 %v1368_v8, %v1023_v9  ;;  %v930_v25 = vrot.slane %v6150_v10, 1 }
 0x134   : > { %v1317_v36 = vrot.slane %v1214_v18, 2  ;;  %v6151_v22 = vpop.f32.mrb[26].mxu1  ;;  %v6199_v23 = vpop.f32.mrb[26].mxu0  ;;  %v928_v31 = vrot.slane %v825_v11, 1 }
 0x135   : > { %v931_v26 = vrot.slane %v6151_v22, 1  ;;  %v1320_v47 = vrot.slane %v6199_v23, 2  ;;  %v828_v28 = vpop.f32.mrb[27].mxu1  ;;  %v1217_v30 = vpop.f32.mrb[27].mxu0 }
 0x136   : > { %v929_v34 = vrot.slane %v828_v28, 1  ;;  %v1318_v49 = vrot.slane %v1217_v30, 2 }
 0x137   : > { %v975_v35 = vsel %vm954_vm0, %v930_v25, %v931_v26  ;;  %6449 = vmatmul.mubr.bf16.gmra.mrb[132].mxu1 %v6955_v29  ;;  %6497 = vmatmul.mubr.bf16.gmra.mrb[132].mxu0 %v6955_v29  ;;  %v1362_v38 = vsel %vm1341_vm1, %v1319_v15, %v1320_v47 }
 0x138   : > { %v977_v43 = vsel %vm954_vm0, %v928_v31, %v929_v34  ;;  %6452 = vmatprep.mubr.bf16.mxu1 %v6967_v33  ;;  %6500 = vmatprep.mubr.bf16.mxu0 %v6967_v33  ;;  %v1029_v44 = vadd.f32 %v7267_v16, %v975_v35  ;;  %v1364_v45 = vsel %vm1341_vm1, %v1317_v36, %v1318_v49 }
 0x139   : > { %v1027_v46 = vadd.f32 %v977_v43, %v7271_v56 }
 0x13a   : > { %v6154_v51 = vpop.f32.mrb[28].mxu1  ;;  %v6202_v52 = vpop.f32.mrb[28].mxu0  ;;  %v7344_v29 = vadd.f32 %v1362_v38, %v1029_v44 }
 0x13b   : > { %v1323_v53 = vrot.slane %v6202_v52, 2  ;;  %v841_v58 = vpop.f32.mrb[29].mxu1  ;;  %v1230_v59 = vpop.f32.mrb[29].mxu0  ;;  %v7346_v60 = vadd.f32 %v1364_v45, %v1027_v46  ;;  %v934_v33 = vrot.slane %v6154_v51, 1 }
 0x13c   : > { %v1321_v17 = vrot.slane %v1230_v59, 2  ;;  %v6155_v61 = vpop.f32.mrb[30].mxu1  ;;  %v6203_v5 = vpop.f32.mrb[30].mxu0  ;;  %v932_v3 = vrot.slane %v841_v58, 1 }
 0x13d   : > { %v935_v0 = vrot.slane %v6155_v61, 1  ;;  %v1324_v16 = vrot.slane %v6203_v5, 2  ;;  %v844_v1 = vpop.f32.mrb[31].mxu1  ;;  %v1233_v2 = vpop.f32.mrb[31].mxu0 }
 0x13e   : > { %v933_v40 = vrot.slane %v844_v1, 1  ;;  %v1322_v56 = vrot.slane %v1233_v2, 2 }
 0x13f   : > { %v971_v4 = vsel %vm954_vm0, %v934_v33, %v935_v0  ;;  %6453 = vmatmul.mubr.bf16.gmra.mrb[136].mxu1 %v6983_v37  ;;  %6501 = vmatmul.mubr.bf16.gmra.mrb[136].mxu0 %v6983_v37  ;;  %v1358_v32 = vsel %vm1341_vm1, %v1323_v53, %v1324_v16 }
 0x140   : > { %v973_v6 = vsel %vm954_vm0, %v932_v3, %v933_v40  ;;  %6456 = vmatprep.mubr.bf16.mxu1 %v7164_v12  ;;  %6504 = vmatprep.mubr.bf16.mxu0 %v7164_v12  ;;  %v1033_v7 = vadd.f32 %v7279_v19, %v971_v4  ;;  %v1360_v8 = vsel %vm1341_vm1, %v1321_v17, %v1322_v56 }
 0x141   : > { %v1031_v9 = vadd.f32 %v973_v6, %v7283_v62 }
 0x142   : > { %v6158_v10 = vpop.f32.mrb[32].mxu1  ;;  %v6206_v14 = vpop.f32.mrb[32].mxu0  ;;  %v7362_v37 = vadd.f32 %v1358_v32, %v1033_v7 }
 0x143   : > { %v1327_v15 = vrot.slane %v6206_v14, 2  ;;  %v857_v11 = vpop.f32.mrb[33].mxu1  ;;  %v1246_v18 = vpop.f32.mrb[33].mxu0  ;;  %v7364_v36 = vadd.f32 %v1360_v8, %v1031_v9  ;;  %v938_v12 = vrot.slane %v6158_v10, 1 }
 0x144   : > { %v1325_v22 = vrot.slane %v1246_v18, 2  ;;  %v6159_v23 = vpop.f32.mrb[34].mxu1  ;;  %v6207_v25 = vpop.f32.mrb[34].mxu0  ;;  %v936_v30 = vrot.slane %v857_v11, 1 }
 0x145   : > { %v939_v26 = vrot.slane %v6159_v23, 1  ;;  %v1328_v19 = vrot.slane %v6207_v25, 2  ;;  %v860_v47 = vpop.f32.mrb[35].mxu1  ;;  %v1249_v28 = vpop.f32.mrb[35].mxu0 }
 0x146   : > { %v937_v31 = vrot.slane %v860_v47, 1  ;;  %v1326_v62 = vrot.slane %v1249_v28, 2 }
 0x147   : > { %v967_v34 = vsel %vm954_vm0, %v938_v12, %v939_v26  ;;  %6457 = vmatmul.mubr.bf16.gmra.mrb[140].mxu1 %v7249_v42  ;;  %6505 = vmatmul.mubr.bf16.gmra.mrb[140].mxu0 %v7249_v42  ;;  %v1354_v49 = vsel %vm1341_vm1, %v1327_v15, %v1328_v19 }
 0x148   : > { %v969_v35 = vsel %vm954_vm0, %v936_v30, %v937_v31  ;;  %v1037_v38 = vadd.f32 %v7242_v39, %v967_v34  ;;  %v1356_v43 = vsel %vm1341_vm1, %v1325_v22, %v1326_v62 }
 0x149   : > { %v1035_v44 = vadd.f32 %v969_v35, %v7246_v41 }
 0x14a   : > { %v6162_v45 = vpop.f32.mrb[36].mxu1  ;;  %v6210_v46 = vpop.f32.mrb[36].mxu0  ;;  %v7378_v51 = vadd.f32 %v1354_v49, %v1037_v38 }
 0x14b   : > { %v1331_v52 = vrot.slane %v6210_v46, 2  ;;  %v873_v53 = vpop.f32.mrb[37].mxu1  ;;  %v1262_v42 = vpop.f32.mrb[37].mxu0  ;;  %v7380_v58 = vadd.f32 %v1356_v43, %v1035_v44  ;;  %v942_v5 = vrot.slane %v6162_v45, 1 }
 0x14c   : > { %v1329_v59 = vrot.slane %v1262_v42, 2  ;;  %v6163_v17 = vpop.f32.mrb[38].mxu1  ;;  %v6211_v61 = vpop.f32.mrb[38].mxu0  ;;  %v940_v1 = vrot.slane %v873_v53, 1 }
 0x14d   : > { %v943_v33 = vrot.slane %v6163_v17, 1  ;;  %v1332_v39 = vrot.slane %v6211_v61, 2  ;;  %v876_v0 = vpop.f32.mrb[39].mxu1  ;;  %v1265_v16 = vpop.f32.mrb[39].mxu0 }
 0x14e   : > { %v941_v2 = vrot.slane %v876_v0, 1  ;;  %v1330_v41 = vrot.slane %v1265_v16, 2 }
 0x14f   : > { %v963_v3 = vsel %vm954_vm0, %v942_v5, %v943_v33  ;;  %v1350_v40 = vsel %vm1341_vm1, %v1331_v52, %v1332_v39 }
 0x150   : > { %v965_v56 = vsel %vm954_vm0, %v940_v1, %v941_v2  ;;  %v1041_v4 = vadd.f32 %v7257_v48, %v963_v3  ;;  %v1352_v32 = vsel %vm1341_vm1, %v1329_v59, %v1330_v41 }
 0x151   : > { %v1039_v6 = vadd.f32 %v965_v56, %v7261_v50 }
 0x152   : > { %v6166_v7 = vpop.f32.mrb[40].mxu1  ;;  %v6214_v8 = vpop.f32.mrb[40].mxu0  ;;  %v7392_v9 = vadd.f32 %v1350_v40, %v1041_v4 }
 0x153   : > { %v1335_v10 = vrot.slane %v6214_v8, 2  ;;  %v889_v14 = vpop.f32.mrb[41].mxu1  ;;  %v1278_v15 = vpop.f32.mrb[41].mxu0  ;;  %v7394_v11 = vadd.f32 %v1352_v32, %v1039_v6  ;;  %v946_v25 = vrot.slane %v6166_v7, 1 }
 0x154   : > { %v1333_v18 = vrot.slane %v1278_v15, 2  ;;  %v6167_v22 = vpop.f32.mrb[42].mxu1  ;;  %v6215_v23 = vpop.f32.mrb[42].mxu0  ;;  %v944_v47 = vrot.slane %v889_v14, 1 }
 0x155   : > { %v947_v12 = vrot.slane %v6167_v22, 1  ;;  %v1336_v48 = vrot.slane %v6215_v23, 2  ;;  %v892_v26 = vpop.f32.mrb[43].mxu1  ;;  %v1281_v19 = vpop.f32.mrb[43].mxu0 }
 0x156   : > { %v945_v28 = vrot.slane %v892_v26, 1  ;;  %v1334_v50 = vrot.slane %v1281_v19, 2 }
 0x157   : > { %v959_v30 = vsel %vm954_vm0, %v946_v25, %v947_v12  ;;  %v1346_v31 = vsel %vm1341_vm1, %v1335_v10, %v1336_v48 }
 0x158   : > { %v961_v62 = vsel %vm954_vm0, %v944_v47, %v945_v28  ;;  %v1045_v34 = vadd.f32 %v7269_v55, %v959_v30  ;;  %v1348_v49 = vsel %vm1341_vm1, %v1333_v18, %v1334_v50 }
 0x159   : > { %v1043_v35 = vadd.f32 %v961_v62, %v7273_v57 }
 0x15a   : > { %v6170_v38 = vpop.f32.mrb[44].mxu1  ;;  %v6218_v43 = vpop.f32.mrb[44].mxu0  ;;  %v7406_v44 = vadd.f32 %v1346_v31, %v1045_v34 }
 0x15b   : > { %v1339_v45 = vrot.slane %v6218_v43, 2  ;;  %v905_v46 = vpop.f32.mrb[45].mxu1  ;;  %v1294_v52 = vpop.f32.mrb[45].mxu0  ;;  %v7408_v53 = vadd.f32 %v1348_v49, %v1043_v35  ;;  %v950_v61 = vrot.slane %v6170_v38, 1 }
 0x15c   : > { %v1337_v42 = vrot.slane %v1294_v52, 2  ;;  %v6171_v59 = vpop.f32.mrb[46].mxu1  ;;  %v6219_v17 = vpop.f32.mrb[46].mxu0  ;;  %v948_v0 = vrot.slane %v905_v46, 1 }
 0x15d   : > { %v951_v5 = vrot.slane %v6171_v59, 1  ;;  %v1340_v55 = vrot.slane %v6219_v17, 2  ;;  %v908_v33 = vpop.f32.mrb[47].mxu1  ;;  %v1297_v39 = vpop.f32.mrb[47].mxu0 }
 0x15e   : > { %v949_v16 = vrot.slane %v908_v33, 1  ;;  %v1338_v57 = vrot.slane %v1297_v39, 2 }
 0x15f   : > { %v955_v1 = vsel %vm954_vm0, %v950_v61, %v951_v5  ;;  %v1342_v2 = vsel %vm1341_vm1, %v1339_v45, %v1340_v55 }
 0x160   : > { %v957_v41 = vsel %vm954_vm0, %v948_v0, %v949_v16  ;;  %v1049_v3 = vadd.f32 %v7281_v24, %v955_v1  ;;  %v1344_v40 = vsel %vm1341_vm1, %v1337_v42, %v1338_v57 }
 0x161   : > { %v1047_v56 = vadd.f32 %v957_v41, %v7285_v63 }
 0x162   : > { %v6238_v4 = vpop.f32.mrb[48].mxu1  ;;  %v6286_v32 = vpop.f32.mrb[48].mxu0  ;;  %v7420_v6 = vadd.f32 %v1342_v2, %v1049_v3 }
 0x163   : > { %v1736_v7 = vadd.f32 %v6238_v4, %v7308_v13  ;;  %v2026_v8 = vrot.slane %v6286_v32, 1  ;;  %v1575_v10 = vpop.f32.mrb[49].mxu1  ;;  %v1897_v14 = vpop.f32.mrb[49].mxu0  ;;  %v7423_v15 = vadd.f32 %v1344_v40, %v1047_v56 }
 0x164   : > { %v1734_v18 = vadd.f32 %v1575_v10, %v7310_v54  ;;  %v2024_v22 = vrot.slane %v1897_v14, 1  ;;  %v6239_v24 = vpop.f32.mrb[50].mxu1  ;;  %v6287_v23 = vpop.f32.mrb[50].mxu0 }
 0x165   : > { %v2027_v25 = vrot.slane %v6287_v23, 1  ;;  %v1578_v12 = vpop.f32.mrb[51].mxu1  ;;  %v1900_v48 = vpop.f32.mrb[51].mxu0 }
 0x166   : > { %v2025_v63 = vrot.slane %v1900_v48, 1 }
 0x167   : > { %v2084_v26 = vsel %vm954_vm0, %v2026_v8, %v2027_v25 }
 0x168   : > { %v7428_v19 = vadd.f32 %v2084_v26, %v1736_v7  ;;  %v2086_v13 = vsel %vm954_vm0, %v2024_v22, %v2025_v63 }
 0x169   : > { %v7432_v47 = vadd.f32 %v2086_v13, %v1734_v18 }
 0x16a   : > { %v6242_v28 = vpop.f32.mrb[52].mxu1  ;;  %v6290_v50 = vpop.f32.mrb[52].mxu0 }
 0x16b   : > { %v1740_v54 = vadd.f32 %v6242_v28, %v7326_v21  ;;  %v2030_v30 = vrot.slane %v6290_v50, 1  ;;  %v1591_v31 = vpop.f32.mrb[53].mxu1  ;;  %v1913_v62 = vpop.f32.mrb[53].mxu0 }
 0x16c   : > { %v1738_v34 = vadd.f32 %v1591_v31, %v7328_v20  ;;  %v2028_v49 = vrot.slane %v1913_v62, 1  ;;  %v6243_v35 = vpop.f32.mrb[54].mxu1  ;;  %v6291_v38 = vpop.f32.mrb[54].mxu0 }
 0x16d   : > { %v2031_v43 = vrot.slane %v6291_v38, 1  ;;  %v1594_v45 = vpop.f32.mrb[55].mxu1  ;;  %v1916_v46 = vpop.f32.mrb[55].mxu0 }
 0x16e   : > { %v2029_v52 = vrot.slane %v1916_v46, 1 }
 0x16f   : > { %v2080_v42 = vsel %vm954_vm0, %v2030_v30, %v2031_v43 }
 0x170   : > { %v7438_v59 = vadd.f32 %v2080_v42, %v1740_v54  ;;  %v2082_v21 = vsel %vm954_vm0, %v2028_v49, %v2029_v52 }
 0x171   : > { %v7442_v17 = vadd.f32 %v2082_v21, %v1738_v34 }
 0x172   : > { %v6246_v61 = vpop.f32.mrb[56].mxu1  ;;  %v6294_v5 = vpop.f32.mrb[56].mxu0 }
 0x173   : > { %v1744_v20 = vadd.f32 %v6246_v61, %v7344_v29  ;;  %v2034_v55 = vrot.slane %v6294_v5, 1  ;;  %v1607_v33 = vpop.f32.mrb[57].mxu1  ;;  %v1929_v39 = vpop.f32.mrb[57].mxu0 }
 0x174   : > { %v1742_v0 = vadd.f32 %v1607_v33, %v7346_v60  ;;  %v2032_v16 = vrot.slane %v1929_v39, 1  ;;  %v6247_v57 = vpop.f32.mrb[58].mxu1  ;;  %v6295_v1 = vpop.f32.mrb[58].mxu0 }
 0x175   : > { %v2035_v2 = vrot.slane %v6295_v1, 1  ;;  %v1610_v41 = vpop.f32.mrb[59].mxu1  ;;  %v1932_v3 = vpop.f32.mrb[59].mxu0 }
 0x176   : > { %v2033_v40 = vrot.slane %v1932_v3, 1 }
 0x177   : > { %v2076_v56 = vsel %vm954_vm0, %v2034_v55, %v2035_v2 }
 0x178   : > { %v7448_v4 = vadd.f32 %v2076_v56, %v1744_v20  ;;  %v2078_v29 = vsel %vm954_vm0, %v2032_v16, %v2033_v40 }
 0x179   : > { %v7452_v32 = vadd.f32 %v2078_v29, %v1742_v0 }
 0x17a   : > { %v6250_v7 = vpop.f32.mrb[60].mxu1  ;;  %v6298_v8 = vpop.f32.mrb[60].mxu0 }
 0x17b   : > { %v1748_v60 = vadd.f32 %v6250_v7, %v7362_v37  ;;  %v2038_v10 = vrot.slane %v6298_v8, 1  ;;  %v1623_v14 = vpop.f32.mrb[61].mxu1  ;;  %v1945_v18 = vpop.f32.mrb[61].mxu0 }
 0x17c   : > { %v1746_v22 = vadd.f32 %v1623_v14, %v7364_v36  ;;  %v2036_v24 = vrot.slane %v1945_v18, 1  ;;  %v6251_v23 = vpop.f32.mrb[62].mxu1  ;;  %v6299_v25 = vpop.f32.mrb[62].mxu0 }
 0x17d   : > { %v2039_v12 = vrot.slane %v6299_v25, 1  ;;  %v1626_v48 = vpop.f32.mrb[63].mxu1  ;;  %v1948_v63 = vpop.f32.mrb[63].mxu0 }
 0x17e   : > { %v2037_v26 = vrot.slane %v1948_v63, 1 }
 0x17f   : > { %v2072_v13 = vsel %vm954_vm0, %v2038_v10, %v2039_v12 }
 0x180   : > { %v7458_v28 = vadd.f32 %v2072_v13, %v1748_v60  ;;  %v2074_v37 = vsel %vm954_vm0, %v2036_v24, %v2037_v26 }
 0x181   : > { %v7462_v50 = vadd.f32 %v2074_v37, %v1746_v22 }
 0x182   : > { %v6254_v54 = vpop.f32.mrb[64].mxu1  ;;  %v6302_v30 = vpop.f32.mrb[64].mxu0 }
 0x183   : > { %v1752_v36 = vadd.f32 %v6254_v54, %v7378_v51  ;;  %v2042_v31 = vrot.slane %v6302_v30, 1  ;;  %v1639_v62 = vpop.f32.mrb[65].mxu1  ;;  %v1961_v34 = vpop.f32.mrb[65].mxu0 }
 0x184   : > { %v1750_v49 = vadd.f32 %v1639_v62, %v7380_v58  ;;  %v2040_v35 = vrot.slane %v1961_v34, 1  ;;  %v6255_v38 = vpop.f32.mrb[66].mxu1  ;;  %v6303_v43 = vpop.f32.mrb[66].mxu0 }
 0x185   : > { %v2043_v45 = vrot.slane %v6303_v43, 1  ;;  %v1642_v46 = vpop.f32.mrb[67].mxu1  ;;  %v1964_v52 = vpop.f32.mrb[67].mxu0 }
 0x186   : > { %v2041_v42 = vrot.slane %v1964_v52, 1 }
 0x187   : > { %v2068_v21 = vsel %vm954_vm0, %v2042_v31, %v2043_v45 }
 0x188   : > { %v7468_v61 = vadd.f32 %v2068_v21, %v1752_v36  ;;  %v2070_v51 = vsel %vm954_vm0, %v2040_v35, %v2041_v42 }
 0x189   : > { %v7472_v5 = vadd.f32 %v2070_v51, %v1750_v49 }
 0x18a   : > { %v6258_v20 = vpop.f32.mrb[68].mxu1  ;;  %v6306_v55 = vpop.f32.mrb[68].mxu0 }
 0x18b   : > { %v1756_v58 = vadd.f32 %v6258_v20, %v7392_v9  ;;  %v2046_v33 = vrot.slane %v6306_v55, 1  ;;  %v1655_v39 = vpop.f32.mrb[69].mxu1  ;;  %v1977_v0 = vpop.f32.mrb[69].mxu0 }
 0x18c   : > { %v1754_v16 = vadd.f32 %v1655_v39, %v7394_v11  ;;  %v2044_v57 = vrot.slane %v1977_v0, 1  ;;  %v6259_v1 = vpop.f32.mrb[70].mxu1  ;;  %v6307_v2 = vpop.f32.mrb[70].mxu0 }
 0x18d   : > { %v2047_v41 = vrot.slane %v6307_v2, 1  ;;  %v1658_v3 = vpop.f32.mrb[71].mxu1  ;;  %v1980_v40 = vpop.f32.mrb[71].mxu0 }
 0x18e   : > { %v2045_v56 = vrot.slane %v1980_v40, 1 }
 0x18f   : > { %v2064_v29 = vsel %vm954_vm0, %v2046_v33, %v2047_v41 }
 0x190   : > { %v7478_v7 = vadd.f32 %v2064_v29, %v1756_v58  ;;  %v2066_v9 = vsel %vm954_vm0, %v2044_v57, %v2045_v56 }
 0x191   : > { %v7482_v8 = vadd.f32 %v2066_v9, %v1754_v16 }
 0x192   : > { %v6262_v60 = vpop.f32.mrb[72].mxu1  ;;  %v6310_v10 = vpop.f32.mrb[72].mxu0 }
 0x193   : > { %v1760_v11 = vadd.f32 %v6262_v60, %v7406_v44  ;;  %v2050_v14 = vrot.slane %v6310_v10, 1  ;;  %v1671_v18 = vpop.f32.mrb[73].mxu1  ;;  %v1993_v22 = vpop.f32.mrb[73].mxu0 }
 0x194   : > { %v1758_v24 = vadd.f32 %v1671_v18, %v7408_v53  ;;  %v2048_v23 = vrot.slane %v1993_v22, 1  ;;  %v6263_v25 = vpop.f32.mrb[74].mxu1  ;;  %v6311_v12 = vpop.f32.mrb[74].mxu0 }
 0x195   : > { %v2051_v48 = vrot.slane %v6311_v12, 1  ;;  %v1674_v63 = vpop.f32.mrb[75].mxu1  ;;  %v1996_v26 = vpop.f32.mrb[75].mxu0 }
 0x196   : > { %v2049_v13 = vrot.slane %v1996_v26, 1 }
 0x197   : > { %v2060_v37 = vsel %vm954_vm0, %v2050_v14, %v2051_v48 }
 0x198   : > { %v7488_v54 = vadd.f32 %v2060_v37, %v1760_v11  ;;  %v2062_v44 = vsel %vm954_vm0, %v2048_v23, %v2049_v13 }
 0x199   : > { %v7492_v30 = vadd.f32 %v2062_v44, %v1758_v24 }
 0x19a   : > { %v6266_v36 = vpop.f32.mrb[76].mxu1  ;;  %v6314_v31 = vpop.f32.mrb[76].mxu0 }
 0x19b   : > { %v1764_v53 = vadd.f32 %v6266_v36, %v7420_v6  ;;  %v2054_v62 = vrot.slane %v6314_v31, 1  ;;  %v1687_v34 = vpop.f32.mrb[77].mxu1  ;;  %v2009_v49 = vpop.f32.mrb[77].mxu0 }
 0x19c   : > { %v1762_v35 = vadd.f32 %v1687_v34, %v7423_v15  ;;  %v2052_v38 = vrot.slane %v2009_v49, 1  ;;  %v6267_v43 = vpop.f32.mrb[78].mxu1  ;;  %v6315_v45 = vpop.f32.mrb[78].mxu0 }
 0x19d   : > { %v2055_v46 = vrot.slane %v6315_v45, 1  ;;  %v1690_v52 = vpop.f32.mrb[79].mxu1  ;;  %v2012_v42 = vpop.f32.mrb[79].mxu0 }
 0x19e   : > { %v2053_v21 = vrot.slane %v2012_v42, 1 }
 0x19f   : > { %v2056_v51 = vsel %vm954_vm0, %v2054_v62, %v2055_v46 }
 0x1a0   : > { %v7498_v20 = vadd.f32 %v2056_v51, %v1764_v53  ;;  %v2058_v6 = vsel %vm954_vm0, %v2052_v38, %v2053_v21 }
 0x1a1   : > { %v7502_v55 = vadd.f32 %v2058_v6, %v1762_v35 }
 0x1a2   : > { %v6334_v58 = vpop.f32.mrb[80].mxu1  ;;  %v6382_v33 = vpop.f32.mrb[80].mxu0 }
 0x1a3   : > { %v2283_v15 = vpop.f32.mrb[81].mxu1  ;;  %v2675_v39 = vpop.f32.mrb[81].mxu0  ;;  %v2412_v57 = vrot.slane %v6334_v58, 2 }
 0x1a4   : > { %v6335_v0 = vpop.f32.mrb[82].mxu1  ;;  %v6383_v16 = vpop.f32.mrb[82].mxu0  ;;  %v2410_v3 = vrot.slane %v2283_v15, 2 }
 0x1a5   : > { %v2413_v1 = vrot.slane %v6335_v0, 2  ;;  %v2286_v2 = vpop.f32.mrb[83].mxu1  ;;  %v2678_v41 = vpop.f32.mrb[83].mxu0 }
 0x1a6   : > { %v2411_v40 = vrot.slane %v2286_v2, 2 }
 0x1a7   : > { %v2470_v56 = vsel %vm1341_vm1, %v2412_v57, %v2413_v1 }
 0x1a8   : > { %v2508_v29 = vadd.f32 %v2470_v56, %v7428_v19  ;;  %v2472_v9 = vsel %vm1341_vm1, %v2410_v3, %v2411_v40 }
 0x1a9   : > { %v2506_v60 = vadd.f32 %v2472_v9, %v7432_v47 }
 0x1aa   : > { %v6338_v10 = vpop.f32.mrb[84].mxu1  ;;  %v6386_v11 = vpop.f32.mrb[84].mxu0  ;;  %v7510_v14 = vadd.f32 %v6382_v33, %v2508_v29 }
 0x1ab   : > { %v2299_v18 = vpop.f32.mrb[85].mxu1  ;;  %v2691_v22 = vpop.f32.mrb[85].mxu0  ;;  %v7512_v24 = vadd.f32 %v2675_v39, %v2506_v60  ;;  %v2416_v12 = vrot.slane %v6338_v10, 2 }
 0x1ac   : > { %v6339_v23 = vpop.f32.mrb[86].mxu1  ;;  %v6387_v25 = vpop.f32.mrb[86].mxu0  ;;  %v2414_v19 = vrot.slane %v2299_v18, 2 }
 0x1ad   : > { %v2417_v48 = vrot.slane %v6339_v23, 2  ;;  %v2302_v63 = vpop.f32.mrb[87].mxu1  ;;  %v2694_v26 = vpop.f32.mrb[87].mxu0 }
 0x1ae   : > { %v2415_v13 = vrot.slane %v2302_v63, 2 }
 0x1af   : > { %v2466_v37 = vsel %vm1341_vm1, %v2416_v12, %v2417_v48 }
 0x1b0   : > { %v2512_v47 = vadd.f32 %v2466_v37, %v7438_v59  ;;  %v2468_v44 = vsel %vm1341_vm1, %v2414_v19, %v2415_v13 }
 0x1b1   : > { %v2510_v36 = vadd.f32 %v2468_v44, %v7442_v17 }
 0x1b2   : > { %v6342_v31 = vpop.f32.mrb[88].mxu1  ;;  %v6390_v53 = vpop.f32.mrb[88].mxu0  ;;  %v7520_v62 = vadd.f32 %v6386_v11, %v2512_v47 }
 0x1b3   : > { %v2315_v34 = vpop.f32.mrb[89].mxu1  ;;  %v2707_v49 = vpop.f32.mrb[89].mxu0  ;;  %v7522_v35 = vadd.f32 %v2691_v22, %v2510_v36  ;;  %v2420_v45 = vrot.slane %v6342_v31, 2 }
 0x1b4   : > { %v6343_v38 = vpop.f32.mrb[90].mxu1  ;;  %v6391_v43 = vpop.f32.mrb[90].mxu0  ;;  %v2418_v59 = vrot.slane %v2315_v34, 2 }
 0x1b5   : > { %v2421_v46 = vrot.slane %v6343_v38, 2  ;;  %v2318_v52 = vpop.f32.mrb[91].mxu1  ;;  %v2710_v42 = vpop.f32.mrb[91].mxu0 }
 0x1b6   : > { %v2419_v21 = vrot.slane %v2318_v52, 2 }
 0x1b7   : > { %v2462_v51 = vsel %vm1341_vm1, %v2420_v45, %v2421_v46 }
 0x1b8   : > { %v2516_v17 = vadd.f32 %v2462_v51, %v7448_v4  ;;  %v2464_v6 = vsel %vm1341_vm1, %v2418_v59, %v2419_v21 }
 0x1b9   : > { %v2514_v58 = vadd.f32 %v2464_v6, %v7452_v32 }
 0x1ba   : > { %v6346_v33 = vpop.f32.mrb[92].mxu1  ;;  %v6394_v15 = vpop.f32.mrb[92].mxu0  ;;  %v7530_v39 = vadd.f32 %v6390_v53, %v2516_v17 }
 0x1bb   : > { %v2331_v0 = vpop.f32.mrb[93].mxu1  ;;  %v2723_v16 = vpop.f32.mrb[93].mxu0  ;;  %v7532_v57 = vadd.f32 %v2707_v49, %v2514_v58  ;;  %v2424_v41 = vrot.slane %v6346_v33, 2 }
 0x1bc   : > { %v6347_v1 = vpop.f32.mrb[94].mxu1  ;;  %v6395_v2 = vpop.f32.mrb[94].mxu0  ;;  %v2422_v4 = vrot.slane %v2331_v0, 2 }
 0x1bd   : > { %v2425_v3 = vrot.slane %v6347_v1, 2  ;;  %v2334_v40 = vpop.f32.mrb[95].mxu1  ;;  %v2726_v56 = vpop.f32.mrb[95].mxu0 }
 0x1be   : > { %v2423_v29 = vrot.slane %v2334_v40, 2 }
 0x1bf   : > { %v2458_v9 = vsel %vm1341_vm1, %v2424_v41, %v2425_v3 }
 0x1c0   : > { %v2520_v32 = vadd.f32 %v2458_v9, %v7458_v28  ;;  %v2460_v60 = vsel %vm1341_vm1, %v2422_v4, %v2423_v29 }
 0x1c1   : > { %v2518_v10 = vadd.f32 %v2460_v60, %v7462_v50 }
 0x1c2   : > { %v6350_v11 = vpop.f32.mrb[96].mxu1  ;;  %v6398_v18 = vpop.f32.mrb[96].mxu0  ;;  %v7540_v22 = vadd.f32 %v6394_v15, %v2520_v32 }
 0x1c3   : > { %v2347_v23 = vpop.f32.mrb[97].mxu1  ;;  %v7542_v25 = vpop.f32.mrb[97].mxu0  ;;  %v7544_v12 = vadd.f32 %v2723_v16, %v2518_v10  ;;  %v2428_v26 = vrot.slane %v6350_v11, 2 }
 0x1c4   : > { %9287 = vst [vmem:[#allocation3_spill] sm:$0xff] %v7540_v22  ;;  %9288 = vst [vmem:[#allocation4_spill] sm:$0xff] %v7542_v25  ;;  %v6351_v48 = vpop.f32.mrb[98].mxu1  ;;  %v6399_v63 = vpop.f32.mrb[98].mxu0  ;;  %v2426_v37 = vrot.slane %v2347_v23, 2 }
 0x1c5   : > { %9289 = vst [vmem:[#allocation5_spill] sm:$0xff] %v7544_v12  ;;  %v2429_v19 = vrot.slane %v6351_v48, 2  ;;  %v2350_v13 = vpop.f32.mrb[99].mxu1  ;;  %v2742_v28 = vpop.f32.mrb[99].mxu0 }
 0x1c6   : > { %v2427_v47 = vrot.slane %v2350_v13, 2 }
 0x1c7   : > { %v2454_v50 = vsel %vm1341_vm1, %v2428_v26, %v2429_v19 }
 0x1c8   : > { %v2524_v44 = vadd.f32 %v2454_v50, %v7468_v61  ;;  %v2456_v36 = vsel %vm1341_vm1, %v2426_v37, %v2427_v47 }
 0x1c9   : > { %v7552_v31 = vadd.f32 %v2456_v36, %v7472_v5 }
 0x1ca   : > { %v6354_v53 = vpop.f32.mrb[100].mxu1  ;;  %v7554_v34 = vpop.f32.mrb[100].mxu0  ;;  %v7586_v37 = vadd.f32 %v6398_v18, %v2524_v44 }
 0x1cb   : > { %9290 = vst [vmem:[#allocation6_spill] sm:$0xff] %v7552_v31  ;;  %9291 = vst [vmem:[#allocation7_spill] sm:$0xff] %v7554_v34  ;;  %v2363_v49 = vpop.f32.mrb[101].mxu1  ;;  %v7556_v38 = vpop.f32.mrb[101].mxu0  ;;  %v2432_v46 = vrot.slane %v6354_v53, 2 }
 0x1cc   : > { %9292 = vst [vmem:[#allocation8_spill] sm:$0xff] %v7556_v38  ;;  %v6355_v43 = vpop.f32.mrb[102].mxu1  ;;  %v6403_v45 = vpop.f32.mrb[102].mxu0  ;;  %v2430_v21 = vrot.slane %v2363_v49, 2  ;;  %9301 = vst [vmem:[#allocation17_spill] sm:$0xff] %v7586_v37 }
 0x1cd   : > { %v2433_v52 = vrot.slane %v6355_v43, 2  ;;  %v2366_v42 = vpop.f32.mrb[103].mxu1  ;;  %v2758_v59 = vpop.f32.mrb[103].mxu0 }
 0x1ce   : > { %v2431_v61 = vrot.slane %v2366_v42, 2 }
 0x1cf   : > { %v2450_v51 = vsel %vm1341_vm1, %v2432_v46, %v2433_v52 }
 0x1d0   : > { %v7561_v5 = vadd.f32 %v2450_v51, %v7478_v7  ;;  %v2452_v17 = vsel %vm1341_vm1, %v2430_v21, %v2431_v61 }
 0x1d1   : > { %v7566_v6 = vadd.f32 %v2452_v17, %v7482_v8 }
 0x1d2   : > { %9293 = vst [vmem:[#allocation9_spill] sm:$0xff] %v7561_v5  ;;  %v6358_v58 = vpop.f32.mrb[104].mxu1  ;;  %v7568_v33 = vpop.f32.mrb[104].mxu0 }
 0x1d3   : > { %9294 = vst [vmem:[#allocation10_spill] sm:$0xff] %v7566_v6  ;;  %9295 = vst [vmem:[#allocation11_spill] sm:$0xff] %v7568_v33  ;;  %v2379_v15 = vpop.f32.mrb[105].mxu1  ;;  %v7570_v0 = vpop.f32.mrb[105].mxu0  ;;  %v2436_v2 = vrot.slane %v6358_v58, 2 }
 0x1d4   : > { %9296 = vst [vmem:[#allocation12_spill] sm:$0xff] %v7570_v0  ;;  %v6359_v16 = vpop.f32.mrb[106].mxu1  ;;  %v6407_v1 = vpop.f32.mrb[106].mxu0  ;;  %v2434_v7 = vrot.slane %v2379_v15, 2 }
 0x1d5   : > { %v2437_v41 = vrot.slane %v6359_v16, 2  ;;  %v2382_v3 = vpop.f32.mrb[107].mxu1  ;;  %v2774_v40 = vpop.f32.mrb[107].mxu0 }
 0x1d6   : > { %v2435_v56 = vrot.slane %v2382_v3, 2 }
 0x1d7   : > { %v2446_v4 = vsel %vm1341_vm1, %v2436_v2, %v2437_v41  ;;  %v7610_v41 = vld [vmem:[%s9265_s3] ss:$0 sm:$0xff] }
 0x1d8   : > { %v7575_v8 = vadd.f32 %v2446_v4, %v7488_v54  ;;  %v2448_v29 = vsel %vm1341_vm1, %v2434_v7, %v2435_v56 }
 0x1d9   : > { %v7580_v9 = vadd.f32 %v2448_v29, %v7492_v30 }
 0x1da   : > { %9297 = vst [vmem:[#allocation13_spill] sm:$0xff] %v7575_v8  ;;  %v6362_v32 = vpop.f32.mrb[108].mxu1  ;;  %v7582_v60 = vpop.f32.mrb[108].mxu0 }
 0x1db   : > { %9298 = vst [vmem:[#allocation14_spill] sm:$0xff] %v7580_v9  ;;  %9299 = vst [vmem:[#allocation15_spill] sm:$0xff] %v7582_v60  ;;  %v2395_v10 = vpop.f32.mrb[109].mxu1  ;;  %v7584_v11 = vpop.f32.mrb[109].mxu0  ;;  %v2440_v63 = vrot.slane %v6362_v32, 2 }
 0x1dc   : > { %9300 = vst [vmem:[#allocation16_spill] sm:$0xff] %v7584_v11  ;;  %v6363_v23 = vpop.f32.mrb[110].mxu1  ;;  %v6411_v48 = vpop.f32.mrb[110].mxu0  ;;  %v2438_v54 = vrot.slane %v2395_v10, 2 }
 0x1dd   : > { %v2441_v26 = vrot.slane %v6363_v23, 2  ;;  %v2398_v19 = vpop.f32.mrb[111].mxu1  ;;  %v2790_v13 = vpop.f32.mrb[111].mxu0 }
 0x1de   : > { %v2439_v28 = vrot.slane %v2398_v19, 2 }
 0x1df   : > { %v2442_v30 = vsel %vm1341_vm1, %v2440_v63, %v2441_v26 }
 0x1e0   : > { %v7591_v47 = vadd.f32 %v2442_v30, %v7498_v20  ;;  %v2444_v50 = vsel %vm1341_vm1, %v2438_v54, %v2439_v28 }
 0x1e1   : > { %v7596_v36 = vadd.f32 %v2444_v50, %v7502_v55 }
 0x1e2   : > { %9302 = vst [vmem:[#allocation18_spill] sm:$0xff] %v7591_v47  ;;  %v6430_v53 = vpop.f32.mrb[112].mxu1  ;;  %v6478_v49 = vpop.f32.mrb[112].mxu0 }
 0x1e3   : > { %9303 = vst [vmem:[#allocation19_spill] sm:$0xff] %v7596_v36  ;;  %v3512_v43 = vrot.slane %v6478_v49, 2  ;;  %v2997_v45 = vpop.f32.mrb[113].mxu1  ;;  %v3383_v46 = vpop.f32.mrb[113].mxu0  ;;  %v3126_v42 = vrot.slane %v6430_v53, 1 }
 0x1e4   : > { %v3510_v52 = vrot.slane %v3383_v46, 2  ;;  %v6431_v18 = vpop.f32.mrb[114].mxu1  ;;  %v6479_v44 = vpop.f32.mrb[114].mxu0  ;;  %v3124_v51 = vrot.slane %v2997_v45, 1 }
 0x1e5   : > { %v3127_v59 = vrot.slane %v6431_v18, 1  ;;  %v3513_v21 = vrot.slane %v6479_v44, 2  ;;  %v3000_v61 = vpop.f32.mrb[115].mxu1  ;;  %v3386_v20 = vpop.f32.mrb[115].mxu0 }
 0x1e6   : > { %v3125_v17 = vrot.slane %v3000_v61, 1  ;;  %v3511_v58 = vrot.slane %v3386_v20, 2 }
 0x1e7   : > { %v3184_v55 = vsel %vm954_vm0, %v3126_v42, %v3127_v59  ;;  %v3570_v15 = vsel %vm1341_vm1, %v3512_v43, %v3513_v21 }
 0x1e8   : > { %v3222_v16 = vadd.f32 %v3184_v55, %v7510_v14  ;;  %v3186_v1 = vsel %vm954_vm0, %v3124_v51, %v3125_v17  ;;  %v3572_v2 = vsel %vm1341_vm1, %v3510_v52, %v3511_v58 }
 0x1e9   : > { %v3220_v3 = vadd.f32 %v3186_v1, %v7512_v24 }
 0x1ea   : > { %v3608_v40 = vadd.f32 %v3570_v15, %v3222_v16  ;;  %v6434_v7 = vpop.f32.mrb[116].mxu1  ;;  %v6482_v56 = vpop.f32.mrb[116].mxu0 }
 0x1eb   : > { %v3606_v4 = vadd.f32 %v3572_v2, %v3220_v3  ;;  %v3013_v29 = vpop.f32.mrb[117].mxu1  ;;  %v3399_v32 = vpop.f32.mrb[117].mxu0  ;;  %v3130_v63 = vrot.slane %v6434_v7, 1  ;;  %v3516_v28 = vrot.slane %v6482_v56, 2 }
 0x1ec   : > { %v7614_v14 = vadd.f32 %v7610_v41, %v3608_v40  ;;  %v6435_v10 = vpop.f32.mrb[118].mxu1  ;;  %v6483_v23 = vpop.f32.mrb[118].mxu0  ;;  %v3128_v18 = vrot.slane %v3013_v29, 1  ;;  %v3514_v59 = vrot.slane %v3399_v32, 2 }
 0x1ed   : > { %v7617_v48 = vadd.f32 %v7610_v41, %v3606_v4  ;;  %v3131_v26 = vrot.slane %v6435_v10, 1  ;;  %v3016_v19 = vpop.f32.mrb[119].mxu1  ;;  %v3402_v13 = vpop.f32.mrb[119].mxu0  ;;  %v3517_v30 = vrot.slane %v6483_v23, 2 }
 0x1ee   : > { %v9268_v24 = vand.u32 2147483647, %v7614_v14  ;;  %v3816_v54 = vand.u32 2139095040, %v7614_v14  ;;  %v3129_v61 = vrot.slane %v3016_v19, 1  ;;  %v3515_v55 = vrot.slane %v3402_v13, 2 }
 0x1ef   : > { %v9267_v50 = vand.u32 2147483647, %v7617_v48  ;;  %v3712_v53 = vand.u32 2139095040, %v7617_v48  ;;  %v3180_v45 = vsel %vm954_vm0, %v3130_v63, %v3131_v26  ;;  %v3566_v21 = vsel %vm1341_vm1, %v3516_v28, %v3517_v30 }
 0x1f0   : > { %v3817_v49 = vshrl.u32 %v3816_v54, 23  ;;  %v3820_v43 = vand.u32 8388607, %v9268_v24  ;;  %v3226_v44 = vadd.f32 %v3180_v45, %v7520_v62  ;;  %v3182_v62 = vsel %vm954_vm0, %v3128_v18, %v3129_v61 }
 0x1f1   : > { %v3713_v46 = vshrl.u32 %v3712_v53, 23  ;;  %v3716_v52 = vand.u32 8388607, %v9267_v50  ;;  %v7650_v29 = vadd.f32 %v3182_v62, %v7522_v35  ;;  %v7658_v23 = vsel %vm1341_vm1, %v3514_v59, %v3515_v55 }
 0x1f2   : > { %v5749_v42 = vadd.s32 4294967169, %v3817_v49  ;;  %v7632_v20 = vpop.f32.mrb[120].mxu1  ;;  %v7634_v51 = vpop.f32.mrb[120].mxu0  ;;  %v3612_v58 = vadd.f32 %v3566_v21, %v3226_v44  ;;  %v3821_v1 = vor.u32 8388608, %v3820_v43  ;;  %v9275_v49 = vmov 683565275  }
 0x1f3   : > { %v5745_v17 = vadd.s32 4294967169, %v3713_v46  ;;  %v7636_v15 = vpop.f32.mrb[121].mxu1  ;;  %v7638_v16 = vpop.f32.mrb[121].mxu0  ;;  %v3717_v7 = vor.u32 8388608, %v3716_v52  ;;  %v9269_v44 = vmov 2475754826  }
 0x1f4   : > { %v3823_v2 = vadd.s32 1, %v5749_v42  ;;  %v7642_v3 = vpop.f32.mrb[122].mxu1  ;;  %v7644_v40 = vpop.f32.mrb[122].mxu0  ;;  %v7647_v4 = vadd.f32 %v7610_v41, %v3612_v58  ;;  %v7660_v54 = vshll.u32 %v3821_v1, 8  ;;  %v9271_v59 = vmov 2131351028  }
 0x1f5   : > { %v3719_v56 = vadd.s32 1, %v5745_v17  ;;  %v7652_v32 = vpop.f32.mrb[123].mxu1  ;;  %v7654_v10 = vpop.f32.mrb[123].mxu0  ;;  %v7662_v28 = vshll.u32 %v3717_v7, 8  ;;  %v9273_v61 = vmov 2102212464  }
 0x1f6   : > { %vm3824_vm2 = vcmp.gt.s32.totalorder %v3823_v2, 0  ;;  %v9277_v58 = vmov 920167782   ;;  %vm3815_vm15 = vcmp.lt.s32.totalorder %v7614_v14, 0 }
 0x1f7   : > { %v3825_v63 = vsel %vm3824_vm2, %v3823_v2, 0  ;;  %vm3720_vm3 = vcmp.gt.s32.totalorder %v3719_v56, 0 }
 0x1f8   : > { %v3826_v26 = vshrl.u32 %v3825_v63, 5  ;;  %v3827_v19 = vand.u32 31, %v3825_v63  ;;  %v3721_v13 = vsel %vm3720_vm3, %v3719_v56, 0  ;;  %vm3711_vm3 = vcmp.lt.s32.totalorder %v7617_v48, 0 }
 0x1f9   : > { %v7667_v45 = vshrl.u32 %v3721_v13, 5  ;;  %v7669_v46 = vand.u32 31, %v3721_v13 }
 0x1fa   : > { %v3828_v53 = vsub.s32 32, %v3827_v19  ;;  %v3830_v43 = vshll.u32 %v9275_v49, %v3827_v19  ;;  %v7671_v52 = vpop.f32.mrb[124].mxu1  ;;  %v7673_v18 = vpop.f32.mrb[124].mxu0  ;;  %v3833_v42 = vshll.u32 %v9269_v44, %v3827_v19  ;;  %v3836_v21 = vshll.u32 %v9271_v59, %v3827_v19 }
 0x1fb   : > { %v3839_v17 = vshll.u32 %v9273_v61, %v3827_v19  ;;  %v3842_v55 = vshll.u32 %v9277_v58, %v3827_v19  ;;  %v7679_v1 = vpop.f32.mrb[125].mxu1  ;;  %v7681_v2 = vpop.f32.mrb[125].mxu0  ;;  %vm3845_vm4 = vcmp.lt.s32.totalorder %v3826_v26, 1  ;;  %v9279_v19 = vmov 1326507024  }
 0x1fc   : > { %9304 = vst [vmem:[#allocation20_spill] sm:$0xff] %v7679_v1  ;;  %9305 = vst [vmem:[#allocation21_spill] sm:$0xff] %v7681_v2  ;;  %v3831_v62 = vshrl.u32 %v9269_v44, %v3828_v53  ;;  %v3834_v7 = vshrl.u32 %v9271_v59, %v3828_v53  ;;  %v3837_v56 = vshrl.u32 %v9273_v61, %v3828_v53  ;;  %v7686_v63 = vpop.f32.mrb[126].mxu1  ;;  %v7688_v13 = vpop.f32.mrb[126].mxu0  ;;  %vm3846_vm5 = vcmp.lt.s32.totalorder %v3826_v26, 2 }
 0x1fd   : > { %v3829_v50 = vshrl.u32 %v9275_v49, %v3828_v53  ;;  %v3840_v24 = vshrl.u32 %v9277_v58, %v3828_v53  ;;  %v3843_v35 = vshrl.u32 %v9279_v19, %v3828_v53  ;;  %v7693_v30 = vpop.f32.mrb[127].mxu1  ;;  %v7695_v44 = vpop.f32.mrb[127].mxu0  ;;  %v3724_v36 = vsub.s32 32, %v7669_v46 }
 0x1fe   : > { %9306 = vst [vmem:[#allocation22_spill] sm:$0xff] %v7693_v30  ;;  %9307 = vst [vmem:[#allocation23_spill] sm:$0xff] %v7695_v44  ;;  %v3832_v59 = vor.u32 %v3831_v62, %v3830_v43  ;;  %v3835_v11 = vor.u32 %v3834_v7, %v3833_v42  ;;  %v3838_v61 = vor.u32 %v3837_v56, %v3836_v21  ;;  %vm3847_vm6 = vcmp.lt.s32.totalorder %v3826_v26, 3 }
 0x1ff   : > { %v3841_v60 = vor.u32 %v3840_v24, %v3839_v17  ;;  %v3844_v47 = vor.u32 %v3843_v35, %v3842_v55  ;;  %vm3848_vm7 = vcmp.lt.s32.totalorder %v3826_v26, 4  ;;  %v9308_v43 = vmov 683565275  }
 0x200   : > { %v3849_v49 = vsel %vm3845_vm4, %v3829_v50, %v3832_v59  ;;  %v3850_v58 = vsel %vm3848_vm7, %v3838_v61, 2102212464  ;;  %v3853_v0 = vsel %vm3845_vm4, %v3832_v59, %v3835_v11  ;;  %v3857_v53 = vsel %vm3845_vm4, %v3835_v11, %v3838_v61 }
 0x201   : > { %v3851_v19 = vsel %vm3847_vm6, %v3835_v11, %v3850_v58  ;;  %v3854_v9 = vsel %vm3848_vm7, %v3841_v60, 920167782  ;;  %v3858_v33 = vsel %vm3848_vm7, %v3844_v47, 1326507024  ;;  %v3726_v42 = vshll.u32 %v9308_v43, %v7669_v46 }
 0x202   : > { %v3855_v21 = vsel %vm3847_vm6, %v3838_v61, %v3854_v9  ;;  %v3859_v62 = vsel %vm3847_vm6, %v3841_v60, %v3858_v33  ;;  %v9309_v7 = vmov 2475754826   ;;  %v3852_v50 = vsel %vm3846_vm5, %v3849_v49, %v3851_v19 }
 0x203   : > { %v3727_v24 = vshrl.u32 %v9309_v7, %v3724_v36  ;;  %v3729_v35 = vshll.u32 %v9309_v7, %v7669_v46  ;;  %v3856_v17 = vsel %vm3846_vm5, %v3853_v0, %v3855_v21  ;;  %v3860_v59 = vsel %vm3846_vm5, %v3857_v53, %v3859_v62 }
 0x204   : > { %v9310_v55 = vmov 2131351028   ;;  %v7711_v47 = vmul.u32.u64.low %v7660_v54, %v3860_v59  ;;  %v7712_v58 = vmul.u32.u64.high %v7660_v54, %v3860_v59, %v7711_v47  ;;  %v9311_v56 = vmov 2102212464  }
 0x205   : > { %v3730_v11 = vshrl.u32 %v9310_v55, %v3724_v36  ;;  %v7715_v9 = vmul.u32.u64.low %v7660_v54, %v3856_v17  ;;  %v7716_v33 = vmul.u32.u64.high %v7660_v54, %v3856_v17, %v7715_v9  ;;  %v3728_v60 = vor.u32 %v3727_v24, %v3726_v42 }
 0x206   : > { %v3732_v49 = vshll.u32 %v9310_v55, %v7669_v46  ;;  %v3733_v0 = vshrl.u32 %v9311_v56, %v3724_v36  ;;  %v3725_v26 = vshrl.u32 %v9308_v43, %v3724_v36  ;;  %v3735_v19 = vshll.u32 %v9311_v56, %v7669_v46 }
 0x207   : > { %v3731_v61 = vor.u32 %v3730_v11, %v3729_v35  ;;  %v9312_v53 = vmov 920167782   ;;  %v9313_v62 = vmov 1326507024   ;;  %v3868_v17 = vmul.u32 %v7660_v54, %v3852_v50 }
 0x208   : > { %v3736_v21 = vshrl.u32 %v9312_v53, %v3724_v36  ;;  %v3739_v59 = vshrl.u32 %v9313_v62, %v3724_v36  ;;  %v3734_v47 = vor.u32 %v3733_v0, %v3732_v49  ;;  %v3738_v42 = vshll.u32 %v9312_v53, %v7669_v46 }
 0x209   : > { %vm3741_vm8 = vcmp.lt.s32.totalorder %v7667_v45, 1  ;;  %vm3870_vm9 = vc.u32 %v7712_v58, %v7715_v9  ;;  %v3871_v24 = vadd.s32 1, %v7716_v33  ;;  %vm3742_vm10 = vcmp.lt.s32.totalorder %v7667_v45, 2 }
 0x20a   : > { %v3737_v35 = vor.u32 %v3736_v21, %v3735_v19  ;;  %v3740_v11 = vor.u32 %v3739_v59, %v3738_v42  ;;  %vm3743_vm11 = vcmp.lt.s32.totalorder %v7667_v45, 3  ;;  %vm3744_vm12 = vcmp.lt.s32.totalorder %v7667_v45, 4 }
 0x20b   : > { %v3749_v36 = vsel %vm3741_vm8, %v3728_v60, %v3731_v61  ;;  %v3872_v54 = vsel %vm3870_vm9, %v3871_v24, %v7716_v33  ;;  %v3746_v50 = vsel %vm3744_vm12, %v3734_v47, 2102212464  ;;  %v3753_v49 = vsel %vm3741_vm8, %v3731_v61, %v3734_v47 }
 0x20c   : > { %v3750_v46 = vsel %vm3744_vm12, %v3737_v35, 920167782  ;;  %v3873_v0 = vadd.s32 %v3872_v54, %v3868_v17  ;;  %v3745_v8 = vsel %vm3741_vm8, %v3725_v26, %v3728_v60  ;;  %v3754_v6 = vsel %vm3744_vm12, %v3740_v11, 1326507024 }
 0x20d   : > { %v3751_v38 = vsel %vm3743_vm11, %v3734_v47, %v3750_v46  ;;  %v3747_v34 = vsel %vm3743_vm11, %v3731_v61, %v3746_v50  ;;  %v3755_v21 = vsel %vm3743_vm11, %v3737_v35, %v3754_v6  ;;  %v9314_v59 = vand.u32 2139095040, %v7647_v4 }
 0x20e   : > { %v3752_v19 = vsel %vm3742_vm10, %v3749_v36, %v3751_v38  ;;  %v3874_v5 = vadd.s32 536870912, %v3873_v0  ;;  %v3756_v37 = vsel %vm3742_vm10, %v3753_v49, %v3755_v21  ;;  %v3748_v38 = vsel %vm3742_vm10, %v3745_v8, %v3747_v34 }
 0x20f   : > { %v4025_v42 = vshrl.u32 %v9314_v59, 23  ;;  %v7745_v33 = vmul.u32.u64.low %v7662_v28, %v3752_v19  ;;  %v7746_v24 = vmul.u32.u64.high %v7662_v28, %v3752_v19, %v7745_v33  ;;  %v3610_v6 = vadd.f32 %v7658_v23, %v7650_v29 }
 0x210   : > { %v7749_v60 = vmul.u32.u64.low %v7662_v28, %v3756_v37  ;;  %v7750_v26 = vmul.u32.u64.high %v7662_v28, %v3756_v37, %v7749_v60  ;;  %v3875_v17 = vshrl.u32 %v3874_v5, 30  ;;  %v9315_v54 = vand.u32 2147483647, %v7647_v4 }
 0x211   : > { %v5757_v61 = vadd.s32 4294967169, %v4025_v42  ;;  %v3767_v36 = vadd.s32 1, %v7746_v24  ;;  %v3764_v46 = vmul.u32 %v7662_v28, %v3748_v38  ;;  %v9316_v45 = vand.u32 2147483647, %v7614_v14  ;;  %v7776_v42 = vpop.f32.mrb[128].mxu1 }
 0x212   : > { %v3876_v35 = vshll.u32 %v3875_v17, 30  ;;  %v3899_v11 = vsub.s32 4, %v3875_v17  ;;  %v4028_v50 = vand.u32 8388607, %v9315_v54  ;;  %vm3766_vm13 = vc.u32 %v7750_v26, %v7745_v33  ;;  %9319 = vst [vmem:[#allocation24_spill] sm:$0xff] %v7776_v42 }
 0x213   : > { %v4031_v47 = vadd.s32 1, %v5757_v61  ;;  %v3768_v34 = vsel %vm3766_vm13, %v3767_v36, %v7746_v24  ;;  %vm7769_vm2 = vcmp.le.f32.partialorder %v9316_v45, 0.7853982  ;;  %v7778_v24 = vpop.f32.mrb[128].mxu0  ;;  %vm3905_vm13 = vweird.f32 %v7614_v14 }
 0x214   : > { %v7762_v5 = vsub.s32 %v3873_v0, %v3876_v35  ;;  %v3900_v37 = vsel %vm3815_vm15, %v3899_v11, %v3875_v17  ;;  %v3769_v29 = vadd.s32 %v3768_v34, %v3764_v46  ;;  %v4029_v19 = vor.u32 8388608, %v4028_v50  ;;  %9320 = vst [vmem:[#allocation25_spill] sm:$0xff] %v7778_v24  ;;  %v7786_v35 = vpop.f32.mrb[129].mxu0 }
 0x215   : > { %vm4032_vm14 = vcmp.gt.s32.totalorder %v4031_v47, 0  ;;  %v3902_v61 = vsel %vm7769_vm2, 0, %v3900_v37  ;;  %9322 = vst [vmem:[#allocation27_spill] sm:$0xff] %v7786_v35  ;;  %v3869_v11 = vadd.s32 %v7715_v9, %v7712_v58  ;;  %v7796_v37 = vadd.s32 %v7745_v33, %v7750_v26 }
 0x216   : > { %v4033_v8 = vsel %vm4032_vm14, %v4031_v47, 0  ;;  %v3879_v28 = vsub.s32 0, %v7762_v5  ;;  %v3770_v21 = vadd.s32 536870912, %v3769_v29  ;;  %v7784_v47 = vpop.f32.mrb[129].mxu1  ;;  %v7798_v45 = vshll.u32 %v4029_v19, 8 }
 0x217   : > { %v4035_v23 = vand.u32 31, %v4033_v8  ;;  %9321 = vst [vmem:[#allocation26_spill] sm:$0xff] %v7784_v47  ;;  %v7792_v46 = vpop.f32.mrb[130].mxu1  ;;  %v7801_v38 = vadd.s32 3, %v3902_v61  ;;  %v7803_v9 = vshrl.u32 %v4033_v8, 5 }
 0x218   : > { %v5750_v60 = vmin.u32 %v3879_v28, %v7762_v5  ;;  %v3771_v36 = vshrl.u32 %v3770_v21, 30  ;;  %9323 = vst [vmem:[#allocation28_spill] sm:$0xff] %v7792_v46  ;;  %v7806_v21 = vadd.f32 %v7610_v41, %v3610_v6 }
 0x219   : > { %v4036_v17 = vsub.s32 32, %v4035_v23  ;;  %v4041_v33 = vshll.u32 %v9309_v7, %v4035_v23  ;;  %v4044_v8 = vshll.u32 %v9310_v55, %v4035_v23  ;;  %v4047_v6 = vshll.u32 %v9311_v56, %v4035_v23 }
 0x21a   : > { %v3881_v34 = vclz %v5750_v60  ;;  %v3772_v58 = vshll.u32 %v3771_v36, 30  ;;  %v4038_v60 = vshll.u32 %v9308_v43, %v4035_v23  ;;  %v3795_v35 = vsub.s32 4, %v3771_v36 }
 0x21b   : > { %v4039_v59 = vshrl.u32 %v9309_v7, %v4036_v17  ;;  %v4042_v19 = vshrl.u32 %v9310_v55, %v4036_v17  ;;  %v4045_v61 = vshrl.u32 %v9311_v56, %v4036_v17  ;;  %v4048_v28 = vshrl.u32 %v9312_v53, %v4036_v17 }
 0x21c   : > { %v5751_v54 = vadd.s32 4294967294, %v3881_v34  ;;  %v7811_v26 = vsub.s32 %v3769_v29, %v3772_v58  ;;  %v4051_v34 = vshrl.u32 %v9313_v62, %v4036_v17  ;;  %v4037_v29 = vshrl.u32 %v9308_v43, %v4036_v17 }
 0x21d   : > { %v4040_v31 = vor.u32 %v4039_v59, %v4038_v60  ;;  %v4050_v47 = vshll.u32 %v9312_v53, %v4035_v23  ;;  %v4043_v24 = vor.u32 %v4042_v19, %v4041_v33  ;;  %v4046_v42 = vor.u32 %v4045_v61, %v4044_v8 }
 0x21e   : > { %vm5752_vm4 = vcmp.lt.s32.totalorder %v5751_v54, 0  ;;  %v3775_v50 = vsub.s32 0, %v7811_v26  ;;  %v4049_v44 = vor.u32 %v4048_v28, %v4047_v6  ;;  %v7826_v22 = vsel %vm3711_vm3, %v3795_v35, %v3771_v36 }
 0x21f   : > { %v3884_v0 = vsel %vm5752_vm4, 0, %v5751_v54  ;;  %v4052_v54 = vor.u32 %v4051_v34, %v4050_v47  ;;  %vm4053_vm5 = vcmp.lt.s32.totalorder %v7803_v9, 1  ;;  %vm4054_vm6 = vcmp.lt.s32.totalorder %v7803_v9, 2 }
 0x220   : > { %v3885_v58 = vsub.s32 32, %v3884_v0  ;;  %v3889_v25 = vsub.s32 4294967266, %v3884_v0  ;;  %v5746_v46 = vmin.u32 %v3775_v50, %v7811_v26  ;;  %v3886_v2 = vshll.u32 %v7762_v5, %v3884_v0 }
 0x221   : > { %vm4055_vm7 = vcmp.lt.s32.totalorder %v7803_v9, 3  ;;  %vm4056_vm8 = vcmp.lt.s32.totalorder %v7803_v9, 4  ;;  %v9324_v5 = vand.u32 2147483647, %v7617_v48  ;;  %v4061_v17 = vsel %vm4053_vm5, %v4040_v31, %v4043_v24 }
 0x222   : > { %v3887_v12 = vshrl.u32 %v3869_v11, %v3885_v58  ;;  %v3890_v30 = vadd.s32 127, %v3889_v25  ;;  %v3777_v1 = vclz %v5746_v46  ;;  %v4062_v47 = vsel %vm4056_vm8, %v4049_v44, 920167782 }
 0x223   : > { %vm7834_vm9 = vcmp.le.f32.partialorder %v9324_v5, 0.7853982  ;;  %v4065_v35 = vsel %vm4053_vm5, %v4043_v24, %v4046_v42  ;;  %v4066_v11 = vsel %vm4056_vm8, %v4052_v54, 1326507024  ;;  %v4057_v50 = vsel %vm4053_vm5, %v4037_v29, %v4040_v31  ;;  %v7860_v29 = vpop.f32.mrb[130].mxu0 }
 0x224   : > { %v3888_v23 = vor.u32 %v3887_v12, %v3886_v2  ;;  %v3891_v59 = vshll.u32 %v3890_v30, 23  ;;  %v5747_v0 = vadd.s32 4294967294, %v3777_v1  ;;  %v4058_v30 = vsel %vm4056_vm8, %v4046_v42, 2102212464 }
 0x225   : > { %v4063_v2 = vsel %vm4055_vm7, %v4046_v42, %v4062_v47  ;;  %v4067_v1 = vsel %vm4055_vm7, %v4049_v44, %v4066_v11  ;;  %v4059_v42 = vsel %vm4055_vm7, %v4043_v24, %v4058_v30  ;;  %v3920_v8 = vand.u32 2139095040, %v7806_v21 }
 0x226   : > { %v3892_v12 = vor.u32 4788187, %v3891_v59  ;;  %v3895_v36 = vcvt.s32.f32 %v3888_v23  ;;  %vm5748_vm10 = vcmp.lt.s32.totalorder %v5747_v0, 0  ;;  %v4064_v60 = vsel %vm4054_vm6, %v4061_v17, %v4063_v2 }
 0x227   : > { %v3780_v28 = vsel %vm5748_vm10, 0, %v5747_v0  ;;  %v4068_v33 = vsel %vm4054_vm6, %v4065_v35, %v4067_v1  ;;  %v7864_v23 = vmul.u32.u64.low %v7798_v45, %v4064_v60  ;;  %v7865_v59 = vmul.u32.u64.high %v7798_v45, %v4064_v60, %v7864_v23 }
 0x228   : > { %v3893_v46 = vand.u32 2147483647, %v3892_v12  ;;  %v3781_v19 = vsub.s32 32, %v3780_v28  ;;  %v3785_v61 = vsub.s32 4294967266, %v3780_v28  ;;  %v3782_v31 = vshll.u32 %v7811_v26, %v3780_v28 }
 0x229   : > { %v7857_v44 = vmul.u32.u64.low %v7798_v45, %v4068_v33  ;;  %v7858_v34 = vmul.u32.u64.high %v7798_v45, %v4068_v33, %v7857_v44  ;;  %v4060_v5 = vsel %vm4054_vm6, %v4057_v50, %v4059_v42  ;;  %v3917_v26 = vand.u32 2147483647, %v7806_v21 }
 0x22a   : > { %v3896_v6 = vmul.f32 %v3895_v36, %v3893_v46  ;;  %v3783_v58 = vshrl.u32 %v7796_v37, %v3781_v19  ;;  %v3786_v54 = vadd.s32 127, %v3785_v61  ;;  %v3921_v0 = vshrl.u32 %v3920_v8, 23 }
 0x22b   : > { %v9327_v35 = vrot.slane %v7642_v3, 1  ;;  %v9328_v12 = vrot.slane %v7632_v20, 1  ;;  %v9329_v30 = vrot.slane %v7644_v40, 2  ;;  %v9330_v2 = vrot.slane %v7634_v51, 2 }
 0x22c   : > { %v3897_v24 = vxor.u32 2147483648, %v3896_v6  ;;  %v3784_v17 = vor.u32 %v3783_v58, %v3782_v31  ;;  %v3787_v47 = vshll.u32 %v3786_v54, 23  ;;  %v3798_v36 = vsel %vm7834_vm9, 0, %v7826_v22 }
 0x22d   : > { %v3176_v37 = vsel %vm954_vm0, %v9328_v12, %v9327_v35  ;;  %v3562_v9 = vsel %vm1341_vm1, %v9330_v2, %v9329_v30  ;;  %vm4078_vm11 = vc.u32 %v7858_v34, %v7864_v23  ;;  %v5753_v20 = vadd.s32 4294967169, %v3921_v0 }
 0x22e   : > { %v3898_v11 = vsel %vm3815_vm15, %v3897_v24, %v3896_v6  ;;  %v3788_v40 = vor.u32 4788187, %v3787_v47  ;;  %v4076_v51 = vmul.u32 %v7798_v45, %v4060_v5  ;;  %v4079_v50 = vadd.s32 1, %v7865_v59 }
 0x22f   : > { %v3901_v3 = vsel %vm7769_vm2, %v7614_v14, %v3898_v11  ;;  %v3791_v1 = vcvt.s32.f32 %v3784_v17  ;;  %v3927_v46 = vadd.s32 1, %v5753_v20  ;;  %v3230_v28 = vadd.f32 %v3176_v37, %v7530_v39 }
 0x230   : > { %6709 = vcosq.f32 %v3901_v3  ;;  %v3789_v22 = vand.u32 2147483647, %v3788_v40  ;;  %v4080_v60 = vsel %vm4078_vm11, %v4079_v50, %v7865_v59  ;;  %v3133_v33 = vrot.slane %v7652_v32, 1 }
 0x231   : > { %6711 = vsinq.f32 %v3901_v3  ;;  %v4081_v19 = vadd.s32 %v4080_v60, %v4076_v51  ;;  %vm3928_vm12 = vcmp.gt.s32.totalorder %v3927_v46, 0  ;;  %v3616_v49 = vadd.f32 %v3562_v9, %v3230_v28 }
 0x232   : > { %v3519_v61 = vrot.slane %v7654_v10, 2  ;;  %v3907_v45 = vand.u32 3, %v7801_v38  ;;  %v3792_v42 = vmul.f32 %v3791_v1, %v3789_v22  ;;  %v3929_v8 = vsel %vm3928_vm12, %v3927_v46, 0 }
 0x233   : > { %v9331_v6 = vrot.slane %v7636_v15, 1  ;;  %v3802_v31 = vadd.s32 3, %v3798_v36  ;;  %v4082_v44 = vadd.s32 536870912, %v4081_v19  ;;  %v3924_v58 = vand.u32 8388607, %v3917_v26 }
 0x234   : > { %v3931_v32 = vand.u32 31, %v3929_v8  ;;  %v3793_v54 = vxor.u32 2147483648, %v3792_v42  ;;  %v9332_v10 = vrot.slane %v7638_v16, 2  ;;  %vm3908_vm14 = vcmp.lt.s32.totalorder %v3907_v45, 2 }
 0x235   : > { %v3178_v39 = vsel %vm954_vm0, %v9331_v6, %v3133_v33  ;;  %v4083_v15 = vshrl.u32 %v4082_v44, 30  ;;  %vm3909_vm15 = vcmp.eq.s32.totalorder %v3907_v45, 0  ;;  %vm3912_vm2 = vcmp.eq.s32.totalorder %v3907_v45, 2 }
 0x236   : > { %v7907_v59 = vadd.f32 %v3178_v39, %v7532_v57  ;;  %v7913_v38 = vsel %vm1341_vm1, %v9332_v10, %v3519_v61  ;;  %v3932_v24 = vsub.s32 32, %v3931_v32  ;;  %v3794_v5 = vsel %vm3711_vm3, %v3793_v54, %v3792_v42 }
 0x237   : > { %v3797_v57 = vsel %vm7834_vm9, %v7617_v48, %v3794_v5  ;;  %v7921_v0 = vand.u32 3, %v3802_v31  ;;  %vm4023_vm4 = vcmp.lt.s32.totalorder %v7647_v4, 0  ;;  %v4084_v16 = vshll.u32 %v4083_v15, 30 }
 0x238   : > { %v3925_v17 = vor.u32 8388608, %v3924_v58  ;;  %6713 = vcosq.f32 %v3797_v57  ;;  %v7924_v47 = vshrl.u32 %v3929_v8, 5  ;;  %v3934_v35 = vshll.u32 %v9308_v43, %v3931_v32 }
 0x239   : > { %v3938_v12 = vshrl.u32 %v9310_v55, %v3932_v24  ;;  %6715 = vsinq.f32 %v3797_v57  ;;  %v7928_v30 = vsub.s32 %v4081_v19, %v4084_v16  ;;  %v3941_v25 = vshrl.u32 %v9311_v56, %v3932_v24 }
 0x23a   : > { %v6710_v37 = vpop.eup %6709  ;;  %v3944_v2 = vshrl.u32 %v9312_v53, %v3932_v24  ;;  %v3935_v36 = vshrl.u32 %v9309_v7, %v3932_v24  ;;  %v3937_v20 = vshll.u32 %v9309_v7, %v3931_v32  ;;  %v3940_v3 = vshll.u32 %v9310_v55, %v3931_v32 }
 0x23b   : > { %v6712_v9 = vpop.eup %6711  ;;  %v3913_v11 = vxor.u32 2147483648, %v6710_v37  ;;  %v4087_v51 = vsub.s32 0, %v7928_v30  ;;  %v3943_v50 = vshll.u32 %v9311_v56, %v3931_v32  ;;  %v3946_v1 = vshll.u32 %v9312_v53, %v3931_v32 }
 0x23c   : > { %v3910_v40 = vxor.u32 2147483648, %v6712_v9  ;;  %vm3808_vm3 = vcmp.eq.s32.totalorder %v7921_v0, 2  ;;  %v4107_v28 = vsub.s32 4, %v4083_v15  ;;  %v3939_v22 = vor.u32 %v3938_v12, %v3937_v20 }
 0x23d   : > { %v3914_v46 = vsel %vm3912_vm2, %v3913_v11, %v6712_v9  ;;  %v3947_v60 = vshrl.u32 %v9313_v62, %v3932_v24  ;;  %vm3805_vm5 = vcmp.eq.s32.totalorder %v7921_v0, 0  ;;  %v5758_v19 = vmin.u32 %v4087_v51, %v7928_v30 }
 0x23e   : > { %v3911_v33 = vsel %vm3909_vm15, %v6710_v37, %v3910_v40  ;;  %v3942_v61 = vor.u32 %v3941_v25, %v3940_v3  ;;  %v3945_v42 = vor.u32 %v3944_v2, %v3943_v50  ;;  %vm3804_vm6 = vcmp.lt.s32.totalorder %v7921_v0, 2 }
 0x23f   : > { %v3915_v8 = vsel %vm3908_vm14, %v3911_v33, %v3914_v46  ;;  %v4077_v6 = vadd.s32 %v7864_v23, %v7858_v34  ;;  %v3936_v39 = vor.u32 %v3935_v36, %v3934_v35  ;;  %v3948_v31 = vor.u32 %v3947_v60, %v3946_v1 }
 0x240   : > { %v3916_v44 = vsel %vm3905_vm13, nan, %v3915_v8  ;;  %vm3801_vm7 = vweird.f32 %v7617_v48  ;;  %v4089_v58 = vclz %v5758_v19  ;;  %v7951_v32 = vshll.u32 %v3925_v17, 8 }
 0x241   : > { %v7954_v54 = vadd.f32 %v7610_v41, %v3616_v49  ;;  %v4108_v45 = vsel %vm4023_vm4, %v4107_v28, %v4083_v15  ;;  %v3933_v10 = vshrl.u32 %v9308_v43, %v3932_v24  ;;  %vm3949_vm8 = vcmp.lt.s32.totalorder %v7924_v47, 1 }
 0x242   : > { %vm3952_vm9 = vcmp.lt.s32.totalorder %v7924_v47, 4  ;;  %v5759_v34 = vadd.s32 4294967294, %v4089_v58  ;;  %vm3951_vm10 = vcmp.lt.s32.totalorder %v7924_v47, 3  ;;  %v3961_v23 = vsel %vm3949_vm8, %v3939_v22, %v3942_v61  ;;  %v6714_v5 = vpop.eup %6713 }
 0x243   : > { %v3958_v14 = vsel %vm3952_vm9, %v3945_v42, 920167782  ;;  %vm3950_vm11 = vcmp.lt.s32.totalorder %v7924_v47, 2  ;;  %v3957_v49 = vsel %vm3949_vm8, %v3936_v39, %v3939_v22  ;;  %v3962_v24 = vsel %vm3952_vm9, %v3948_v31, 1326507024  ;;  %v6716_v57 = vpop.eup %6715 }
 0x244   : > { %v3959_v15 = vsel %vm3951_vm10, %v3942_v61, %v3958_v14  ;;  %v3809_v16 = vxor.u32 2147483648, %v6714_v5  ;;  %vm5760_vm12 = vcmp.lt.s32.totalorder %v5759_v34, 0  ;;  %v3954_v17 = vsel %vm3952_vm9, %v3942_v61, 2102212464 }
 0x245   : > { %v3963_v35 = vsel %vm3951_vm10, %v3945_v42, %v3962_v24  ;;  %v3806_v12 = vxor.u32 2147483648, %v6716_v57  ;;  %v4092_v37 = vsel %vm5760_vm12, 0, %v5759_v34  ;;  %v3953_v25 = vsel %vm3949_vm8, %v3933_v10, %v3936_v39 }
 0x246   : > { %v3964_v2 = vsel %vm3950_vm11, %v3961_v23, %v3963_v35  ;;  %v3810_v9 = vsel %vm3808_vm3, %v3809_v16, %v6716_v57  ;;  %v4093_v11 = vsub.s32 32, %v4092_v37  ;;  %v4097_v36 = vsub.s32 4294967266, %v4092_v37 }
 0x247   : > { %v3960_v20 = vsel %vm3950_vm11, %v3957_v49, %v3959_v15  ;;  %v3807_v3 = vsel %vm3805_vm5, %v6714_v5, %v3806_v12  ;;  %v3955_v40 = vsel %vm3951_vm10, %v3939_v22, %v3954_v17  ;;  %v4094_v46 = vshll.u32 %v7928_v30, %v4092_v37 }
 0x248   : > { %v7985_v51 = vmul.u32.u64.low %v7951_v32, %v3964_v2  ;;  %v7986_v50 = vmul.u32.u64.high %v7951_v32, %v3964_v2, %v7985_v51  ;;  %v3811_v1 = vsel %vm3804_vm6, %v3807_v3, %v3810_v9  ;;  %v4095_v28 = vshrl.u32 %v4077_v6, %v4093_v11  ;;  %v8066_v6 = vpop.f32.mrb[131].mxu1 }
 0x249   : > { %v4098_v60 = vadd.s32 127, %v4097_v36  ;;  %v3812_v22 = vsel %vm3801_vm7, nan, %v3811_v1  ;;  %v7999_v33 = vmul.u32.u64.low %v7951_v32, %v3960_v20  ;;  %v8000_v19 = vmul.u32.u64.high %v7951_v32, %v3960_v20, %v7999_v33 }
 0x24a   : > { %v4232_v0 = vand.u32 2139095040, %v7954_v54  ;;  %v5816_v61 = vpack.c.bf16 %v3916_v44, %v3812_v22  ;;  %v4096_v42 = vor.u32 %v4095_v28, %v4094_v46  ;;  %v9333_v8 = vand.u32 2147483647, %v7647_v4 }
 0x24b   : > { %v4099_v30 = vshll.u32 %v4098_v60, 23  ;;  %v3956_v48 = vsel %vm3950_vm11, %v3953_v25, %v3955_v40  ;;  %vm3974_vm14 = vc.u32 %v7986_v50, %v7999_v33  ;;  %v3614_v44 = vadd.f32 %v7913_v38, %v7907_v59 }
 0x24c   : > { %vm8005_vm13 = vcmp.le.f32.partialorder %v9333_v8, 0.7853982  ;;  %v4233_v39 = vshrl.u32 %v4232_v0, 23  ;;  %5817 = vst [vmem:[%s7994_s30] sm:$0xff] %v5816_v61   ;;  %v3975_v10 = vadd.s32 1, %v8000_v19  ;;  %v4229_v34 = vand.u32 2147483647, %v7954_v54 }
 0x24d   : > { %v4100_v31 = vor.u32 4788187, %v4099_v30  ;;  %v4110_v58 = vsel %vm8005_vm13, 0, %v4108_v45  ;;  %v4103_v5 = vcvt.s32.f32 %v4096_v42  ;;  %v3972_v47 = vmul.u32 %v7951_v32, %v3956_v48  ;;  %v9337_v30 = vld [vmem:[#allocation20_spill] sm:$0xff]  ;;  %v8068_v48 = vpop.f32.mrb[131].mxu0 }
 0x24e   : > { %v5765_v14 = vadd.s32 4294967169, %v4233_v39  ;;  %v3139_v49 = vrot.slane %v7686_v63, 1  ;;  %v4114_v15 = vadd.s32 3, %v4110_v58  ;;  %v3976_v24 = vsel %vm3974_vm14, %v3975_v10, %v8000_v19 }
 0x24f   : > { %v4101_v23 = vand.u32 2147483647, %v4100_v31  ;;  %v3138_v57 = vrot.slane %v7671_v52, 1  ;;  %v3977_v17 = vadd.s32 %v3976_v24, %v3972_v47  ;;  %v3524_v59 = vrot.slane %v7673_v18, 2  ;;  %v9336_v18 = vld [vmem:[#allocation3_spill] sm:$0xff] }
 0x250   : > { %v4239_v45 = vadd.s32 1, %v5765_v14  ;;  %v3525_v38 = vrot.slane %v7688_v13, 2  ;;  %v4236_v35 = vand.u32 8388607, %v4229_v34  ;;  %v8029_v25 = vand.u32 3, %v4114_v15 }
 0x251   : > { %v4104_v16 = vmul.f32 %v4103_v5, %v4101_v23  ;;  %v3172_v32 = vsel %vm954_vm0, %v3138_v57, %v3139_v49  ;;  %v3978_v12 = vadd.s32 536870912, %v3977_v17  ;;  %v8046_v20 = vadd.s32 %v7999_v33, %v7986_v50 }
 0x252   : > { %vm4240_vm15 = vcmp.gt.s32.totalorder %v4239_v45, 0  ;;  %v8036_v13 = vadd.f32 %v3172_v32, %v9336_v18  ;;  %v8040_v11 = vsel %vm1341_vm1, %v3524_v59, %v3525_v38  ;;  %v4237_v3 = vor.u32 8388608, %v4236_v35  ;;  %v8086_v38 = vpop.f32.mrb[132].mxu1  ;;  %v8088_v35 = vpop.f32.mrb[132].mxu0 }
 0x253   : > { %v4105_v63 = vxor.u32 2147483648, %v4104_v16  ;;  %v4241_v37 = vsel %vm4240_vm15, %v4239_v45, 0  ;;  %v8033_v9 = vshrl.u32 %v3978_v12, 30  ;;  %v8050_v46 = vadd.f32 %v7610_v41, %v3614_v44 }
 0x254   : > { %v4243_v2 = vand.u32 31, %v4241_v37  ;;  %v4242_v1 = vshrl.u32 %v4241_v37, 5  ;;  %vm3919_vm2 = vcmp.lt.s32.totalorder %v7806_v21, 0  ;;  %v8063_v42 = vshll.u32 %v4237_v3, 8 }
 0x255   : > { %v4106_v52 = vsel %vm4023_vm4, %v4105_v63, %v4104_v16  ;;  %v3980_v51 = vshll.u32 %v8033_v9, 30  ;;  %v3136_v8 = vrot.slane %v9337_v30, 1  ;;  %v4125_v5 = vand.u32 2147483647, %v8050_v46 }
 0x256   : > { %v4109_v36 = vsel %vm8005_vm13, %v7647_v4, %v4106_v52  ;;  %v4244_v40 = vsub.s32 32, %v4243_v2  ;;  %v4246_v28 = vshll.u32 %v9308_v43, %v4243_v2  ;;  %v4249_v33 = vshll.u32 %v9309_v7, %v4243_v2  ;;  %v8096_v52 = vpop.f32.mrb[133].mxu0 }
 0x257   : > { %6717 = vcosq.f32 %v4109_v36  ;;  %v8056_v50 = vsub.s32 %v3977_v17, %v3980_v51  ;;  %v4252_v19 = vshll.u32 %v9310_v55, %v4243_v2  ;;  %v4255_v41 = vshll.u32 %v9311_v56, %v4243_v2 }
 0x258   : > { %6719 = vsinq.f32 %v4109_v36  ;;  %v4247_v60 = vshrl.u32 %v9309_v7, %v4244_v40  ;;  %v4250_v22 = vshrl.u32 %v9310_v55, %v4244_v40  ;;  %v4253_v0 = vshrl.u32 %v9311_v56, %v4244_v40 }
 0x259   : > { %v4256_v61 = vshrl.u32 %v9312_v53, %v4244_v40  ;;  %v3983_v39 = vsub.s32 0, %v8056_v50  ;;  %v4258_v14 = vshll.u32 %v9312_v53, %v4243_v2  ;;  %v4259_v23 = vshrl.u32 %v9313_v62, %v4244_v40  ;;  %v8094_v2 = vpop.f32.mrb[133].mxu1 }
 0x25a   : > { %v4248_v31 = vor.u32 %v4247_v60, %v4246_v28  ;;  %v4251_v58 = vor.u32 %v4250_v22, %v4249_v33  ;;  %v4254_v44 = vor.u32 %v4253_v0, %v4252_v19  ;;  %vm8076_vm4 = vcmp.le.f32.partialorder %v3917_v26, 0.7853982 }
 0x25b   : > { %v4257_v10 = vor.u32 %v4256_v61, %v4255_v41  ;;  %v5754_v49 = vmin.u32 %v3983_v39, %v8056_v50  ;;  %v4245_v15 = vshrl.u32 %v9308_v43, %v4244_v40  ;;  %vm4264_vm3 = vcmp.lt.s32.totalorder %v4242_v1, 4 }
 0x25c   : > { %v4128_v24 = vand.u32 2139095040, %v8050_v46  ;;  %v4003_v45 = vsub.s32 4, %v8033_v9  ;;  %v4260_v57 = vor.u32 %v4259_v23, %v4258_v14  ;;  %vm4261_vm5 = vcmp.lt.s32.totalorder %v4242_v1, 1 }
 0x25d   : > { %v4266_v16 = vsel %vm4264_vm3, %v4254_v44, 2102212464  ;;  %vm4120_vm6 = vcmp.eq.s32.totalorder %v8029_v25, 2  ;;  %v3985_v17 = vclz %v5754_v49  ;;  %vm4263_vm7 = vcmp.lt.s32.totalorder %v4242_v1, 3 }
 0x25e   : > { %v4265_v26 = vsel %vm4261_vm5, %v4245_v15, %v4248_v31  ;;  %v4269_v59 = vsel %vm4261_vm5, %v4248_v31, %v4251_v58  ;;  %vm4117_vm8 = vcmp.eq.s32.totalorder %v8029_v25, 0  ;;  %v4267_v32 = vsel %vm4263_vm7, %v4251_v58, %v4266_v16 }
 0x25f   : > { %v4270_v63 = vsel %vm4264_vm3, %v4257_v10, 920167782  ;;  %v4273_v12 = vsel %vm4261_vm5, %v4251_v58, %v4254_v44  ;;  %v4274_v37 = vsel %vm4264_vm3, %v4260_v57, 1326507024  ;;  %v5755_v36 = vadd.s32 4294967294, %v3985_v17 }
 0x260   : > { %vm4262_vm9 = vcmp.lt.s32.totalorder %v4242_v1, 2  ;;  %v4271_v3 = vsel %vm4263_vm7, %v4254_v44, %v4270_v63  ;;  %v4275_v40 = vsel %vm4263_vm7, %v4257_v10, %v4274_v37  ;;  %v4004_v28 = vsel %vm3919_vm2, %v4003_v45, %v8033_v9  ;;  %v9340_v9 = vld [vmem:[#allocation22_spill] sm:$0xff] }
 0x261   : > { %v6718_v18 = vpop.eup %6717  ;;  %v4272_v60 = vsel %vm4262_vm9, %v4269_v59, %v4271_v3  ;;  %v4276_v22 = vsel %vm4262_vm9, %v4273_v12, %v4275_v40  ;;  %v4129_v33 = vshrl.u32 %v4128_v24, 23  ;;  %vm5756_vm10 = vcmp.lt.s32.totalorder %v5755_v36, 0  ;;  %v9341_v12 = vld [vmem:[#allocation5_spill] sm:$0xff] }
 0x262   : > { %v6720_v51 = vpop.eup %6719  ;;  %v4268_v19 = vsel %vm4262_vm9, %v4265_v26, %v4267_v32  ;;  %v8104_v0 = vmul.u32.u64.low %v8063_v42, %v4276_v22  ;;  %v8105_v41 = vmul.u32.u64.high %v8063_v42, %v4276_v22, %v8104_v0  ;;  %v4121_v61 = vxor.u32 2147483648, %v6718_v18 }
 0x263   : > { %v3988_v39 = vsel %vm5756_vm10, 0, %v5755_v36  ;;  %v8108_v31 = vmul.u32.u64.low %v8063_v42, %v4272_v60  ;;  %v8109_v1 = vmul.u32.u64.high %v8063_v42, %v4272_v60, %v8108_v31  ;;  %v4118_v58 = vxor.u32 2147483648, %v6720_v51 }
 0x264   : > { %v3989_v44 = vsub.s32 32, %v3988_v39  ;;  %v3993_v10 = vsub.s32 4294967266, %v3988_v39  ;;  %v3137_v14 = vrot.slane %v9340_v9, 1  ;;  %v4006_v23 = vsel %vm8076_vm4, 0, %v4004_v28 }
 0x265   : > { %v5761_v49 = vadd.s32 4294967169, %v4129_v33  ;;  %v4132_v15 = vand.u32 8388607, %v4125_v5  ;;  %v3620_v24 = vadd.f32 %v8040_v11, %v8036_v13  ;;  %v3990_v45 = vshll.u32 %v8056_v50, %v3988_v39 }
 0x266   : > { %v3991_v57 = vshrl.u32 %v8046_v20, %v3989_v44  ;;  %v3994_v16 = vadd.s32 127, %v3993_v10  ;;  %v4284_v17 = vmul.u32 %v8063_v42, %v4268_v19  ;;  %v4122_v26 = vsel %vm4120_vm6, %v4121_v61, %v6720_v51  ;;  %v9342_v19 = vld [vmem:[#allocation21_spill] sm:$0xff] }
 0x267   : > { %vm4286_vm11 = vc.u32 %v8105_v41, %v8108_v31  ;;  %v4287_v59 = vadd.s32 1, %v8109_v1  ;;  %v4135_v32 = vadd.s32 1, %v5761_v49  ;;  %v4119_v63 = vsel %vm4117_vm8, %v6718_v18, %v4118_v58 }
 0x268   : > { %v3992_v13 = vor.u32 %v3991_v57, %v3990_v45  ;;  %v3995_v11 = vshll.u32 %v3994_v16, 23  ;;  %v3174_v20 = vsel %vm954_vm0, %v3136_v8, %v3137_v14  ;;  %v4010_v50 = vadd.s32 3, %v4006_v23 }
 0x269   : > { %v4288_v42 = vsel %vm4286_vm11, %v4287_v59, %v8109_v1  ;;  %vm4136_vm12 = vcmp.gt.s32.totalorder %v4135_v32, 0  ;;  %v8135_v37 = vadd.f32 %v3174_v20, %v9341_v12  ;;  %vm4116_vm13 = vcmp.lt.s32.totalorder %v8029_v25, 2  ;;  %v8170_v12 = vld [vmem:[%s9265_s3] ss:$0 sm:$0xff] }
 0x26a   : > { %v3996_v36 = vor.u32 4788187, %v3995_v11  ;;  %v4289_v3 = vadd.s32 %v4288_v42, %v4284_v17  ;;  %v4137_v40 = vsel %vm4136_vm12, %v4135_v32, 0  ;;  %v4123_v18 = vsel %vm4116_vm13, %v4119_v63, %v4122_v26 }
 0x26b   : > { %v4139_v51 = vand.u32 31, %v4137_v40  ;;  %vm4113_vm14 = vweird.f32 %v7647_v4  ;;  %v3999_v28 = vcvt.s32.f32 %v3992_v13  ;;  %v8139_v8 = vand.u32 3, %v4010_v50 }
 0x26c   : > { %v3997_v30 = vand.u32 2147483647, %v3996_v36  ;;  %v4290_v60 = vadd.s32 536870912, %v4289_v3  ;;  %v4133_v22 = vor.u32 8388608, %v4132_v15  ;;  %v3522_v0 = vrot.slane %v9342_v19, 2 }
 0x26d   : > { %v4140_v33 = vsub.s32 32, %v4139_v51  ;;  %v8142_v61 = vsel %vm4113_vm14, nan, %v4123_v18  ;;  %v8144_v1 = vshrl.u32 %v4137_v40, 5  ;;  %v4142_v58 = vshll.u32 %v9308_v43, %v4139_v51  ;;  %v9345_v40 = vld [vmem:[#allocation23_spill] sm:$0xff] }
 0x26e   : > { %v4000_v39 = vmul.f32 %v3999_v28, %v3997_v30  ;;  %v4291_v25 = vshrl.u32 %v4290_v60, 30  ;;  %v4148_v23 = vshll.u32 %v9310_v55, %v4139_v51  ;;  %vm4231_vm15 = vcmp.lt.s32.totalorder %v7954_v54, 0  ;;  %v8186_v30 = vpop.f32.mrb[134].mxu0 }
 0x26f   : > { %v4143_v44 = vshrl.u32 %v9309_v7, %v4140_v33  ;;  %v4146_v4 = vshrl.u32 %v9310_v55, %v4140_v33  ;;  %v4149_v10 = vshrl.u32 %v9311_v56, %v4140_v33  ;;  %v4152_v49 = vshrl.u32 %v9312_v53, %v4140_v33 }
 0x270   : > { %v4001_v9 = vxor.u32 2147483648, %v4000_v39  ;;  %v4292_v14 = vshll.u32 %v4291_v25, 30  ;;  %v4145_v15 = vshll.u32 %v9309_v7, %v4139_v51  ;;  %v4151_v45 = vshll.u32 %v9311_v56, %v4139_v51 }
 0x271   : > { %v4154_v57 = vshll.u32 %v9312_v53, %v4139_v51  ;;  %v4155_v16 = vshrl.u32 %v9313_v62, %v4140_v33  ;;  %v4144_v59 = vor.u32 %v4143_v44, %v4142_v58  ;;  %v4150_v32 = vor.u32 %v4149_v10, %v4148_v23  ;;  %v8184_v51 = vpop.f32.mrb[134].mxu1 }
 0x272   : > { %v4002_v17 = vsel %vm3919_vm2, %v4001_v9, %v4000_v39  ;;  %v8159_v26 = vsub.s32 %v4289_v3, %v4292_v14  ;;  %v4147_v13 = vor.u32 %v4146_v4, %v4145_v15  ;;  %v4153_v11 = vor.u32 %v4152_v49, %v4151_v45  ;;  %v8190_v44 = vpop.f32.mrb[135].mxu1 }
 0x273   : > { %v4005_v63 = vsel %vm8076_vm4, %v7806_v21, %v4002_v17  ;;  %v4156_v20 = vor.u32 %v4155_v16, %v4154_v57  ;;  %v8165_v42 = vshll.u32 %v4133_v22, 8  ;;  %v8173_v36 = vadd.f32 %v8170_v12, %v3620_v24 }
 0x274   : > { %6721 = vcosq.f32 %v4005_v63  ;;  %v4295_v50 = vsub.s32 0, %v8159_v26  ;;  %vm8177_vm2 = vcmp.le.f32.partialorder %v4229_v34, 0.7853982  ;;  %v4141_v3 = vshrl.u32 %v9308_v43, %v4140_v33  ;;  %v8192_v33 = vpop.f32.mrb[135].mxu0 }
 0x275   : > { %6723 = vsinq.f32 %v4005_v63  ;;  %vm4160_vm4 = vcmp.lt.s32.totalorder %v8144_v1, 4  ;;  %v3523_v18 = vrot.slane %v9345_v40, 2  ;;  %v4315_v28 = vsub.s32 4, %v4291_v25 }
 0x276   : > { %v5766_v24 = vmin.u32 %v4295_v50, %v8159_v26  ;;  %vm4157_vm3 = vcmp.lt.s32.totalorder %v8144_v1, 1  ;;  %v4162_v60 = vsel %vm4160_vm4, %v4150_v32, 2102212464  ;;  %v4166_v22 = vsel %vm4160_vm4, %v4153_v11, 920167782 }
 0x277   : > { %v4165_v34 = vsel %vm4157_vm3, %v4144_v59, %v4147_v13  ;;  %v4169_v39 = vsel %vm4157_vm3, %v4147_v13, %v4150_v32  ;;  %v4170_v58 = vsel %vm4160_vm4, %v4156_v20, 1326507024  ;;  %vm4016_vm5 = vcmp.eq.s32.totalorder %v8139_v8, 2 }
 0x278   : > { %v4297_v4 = vclz %v5766_v24  ;;  %vm4158_vm6 = vcmp.lt.s32.totalorder %v8144_v1, 2  ;;  %vm4159_vm7 = vcmp.lt.s32.totalorder %v8144_v1, 3  ;;  %v4440_v10 = vand.u32 2139095040, %v8173_v36 }
 0x279   : > { %vm4013_vm8 = vcmp.eq.s32.totalorder %v8139_v8, 0  ;;  %v4161_v9 = vsel %vm4157_vm3, %v4141_v3, %v4144_v59  ;;  %v4163_v14 = vsel %vm4159_vm7, %v4147_v13, %v4162_v60  ;;  %v4167_v23 = vsel %vm4159_vm7, %v4150_v32, %v4166_v22 }
 0x27a   : > { %v4171_v49 = vsel %vm4159_vm7, %v4153_v11, %v4170_v58  ;;  %vm4012_vm9 = vcmp.lt.s32.totalorder %v8139_v8, 2  ;;  %v5767_v15 = vadd.s32 4294967294, %v4297_v4  ;;  %v4316_v45 = vsel %vm4231_vm15, %v4315_v28, %v4291_v25 }
 0x27b   : > { %v4168_v57 = vsel %vm4158_vm6, %v4165_v34, %v4167_v23  ;;  %v4172_v16 = vsel %vm4158_vm6, %v4169_v39, %v4171_v49  ;;  %v4164_v13 = vsel %vm4158_vm6, %v4161_v9, %v4163_v14  ;;  %v4441_v11 = vshrl.u32 %v4440_v10, 23 }
 0x27c   : > { %v8207_v17 = vmul.u32.u64.low %v8165_v42, %v4172_v16  ;;  %v8208_v63 = vmul.u32.u64.high %v8165_v42, %v4172_v16, %v8207_v17  ;;  %v8211_v59 = vmul.u32.u64.low %v8165_v42, %v4168_v57  ;;  %v8212_v32 = vmul.u32.u64.high %v8165_v42, %v4168_v57, %v8211_v59 }
 0x27d   : > { %vm5768_vm10 = vcmp.lt.s32.totalorder %v5767_v15, 0  ;;  %v3560_v25 = vsel %vm1341_vm1, %v3522_v0, %v3523_v18  ;;  %v4285_v20 = vadd.s32 %v8108_v31, %v8105_v41  ;;  %v4437_v3 = vand.u32 2147483647, %v8173_v36 }
 0x27e   : > { %v4300_v50 = vsel %vm5768_vm10, 0, %v5767_v15  ;;  %v3618_v40 = vadd.f32 %v3560_v25, %v8135_v37  ;;  %v6722_v24 = vpop.eup %6721  ;;  %v4318_v1 = vsel %vm8177_vm2, 0, %v4316_v45  ;;  %v5773_v34 = vadd.s32 4294967169, %v4441_v11 }
 0x27f   : > { %v4301_v28 = vsub.s32 32, %v4300_v50  ;;  %v4305_v60 = vsub.s32 4294967266, %v4300_v50  ;;  %v6724_v22 = vpop.eup %6723  ;;  %v4017_v19 = vxor.u32 2147483648, %v6722_v24  ;;  %v4180_v39 = vmul.u32 %v8165_v42, %v4164_v13 }
 0x280   : > { %vm4182_vm11 = vc.u32 %v8208_v63, %v8211_v59  ;;  %v4183_v41 = vadd.s32 1, %v8212_v32  ;;  %v4014_v31 = vxor.u32 2147483648, %v6724_v22  ;;  %v4302_v0 = vshll.u32 %v8159_v26, %v4300_v50 }
 0x281   : > { %v4303_v18 = vshrl.u32 %v4285_v20, %v4301_v28  ;;  %v4306_v37 = vadd.s32 127, %v4305_v60  ;;  %v4018_v58 = vsel %vm4016_vm5, %v4017_v19, %v6724_v22  ;;  %v4444_v10 = vand.u32 8388607, %v4437_v3 }
 0x282   : > { %v4184_v4 = vsel %vm4182_vm11, %v4183_v41, %v8212_v32  ;;  %v4447_v9 = vadd.s32 1, %v5773_v34  ;;  %v4015_v42 = vsel %vm4013_vm8, %v6722_v24, %v4014_v31  ;;  %vm4009_vm12 = vweird.f32 %v7806_v21  ;;  %v8242_v24 = vpop.f32.mrb[136].mxu1  ;;  %v8244_v21 = vpop.f32.mrb[136].mxu0 }
 0x283   : > { %v4304_v14 = vor.u32 %v4303_v18, %v4302_v0  ;;  %v4307_v23 = vshll.u32 %v4306_v37, 23  ;;  %v4185_v49 = vadd.s32 %v4184_v4, %v4180_v39  ;;  %v4019_v26 = vsel %vm4012_vm9, %v4015_v42, %v4018_v58  ;;  %v8246_v34 = vpop.f32.mrb[137].mxu1  ;;  %v8248_v22 = vpop.f32.mrb[137].mxu0 }
 0x284   : > { %vm4448_vm13 = vcmp.gt.s32.totalorder %v4447_v9, 0  ;;  %v4020_v15 = vsel %vm4009_vm12, nan, %v4019_v26  ;;  %v4322_v17 = vadd.s32 3, %v4318_v1  ;;  %v4445_v32 = vor.u32 8388608, %v4444_v10 }
 0x285   : > { %v4308_v45 = vor.u32 4788187, %v4307_v23  ;;  %v4186_v57 = vadd.s32 536870912, %v4185_v49  ;;  %v5821_v16 = vpack.c.bf16 %v8142_v61, %v4020_v15  ;;  %v4449_v13 = vsel %vm4448_vm13, %v4447_v9, 0 }
 0x286   : > { %v4311_v25 = vcvt.s32.f32 %v4304_v14  ;;  %v4451_v50 = vand.u32 31, %v4449_v13  ;;  %v8250_v61 = vand.u32 3, %v4322_v17  ;;  %vm4127_vm14 = vcmp.lt.s32.totalorder %v8050_v46, 0 }
 0x287   : > { %v4309_v11 = vand.u32 2147483647, %v4308_v45  ;;  %v4187_v20 = vshrl.u32 %v4186_v57, 30  ;;  %5853 = vst [vmem:[%s7994_s30 + $0x8] sm:$0xff] %v5821_v16   ;;  %v4181_v1 = vadd.s32 %v8211_v59, %v8208_v63  ;;  %v8255_v19 = vadd.f32 %v8170_v12, %v3618_v40 }
 0x288   : > { %v4452_v60 = vsub.s32 32, %v4451_v50  ;;  %v4454_v31 = vshll.u32 %v9308_v43, %v4451_v50  ;;  %v8260_v0 = vshll.u32 %v4445_v32, 8  ;;  %v4457_v37 = vshll.u32 %v9309_v7, %v4451_v50 }
 0x289   : > { %v4312_v8 = vmul.f32 %v4311_v25, %v4309_v11  ;;  %v4188_v28 = vshll.u32 %v4187_v20, 30  ;;  %v4460_v40 = vshll.u32 %v9310_v55, %v4451_v50  ;;  %v4211_v42 = vsub.s32 4, %v4187_v20 }
 0x28a   : > { %v4455_v18 = vshrl.u32 %v9309_v7, %v4452_v60  ;;  %v4458_v58 = vshrl.u32 %v9310_v55, %v4452_v60  ;;  %v4461_v4 = vshrl.u32 %v9311_v56, %v4452_v60  ;;  %v4464_v10 = vshrl.u32 %v9312_v53, %v4452_v60 }
 0x28b   : > { %v4313_v39 = vxor.u32 2147483648, %v4312_v8  ;;  %v8257_v41 = vsub.s32 %v4185_v49, %v4188_v28  ;;  %v4450_v14 = vshrl.u32 %v4449_v13, 5  ;;  %v4463_v23 = vshll.u32 %v9311_v56, %v4451_v50 }
 0x28c   : > { %v4456_v26 = vor.u32 %v4455_v18, %v4454_v31  ;;  %v4459_v15 = vor.u32 %v4458_v58, %v4457_v37  ;;  %v4462_v45 = vor.u32 %v4461_v4, %v4460_v40  ;;  %v4466_v16 = vshll.u32 %v9312_v53, %v4451_v50 }
 0x28d   : > { %v4314_v63 = vsel %vm4231_vm15, %v4313_v39, %v4312_v8  ;;  %v4191_v59 = vsub.s32 0, %v8257_v41  ;;  %v4465_v57 = vor.u32 %v4464_v10, %v4463_v23  ;;  %v4467_v17 = vshrl.u32 %v9313_v62, %v4452_v60 }
 0x28e   : > { %v4317_v9 = vsel %vm8177_vm2, %v7954_v54, %v4314_v63  ;;  %vm8280_vm15 = vcmp.le.f32.partialorder %v4125_v5, 0.7853982  ;;  %v9285_v13 = vand.u32 2147483647, %v8255_v19  ;;  %v4336_v11 = vand.u32 2139095040, %v8255_v19 }
 0x28f   : > { %v5762_v49 = vmin.u32 %v4191_v59, %v8257_v41  ;;  %6725 = vcosq.f32 %v4317_v9  ;;  %v4212_v25 = vsel %vm4127_vm14, %v4211_v42, %v4187_v20  ;;  %v4453_v8 = vshrl.u32 %v9308_v43, %v4452_v60 }
 0x290   : > { %6727 = vsinq.f32 %v4317_v9  ;;  %v4468_v50 = vor.u32 %v4467_v17, %v4466_v16  ;;  %vm4469_vm2 = vcmp.lt.s32.totalorder %v4450_v14, 1  ;;  %vm4471_vm4 = vcmp.lt.s32.totalorder %v4450_v14, 3 }
 0x291   : > { %v4193_v32 = vclz %v5762_v49  ;;  %vm4472_vm3 = vcmp.lt.s32.totalorder %v4450_v14, 4  ;;  %v4477_v39 = vsel %vm4469_vm2, %v4456_v26, %v4459_v15  ;;  %v4481_v18 = vsel %vm4469_vm2, %v4459_v15, %v4462_v45 }
 0x292   : > { %v4474_v5 = vsel %vm4472_vm3, %v4462_v45, 2102212464  ;;  %v4478_v31 = vsel %vm4472_vm3, %v4465_v57, 920167782  ;;  %v4482_v37 = vsel %vm4472_vm3, %v4468_v50, 1326507024  ;;  %v4473_v20 = vsel %vm4469_vm2, %v4453_v8, %v4456_v26 }
 0x293   : > { %v5763_v28 = vadd.s32 4294967294, %v4193_v32  ;;  %vm4470_vm6 = vcmp.lt.s32.totalorder %v4450_v14, 2  ;;  %v4479_v58 = vsel %vm4471_vm4, %v4462_v45, %v4478_v31  ;;  %v4483_v4 = vsel %vm4471_vm4, %v4465_v57, %v4482_v37  ;;  %v9348_v50 = vld [vmem:[#allocation24_spill] sm:$0xff] }
 0x294   : > { %v4480_v60 = vsel %vm4470_vm6, %v4477_v39, %v4479_v58  ;;  %v4484_v59 = vsel %vm4470_vm6, %v4481_v18, %v4483_v4  ;;  %v4475_v9 = vsel %vm4471_vm4, %v4459_v15, %v4474_v5  ;;  %v4337_v42 = vshrl.u32 %v4336_v11, 23  ;;  %v9349_v39 = vld [vmem:[#allocation25_spill] sm:$0xff] }
 0x295   : > { %vm5764_vm5 = vcmp.lt.s32.totalorder %v5763_v28, 0  ;;  %v8295_v23 = vmul.u32.u64.low %v8260_v0, %v4484_v59  ;;  %v8296_v49 = vmul.u32.u64.high %v8260_v0, %v4484_v59, %v8295_v23  ;;  %vm4325_vm7 = vcmp.eq.s32.totalorder %v8250_v61, 0 }
 0x296   : > { %v4196_v63 = vsel %vm5764_vm5, 0, %v5763_v28  ;;  %v8299_v16 = vmul.u32.u64.low %v8260_v0, %v4480_v60  ;;  %v8300_v45 = vmul.u32.u64.high %v8260_v0, %v4480_v60, %v8299_v16  ;;  %vm4328_vm8 = vcmp.eq.s32.totalorder %v8250_v61, 2 }
 0x297   : > { %v4197_v40 = vsub.s32 32, %v4196_v63  ;;  %v4201_v10 = vsub.s32 4294967266, %v4196_v63  ;;  %v4198_v26 = vshll.u32 %v8257_v41, %v4196_v63  ;;  %v5769_v32 = vadd.s32 4294967169, %v4337_v42 }
 0x298   : > { %v4214_v11 = vsel %vm8280_vm15, 0, %v4212_v25  ;;  %v4476_v8 = vsel %vm4470_vm6, %v4473_v20, %v4475_v9  ;;  %v3142_v28 = vrot.slane %v9348_v50, 1  ;;  %v3528_v5 = vrot.slane %v9349_v39, 2  ;;  %v9350_v25 = vld [vmem:[#allocation28_spill] sm:$0xff] }
 0x299   : > { %v4199_v57 = vshrl.u32 %v4181_v1, %v4197_v40  ;;  %v4202_v17 = vadd.s32 127, %v4201_v10  ;;  %v6726_v15 = vpop.eup %6725  ;;  %v8313_v58 = vand.u32 8388607, %v9285_v13  ;;  %v4343_v1 = vadd.s32 1, %v5769_v32 }
 0x29a   : > { %v6728_v31 = vpop.eup %6727  ;;  %vm4494_vm9 = vc.u32 %v8296_v49, %v8299_v16  ;;  %v4495_v41 = vadd.s32 1, %v8300_v45  ;;  %v3143_v14 = vrot.slane %v9350_v25, 1  ;;  %v3529_v4 = vrot.slane %v7860_v29, 2 }
 0x29b   : > { %v4200_v18 = vor.u32 %v4199_v57, %v4198_v26  ;;  %v4203_v37 = vshll.u32 %v4202_v17, 23  ;;  %v4218_v20 = vadd.s32 3, %v4214_v11  ;;  %v4492_v60 = vmul.u32 %v8260_v0, %v4476_v8  ;;  %v9351_v57 = vld [vmem:[#allocation26_spill] sm:$0xff]  ;;  %v9353_v8 = vld [vmem:[#allocation4_spill] sm:$0xff] }
 0x29c   : > { %vm4344_vm10 = vcmp.gt.s32.totalorder %v4343_v1, 0  ;;  %v4326_v59 = vxor.u32 2147483648, %v6728_v31  ;;  %v4329_v40 = vxor.u32 2147483648, %v6726_v15  ;;  %v4496_v10 = vsel %vm4494_vm9, %v4495_v41, %v8300_v45  ;;  %v9352_v11 = vld [vmem:[#allocation6_spill] sm:$0xff] }
 0x29d   : > { %v4204_v63 = vor.u32 4788187, %v4203_v37  ;;  %v4345_v9 = vsel %vm4344_vm10, %v4343_v1, 0  ;;  %vm4324_vm11 = vcmp.lt.s32.totalorder %v8250_v61, 2  ;;  %v4207_v23 = vcvt.s32.f32 %v4200_v18 }
 0x29e   : > { %v4497_v26 = vadd.s32 %v4496_v10, %v4492_v60  ;;  %v3140_v17 = vrot.slane %v9351_v57, 1  ;;  %v4347_v32 = vand.u32 31, %v4345_v9  ;;  %v8326_v29 = vsel %vm954_vm0, %v3142_v28, %v3143_v14 }
 0x29f   : > { %v4205_v42 = vand.u32 2147483647, %v4204_v63  ;;  %v8330_v0 = vsel %vm1341_vm1, %v3528_v5, %v3529_v4  ;;  %v8334_v45 = vadd.f32 %v9353_v8, %v9352_v11  ;;  %v8336_v39 = vand.u32 3, %v4218_v20 }
 0x2a0   : > { %v4498_v18 = vadd.s32 536870912, %v4497_v26  ;;  %v4341_v37 = vor.u32 8388608, %v8313_v58  ;;  %v4327_v1 = vsel %vm4325_vm7, %v6726_v15, %v4326_v59  ;;  %v4330_v28 = vsel %vm4328_vm8, %v4329_v40, %v6728_v31 }
 0x2a1   : > { %v4208_v50 = vmul.f32 %v4207_v23, %v4205_v42  ;;  %v8343_v41 = vshrl.u32 %v4345_v9, 5  ;;  %v4348_v5 = vsub.s32 32, %v4347_v32  ;;  %v4350_v4 = vshll.u32 %v9308_v43, %v4347_v32 }
 0x2a2   : > { %v8345_v14 = vshrl.u32 %v4498_v18, 30  ;;  %v4353_v63 = vshll.u32 %v9309_v7, %v4347_v32  ;;  %v4356_v60 = vshll.u32 %v9310_v55, %v4347_v32  ;;  %v4359_v40 = vshll.u32 %v9311_v56, %v4347_v32 }
 0x2a3   : > { %v4209_v25 = vxor.u32 2147483648, %v4208_v50  ;;  %v4351_v20 = vshrl.u32 %v9309_v7, %v4348_v5  ;;  %v4354_v58 = vshrl.u32 %v9310_v55, %v4348_v5  ;;  %v4357_v15 = vshrl.u32 %v9311_v56, %v4348_v5 }
 0x2a4   : > { %v4500_v59 = vshll.u32 %v8345_v14, 30  ;;  %v4360_v10 = vshrl.u32 %v9312_v53, %v4348_v5  ;;  %vm4321_vm12 = vweird.f32 %v7954_v54  ;;  %v4331_v13 = vsel %vm4324_vm11, %v4327_v1, %v4330_v28 }
 0x2a5   : > { %v4210_v31 = vsel %vm4127_vm14, %v4209_v25, %v4208_v50  ;;  %v4352_v42 = vor.u32 %v4351_v20, %v4350_v4  ;;  %v4355_v23 = vor.u32 %v4354_v58, %v4353_v63  ;;  %v4358_v11 = vor.u32 %v4357_v15, %v4356_v60  ;;  %v9354_v50 = vld [vmem:[#allocation27_spill] sm:$0xff] }
 0x2a6   : > { %v4213_v9 = vsel %vm8280_vm15, %v8050_v46, %v4210_v31  ;;  %v8362_v8 = vsub.s32 %v4497_v26, %v4500_v59  ;;  %v4361_v18 = vor.u32 %v4360_v10, %v4359_v40  ;;  %v3526_v25 = vrot.slane %v9354_v50, 2  ;;  %v9361_v50 = vld [vmem:[#allocation8_spill] sm:$0xff] }
 0x2a7   : > { %6729 = vcosq.f32 %v4213_v9  ;;  %vm4439_vm13 = vcmp.lt.s32.totalorder %v8173_v36, 0  ;;  %v4362_v47 = vshll.u32 %v9312_v53, %v4347_v32  ;;  %v4363_v4 = vshrl.u32 %v9313_v62, %v4348_v5 }
 0x2a8   : > { %6731 = vsinq.f32 %v4213_v9  ;;  %v4503_v63 = vsub.s32 0, %v8362_v8  ;;  %vm4365_vm14 = vcmp.lt.s32.totalorder %v8343_v41, 1  ;;  %vm4367_vm15 = vcmp.lt.s32.totalorder %v8343_v41, 3 }
 0x2a9   : > { %vm4368_vm2 = vcmp.lt.s32.totalorder %v8343_v41, 4  ;;  %v4364_v26 = vor.u32 %v4363_v4, %v4362_v47  ;;  %v4373_v61 = vsel %vm4365_vm14, %v4352_v42, %v4355_v23  ;;  %vm4224_vm4 = vcmp.eq.s32.totalorder %v8336_v39, 2 }
 0x2aa   : > { %v4370_v20 = vsel %vm4368_vm2, %v4358_v11, 2102212464  ;;  %v4374_v1 = vsel %vm4368_vm2, %v4361_v18, 920167782  ;;  %v5774_v32 = vmin.u32 %v4503_v63, %v8362_v8  ;;  %v4349_v28 = vshrl.u32 %v9308_v43, %v4348_v5  ;;  %v8402_v63 = vpop.f32.mrb[138].mxu1 }
 0x2ab   : > { %vm4366_vm3 = vcmp.lt.s32.totalorder %v8343_v41, 2  ;;  %v4375_v58 = vsel %vm4367_vm15, %v4358_v11, %v4374_v1  ;;  %vm4221_vm5 = vcmp.eq.s32.totalorder %v8336_v39, 0  ;;  %v4377_v15 = vsel %vm4365_vm14, %v4355_v23, %v4358_v11 }
 0x2ac   : > { %v4376_v60 = vsel %vm4366_vm3, %v4373_v61, %v4375_v58  ;;  %v4378_v31 = vsel %vm4368_vm2, %v4364_v26, 1326507024  ;;  %v4381_v59 = vshll.u32 %v4341_v37, 8  ;;  %vm4220_vm6 = vcmp.lt.s32.totalorder %v8336_v39, 2  ;;  %v8404_v26 = vpop.f32.mrb[138].mxu0 }
 0x2ad   : > { %v4505_v40 = vclz %v5774_v32  ;;  %v4523_v5 = vsub.s32 4, %v8345_v14  ;;  %v4369_v10 = vsel %vm4365_vm14, %v4349_v28, %v4352_v42  ;;  %v4371_v9 = vsel %vm4367_vm15, %v4355_v23, %v4370_v20  ;;  %v9355_v20 = vld [vmem:[#allocation17_spill] sm:$0xff] }
 0x2ae   : > { %vm4217_vm7 = vweird.f32 %v8050_v46  ;;  %v4493_v47 = vadd.s32 %v8299_v16, %v8296_v49  ;;  %v4379_v11 = vsel %vm4367_vm15, %v4361_v18, %v4378_v31  ;;  %v3238_v61 = vadd.f32 %v8326_v29, %v9355_v20 }
 0x2af   : > { %v8398_v37 = vmul.u32.u64.low %v4381_v59, %v4376_v60  ;;  %v8399_v4 = vmul.u32.u64.high %v4381_v59, %v4376_v60, %v8398_v37  ;;  %v5775_v42 = vadd.s32 4294967294, %v4505_v40  ;;  %v4380_v23 = vsel %vm4366_vm3, %v4377_v15, %v4379_v11 }
 0x2b0   : > { %v3141_v49 = vrot.slane %v8066_v6, 1  ;;  %v4332_v16 = vsel %vm4321_vm12, nan, %v4331_v13  ;;  %v4372_v18 = vsel %vm4366_vm3, %v4369_v10, %v4371_v9  ;;  %v4524_v58 = vsel %vm4439_vm13, %v4523_v5, %v8345_v14 }
 0x2b1   : > { %v8415_v1 = vmul.u32.u64.low %v4381_v59, %v4380_v23  ;;  %v8416_v32 = vmul.u32.u64.high %v4381_v59, %v4380_v23, %v8415_v1  ;;  %v6730_v28 = vpop.eup %6729  ;;  %vm5776_vm8 = vcmp.lt.s32.totalorder %v5775_v42, 0  ;;  %v3624_v60 = vadd.f32 %v8330_v0, %v3238_v61 }
 0x2b2   : > { %v3170_v54 = vsel %vm954_vm0, %v3140_v17, %v3141_v49  ;;  %v6732_v6 = vpop.eup %6731  ;;  %v4225_v13 = vxor.u32 2147483648, %v6730_v28  ;;  %v4508_v29 = vsel %vm5776_vm8, 0, %v5775_v42  ;;  %v4391_v41 = vadd.s32 1, %v8399_v4 }
 0x2b3   : > { %v3236_v15 = vadd.f32 %v3170_v54, %v8334_v45  ;;  %v4222_v31 = vxor.u32 2147483648, %v6732_v6  ;;  %v4509_v40 = vsub.s32 32, %v4508_v29  ;;  %v4513_v10 = vsub.s32 4294967266, %v4508_v29 }
 0x2b4   : > { %v4388_v9 = vmul.u32 %v4381_v59, %v4372_v18  ;;  %v4226_v14 = vsel %vm4224_vm4, %v4225_v13, %v6732_v6  ;;  %v4510_v0 = vshll.u32 %v8362_v8, %v4508_v29  ;;  %vm4390_vm9 = vc.u32 %v8416_v32, %v8398_v37 }
 0x2b5   : > { %v8434_v57 = vadd.f32 %v8170_v12, %v3624_v60  ;;  %v4223_v17 = vsel %vm4221_vm5, %v6730_v28, %v4222_v31  ;;  %v4511_v5 = vshrl.u32 %v4493_v47, %v4509_v40  ;;  %v4514_v45 = vadd.s32 127, %v4513_v10  ;;  %v9359_v31 = vld [vmem:[#allocation7_spill] sm:$0xff] }
 0x2b6   : > { %v4392_v11 = vsel %vm4390_vm9, %v4391_v41, %v8399_v4  ;;  %v4227_v59 = vsel %vm4220_vm6, %v4223_v17, %v4226_v14  ;;  %v3527_v23 = vrot.slane %v8068_v48, 2  ;;  %vm8448_vm10 = vcmp.le.f32.partialorder %v4437_v3, 0.7853982  ;;  %v9358_v41 = vld [vmem:[#allocation9_spill] sm:$0xff]  ;;  %v9360_v17 = vld [vmem:[#allocation10_spill] sm:$0xff] }
 0x2b7   : > { %v4393_v42 = vadd.s32 %v4392_v11, %v4388_v9  ;;  %v9286_v8 = vand.u32 2147483647, %v8434_v57  ;;  %v4228_v20 = vsel %vm4217_vm7, nan, %v4227_v59  ;;  %v4512_v61 = vor.u32 %v4511_v5, %v4510_v0 }
 0x2b8   : > { %v4515_v49 = vshll.u32 %v4514_v45, 23  ;;  %v4648_v18 = vand.u32 2139095040, %v8434_v57  ;;  %v5826_v47 = vpack.c.bf16 %v4332_v16, %v4228_v20  ;;  %v4526_v48 = vsel %vm8448_vm10, 0, %v4524_v58 }
 0x2b9   : > { %v4394_v1 = vadd.s32 536870912, %v4393_v42  ;;  %v4652_v60 = vand.u32 8388607, %v9286_v8  ;;  %v3556_v16 = vsel %vm1341_vm1, %v3526_v25, %v3527_v23  ;;  %v4519_v3 = vcvt.s32.f32 %v4512_v61 }
 0x2ba   : > { %v4516_v39 = vor.u32 4788187, %v4515_v49  ;;  %v4649_v28 = vshrl.u32 %v4648_v18, 23  ;;  %5854 = vst [vmem:[%s7994_s30 + $0x10] sm:$0xff] %v5826_v47   ;;  %v3622_v13 = vadd.f32 %v3556_v16, %v3236_v15  ;;  %v8463_v40 = vadd.f32 %v9359_v31, %v9358_v41 }
 0x2bb   : > { %v4395_v46 = vshrl.u32 %v4394_v1, 30  ;;  %v4530_v58 = vadd.s32 3, %v4526_v48  ;;  %v8469_v5 = vadd.f32 %v9361_v50, %v9360_v17  ;;  %v4653_v45 = vor.u32 8388608, %v4652_v60  ;;  %v8511_v17 = vpop.f32.mrb[139].mxu1  ;;  %v8513_v50 = vpop.f32.mrb[139].mxu0 }
 0x2bc   : > { %v4517_v54 = vand.u32 2147483647, %v4516_v39  ;;  %v5781_v6 = vadd.s32 4294967169, %v4649_v28  ;;  %v9362_v15 = vand.u32 2147483647, %v8255_v19  ;;  %vm4335_vm14 = vcmp.lt.s32.totalorder %v8255_v19, 0 }
 0x2bd   : > { %v4396_v29 = vshll.u32 %v4395_v46, 30  ;;  %v4419_v9 = vsub.s32 4, %v4395_v46  ;;  %v8481_v20 = vand.u32 3, %v4530_v58  ;;  %v4389_v18 = vadd.s32 %v8398_v37, %v8416_v32 }
 0x2be   : > { %v4520_v10 = vmul.f32 %v4519_v3, %v4517_v54  ;;  %v4655_v14 = vadd.s32 1, %v5781_v6  ;;  %vm8473_vm12 = vcmp.le.f32.partialorder %v9362_v15, 0.7853982  ;;  %v3146_v1 = vrot.slane %v8086_v38, 1 }
 0x2bf   : > { %v8465_v0 = vsub.s32 %v4393_v42, %v4396_v29  ;;  %v4420_v61 = vsel %vm4335_vm14, %v4419_v9, %v4395_v46  ;;  %v3532_v39 = vrot.slane %v8088_v35, 2  ;;  %v8493_v60 = vshll.u32 %v4653_v45, 8 }
 0x2c0   : > { %v4521_v25 = vxor.u32 2147483648, %v4520_v10  ;;  %vm4656_vm11 = vcmp.gt.s32.totalorder %v4655_v14, 0  ;;  %v8496_v16 = vadd.f32 %v8170_v12, %v3622_v13  ;;  %v4422_v37 = vsel %vm8473_vm12, 0, %v4420_v61 }
 0x2c1   : > { %v4399_v59 = vsub.s32 0, %v8465_v0  ;;  %v4657_v23 = vsel %vm4656_vm11, %v4655_v14, 0  ;;  %v3147_v54 = vrot.slane %v8184_v51, 1  ;;  %vm4536_vm5 = vcmp.eq.s32.totalorder %v8481_v20, 2 }
 0x2c2   : > { %v4522_v42 = vsel %vm4439_vm13, %v4521_v25, %v4520_v10  ;;  %v4659_v49 = vand.u32 31, %v4657_v23  ;;  %v8500_v32 = vshrl.u32 %v4657_v23, 5  ;;  %vm4533_vm8 = vcmp.eq.s32.totalorder %v8481_v20, 0 }
 0x2c3   : > { %v5770_v47 = vmin.u32 %v4399_v59, %v8465_v0  ;;  %v4525_v28 = vsel %vm8448_vm10, %v8173_v36, %v4522_v42  ;;  %v4544_v42 = vand.u32 2139095040, %v8496_v16  ;;  %vm4532_vm9 = vcmp.lt.s32.totalorder %v8481_v20, 2 }
 0x2c4   : > { %v4660_v48 = vsub.s32 32, %v4659_v49  ;;  %v4662_v3 = vshll.u32 %v9308_v43, %v4659_v49  ;;  %v4665_v4 = vshll.u32 %v9309_v7, %v4659_v49  ;;  %6733 = vcosq.f32 %v4525_v28 }
 0x2c5   : > { %v4401_v46 = vclz %v5770_v47  ;;  %v4668_v13 = vshll.u32 %v9310_v55, %v4659_v49  ;;  %v4671_v9 = vshll.u32 %v9311_v56, %v4659_v49  ;;  %v4674_v45 = vshll.u32 %v9312_v53, %v4659_v49 }
 0x2c6   : > { %v4663_v6 = vshrl.u32 %v9309_v7, %v4660_v48  ;;  %v4666_v29 = vshrl.u32 %v9310_v55, %v4660_v48  ;;  %v4669_v31 = vshrl.u32 %v9311_v56, %v4660_v48  ;;  %v4672_v14 = vshrl.u32 %v9312_v53, %v4660_v48 }
 0x2c7   : > { %v5771_v41 = vadd.s32 4294967294, %v4401_v46  ;;  %v4675_v15 = vshrl.u32 %v9313_v62, %v4660_v48  ;;  %6735 = vsinq.f32 %v4525_v28  ;;  %vm4677_vm15 = vcmp.lt.s32.totalorder %v8500_v32, 1 }
 0x2c8   : > { %v4664_v10 = vor.u32 %v4663_v6, %v4662_v3  ;;  %v4667_v58 = vor.u32 %v4666_v29, %v4665_v4  ;;  %v4670_v25 = vor.u32 %v4669_v31, %v4668_v13  ;;  %v4673_v23 = vor.u32 %v4672_v14, %v4671_v9  ;;  %v8530_v14 = vpop.f32.mrb[140].mxu0 }
 0x2c9   : > { %vm5772_vm13 = vcmp.lt.s32.totalorder %v5771_v41, 0  ;;  %v4676_v46 = vor.u32 %v4675_v15, %v4674_v45  ;;  %vm4679_vm2 = vcmp.lt.s32.totalorder %v8500_v32, 3  ;;  %vm4680_vm4 = vcmp.lt.s32.totalorder %v8500_v32, 4 }
 0x2ca   : > { %v4404_v59 = vsel %vm5772_vm13, 0, %v5771_v41  ;;  %v4685_v49 = vsel %vm4677_vm15, %v4664_v10, %v4667_v58  ;;  %v4682_v4 = vsel %vm4680_vm4, %v4670_v25, 2102212464  ;;  %v4686_v29 = vsel %vm4680_vm4, %v4673_v23, 920167782  ;;  %v8524_v41 = vpop.f32.mrb[140].mxu1 }
 0x2cb   : > { %v4405_v61 = vsub.s32 32, %v4404_v59  ;;  %v4409_v47 = vsub.s32 4294967266, %v4404_v59  ;;  %v4406_v3 = vshll.u32 %v8465_v0, %v4404_v59  ;;  %v4687_v13 = vsel %vm4679_vm2, %v4670_v25, %v4686_v29  ;;  %v8532_v45 = vpop.f32.mrb[141].mxu1 }
 0x2cc   : > { %v4689_v31 = vsel %vm4677_vm15, %v4667_v58, %v4670_v25  ;;  %v4690_v0 = vsel %vm4680_vm4, %v4676_v46, 1326507024  ;;  %v4545_v9 = vshrl.u32 %v4544_v42, 23  ;;  %vm4678_vm3 = vcmp.lt.s32.totalorder %v8500_v32, 2 }
 0x2cd   : > { %v4407_v6 = vshrl.u32 %v4389_v18, %v4405_v61  ;;  %v4410_v28 = vadd.s32 127, %v4409_v47  ;;  %v4661_v18 = vshrl.u32 %v9308_v43, %v4660_v48  ;;  %v8536_v61 = vpop.f32.mrb[141].mxu0  ;;  %v4426_v47 = vadd.s32 3, %v4422_v37 }
 0x2ce   : > { %v4688_v29 = vsel %vm4678_vm3, %v4685_v49, %v4687_v13  ;;  %v4691_v25 = vsel %vm4679_vm2, %v4673_v23, %v4690_v0  ;;  %v3533_v42 = vrot.slane %v8186_v30, 2  ;;  %v8543_v46 = vpop.eup %6733  ;;  %v4683_v48 = vsel %vm4679_vm2, %v4667_v58, %v4682_v4 }
 0x2cf   : > { %v4408_v15 = vor.u32 %v4407_v6, %v4406_v3  ;;  %v4411_v59 = vshll.u32 %v4410_v28, 23  ;;  %v4681_v3 = vsel %vm4677_vm15, %v4661_v18, %v4664_v10  ;;  %v4692_v37 = vsel %vm4678_vm3, %v4689_v31, %v4691_v25 }
 0x2d0   : > { %v8552_v6 = vmul.u32.u64.low %v8493_v60, %v4692_v37  ;;  %v8553_v49 = vmul.u32.u64.high %v8493_v60, %v4692_v37, %v8552_v6  ;;  %v4541_v23 = vand.u32 2147483647, %v8496_v16  ;;  %v5777_v28 = vadd.s32 4294967169, %v4545_v9 }
 0x2d1   : > { %v4412_v8 = vor.u32 4788187, %v4411_v59  ;;  %v4415_v13 = vcvt.s32.f32 %v4408_v15  ;;  %v8557_v0 = vmul.u32.u64.low %v8493_v60, %v4688_v29  ;;  %v8558_v59 = vmul.u32.u64.high %v8493_v60, %v4688_v29, %v8557_v0  ;;  %v6736_v10 = vpop.eup %6735 }
 0x2d2   : > { %v8561_v18 = vand.u32 3, %v4426_v47  ;;  %v4684_v58 = vsel %vm4678_vm3, %v4681_v3, %v4683_v48  ;;  %v4551_v4 = vadd.s32 1, %v5777_v28  ;;  %v3144_v31 = vrot.slane %v8094_v2, 1 }
 0x2d3   : > { %v4413_v30 = vand.u32 2147483647, %v4412_v8  ;;  %v3164_v8 = vsel %vm954_vm0, %v3146_v1, %v3147_v54  ;;  %v3550_v9 = vsel %vm1341_vm1, %v3532_v39, %v3533_v42  ;;  %v3145_v15 = vrot.slane %v8190_v44, 1 }
 0x2d4   : > { %v4537_v32 = vxor.u32 2147483648, %v8543_v46  ;;  %vm4702_vm6 = vc.u32 %v8553_v49, %v8557_v0  ;;  %v4548_v38 = vand.u32 8388607, %v4541_v23  ;;  %vm4552_vm7 = vcmp.gt.s32.totalorder %v4551_v4, 0 }
 0x2d5   : > { %v4416_v25 = vmul.f32 %v4415_v13, %v4413_v30  ;;  %v4703_v35 = vadd.s32 1, %v8558_v59  ;;  %v4553_v51 = vsel %vm4552_vm7, %v4551_v4, 0  ;;  %v3242_v1 = vadd.f32 %v3164_v8, %v8463_v40 }
 0x2d6   : > { %v4534_v44 = vxor.u32 2147483648, %v6736_v10  ;;  %v4700_v39 = vmul.u32 %v8493_v60, %v4684_v58  ;;  %v4555_v54 = vand.u32 31, %v4553_v51  ;;  %v3166_v47 = vsel %vm954_vm0, %v3144_v31, %v3145_v15 }
 0x2d7   : > { %v4417_v2 = vxor.u32 2147483648, %v4416_v25  ;;  %v4704_v42 = vsel %vm4702_vm6, %v4703_v35, %v8558_v59  ;;  %v8592_v3 = vadd.f32 %v3550_v9, %v3242_v1  ;;  %v8595_v48 = vadd.f32 %v3166_v47, %v8469_v5 }
 0x2d8   : > { %v4705_v37 = vadd.s32 %v4704_v42, %v4700_v39  ;;  %v4549_v60 = vor.u32 8388608, %v4548_v38  ;;  %v4556_v6 = vsub.s32 32, %v4555_v54  ;;  %v8601_v28 = vshrl.u32 %v4553_v51, 5 }
 0x2d9   : > { %v4418_v29 = vsel %vm4335_vm14, %v4417_v2, %v4416_v25  ;;  %v4558_v30 = vshll.u32 %v9308_v43, %v4555_v54  ;;  %v4561_v13 = vshll.u32 %v9309_v7, %v4555_v54  ;;  %v4564_v58 = vshll.u32 %v9310_v55, %v4555_v54 }
 0x2da   : > { %v4421_v40 = vsel %vm8473_vm12, %v8255_v19, %v4418_v29  ;;  %v4706_v59 = vadd.s32 536870912, %v4705_v37  ;;  %v4559_v5 = vshrl.u32 %v9309_v7, %v4556_v6  ;;  %v4562_v11 = vshrl.u32 %v9310_v55, %v4556_v6 }
 0x2db   : > { %6737 = vcosq.f32 %v4421_v40  ;;  %v4565_v4 = vshrl.u32 %v9311_v56, %v4556_v6  ;;  %v4567_v31 = vshll.u32 %v9311_v56, %v4555_v54  ;;  %v4568_v25 = vshrl.u32 %v9312_v53, %v4556_v6 }
 0x2dc   : > { %6739 = vsinq.f32 %v4421_v40  ;;  %v4707_v8 = vshrl.u32 %v4706_v59, 30  ;;  %v4560_v9 = vor.u32 %v4559_v5, %v4558_v30  ;;  %v4570_v15 = vshll.u32 %v9312_v53, %v4555_v54 }
 0x2dd   : > { %v4571_v38 = vshrl.u32 %v9313_v62, %v4556_v6  ;;  %v4538_v2 = vsel %vm4536_vm5, %v4537_v32, %v6736_v10  ;;  %vm4432_vm10 = vcmp.eq.s32.totalorder %v8561_v18, 2  ;;  %v4563_v35 = vor.u32 %v4562_v11, %v4561_v13  ;;  %v8635_v13 = vpop.f32.mrb[142].mxu1 }
 0x2de   : > { %v4566_v51 = vor.u32 %v4565_v4, %v4564_v58  ;;  %v4569_v1 = vor.u32 %v4568_v25, %v4567_v31  ;;  %vm4529_vm11 = vweird.f32 %v8173_v36  ;;  %v4535_v39 = vsel %vm4533_vm8, %v8543_v46, %v4534_v44 }
 0x2df   : > { %v4708_v47 = vshll.u32 %v4707_v8, 30  ;;  %v4572_v29 = vor.u32 %v4571_v38, %v4570_v15  ;;  %vm4573_vm12 = vcmp.lt.s32.totalorder %v8601_v28, 1  ;;  %vm4647_vm14 = vcmp.lt.s32.totalorder %v8434_v57, 0 }
 0x2e0   : > { %v4557_v54 = vshrl.u32 %v9308_v43, %v4556_v6  ;;  %vm4576_vm13 = vcmp.lt.s32.totalorder %v8601_v28, 4  ;;  %v4581_v10 = vsel %vm4573_vm12, %v4560_v9, %v4563_v35  ;;  %v4589_v32 = vshll.u32 %v4549_v60, 8  ;;  %v8637_v60 = vpop.f32.mrb[142].mxu0 }
 0x2e1   : > { %vm4425_vm15 = vweird.f32 %v8255_v19  ;;  %v8627_v42 = vsub.s32 %v4705_v37, %v4708_v47  ;;  %vm4575_vm2 = vcmp.lt.s32.totalorder %v8601_v28, 3  ;;  %v4578_v46 = vsel %vm4576_vm13, %v4566_v51, 2102212464 }
 0x2e2   : > { %v4582_v44 = vsel %vm4576_vm13, %v4569_v1, 920167782  ;;  %vm4574_vm4 = vcmp.lt.s32.totalorder %v8601_v28, 2  ;;  %v4585_v6 = vsel %vm4573_vm12, %v4563_v35, %v4566_v51  ;;  %v4586_v30 = vsel %vm4576_vm13, %v4572_v29, 1326507024 }
 0x2e3   : > { %v4583_v40 = vsel %vm4575_vm2, %v4566_v51, %v4582_v44  ;;  %v4539_v37 = vsel %vm4532_vm9, %v4535_v39, %v4538_v2  ;;  %v4711_v59 = vsub.s32 0, %v8627_v42  ;;  %v4577_v5 = vsel %vm4573_vm12, %v4557_v54, %v4560_v9  ;;  %v8660_v9 = vpop.f32.mrb[143].mxu1  ;;  %v8662_v2 = vpop.f32.mrb[143].mxu0 }
 0x2e4   : > { %v4584_v58 = vsel %vm4574_vm4, %v4581_v10, %v4583_v40  ;;  %v9365_v4 = vand.u32 2147483647, %v8434_v57  ;;  %v4579_v25 = vsel %vm4575_vm2, %v4563_v35, %v4578_v46  ;;  %v4587_v20 = vsel %vm4575_vm2, %v4569_v1, %v4586_v30 }
 0x2e5   : > { %v6738_v11 = vpop.eup %6737  ;;  %v8656_v15 = vmul.u32.u64.low %v4589_v32, %v4584_v58  ;;  %v8657_v38 = vmul.u32.u64.high %v4589_v32, %v4584_v58, %v8656_v15  ;;  %v5782_v47 = vmin.u32 %v4711_v59, %v8627_v42  ;;  %v4731_v29 = vsub.s32 4, %v4707_v8 }
 0x2e6   : > { %vm8648_vm3 = vcmp.le.f32.partialorder %v9365_v4, 0.7853982  ;;  %v6740_v51 = vpop.eup %6739  ;;  %v4433_v39 = vxor.u32 2147483648, %v6738_v11  ;;  %v4588_v54 = vsel %vm4574_vm4, %v4585_v6, %v4587_v20  ;;  %v8672_v1 = vadd.f32 %v8170_v12, %v8592_v3 }
 0x2e7   : > { %v4430_v35 = vxor.u32 2147483648, %v6740_v51  ;;  %v8667_v10 = vmul.u32.u64.low %v4589_v32, %v4588_v54  ;;  %v8668_v46 = vmul.u32.u64.high %v4589_v32, %v4588_v54, %v8667_v10  ;;  %vm4429_vm5 = vcmp.eq.s32.totalorder %v8561_v18, 0 }
 0x2e8   : > { %v4434_v44 = vsel %vm4432_vm10, %v4433_v39, %v6740_v51  ;;  %v4713_v40 = vclz %v5782_v47  ;;  %v4580_v30 = vsel %vm4574_vm4, %v4577_v5, %v4579_v25  ;;  %v4540_v6 = vsel %vm4529_vm11, nan, %v4539_v37 }
 0x2e9   : > { %vm4428_vm6 = vcmp.lt.s32.totalorder %v8561_v18, 2  ;;  %v4431_v59 = vsel %vm4429_vm5, %v6738_v11, %v4430_v35  ;;  %v4599_v58 = vadd.s32 1, %v8657_v38  ;;  %v4732_v3 = vsel %vm4647_vm14, %v4731_v29, %v4707_v8 }
 0x2ea   : > { %v4435_v4 = vsel %vm4428_vm6, %v4431_v59, %v4434_v44  ;;  %v5783_v12 = vadd.s32 4294967294, %v4713_v40  ;;  %v4856_v20 = vand.u32 2139095040, %v8672_v1  ;;  %v4596_v5 = vmul.u32 %v4589_v32, %v4580_v30 }
 0x2eb   : > { %v4436_v28 = vsel %vm4425_vm15, nan, %v4435_v4  ;;  %vm4598_vm7 = vc.u32 %v8668_v46, %v8656_v15  ;;  %v4853_v36 = vand.u32 2147483647, %v8672_v1  ;;  %v4701_v25 = vadd.s32 %v8557_v0, %v8553_v49 }
 0x2ec   : > { %v5831_v18 = vpack.c.bf16 %v4540_v6, %v4436_v28  ;;  %vm5784_vm8 = vcmp.lt.s32.totalorder %v5783_v12, 0  ;;  %v4600_v37 = vsel %vm4598_vm7, %v4599_v58, %v8657_v38  ;;  %v4857_v11 = vshrl.u32 %v4856_v20, 23 }
 0x2ed   : > { %v4716_v8 = vsel %vm5784_vm8, 0, %v5783_v12  ;;  %v4601_v51 = vadd.s32 %v4600_v37, %v4596_v5  ;;  %v3530_v39 = vrot.slane %v8096_v52, 2  ;;  %v4734_v47 = vsel %vm8648_vm3, 0, %v4732_v3  ;;  %v9368_v5 = vld [vmem:[#allocation13_spill] sm:$0xff] }
 0x2ee   : > { %5855 = vst [vmem:[%s7994_s30 + $0x18] sm:$0xff] %v5831_v18   ;;  %v4717_v19 = vsub.s32 32, %v4716_v8  ;;  %v4721_v32 = vsub.s32 4294967266, %v4716_v8  ;;  %v5789_v29 = vadd.s32 4294967169, %v4857_v11  ;;  %v4860_v35 = vand.u32 8388607, %v4853_v36 }
 0x2ef   : > { %v4602_v54 = vadd.s32 536870912, %v4601_v51  ;;  %v3531_v38 = vrot.slane %v8192_v33, 2  ;;  %v4718_v10 = vshll.u32 %v8627_v42, %v4716_v8  ;;  %v4738_v40 = vadd.s32 3, %v4734_v47  ;;  %v9369_v18 = vld [vmem:[#allocation11_spill] sm:$0xff] }
 0x2f0   : > { %v4719_v49 = vshrl.u32 %v4701_v25, %v4717_v19  ;;  %v4722_v0 = vadd.s32 127, %v4721_v32  ;;  %v4863_v44 = vadd.s32 1, %v5789_v29  ;;  %v4861_v12 = vor.u32 8388608, %v4860_v35 }
 0x2f1   : > { %v4603_v52 = vshrl.u32 %v4602_v54, 30  ;;  %v3552_v30 = vsel %vm1341_vm1, %v3530_v39, %v3531_v38  ;;  %vm4543_vm10 = vcmp.lt.s32.totalorder %v8496_v16, 0  ;;  %v8710_v37 = vadd.f32 %v9369_v18, %v9368_v5 }
 0x2f2   : > { %v4720_v6 = vor.u32 %v4719_v49, %v4718_v10  ;;  %v4723_v59 = vshll.u32 %v4722_v0, 23  ;;  %vm4864_vm9 = vcmp.gt.s32.totalorder %v4863_v44, 0  ;;  %v3626_v58 = vadd.f32 %v3552_v30, %v8595_v48 }
 0x2f3   : > { %v4604_v4 = vshll.u32 %v4603_v52, 30  ;;  %v4865_v3 = vsel %vm4864_vm9, %v4863_v44, 0  ;;  %v4627_v33 = vsub.s32 4, %v4603_v52  ;;  %v8712_v8 = vand.u32 3, %v4738_v40 }
 0x2f4   : > { %v4724_v20 = vor.u32 4788187, %v4723_v59  ;;  %v4867_v28 = vand.u32 31, %v4865_v3  ;;  %v4727_v25 = vcvt.s32.f32 %v4720_v6  ;;  %v4597_v48 = vadd.s32 %v8656_v15, %v8668_v46  ;;  %v8736_v59 = vld [vmem:[%s9265_s3] ss:$0 sm:$0xff] }
 0x2f5   : > { %v8706_v42 = vsub.s32 %v4601_v51, %v4604_v4  ;;  %v4866_v32 = vshrl.u32 %v4865_v3, 5  ;;  %v8717_v47 = vshll.u32 %v4861_v12, 8  ;;  %v8721_v51 = vsel %vm4543_vm10, %v4627_v33, %v4603_v52 }
 0x2f6   : > { %v4725_v11 = vand.u32 2147483647, %v4724_v20  ;;  %v4868_v39 = vsub.s32 32, %v4867_v28  ;;  %v4870_v10 = vshll.u32 %v9308_v43, %v4867_v28  ;;  %v4873_v15 = vshll.u32 %v9309_v7, %v4867_v28 }
 0x2f7   : > { %v4607_v19 = vsub.s32 0, %v8706_v42  ;;  %v4876_v0 = vshll.u32 %v9310_v55, %v4867_v28  ;;  %v4879_v44 = vshll.u32 %v9311_v56, %v4867_v28  ;;  %v8739_v4 = vadd.f32 %v8736_v59, %v3626_v58 }
 0x2f8   : > { %v4728_v29 = vmul.f32 %v4727_v25, %v4725_v11  ;;  %v4871_v54 = vshrl.u32 %v9309_v7, %v4868_v39  ;;  %v4874_v35 = vshrl.u32 %v9310_v55, %v4868_v39  ;;  %v4877_v46 = vshrl.u32 %v9311_v56, %v4868_v39 }
 0x2f9   : > { %v5778_v38 = vmin.u32 %v4607_v19, %v8706_v42  ;;  %v4880_v40 = vshrl.u32 %v9312_v53, %v4868_v39  ;;  %v4869_v30 = vshrl.u32 %v9308_v43, %v4868_v39  ;;  %v4882_v11 = vshll.u32 %v9312_v53, %v4867_v28 }
 0x2fa   : > { %v4729_v49 = vxor.u32 2147483648, %v4728_v29  ;;  %v4872_v6 = vor.u32 %v4871_v54, %v4870_v10  ;;  %v4875_v3 = vor.u32 %v4874_v35, %v4873_v15  ;;  %v4878_v20 = vor.u32 %v4877_v46, %v4876_v0 }
 0x2fb   : > { %v4609_v52 = vclz %v5778_v38  ;;  %v4881_v33 = vor.u32 %v4880_v40, %v4879_v44  ;;  %v4883_v25 = vshrl.u32 %v9313_v62, %v4868_v39  ;;  %vm8750_vm11 = vcmp.le.f32.partialorder %v4541_v23, 0.7853982 }
 0x2fc   : > { %v4730_v12 = vsel %vm4647_vm14, %v4729_v49, %v4728_v29  ;;  %vm4885_vm12 = vcmp.lt.s32.totalorder %v4866_v32, 1  ;;  %vm4886_vm14 = vcmp.lt.s32.totalorder %v4866_v32, 2  ;;  %vm4887_vm13 = vcmp.lt.s32.totalorder %v4866_v32, 3 }
 0x2fd   : > { %v4733_v5 = vsel %vm8648_vm3, %v8434_v57, %v4730_v12  ;;  %v5779_v18 = vadd.s32 4294967294, %v4609_v52  ;;  %v4884_v19 = vor.u32 %v4883_v25, %v4882_v11  ;;  %vm4888_vm2 = vcmp.lt.s32.totalorder %v4866_v32, 4 }
 0x2fe   : > { %6741 = vcosq.f32 %v4733_v5  ;;  %v4890_v29 = vsel %vm4888_vm2, %v4878_v20, 2102212464  ;;  %v4893_v28 = vsel %vm4885_vm12, %v4872_v6, %v4875_v3  ;;  %v4894_v54 = vsel %vm4888_vm2, %v4881_v33, 920167782 }
 0x2ff   : > { %6743 = vsinq.f32 %v4733_v5  ;;  %vm5780_vm15 = vcmp.lt.s32.totalorder %v5779_v18, 0  ;;  %v4889_v38 = vsel %vm4885_vm12, %v4869_v30, %v4872_v6  ;;  %v4891_v23 = vsel %vm4887_vm13, %v4875_v3, %v4890_v29 }
 0x300   : > { %v4612_v31 = vsel %vm5780_vm15, 0, %v5779_v18  ;;  %v4895_v15 = vsel %vm4887_vm13, %v4878_v20, %v4894_v54  ;;  %v4897_v46 = vsel %vm4885_vm12, %v4875_v3, %v4878_v20  ;;  %v4898_v49 = vsel %vm4888_vm2, %v4884_v19, 1326507024 }
 0x301   : > { %v4613_v39 = vsub.s32 32, %v4612_v31  ;;  %v4617_v35 = vsub.s32 4294967266, %v4612_v31  ;;  %v4614_v10 = vshll.u32 %v8706_v42, %v4612_v31  ;;  %v4896_v40 = vsel %vm4886_vm14, %v4893_v28, %v4895_v15 }
 0x302   : > { %v4899_v52 = vsel %vm4887_vm13, %v4881_v33, %v4898_v49  ;;  %v4892_v12 = vsel %vm4886_vm14, %v4889_v38, %v4891_v23  ;;  %v8765_v30 = vmul.u32.u64.low %v8717_v47, %v4896_v40  ;;  %v8766_v6 = vmul.u32.u64.high %v8717_v47, %v4896_v40, %v8765_v30 }
 0x303   : > { %v4615_v0 = vshrl.u32 %v4597_v48, %v4613_v39  ;;  %v4618_v44 = vadd.s32 127, %v4617_v35  ;;  %v4900_v5 = vsel %vm4886_vm14, %v4897_v46, %v4899_v52  ;;  %vm4741_vm4 = vcmp.eq.s32.totalorder %v8712_v8, 0 }
 0x304   : > { %v8770_v3 = vmul.u32.u64.low %v8717_v47, %v4900_v5  ;;  %v8771_v20 = vmul.u32.u64.high %v8717_v47, %v4900_v5, %v8770_v3  ;;  %v4752_v48 = vand.u32 2139095040, %v8739_v4  ;;  %v3150_v33 = vrot.slane %v8242_v24, 1 }
 0x305   : > { %v4616_v42 = vor.u32 %v4615_v0, %v4614_v10  ;;  %v4619_v18 = vshll.u32 %v4618_v44, 23  ;;  %v3536_v32 = vrot.slane %v8244_v21, 2  ;;  %v4630_v25 = vsel %vm8750_vm11, 0, %v8721_v51  ;;  %v9373_v3 = vld [vmem:[#allocation12_spill] sm:$0xff] }
 0x306   : > { %v4908_v19 = vmul.u32 %v8717_v47, %v4892_v12  ;;  %v3151_v31 = vrot.slane %v8402_v63, 1  ;;  %v4911_v54 = vadd.s32 1, %v8766_v6  ;;  %v4749_v39 = vand.u32 2147483647, %v8739_v4 }
 0x307   : > { %v4620_v11 = vor.u32 4788187, %v4619_v18  ;;  %v4623_v28 = vcvt.s32.f32 %v4616_v42  ;;  %v4753_v35 = vshrl.u32 %v4752_v48, 23  ;;  %vm4910_vm3 = vc.u32 %v8771_v20, %v8765_v30  ;;  %v9372_v18 = vld [vmem:[#allocation14_spill] sm:$0xff] }
 0x308   : > { %v6742_v29 = vpop.eup %6741  ;;  %v3537_v21 = vrot.slane %v8404_v26, 2  ;;  %vm4744_vm5 = vcmp.eq.s32.totalorder %v8712_v8, 2  ;;  %v4912_v63 = vsel %vm4910_vm3, %v4911_v54, %v8766_v6  ;;  %v3148_v46 = vrot.slane %v8246_v34, 1 }
 0x309   : > { %v6744_v38 = vpop.eup %6743  ;;  %v4745_v24 = vxor.u32 2147483648, %v6742_v29  ;;  %v4621_v23 = vand.u32 2147483647, %v4620_v11  ;;  %v5785_v47 = vadd.s32 4294967169, %v4753_v35  ;;  %v4913_v15 = vadd.s32 %v4912_v63, %v4908_v19 }
 0x30a   : > { %v4742_v51 = vxor.u32 2147483648, %v6744_v38  ;;  %v3160_v49 = vsel %vm954_vm0, %v3150_v33, %v3151_v31  ;;  %v4634_v0 = vadd.s32 3, %v4630_v25  ;;  %v4756_v44 = vand.u32 8388607, %v4749_v39 }
 0x30b   : > { %v4624_v10 = vmul.f32 %v4623_v28, %v4621_v23  ;;  %v4759_v40 = vadd.s32 1, %v5785_v47  ;;  %v3246_v26 = vadd.f32 %v3160_v49, %v8710_v37  ;;  %v4746_v52 = vsel %vm4744_vm5, %v4745_v24, %v6744_v38 }
 0x30c   : > { %v4914_v5 = vadd.s32 536870912, %v4913_v15  ;;  %v3546_v6 = vsel %vm1341_vm1, %v3536_v32, %v3537_v21  ;;  %v4743_v42 = vsel %vm4741_vm4, %v6742_v29, %v4742_v51  ;;  %v8801_v48 = vadd.f32 %v9373_v3, %v9372_v18 }
 0x30d   : > { %v4625_v12 = vxor.u32 2147483648, %v4624_v10  ;;  %vm4760_vm6 = vcmp.gt.s32.totalorder %v4759_v40, 0  ;;  %v3632_v34 = vadd.f32 %v3546_v6, %v3246_v26  ;;  %vm4737_vm7 = vweird.f32 %v8434_v57 }
 0x30e   : > { %v4915_v33 = vshrl.u32 %v4914_v5, 30  ;;  %v4761_v11 = vsel %vm4760_vm6, %v4759_v40, 0  ;;  %v3149_v25 = vrot.slane %v8511_v17, 1  ;;  %vm4740_vm8 = vcmp.lt.s32.totalorder %v8712_v8, 2 }
 0x30f   : > { %v4626_v37 = vsel %vm4543_vm10, %v4625_v12, %v4624_v10  ;;  %vm4855_vm9 = vcmp.lt.s32.totalorder %v8672_v1, 0  ;;  %v4763_v19 = vand.u32 31, %v4761_v11  ;;  %v8812_v31 = vand.u32 3, %v4634_v0 }
 0x310   : > { %v4629_v32 = vsel %vm8750_vm11, %v8496_v16, %v4626_v37  ;;  %v4916_v29 = vshll.u32 %v4915_v33, 30  ;;  %v8816_v28 = vsel %vm954_vm0, %v3148_v46, %v3149_v25  ;;  %v4747_v54 = vsel %vm4740_vm8, %v4743_v42, %v4746_v52 }
 0x311   : > { %6745 = vcosq.f32 %v4629_v32  ;;  %v4757_v17 = vor.u32 8388608, %v4756_v44  ;;  %v4764_v35 = vsub.s32 32, %v4763_v19  ;;  %v4939_v38 = vsub.s32 4, %v4915_v33 }
 0x312   : > { %6747 = vsinq.f32 %v4629_v32  ;;  %v8818_v8 = vsub.s32 %v4913_v15, %v4916_v29  ;;  %v8820_v58 = vshrl.u32 %v4761_v11, 5  ;;  %v4766_v24 = vshll.u32 %v9308_v43, %v4763_v19 }
 0x313   : > { %v4767_v23 = vshrl.u32 %v9309_v7, %v4764_v35  ;;  %v4769_v21 = vshll.u32 %v9309_v7, %v4763_v19  ;;  %v4770_v51 = vshrl.u32 %v9310_v55, %v4764_v35  ;;  %v4772_v63 = vshll.u32 %v9310_v55, %v4763_v19 }
 0x314   : > { %v4919_v47 = vsub.s32 0, %v8818_v8  ;;  %v4773_v10 = vshrl.u32 %v9311_v56, %v4764_v35  ;;  %v4775_v15 = vshll.u32 %v9311_v56, %v4763_v19  ;;  %v4776_v46 = vshrl.u32 %v9312_v53, %v4764_v35 }
 0x315   : > { %vm4637_vm10 = vcmp.eq.s32.totalorder %v8812_v31, 0  ;;  %v4768_v49 = vor.u32 %v4767_v23, %v4766_v24  ;;  %v4771_v0 = vor.u32 %v4770_v51, %v4769_v21  ;;  %v4778_v44 = vshll.u32 %v9312_v53, %v4763_v19 }
 0x316   : > { %v4779_v40 = vshrl.u32 %v9313_v62, %v4764_v35  ;;  %vm4636_vm11 = vcmp.lt.s32.totalorder %v8812_v31, 2  ;;  %vm4640_vm12 = vcmp.eq.s32.totalorder %v8812_v31, 2  ;;  %v5790_v26 = vmin.u32 %v4919_v47, %v8818_v8 }
 0x317   : > { %v4774_v52 = vor.u32 %v4773_v10, %v4772_v63  ;;  %v4777_v12 = vor.u32 %v4776_v46, %v4775_v15  ;;  %v4748_v5 = vsel %vm4737_vm7, nan, %v4747_v54  ;;  %vm4633_vm14 = vweird.f32 %v8496_v16 }
 0x318   : > { %v4909_v6 = vadd.s32 %v8765_v30, %v8771_v20  ;;  %v4780_v42 = vor.u32 %v4779_v40, %v4778_v44  ;;  %v8842_v18 = vshll.u32 %v4757_v17, 8  ;;  %v4921_v3 = vclz %v5790_v26 }
 0x319   : > { %v8846_v37 = vsel %vm4855_vm9, %v4939_v38, %v4915_v33  ;;  %vm4781_vm13 = vcmp.lt.s32.totalorder %v8820_v58, 1  ;;  %v8850_v11 = vadd.f32 %v8736_v59, %v3632_v34  ;;  %v4765_v57 = vshrl.u32 %v9308_v43, %v4764_v35 }
 0x31a   : > { %vm4782_vm15 = vcmp.lt.s32.totalorder %v8820_v58, 2  ;;  %vm4784_vm2 = vcmp.lt.s32.totalorder %v8820_v58, 4  ;;  %v4789_v30 = vsel %vm4781_vm13, %v4768_v49, %v4771_v0  ;;  %v5791_v25 = vadd.s32 4294967294, %v4921_v3 }
 0x31b   : > { %v6746_v20 = vpop.eup %6745  ;;  %vm4783_vm4 = vcmp.lt.s32.totalorder %v8820_v58, 3  ;;  %v4786_v33 = vsel %vm4784_vm2, %v4774_v52, 2102212464  ;;  %v4790_v32 = vsel %vm4784_vm2, %v4777_v12, 920167782  ;;  %v4785_v34 = vsel %vm4781_vm13, %v4765_v57, %v4768_v49 }
 0x31c   : > { %v6748_v19 = vpop.eup %6747  ;;  %v4641_v29 = vxor.u32 2147483648, %v6746_v20  ;;  %v4791_v54 = vsel %vm4783_vm4, %v4774_v52, %v4790_v32  ;;  %v4794_v17 = vsel %vm4784_vm2, %v4780_v42, 1326507024  ;;  %vm5792_vm3 = vcmp.lt.s32.totalorder %v5791_v25, 0 }
 0x31d   : > { %v4638_v35 = vxor.u32 2147483648, %v6748_v19  ;;  %v4792_v38 = vsel %vm4782_vm15, %v4789_v30, %v4791_v54  ;;  %v4793_v24 = vsel %vm4781_vm13, %v4771_v0, %v4774_v52  ;;  %v4924_v21 = vsel %vm5792_vm3, 0, %v5791_v25 }
 0x31e   : > { %v4642_v23 = vsel %vm4640_vm12, %v4641_v29, %v6748_v19  ;;  %v4787_v51 = vsel %vm4783_vm4, %v4771_v0, %v4786_v33  ;;  %v4795_v63 = vsel %vm4783_vm4, %v4777_v12, %v4794_v17  ;;  %v4925_v10 = vsub.s32 32, %v4924_v21 }
 0x31f   : > { %v4639_v47 = vsel %vm4637_vm10, %v6746_v20, %v4638_v35  ;;  %v4926_v15 = vshll.u32 %v8818_v8, %v4924_v21  ;;  %v4929_v46 = vsub.s32 4294967266, %v4924_v21  ;;  %v4796_v44 = vsel %vm4782_vm15, %v4793_v24, %v4795_v63 }
 0x320   : > { %v4643_v49 = vsel %vm4636_vm11, %v4639_v47, %v4642_v23  ;;  %v8874_v40 = vmul.u32.u64.low %v8842_v18, %v4792_v38  ;;  %v8875_v26 = vmul.u32.u64.high %v8842_v18, %v4792_v38, %v8874_v40  ;;  %v4927_v52 = vshrl.u32 %v4909_v6, %v4925_v10  ;;  %v9377_v23 = vld [vmem:[#allocation15_spill] sm:$0xff] }
 0x321   : > { %v4644_v0 = vsel %vm4633_vm14, nan, %v4643_v49  ;;  %v4930_v12 = vadd.s32 127, %v4929_v46  ;;  %v5061_v42 = vand.u32 2147483647, %v8850_v11  ;;  %v5064_v31 = vand.u32 2139095040, %v8850_v11  ;;  %v9379_v46 = vld [vmem:[#allocation16_spill] sm:$0xff] }
 0x322   : > { %v5836_v8 = vpack.c.bf16 %v4748_v5, %v4644_v0  ;;  %v8881_v3 = vmul.u32.u64.low %v8842_v18, %v4796_v44  ;;  %v8882_v57 = vmul.u32.u64.high %v8842_v18, %v4796_v44, %v8881_v3  ;;  %v4928_v30 = vor.u32 %v4927_v52, %v4926_v15  ;;  %v9378_v15 = vld [vmem:[#allocation19_spill] sm:$0xff] }
 0x323   : > { %v4931_v20 = vshll.u32 %v4930_v12, 23  ;;  %v4788_v25 = vsel %vm4782_vm15, %v4785_v34, %v4787_v51  ;;  %v3534_v33 = vrot.slane %v8248_v22, 2  ;;  %vm8891_vm5 = vcmp.le.f32.partialorder %v4853_v36, 0.7853982 }
 0x324   : > { %5856 = vst [vmem:[%s7994_s30 + $0x20] sm:$0xff] %v5836_v8   ;;  %v4807_v5 = vadd.s32 1, %v8875_v26  ;;  %v5065_v6 = vshrl.u32 %v5064_v31, 23  ;;  %v3244_v32 = vadd.f32 %v8816_v28, %v8801_v48  ;;  %v4942_v58 = vsel %vm8891_vm5, 0, %v8846_v37 }
 0x325   : > { %v4932_v19 = vor.u32 4788187, %v4931_v20  ;;  %v3535_v22 = vrot.slane %v8513_v50, 2  ;;  %v4804_v29 = vmul.u32 %v8842_v18, %v4788_v25  ;;  %vm4806_vm6 = vc.u32 %v8882_v57, %v8874_v40  ;;  %v9376_v50 = vld [vmem:[#allocation18_spill] sm:$0xff] }
 0x326   : > { %v5797_v36 = vadd.s32 4294967169, %v5065_v6  ;;  %v5068_v34 = vand.u32 8388607, %v5061_v42  ;;  %v4935_v17 = vcvt.s32.f32 %v4928_v30  ;;  %v4808_v35 = vsel %vm4806_vm6, %v4807_v5, %v8875_v26 }
 0x327   : > { %v4933_v54 = vand.u32 2147483647, %v4932_v19  ;;  %v3548_v48 = vsel %vm1341_vm1, %v3534_v33, %v3535_v22  ;;  %v4809_v28 = vadd.s32 %v4808_v35, %v4804_v29  ;;  %v8911_v18 = vadd.f32 %v9377_v23, %v9376_v50 }
 0x328   : > { %v5071_v38 = vadd.s32 1, %v5797_v36  ;;  %v3630_v37 = vadd.f32 %v3548_v48, %v3244_v32  ;;  %v4946_v21 = vadd.s32 3, %v4942_v58  ;;  %v5069_v47 = vor.u32 8388608, %v5068_v34 }
 0x329   : > { %v4936_v24 = vmul.f32 %v4935_v17, %v4933_v54  ;;  %v4810_v51 = vadd.s32 536870912, %v4809_v28  ;;  %v8915_v49 = vadd.f32 %v9379_v46, %v9378_v15  ;;  %vm4751_vm8 = vcmp.lt.s32.totalorder %v8739_v4, 0 }
 0x32a   : > { %vm5072_vm7 = vcmp.gt.s32.totalorder %v5071_v38, 0  ;;  %v8923_v12 = vand.u32 3, %v4946_v21  ;;  %v8926_v31 = vadd.s32 %v8874_v40, %v8882_v57  ;;  %v8928_v30 = vshll.u32 %v5069_v47, 8 }
 0x32b   : > { %v4937_v63 = vxor.u32 2147483648, %v4936_v24  ;;  %v5073_v10 = vsel %vm5072_vm7, %v5071_v38, 0  ;;  %v4811_v44 = vshrl.u32 %v4810_v51, 30  ;;  %v3154_v20 = vrot.slane %v8524_v41, 1 }
 0x32c   : > { %v5075_v26 = vand.u32 31, %v5073_v10  ;;  %v3540_v25 = vrot.slane %v8530_v14, 2  ;;  %v8935_v16 = vadd.f32 %v8736_v59, %v3630_v37  ;;  %v5074_v34 = vshrl.u32 %v5073_v10, 5 }
 0x32d   : > { %v4938_v0 = vsel %vm4855_vm9, %v4937_v63, %v4936_v24  ;;  %v4812_v8 = vshll.u32 %v4811_v44, 30  ;;  %v4835_v5 = vsub.s32 4, %v4811_v44  ;;  %vm8947_vm9 = vcmp.le.f32.partialorder %v4749_v39, 0.7853982 }
 0x32e   : > { %v4941_v52 = vsel %vm8891_vm5, %v8672_v1, %v4938_v0  ;;  %v5076_v3 = vsub.s32 32, %v5075_v26  ;;  %v5081_v32 = vshll.u32 %v9309_v7, %v5075_v26  ;;  %v5084_v58 = vshll.u32 %v9310_v55, %v5075_v26 }
 0x32f   : > { %6749 = vcosq.f32 %v4941_v52  ;;  %v8932_v33 = vsub.s32 %v4809_v28, %v4812_v8  ;;  %v5087_v22 = vshll.u32 %v9311_v56, %v5075_v26  ;;  %v5078_v54 = vshll.u32 %v9308_v43, %v5075_v26 }
 0x330   : > { %v5079_v6 = vshrl.u32 %v9309_v7, %v5076_v3  ;;  %v5082_v40 = vshrl.u32 %v9310_v55, %v5076_v3  ;;  %v5085_v57 = vshrl.u32 %v9311_v56, %v5076_v3  ;;  %v5088_v29 = vshrl.u32 %v9312_v53, %v5076_v3 }
 0x331   : > { %v4815_v19 = vsub.s32 0, %v8932_v33  ;;  %6751 = vsinq.f32 %v4941_v52  ;;  %v5091_v38 = vshrl.u32 %v9313_v62, %v5076_v3  ;;  %v5090_v24 = vshll.u32 %v9312_v53, %v5075_v26 }
 0x332   : > { %v5083_v17 = vor.u32 %v5082_v40, %v5081_v32  ;;  %v5086_v48 = vor.u32 %v5085_v57, %v5084_v58  ;;  %v5089_v28 = vor.u32 %v5088_v29, %v5087_v22  ;;  %v5080_v37 = vor.u32 %v5079_v6, %v5078_v54 }
 0x333   : > { %v5786_v35 = vmin.u32 %v4815_v19, %v8932_v33  ;;  %v3152_v50 = vrot.slane %v8532_v45, 1  ;;  %v3538_v39 = vrot.slane %v8536_v61, 2  ;;  %v4836_v21 = vsel %vm4751_vm8, %v4835_v5, %v4811_v44 }
 0x334   : > { %v4960_v51 = vand.u32 2139095040, %v8935_v16  ;;  %v3155_v63 = vrot.slane %v8635_v13, 1  ;;  %v5092_v47 = vor.u32 %v5091_v38, %v5090_v24  ;;  %vm5093_vm10 = vcmp.lt.s32.totalorder %v5074_v34, 1 }
 0x335   : > { %v4817_v23 = vclz %v5786_v35  ;;  %vm5095_vm11 = vcmp.lt.s32.totalorder %v5074_v34, 3  ;;  %vm5096_vm12 = vcmp.lt.s32.totalorder %v5074_v34, 4  ;;  %v5105_v26 = vsel %vm5093_vm10, %v5083_v17, %v5086_v48 }
 0x336   : > { %v5098_v15 = vsel %vm5096_vm12, %v5086_v48, 2102212464  ;;  %v5102_v46 = vsel %vm5096_vm12, %v5089_v28, 920167782  ;;  %v5077_v0 = vshrl.u32 %v9308_v43, %v5076_v3  ;;  %v5101_v52 = vsel %vm5093_vm10, %v5080_v37, %v5083_v17 }
 0x337   : > { %v5787_v10 = vadd.s32 4294967294, %v4817_v23  ;;  %v5103_v8 = vsel %vm5095_vm11, %v5086_v48, %v5102_v46  ;;  %v5106_v44 = vsel %vm5096_vm12, %v5092_v47, 1326507024  ;;  %vm5094_vm13 = vcmp.lt.s32.totalorder %v5074_v34, 2 }
 0x338   : > { %v5107_v13 = vsel %vm5095_vm11, %v5089_v28, %v5106_v44  ;;  %v3541_v6 = vrot.slane %v8637_v60, 2  ;;  %v5097_v40 = vsel %vm5093_vm10, %v5077_v0, %v5080_v37  ;;  %v5099_v57 = vsel %vm5095_vm11, %v5083_v17, %v5098_v15 }
 0x339   : > { %v6750_v5 = vpop.eup %6749  ;;  %vm5788_vm14 = vcmp.lt.s32.totalorder %v5787_v10, 0  ;;  %v5108_v19 = vsel %vm5094_vm13, %v5105_v26, %v5107_v13  ;;  %vm4949_vm15 = vcmp.eq.s32.totalorder %v8923_v12, 0  ;;  %vm4952_vm2 = vcmp.eq.s32.totalorder %v8923_v12, 2 }
 0x33a   : > { %v4820_v32 = vsel %vm5788_vm14, 0, %v5787_v10  ;;  %v4838_v22 = vsel %vm8947_vm9, 0, %v4836_v21  ;;  %v5104_v29 = vsel %vm5094_vm13, %v5101_v52, %v5103_v8  ;;  %v4957_v17 = vand.u32 2147483647, %v8935_v16 }
 0x33b   : > { %v4821_v3 = vsub.s32 32, %v4820_v32  ;;  %v4825_v58 = vsub.s32 4294967266, %v4820_v32  ;;  %v6752_v54 = vpop.eup %6751  ;;  %v8976_v60 = vmul.u32.u64.low %v8928_v30, %v5108_v19  ;;  %v8977_v35 = vmul.u32.u64.high %v8928_v30, %v5108_v19, %v8976_v60 }
 0x33c   : > { %v4961_v48 = vshrl.u32 %v4960_v51, 23  ;;  %v4822_v28 = vshll.u32 %v8932_v33, %v4820_v32  ;;  %v5100_v24 = vsel %vm5094_vm13, %v5097_v40, %v5099_v57  ;;  %v4842_v23 = vadd.s32 3, %v4838_v22 }
 0x33d   : > { %v4823_v38 = vshrl.u32 %v8926_v31, %v4821_v3  ;;  %v4826_v37 = vadd.s32 127, %v4825_v58  ;;  %v8984_v21 = vmul.u32.u64.low %v8928_v30, %v5104_v29  ;;  %v8985_v47 = vmul.u32.u64.high %v8928_v30, %v5104_v29, %v8984_v21 }
 0x33e   : > { %v5793_v10 = vadd.s32 4294967169, %v4961_v48  ;;  %v4953_v15 = vxor.u32 2147483648, %v6750_v5  ;;  %v3156_v33 = vsel %vm954_vm0, %v3154_v20, %v3155_v63  ;;  %v4950_v51 = vxor.u32 2147483648, %v6752_v54 }
 0x33f   : > { %v4824_v46 = vor.u32 %v4823_v38, %v4822_v28  ;;  %v4827_v26 = vshll.u32 %v4826_v37, 23  ;;  %v5116_v31 = vmul.u32 %v8928_v30, %v5100_v24  ;;  %v3250_v0 = vadd.f32 %v3156_v33, %v8911_v18 }
 0x340   : > { %v4967_v34 = vadd.s32 1, %v5793_v10  ;;  %vm5118_vm4 = vc.u32 %v8977_v35, %v8984_v21  ;;  %v4964_v8 = vand.u32 8388607, %v4957_v17  ;;  %v3542_v41 = vsel %vm1341_vm1, %v3540_v25, %v3541_v6 }
 0x341   : > { %v4828_v52 = vor.u32 4788187, %v4827_v26  ;;  %v5119_v20 = vadd.s32 1, %v8985_v47  ;;  %v3636_v63 = vadd.f32 %v3542_v41, %v3250_v0  ;;  %v3153_v30 = vrot.slane %v8660_v9, 1 }
 0x342   : > { %vm4968_vm3 = vcmp.gt.s32.totalorder %v4967_v34, 0  ;;  %vm4948_vm5 = vcmp.lt.s32.totalorder %v8923_v12, 2  ;;  %v4831_v44 = vcvt.s32.f32 %v4824_v46  ;;  %v3539_v32 = vrot.slane %v8662_v2, 2 }
 0x343   : > { %v4829_v18 = vand.u32 2147483647, %v4828_v52  ;;  %v4969_v13 = vsel %vm4968_vm3, %v4967_v34, 0  ;;  %v4951_v40 = vsel %vm4949_vm15, %v6750_v5, %v4950_v51  ;;  %v4954_v14 = vsel %vm4952_vm2, %v4953_v15, %v6752_v54 }
 0x344   : > { %v5120_v25 = vsel %vm5118_vm4, %v5119_v20, %v8985_v47  ;;  %v4971_v6 = vand.u32 31, %v4969_v13  ;;  %v9015_v9 = vsel %vm954_vm0, %v3152_v50, %v3153_v30  ;;  %v9021_v2 = vsel %vm1341_vm1, %v3538_v39, %v3539_v32 }
 0x345   : > { %v4832_v57 = vmul.f32 %v4831_v44, %v4829_v18  ;;  %v5121_v19 = vadd.s32 %v5120_v25, %v5116_v31  ;;  %v4965_v5 = vor.u32 8388608, %v4964_v8  ;;  %v9023_v3 = vshrl.u32 %v4969_v13, 5 }
 0x346   : > { %v4972_v58 = vsub.s32 32, %v4971_v6  ;;  %v4974_v22 = vshll.u32 %v9308_v43, %v4971_v6  ;;  %v4977_v45 = vshll.u32 %v9309_v7, %v4971_v6  ;;  %v4980_v60 = vshll.u32 %v9310_v55, %v4971_v6 }
 0x347   : > { %v4833_v29 = vxor.u32 2147483648, %v4832_v57  ;;  %v5122_v54 = vadd.s32 536870912, %v5121_v19  ;;  %v4983_v39 = vshll.u32 %v9311_v56, %v4971_v6  ;;  %v4986_v15 = vshll.u32 %v9312_v53, %v4971_v6 }
 0x348   : > { %v4975_v50 = vshrl.u32 %v9309_v7, %v4972_v58  ;;  %v4978_v61 = vshrl.u32 %v9310_v55, %v4972_v58  ;;  %v4981_v27 = vshrl.u32 %v9311_v56, %v4972_v58  ;;  %v4984_v38 = vshrl.u32 %v9312_v53, %v4972_v58 }
 0x349   : > { %v4834_v48 = vsel %vm4751_vm8, %v4833_v29, %v4832_v57  ;;  %v5123_v28 = vshrl.u32 %v5122_v54, 30  ;;  %v4987_v37 = vshrl.u32 %v9313_v62, %v4972_v58  ;;  %vm4945_vm0 = vweird.f32 %v8672_v1 }
 0x34a   : > { %v4837_v24 = vsel %vm8947_vm9, %v8739_v4, %v4834_v48  ;;  %v4976_v47 = vor.u32 %v4975_v50, %v4974_v22  ;;  %v4979_v10 = vor.u32 %v4978_v61, %v4977_v45  ;;  %v4982_v26 = vor.u32 %v4981_v27, %v4980_v60 }
 0x34b   : > { %6753 = vcosq.f32 %v4837_v24  ;;  %v5124_v46 = vshll.u32 %v5123_v28, 30  ;;  %v4985_v33 = vor.u32 %v4984_v38, %v4983_v39  ;;  %v4955_v51 = vsel %vm4948_vm5, %v4951_v40, %v4954_v14 }
 0x34c   : > { %6755 = vsinq.f32 %v4837_v24  ;;  %v4843_v31 = vand.u32 3, %v4842_v23  ;;  %v4988_v34 = vor.u32 %v4987_v37, %v4986_v15  ;;  %vm4989_vm1 = vcmp.lt.s32.totalorder %v9023_v3, 1 }
 0x34d   : > { %v9043_v0 = vsub.s32 %v5121_v19, %v5124_v46  ;;  %v5005_v36 = vshll.u32 %v4965_v5, 8  ;;  %v9047_v52 = vadd.f32 %v8736_v59, %v3636_v63  ;;  %v5147_v8 = vsub.s32 4, %v5123_v28 }
 0x34e   : > { %v4973_v41 = vshrl.u32 %v9308_v43, %v4972_v58  ;;  %vm4992_vm6 = vcmp.lt.s32.totalorder %v9023_v3, 4  ;;  %v4997_v12 = vsel %vm4989_vm1, %v4976_v47, %v4979_v10  ;;  %vm4991_vm7 = vcmp.lt.s32.totalorder %v9023_v3, 3 }
 0x34f   : > { %v5127_v20 = vsub.s32 0, %v9043_v0  ;;  %v4994_v23 = vsel %vm4992_vm6, %v4982_v26, 2102212464  ;;  %v4998_v30 = vsel %vm4992_vm6, %v4985_v33, 920167782  ;;  %vm4990_vm8 = vcmp.lt.s32.totalorder %v9023_v3, 2 }
 0x350   : > { %v4999_v18 = vsel %vm4991_vm7, %v4982_v26, %v4998_v30  ;;  %v5001_v63 = vsel %vm4989_vm1, %v4979_v10, %v4982_v26  ;;  %v5002_v44 = vsel %vm4992_vm6, %v4988_v34, 1326507024  ;;  %v4993_v32 = vsel %vm4989_vm1, %v4973_v41, %v4976_v47 }
 0x351   : > { %v5798_v13 = vmin.u32 %v5127_v20, %v9043_v0  ;;  %v5000_v40 = vsel %vm4990_vm8, %v4997_v12, %v4999_v18  ;;  %v5003_v14 = vsel %vm4991_vm7, %v4985_v33, %v5002_v44  ;;  %vm4841_vm9 = vweird.f32 %v8739_v4 }
 0x352   : > { %v4995_v25 = vsel %vm4991_vm7, %v4979_v10, %v4994_v23  ;;  %v5004_v6 = vsel %vm4990_vm8, %v5001_v63, %v5003_v14  ;;  %v9066_v57 = vmul.u32.u64.low %v5005_v36, %v5000_v40  ;;  %v9067_v19 = vmul.u32.u64.high %v5005_v36, %v5000_v40, %v9066_v57 }
 0x353   : > { %vm4844_vm10 = vcmp.lt.s32.totalorder %v4843_v31, 2  ;;  %vm4845_vm11 = vcmp.eq.s32.totalorder %v4843_v31, 0  ;;  %vm5063_vm12 = vcmp.lt.s32.totalorder %v8850_v11, 0  ;;  %v5129_v5 = vclz %v5798_v13 }
 0x354   : > { %v4956_v58 = vsel %vm4945_vm0, nan, %v4955_v51  ;;  %vm4848_vm14 = vcmp.eq.s32.totalorder %v4843_v31, 2  ;;  %v9073_v22 = vmul.u32.u64.low %v5005_v36, %v5004_v6  ;;  %v9074_v29 = vmul.u32.u64.high %v5005_v36, %v5004_v6, %v9073_v22 }
 0x355   : > { %v6754_v54 = vpop.eup %6753  ;;  %v5799_v45 = vadd.s32 4294967294, %v5129_v5  ;;  %v4996_v60 = vsel %vm4990_vm8, %v4993_v32, %v4995_v25  ;;  %v5272_v50 = vand.u32 2139095040, %v9047_v52  ;;  %v3248_v61 = vadd.f32 %v9015_v9, %v8915_v49 }
 0x356   : > { %v6756_v27 = vpop.eup %6755  ;;  %v4849_v39 = vxor.u32 2147483648, %v6754_v54  ;;  %v5117_v1 = vadd.s32 %v8984_v21, %v8977_v35  ;;  %v5148_v48 = vsel %vm5063_vm12, %v5147_v8, %v5123_v28  ;;  %v5015_v38 = vadd.s32 1, %v9067_v19 }
 0x357   : > { %v4846_v37 = vxor.u32 2147483648, %v6756_v27  ;;  %vm5800_vm13 = vcmp.lt.s32.totalorder %v5799_v45, 0  ;;  %v5273_v24 = vshrl.u32 %v5272_v50, 23  ;;  %v3634_v3 = vadd.f32 %v9021_v2, %v3248_v61 }
 0x358   : > { %v4850_v47 = vsel %vm4848_vm14, %v4849_v39, %v6756_v27  ;;  %v5132_v10 = vsel %vm5800_vm13, 0, %v5799_v45  ;;  %v5012_v15 = vmul.u32 %v5005_v36, %v4996_v60  ;;  %vm5014_vm15 = vc.u32 %v9074_v29, %v9066_v57 }
 0x359   : > { %v4847_v49 = vsel %vm4845_vm11, %v6754_v54, %v4846_v37  ;;  %v5133_v35 = vsub.s32 32, %v5132_v10  ;;  %v5137_v21 = vsub.s32 4294967266, %v5132_v10  ;;  %v5269_v9 = vand.u32 2147483647, %v9047_v52 }
 0x35a   : > { %v4851_v28 = vsel %vm4844_vm10, %v4847_v49, %v4850_v47  ;;  %v5134_v46 = vshll.u32 %v9043_v0, %v5132_v10  ;;  %v5016_v2 = vsel %vm5014_vm15, %v5015_v38, %v9067_v19  ;;  %v5805_v26 = vadd.s32 4294967169, %v5273_v24 }
 0x35b   : > { %v4852_v33 = vsel %vm4841_vm9, nan, %v4851_v28  ;;  %v5135_v51 = vshrl.u32 %v5117_v1, %v5133_v35  ;;  %v5138_v34 = vadd.s32 127, %v5137_v21  ;;  %v5017_v36 = vadd.s32 %v5016_v2, %v5012_v15 }
 0x35c   : > { %v5841_v8 = vpack.c.bf16 %v4956_v58, %v4852_v33  ;;  %v5279_v41 = vadd.s32 1, %v5805_v26  ;;  %vm9099_vm2 = vcmp.le.f32.partialorder %v5061_v42, 0.7853982  ;;  %v5276_v4 = vand.u32 8388607, %v5269_v9 }
 0x35d   : > { %v5136_v31 = vor.u32 %v5135_v51, %v5134_v46  ;;  %v5139_v20 = vshll.u32 %v5138_v34, 23  ;;  %v5018_v0 = vadd.s32 536870912, %v5017_v36  ;;  %v5150_v23 = vsel %vm9099_vm2, 0, %v5148_v48 }
 0x35e   : > { %5857 = vst [vmem:[%s7994_s30 + $0x28] sm:$0xff] %v5841_v8   ;;  %vm5280_vm4 = vcmp.gt.s32.totalorder %v5279_v41, 0  ;;  %v9111_v42 = vadd.f32 %v8736_v59, %v3634_v3  ;;  %v9114_v14 = vadd.s32 3, %v5150_v23  ;;  %v5277_v5 = vor.u32 8388608, %v5276_v4 }
 0x35f   : > { %v5140_v30 = vor.u32 4788187, %v5139_v20  ;;  %v9108_v18 = vshrl.u32 %v5018_v0, 30  ;;  %v5281_v63 = vsel %vm5280_vm4, %v5279_v41, 0  ;;  %v5143_v32 = vcvt.s32.f32 %v5136_v31 }
 0x360   : > { %v5283_v44 = vand.u32 31, %v5281_v63  ;;  %v5168_v58 = vand.u32 2139095040, %v9111_v42  ;;  %v5282_v22 = vshrl.u32 %v5281_v63, 5  ;;  %v5013_v21 = vadd.s32 %v9066_v57, %v9074_v29 }
 0x361   : > { %v5141_v13 = vand.u32 2147483647, %v5140_v30  ;;  %v5020_v40 = vshll.u32 %v9108_v18, 30  ;;  %v5317_v46 = vshll.u32 %v5277_v5, 8  ;;  %v5043_v26 = vsub.s32 4, %v9108_v18 }
 0x362   : > { %v5284_v25 = vsub.s32 32, %v5283_v44  ;;  %v5286_v54 = vshll.u32 %v9308_v43, %v5283_v44  ;;  %v5289_v61 = vshll.u32 %v9309_v7, %v5283_v44  ;;  %v5292_v1 = vshll.u32 %v9310_v55, %v5283_v44 }
 0x363   : > { %v5144_v6 = vmul.f32 %v5143_v32, %v5141_v13  ;;  %v5021_v19 = vsub.s32 %v5017_v36, %v5020_v40  ;;  %v5295_v48 = vshll.u32 %v9311_v56, %v5283_v44  ;;  %v5298_v47 = vshll.u32 %v9312_v53, %v5283_v44 }
 0x364   : > { %v5287_v45 = vshrl.u32 %v9309_v7, %v5284_v25  ;;  %v5290_v59 = vshrl.u32 %v9310_v55, %v5284_v25  ;;  %v5293_v27 = vshrl.u32 %v9311_v56, %v5284_v25  ;;  %v5296_v38 = vshrl.u32 %v9312_v53, %v5284_v25 }
 0x365   : > { %v5145_v60 = vxor.u32 2147483648, %v5144_v6  ;;  %v5023_v50 = vsub.s32 0, %v5021_v19  ;;  %v5299_v35 = vshrl.u32 %v9313_v62, %v5284_v25  ;;  %v5169_v2 = vshrl.u32 %v5168_v58, 23 }
 0x366   : > { %v5288_v39 = vor.u32 %v5287_v45, %v5286_v54  ;;  %v5291_v3 = vor.u32 %v5290_v59, %v5289_v61  ;;  %v5294_v15 = vor.u32 %v5293_v27, %v5292_v1  ;;  %v5297_v49 = vor.u32 %v5296_v38, %v5295_v48 }
 0x367   : > { %v5146_v37 = vsel %vm5063_vm12, %v5145_v60, %v5144_v6  ;;  %v5794_v24 = vmin.u32 %v5023_v50, %v5021_v19  ;;  %v5285_v33 = vshrl.u32 %v9308_v43, %v5284_v25  ;;  %v5300_v51 = vor.u32 %v5299_v35, %v5298_v47 }
 0x368   : > { %v5149_v10 = vsel %vm9099_vm2, %v8850_v11, %v5146_v37  ;;  %vm5301_vm3 = vcmp.lt.s32.totalorder %v5282_v22, 1  ;;  %vm5303_vm5 = vcmp.lt.s32.totalorder %v5282_v22, 3  ;;  %vm5304_vm0 = vcmp.lt.s32.totalorder %v5282_v22, 4 }
 0x369   : > { %v5025_v28 = vclz %v5794_v24  ;;  %6757 = vcosq.f32 %v5149_v10  ;;  %v5306_v36 = vsel %vm5304_vm0, %v5294_v15, 2102212464  ;;  %v5309_v8 = vsel %vm5301_vm3, %v5288_v39, %v5291_v3 }
 0x36a   : > { %v5310_v41 = vsel %vm5304_vm0, %v5297_v49, 920167782  ;;  %v5313_v12 = vsel %vm5301_vm3, %v5291_v3, %v5294_v15  ;;  %vm5302_vm6 = vcmp.lt.s32.totalorder %v5282_v22, 2  ;;  %v5314_v29 = vsel %vm5304_vm0, %v5300_v51, 1326507024 }
 0x36b   : > { %v5795_v34 = vadd.s32 4294967294, %v5025_v28  ;;  %v5311_v57 = vsel %vm5303_vm5, %v5294_v15, %v5310_v41  ;;  %v5305_v20 = vsel %vm5301_vm3, %v5285_v33, %v5288_v39  ;;  %v5315_v23 = vsel %vm5303_vm5, %v5297_v49, %v5314_v29 }
 0x36c   : > { %v5312_v0 = vsel %vm5302_vm6, %v5309_v8, %v5311_v57  ;;  %v5307_v63 = vsel %vm5303_vm5, %v5291_v3, %v5306_v36  ;;  %v5316_v44 = vsel %vm5302_vm6, %v5313_v12, %v5315_v23  ;;  %v5801_v54 = vadd.s32 4294967169, %v5169_v2 }
 0x36d   : > { %vm5796_vm1 = vcmp.lt.s32.totalorder %v5795_v34, 0  ;;  %v9141_v13 = vmul.u32.u64.low %v5317_v46, %v5316_v44  ;;  %v9142_v32 = vmul.u32.u64.high %v5317_v46, %v5316_v44, %v9141_v13  ;;  %v5308_v45 = vsel %vm5302_vm6, %v5305_v20, %v5307_v63 }
 0x36e   : > { %v5028_v31 = vsel %vm5796_vm1, 0, %v5795_v34  ;;  %v9144_v40 = vmul.u32.u64.low %v5317_v46, %v5312_v0  ;;  %v9145_v25 = vmul.u32.u64.high %v5317_v46, %v5312_v0, %v9144_v40  ;;  %vm4959_vm7 = vcmp.lt.s32.totalorder %v8935_v16, 0 }
 0x36f   : > { %v5029_v4 = vsub.s32 32, %v5028_v31  ;;  %v5033_v30 = vsub.s32 4294967266, %v5028_v31  ;;  %v5030_v6 = vshll.u32 %v5021_v19, %v5028_v31  ;;  %v5175_v50 = vadd.s32 1, %v5801_v54 }
 0x370   : > { %6759 = vsinq.f32 %v5149_v10  ;;  %v5044_v61 = vsel %vm4959_vm7, %v5043_v26, %v9108_v18  ;;  %vm5326_vm8 = vc.u32 %v9142_v32, %v9144_v40  ;;  %v5327_v19 = vadd.s32 1, %v9145_v25 }
 0x371   : > { %v5031_v5 = vshrl.u32 %v5013_v21, %v5029_v4  ;;  %v5034_v58 = vadd.s32 127, %v5033_v30  ;;  %v9159_v22 = vand.u32 3, %v9114_v14  ;;  %v5324_v1 = vmul.u32 %v5317_v46, %v5308_v45 }
 0x372   : > { %vm5176_vm9 = vcmp.gt.s32.totalorder %v5175_v50, 0  ;;  %vm9163_vm10 = vcmp.le.f32.partialorder %v4957_v17, 0.7853982  ;;  %v5328_v18 = vsel %vm5326_vm8, %v5327_v19, %v9145_v25  ;;  %v5165_v38 = vand.u32 2147483647, %v9111_v42 }
 0x373   : > { %v5032_v59 = vor.u32 %v5031_v5, %v5030_v6  ;;  %v5035_v60 = vshll.u32 %v5034_v58, 23  ;;  %v9156_v27 = vpop.eup %6757  ;;  %v5177_v37 = vsel %vm5176_vm9, %v5175_v50, 0  ;;  %v5046_v14 = vsel %vm9163_vm10, 0, %v5044_v61 }
 0x374   : > { %v5329_v47 = vadd.s32 %v5328_v18, %v5324_v1  ;;  %v5179_v10 = vand.u32 31, %v5177_v37  ;;  %vm5160_vm11 = vcmp.eq.s32.totalorder %v9159_v22, 2  ;;  %v5161_v17 = vxor.u32 2147483648, %v9156_v27 }
 0x375   : > { %v5036_v39 = vor.u32 4788187, %v5035_v60  ;;  %v5039_v3 = vcvt.s32.f32 %v5032_v59  ;;  %v5050_v35 = vadd.s32 3, %v5046_v14  ;;  %v5172_v21 = vand.u32 8388607, %v5165_v38 }
 0x376   : > { %v5330_v49 = vadd.s32 536870912, %v5329_v47  ;;  %v5180_v28 = vsub.s32 32, %v5179_v10  ;;  %v5182_v26 = vshll.u32 %v9308_v43, %v5179_v10  ;;  %v5185_v33 = vshll.u32 %v9309_v7, %v5179_v10 }
 0x377   : > { %v5037_v24 = vand.u32 2147483647, %v5036_v39  ;;  %vm5157_vm12 = vcmp.eq.s32.totalorder %v9159_v22, 0  ;;  %v5188_v36 = vshll.u32 %v9310_v55, %v5179_v10  ;;  %v5191_v57 = vshll.u32 %v9311_v56, %v5179_v10 }
 0x378   : > { %v9175_v2 = vshrl.u32 %v5330_v49, 30  ;;  %v5183_v51 = vshrl.u32 %v9309_v7, %v5180_v28  ;;  %v5186_v34 = vshrl.u32 %v9310_v55, %v5180_v28  ;;  %v5189_v8 = vshrl.u32 %v9311_v56, %v5180_v28 }
 0x379   : > { %v5040_v15 = vmul.f32 %v5039_v3, %v5037_v24  ;;  %v5192_v29 = vshrl.u32 %v9312_v53, %v5180_v28  ;;  %v5178_v20 = vshrl.u32 %v5177_v37, 5  ;;  %v5051_v63 = vand.u32 3, %v5050_v35 }
 0x37a   : > { %v5332_v12 = vshll.u32 %v9175_v2, 30  ;;  %v6760_v31 = vpop.eup %6759  ;;  %v5184_v0 = vor.u32 %v5183_v51, %v5182_v26  ;;  %v5187_v23 = vor.u32 %v5186_v34, %v5185_v33  ;;  %v5190_v4 = vor.u32 %v5189_v8, %v5188_v36 }
 0x37b   : > { %v5041_v46 = vxor.u32 2147483648, %v5040_v15  ;;  %v5193_v30 = vor.u32 %v5192_v29, %v5191_v57  ;;  %v5194_v44 = vshll.u32 %v9312_v53, %v5179_v10  ;;  %v5195_v56 = vshrl.u32 %v9313_v62, %v5180_v28 }
 0x37c   : > { %v9192_v55 = vsub.s32 %v5329_v47, %v5332_v12  ;;  %v5158_v13 = vxor.u32 2147483648, %v6760_v31  ;;  %v5162_v25 = vsel %vm5160_vm11, %v5161_v17, %v6760_v31  ;;  %v5173_v5 = vor.u32 8388608, %v5172_v21 }
 0x37d   : > { %v5042_v41 = vsel %vm4959_vm7, %v5041_v46, %v5040_v15  ;;  %v5196_v58 = vor.u32 %v5195_v56, %v5194_v44  ;;  %vm5197_vm14 = vcmp.lt.s32.totalorder %v5178_v20, 1  ;;  %vm5199_vm13 = vcmp.lt.s32.totalorder %v5178_v20, 3 }
 0x37e   : > { %v5045_v7 = vsel %vm9163_vm10, %v8935_v16, %v5042_v41  ;;  %v5335_v6 = vsub.s32 0, %v9192_v55  ;;  %vm5200_vm15 = vcmp.lt.s32.totalorder %v5178_v20, 4  ;;  %v5205_v59 = vsel %vm5197_vm14, %v5184_v0, %v5187_v23 }
 0x37f   : > { %6761 = vcosq.f32 %v5045_v7  ;;  %v5202_v45 = vsel %vm5200_vm15, %v5190_v4, 2102212464  ;;  %v5206_v60 = vsel %vm5200_vm15, %v5193_v30, 920167782  ;;  %v5181_v53 = vshrl.u32 %v9308_v43, %v5180_v28 }
 0x380   : > { %6763 = vsinq.f32 %v5045_v7  ;;  %v5806_v54 = vmin.u32 %v5335_v6, %v9192_v55  ;;  %v5207_v62 = vsel %vm5199_vm13, %v5190_v4, %v5206_v60  ;;  %v5209_v50 = vsel %vm5197_vm14, %v5187_v23, %v5190_v4 }
 0x381   : > { %v5210_v61 = vsel %vm5200_vm15, %v5196_v58, 1326507024  ;;  %v5159_v19 = vsel %vm5157_vm12, %v9156_v27, %v5158_v13  ;;  %vm5198_vm2 = vcmp.lt.s32.totalorder %v5178_v20, 2  ;;  %v5213_v1 = vshll.u32 %v5173_v5, 8 }
 0x382   : > { %v5337_v39 = vclz %v5806_v54  ;;  %v5201_v48 = vsel %vm5197_vm14, %v5181_v53, %v5184_v0  ;;  %v5203_v18 = vsel %vm5199_vm13, %v5187_v23, %v5202_v45  ;;  %v5208_v37 = vsel %vm5198_vm2, %v5205_v59, %v5207_v62 }
 0x383   : > { %v5211_v24 = vsel %vm5199_vm13, %v5193_v30, %v5210_v61  ;;  %v9209_v14 = vmul.u32.u64.low %v5213_v1, %v5208_v37  ;;  %v9210_v47 = vmul.u32.u64.high %v5213_v1, %v5208_v37, %v9209_v14  ;;  %vm5156_vm4 = vcmp.lt.s32.totalorder %v9159_v22, 2 }
 0x384   : > { %v5807_v3 = vadd.s32 4294967294, %v5337_v39  ;;  %v5212_v43 = vsel %vm5198_vm2, %v5209_v50, %v5211_v24  ;;  %vm5153_vm3 = vweird.f32 %v8850_v11  ;;  %v5163_v49 = vsel %vm5156_vm4, %v5159_v19, %v5162_v25 }
 0x385   : > { %v9213_v10 = vmul.u32.u64.low %v5213_v1, %v5212_v43  ;;  %v9214_v27 = vmul.u32.u64.high %v5213_v1, %v5212_v43, %v9213_v10  ;;  %vm5052_vm0 = vcmp.lt.s32.totalorder %v5051_v63, 2  ;;  %v5204_v28 = vsel %vm5198_vm2, %v5201_v48, %v5203_v18 }
 0x386   : > { %vm5808_vm5 = vcmp.lt.s32.totalorder %v5807_v3, 0  ;;  %vm5053_vm1 = vcmp.eq.s32.totalorder %v5051_v63, 0  ;;  %vm5056_vm6 = vcmp.eq.s32.totalorder %v5051_v63, 2  ;;  %v5164_v33 = vsel %vm5153_vm3, nan, %v5163_v49 }
 0x387   : > { %v5340_v21 = vsel %vm5808_vm5, 0, %v5807_v3  ;;  %vm5222_vm7 = vc.u32 %v9214_v27, %v9209_v14  ;;  %v5223_v51 = vadd.s32 1, %v9210_v47  ;;  %v5220_v8 = vmul.u32 %v5213_v1, %v5204_v28 }
 0x388   : > { %v5345_v26 = vsub.s32 4294967266, %v5340_v21  ;;  %v5341_v34 = vsub.s32 32, %v5340_v21  ;;  %vm5049_vm8 = vweird.f32 %v8935_v16  ;;  %v5325_v29 = vadd.s32 %v9144_v40, %v9142_v32 }
 0x389   : > { %v6762_v15 = vpop.eup %6761  ;;  %v5224_v12 = vsel %vm5222_vm7, %v5223_v51, %v9210_v47  ;;  %v5342_v4 = vshll.u32 %v9192_v55, %v5340_v21  ;;  %vm5271_vm10 = vcmp.lt.s32.totalorder %v9047_v52, 0  ;;  %v5221_v59 = vadd.s32 %v9209_v14, %v9214_v27 }
 0x38a   : > { %v6764_v17 = vpop.eup %6763  ;;  %v5057_v35 = vxor.u32 2147483648, %v6762_v15  ;;  %v5346_v36 = vadd.s32 127, %v5345_v26  ;;  %v5225_v7 = vadd.s32 %v5224_v12, %v5220_v8  ;;  %v5343_v0 = vshrl.u32 %v5325_v29, %v5341_v34 }
 0x38b   : > { %v5054_v46 = vxor.u32 2147483648, %v6764_v17  ;;  %vm9233_vm11 = vcmp.le.f32.partialorder %v5269_v9, 0.7853982  ;;  %v5355_v18 = vsub.s32 4, %v9175_v2  ;;  %vm5167_vm12 = vcmp.lt.s32.totalorder %v9111_v42, 0 }
 0x38c   : > { %v5058_v22 = vsel %vm5056_vm6, %v5057_v35, %v6764_v17  ;;  %v5347_v31 = vshll.u32 %v5346_v36, 23  ;;  %v5226_v23 = vadd.s32 536870912, %v5225_v7  ;;  %v5344_v56 = vor.u32 %v5343_v0, %v5342_v4 }
 0x38d   : > { %v5055_v11 = vsel %vm5053_vm1, %v6762_v15, %v5054_v46  ;;  %v5356_v9 = vsel %vm5271_vm10, %v5355_v18, %v9175_v2  ;;  %vm5166_vm14 = vcmp.le.f32.partialorder %v5165_v38, 0.7853982  ;;  %vm5361_vm3 = vweird.f32 %v9047_v52 }
 0x38e   : > { %v5059_v41 = vsel %vm5052_vm0, %v5055_v11, %v5058_v22  ;;  %v5348_v30 = vor.u32 4788187, %v5347_v31  ;;  %v5227_v44 = vshrl.u32 %v5226_v23, 30  ;;  %v5351_v25 = vcvt.s32.f32 %v5344_v56 }
 0x38f   : > { %v5060_v57 = vsel %vm5049_vm8, nan, %v5059_v41  ;;  %v5358_v47 = vsel %vm9233_vm11, 0, %v5356_v9  ;;  %vm5257_vm1 = vweird.f32 %v9111_v42 }
 0x390   : > { %v5846_v20 = vpack.c.bf16 %v5164_v33, %v5060_v57  ;;  %v5228_v16 = vshll.u32 %v5227_v44, 30  ;;  %v5349_v63 = vand.u32 2147483647, %v5348_v30  ;;  %v5251_v14 = vsub.s32 4, %v5227_v44 }
 0x391   : > { %v5362_v49 = vadd.s32 3, %v5358_v47 }
 0x392   : > { %5858 = vst [vmem:[%s7994_s30 + $0x30] sm:$0xff] %v5846_v20   ;;  %v5229_v13 = vsub.s32 %v5225_v7, %v5228_v16  ;;  %v5352_v5 = vmul.f32 %v5351_v25, %v5349_v63  ;;  %v5252_v15 = vsel %vm5167_vm12, %v5251_v14, %v5227_v44 }
 0x393   : > { %v5254_v2 = vsel %vm5166_vm14, 0, %v5252_v15  ;;  %v5363_v28 = vand.u32 3, %v5362_v49 }
 0x394   : > { %v5231_v6 = vsub.s32 0, %v5229_v13  ;;  %v5353_v32 = vxor.u32 2147483648, %v5352_v5  ;;  %v5258_v33 = vadd.s32 3, %v5254_v2 }
 0x395   : > { %vm5365_vm13 = vcmp.eq.s32.totalorder %v5363_v28, 0  ;;  %vm5368_vm15 = vcmp.eq.s32.totalorder %v5363_v28, 2  ;;  %vm5364_vm2 = vcmp.lt.s32.totalorder %v5363_v28, 2 }
 0x396   : > { %v5802_v58 = vmin.u32 %v5231_v6, %v5229_v13  ;;  %v5354_v55 = vsel %vm5271_vm10, %v5353_v32, %v5352_v5  ;;  %v5259_v11 = vand.u32 3, %v5258_v33 }
 0x397   : > { %v5357_v39 = vsel %vm9233_vm11, %v9047_v52, %v5354_v55 }
 0x398   : > { %v5233_v54 = vclz %v5802_v58  ;;  %6765 = vcosq.f32 %v5357_v39  ;;  %vm5264_vm4 = vcmp.eq.s32.totalorder %v5259_v11, 2  ;;  %vm5261_vm5 = vcmp.eq.s32.totalorder %v5259_v11, 0 }
 0x399   : > { %6767 = vsinq.f32 %v5357_v39  ;;  %vm5260_vm0 = vcmp.lt.s32.totalorder %v5259_v11, 2 }
 0x39a   : > { %v5803_v40 = vadd.s32 4294967294, %v5233_v54 }
 0x39c   : > { %vm5804_vm9 = vcmp.lt.s32.totalorder %v5803_v40, 0 }
 0x39d   : > { %v5236_v45 = vsel %vm5804_vm9, 0, %v5803_v40 }
 0x39e   : > { %v5237_v60 = vsub.s32 32, %v5236_v45  ;;  %v5241_v53 = vsub.s32 4294967266, %v5236_v45  ;;  %v5238_v50 = vshll.u32 %v5229_v13, %v5236_v45 }
 0x3a0   : > { %v5239_v61 = vshrl.u32 %v5221_v59, %v5237_v60  ;;  %v5242_v19 = vadd.s32 127, %v5241_v53 }
 0x3a2   : > { %v5240_v1 = vor.u32 %v5239_v61, %v5238_v50  ;;  %v5243_v48 = vshll.u32 %v5242_v19, 23  ;;  %v6766_v35 = vpop.eup %6765 }
 0x3a3   : > { %v6768_v21 = vpop.eup %6767  ;;  %v5369_v26 = vxor.u32 2147483648, %v6766_v35 }
 0x3a4   : > { %v5244_v37 = vor.u32 4788187, %v5243_v48  ;;  %v5247_v3 = vcvt.s32.f32 %v5240_v1  ;;  %v5366_v46 = vxor.u32 2147483648, %v6768_v21 }
 0x3a5   : > { %v5370_v51 = vsel %vm5368_vm15, %v5369_v26, %v6768_v21 }
 0x3a6   : > { %v5245_v24 = vand.u32 2147483647, %v5244_v37  ;;  %v5367_v22 = vsel %vm5365_vm13, %v6766_v35, %v5366_v46 }
 0x3a7   : > { %v5371_v36 = vsel %vm5364_vm2, %v5367_v22, %v5370_v51 }
 0x3a8   : > { %v5248_v43 = vmul.f32 %v5247_v3, %v5245_v24  ;;  %v5372_v57 = vsel %vm5361_vm3, nan, %v5371_v36 }
 0x3aa   : > { %v5249_v10 = vxor.u32 2147483648, %v5248_v43 }
 0x3ac   : > { %v5250_v27 = vsel %vm5167_vm12, %v5249_v10, %v5248_v43 }
 0x3ad   : > { %v5253_v17 = vsel %vm5166_vm14, %v9111_v42, %v5250_v27 }
 0x3ae   : > { %6769 = vcosq.f32 %v5253_v17 }
 0x3af   : > { %6771 = vsinq.f32 %v5253_v17 }
 0x3b8   : > { %v6770_v38 = vpop.eup %6769 }
 0x3b9   : > { %v6772_v34 = vpop.eup %6771  ;;  %v5265_v8 = vxor.u32 2147483648, %v6770_v38 }
 0x3ba   : > { %v5262_v41 = vxor.u32 2147483648, %v6772_v34 }
 0x3bb   : > { %v5266_v12 = vsel %vm5264_vm4, %v5265_v8, %v6772_v34 }
 0x3bc   : > { %v5263_v29 = vsel %vm5261_vm5, %v6770_v38, %v5262_v41 }
 0x3bd   : > { %v5267_v31 = vsel %vm5260_vm0, %v5263_v29, %v5266_v12 }
 0x3be   : > { %v5268_v7 = vsel %vm5257_vm1, nan, %v5267_v31 }
 0x3bf   : > { %v5851_v20 = vpack.c.bf16 %v5372_v57, %v5268_v7 }
 0x3c1   : > { %5859 = vst [vmem:[%s7994_s30 + $0x38] sm:$0xff] %v5851_v20  }
 0x3c2 PF: > { %s14_s17 = sadd.s32 1, %s6798_s17   ;;  %s9388_s15 = smov %s6794_s16 }
 0x3c3   : > { %p11_p5 = scmp.ge.s32.totalorder %s14_s17, 4   ;;  %s9389_s16 = smov %s9391_s18 }
 0x3c5   :  { %13 = sbr.rel (!%p11_p5) target bundleno = 2 (0x2), region = 77 }

</bundles_post_ra>
